<compile_context>
chip_gen: v5e
topology: v5e:2x2
jax: 0.10.0
libtpu: 0.0.40
codegen_flags: <defaults>
</compile_context>

<pallas_src>
import math

import jax
import jax.numpy as jnp
from jax import lax
from jax.experimental import pallas as pl
from jax.experimental.pallas import tpu as pltpu

NODE_NUM = 41
NODE_PAD = 48                 # 41 -> 48 (multiple of 8 sublanes), in-kernel only
NUM_FEATURES = 78
FEAT_PAD = 128                # 78 -> 128 lanes, in-kernel only
PLM_NUM = 1280
HIDDEN = 128
FUSED = 4 * HIDDEN            # 512
HALF_FC = FUSED // 2          # 256
FLAT = NODE_NUM * FUSED       # 20992
LN_EPS = 1e-5
ATTN_SCALE = 1.0 / math.sqrt(HIDDEN)
NEG_INF = -1e30


# ---------------------------------------------------------------------------
# Kernel 1: fused co-attention pipeline, grid over batch blocks
# ---------------------------------------------------------------------------
def _sdpa(q, k, v, key_valid):
    """Single-head scaled-dot-product attention on 48-row padded streams."""
    s = jnp.einsum('bqd,bkd->bqk', q, k,
                   preferred_element_type=jnp.float32) * ATTN_SCALE
    s = jnp.where(key_valid, s, NEG_INF)           # mask padded key rows
    s = s - jnp.max(s, axis=-1, keepdims=True)
    e = jnp.exp(s)
    a = e * pl.reciprocal(jnp.sum(e, axis=-1, keepdims=True), approx=True)
    return jnp.einsum('bqk,bkd->bqd', a, v, preferred_element_type=jnp.float32)


def coattention_kernel(plm_ref, node_ref,
                       wp_ref, bp_ref,             # plm_head (1280 -> 128), bf16
                       ln_g_ref, ln_b_ref,         # plm_layer_norm
                       wfold_ref, bfold_ref,       # graph stub + graph_head folded
                       sa_wqkv_ref, sa_bqkv_ref,   # SelfAttention fused QKV
                       sa_wo_ref, sa_bo_ref,       # SelfAttention output proj
                       co_wq_ref, co_bq_ref,       # CrossAttention Q proj
                       co_wkv_ref, co_bkv_ref,     # CrossAttention fused KV
                       co_wo_ref, co_bo_ref,       # CrossAttention output proj
                       out_ref, p_scr, n_scr):
    bb = out_ref.shape[0]

    # Stage both streams into zero-initialised (bb, 48, *) VMEM scratch so all
    # later reshapes are sublane-aligned.  Padded rows stay finite (zero), so
    # the masked-softmax columns they feed contribute exactly 0 downstream.
    p_scr[...] = jnp.zeros_like(p_scr)
    n_scr[...] = jnp.zeros_like(n_scr)

    # plm_head per sample on the unpadded 41-row block (bf16 MXU, f32 acc).
    # The wide 1280-feature plm is never copied/padded -- only its 128-wide
    # projection is scattered into the aligned scratch.
    for i in range(bb):                            # static unroll over the block
        p_scr[i, :NODE_NUM, :] = (
            jnp.dot(plm_ref[i].astype(jnp.bfloat16), wp_ref[...],
                    preferred_element_type=jnp.float32) + bp_ref[...])
    n_scr[:, :NODE_NUM, :NUM_FEATURES] = node_ref[...]

    # plm LayerNorm on the flattened, aligned slab.
    p = p_scr[...].reshape(bb * NODE_PAD, HIDDEN)
    mu = jnp.mean(p, axis=-1, keepdims=True)
    var = jnp.mean((p - mu) * (p - mu), axis=-1, keepdims=True)
    p = (p - mu) * lax.rsqrt(var + LN_EPS) * ln_g_ref[...] + ln_b_ref[...]

    # graphModel stub (78->78) + graph_head (78->128), folded in the wrapper.
    # One tall bf16 matmul (padded lanes are zero in input and weight).
    node = n_scr[...].reshape(bb * NODE_PAD, FEAT_PAD).astype(jnp.bfloat16)
    gh = (jnp.dot(node, wfold_ref[...], preferred_element_type=jnp.float32)
          + bfold_ref[...])

    p3 = p.reshape(bb, NODE_PAD, HIDDEN)
    gh3 = gh.reshape(bb, NODE_PAD, HIDDEN)

    key_valid = lax.broadcasted_iota(jnp.int32, (1, 1, NODE_PAD), 2) < NODE_NUM

    # SelfAttention on both streams in ONE call (2*bb batch) with a fused
    # (128,384) QKV projection.
    x2 = jnp.concatenate([p3, gh3], axis=0)                    # (2bb, 48, 128)
    xf = x2.reshape(2 * bb * NODE_PAD, HIDDEN)
    qkv = (jnp.dot(xf, sa_wqkv_ref[...], preferred_element_type=jnp.float32)
           + sa_bqkv_ref[...])
    q = qkv[:, 0 * HIDDEN:1 * HIDDEN].reshape(2 * bb, NODE_PAD, HIDDEN)
    k = qkv[:, 1 * HIDDEN:2 * HIDDEN].reshape(2 * bb, NODE_PAD, HIDDEN)
    v = qkv[:, 2 * HIDDEN:3 * HIDDEN].reshape(2 * bb, NODE_PAD, HIDDEN)
    o = _sdpa(q, k, v, key_valid)
    sa = (jnp.dot(o.reshape(2 * bb * NODE_PAD, HIDDEN), sa_wo_ref[...],
                  preferred_element_type=jnp.float32) + sa_bo_ref[...]
          ).reshape(2 * bb, NODE_PAD, HIDDEN)                  # [p_sa ; g_sa]

    # CrossAttention, both directions in ONE call:
    #   queries = [p_sa ; g_sa], keys/values = [g_sa ; p_sa], fused (128,256) KV.
    sa_f = sa.reshape(2 * bb * NODE_PAD, HIDDEN)
    q = (jnp.dot(sa_f, co_wq_ref[...], preferred_element_type=jnp.float32)
         + co_bq_ref[...]).reshape(2 * bb, NODE_PAD, HIDDEN)
    kv_src = jnp.concatenate([sa[bb:], sa[:bb]], axis=0)
    kv = (jnp.dot(kv_src.reshape(2 * bb * NODE_PAD, HIDDEN), co_wkv_ref[...],
                  preferred_element_type=jnp.float32) + co_bkv_ref[...])
    k = kv[:, 0:HIDDEN].reshape(2 * bb, NODE_PAD, HIDDEN)
    v = kv[:, HIDDEN:2 * HIDDEN].reshape(2 * bb, NODE_PAD, HIDDEN)
    o = _sdpa(q, k, v, key_valid)
    co = (jnp.dot(o.reshape(2 * bb * NODE_PAD, HIDDEN), co_wo_ref[...],
                  preferred_element_type=jnp.float32) + co_bo_ref[...]
          ).reshape(2 * bb, NODE_PAD, HIDDEN)

    # torch.cat([fused1, fused2, plm_output, graph_output], dim=2) as four
    # lane-aligned 128-wide slice stores of the 41 valid rows.
    out_ref[:, :, 0 * HIDDEN:1 * HIDDEN] = co[:bb, :NODE_NUM, :]
    out_ref[:, :, 1 * HIDDEN:2 * HIDDEN] = co[bb:, :NODE_NUM, :]
    out_ref[:, :, 2 * HIDDEN:3 * HIDDEN] = p3[:, :NODE_NUM, :]
    out_ref[:, :, 3 * HIDDEN:4 * HIDDEN] = gh3[:, :NODE_NUM, :]


def coattention_forward(plm_flat, node_flat, params, block_b=16):
    """plm_flat: (B*41, 1280), node_flat: (B*41, 78) -> fused (B, 41, 512)."""
    B = plm_flat.shape[0] // NODE_NUM
    # Keep >= 2 grid steps whenever B >= 2 so both v7x TensorCores get work.
    Bb = min(block_b, max(1, -(-B // 2)))
    n_b = -(-B // Bb)
    B_pad = n_b * Bb

    plm = plm_flat.reshape(B, NODE_NUM, PLM_NUM)          # free reshape, no pad
    node = node_flat.reshape(B, NODE_NUM, NUM_FEATURES)
    if B_pad != B:                                        # only batch remainder
        plm = jnp.pad(plm, ((0, B_pad - B), (0, 0), (0, 0)))
        node = jnp.pad(node, ((0, B_pad - B), (0, 0), (0, 0)))

    # Fold graphModel stub (78->78) and graph_head (78->128) into one affine
    # map (exact) and zero-pad its contracted dim to 128 lanes.
    w_fold = jnp.dot(params["wg"], params["wgr"])                    # (78, 128)
    b_fold = jnp.dot(params["bg"], params["wgr"]) + params["bgr"]    # (1, 128)
    w_fold = jnp.pad(w_fold, ((0, FEAT_PAD - NUM_FEATURES), (0, 0)))

    sa_w, sa_b = params["sa_w"], params["sa_b"]
    co_w, co_b = params["co_w"], params["co_b"]
    weights = [
        params["wp"].astype(jnp.bfloat16), params["bp"],
        params["ln_g"], params["ln_b"],
        w_fold.astype(jnp.bfloat16), b_fold,
        jnp.concatenate([sa_w[0], sa_w[1], sa_w[2]], axis=1),        # (128,384)
        jnp.concatenate([sa_b[0], sa_b[1], sa_b[2]])[None, :],       # (1,384)
        sa_w[3], sa_b[3][None, :],
        co_w[0], co_b[0][None, :],
        jnp.concatenate([co_w[1], co_w[2]], axis=1),                 # (128,256)
        jnp.concatenate([co_b[1], co_b[2]])[None, :],                # (1,256)
        co_w[3], co_b[3][None, :],
    ]

    def const_spec(arr):
        nd = arr.ndim
        return pl.BlockSpec(arr.shape, lambda b, nd=nd: (0,) * nd)

    in_specs = [
        pl.BlockSpec((Bb, NODE_NUM, PLM_NUM), lambda b: (b, 0, 0)),
        pl.BlockSpec((Bb, NODE_NUM, NUM_FEATURES), lambda b: (b, 0, 0)),
    ] + [const_spec(w) for w in weights]

    fused = pl.pallas_call(
        coattention_kernel,
        out_shape=jax.ShapeDtypeStruct((B_pad, NODE_NUM, FUSED), jnp.float32),
        grid_spec=pltpu.PrefetchScalarGridSpec(
            num_scalar_prefetch=0,
            grid=(n_b,),
            in_specs=in_specs,
            out_specs=pl.BlockSpec((Bb, NODE_NUM, FUSED), lambda b: (b, 0, 0)),
            scratch_shapes=[
                pltpu.VMEM((Bb, NODE_PAD, HIDDEN), jnp.float32),
                pltpu.VMEM((Bb, NODE_PAD, FEAT_PAD), jnp.float32),
            ]),
        compiler_params=pltpu.CompilerParams(
            dimension_semantics=("parallel",),
            vmem_limit_bytes=48 * 1024 * 1024),
    )(plm, node, *weights)

    if B_pad != B:
        fused = fused[:B]
    return fused


# ---------------------------------------------------------------------------
# Kernel 2: FC head.  Grid = (2 parallel column halves of fc_w1, 4-step K
# reduction over the 20992 features).  fc_w1 streamed as bf16.
# ---------------------------------------------------------------------------
def fc_kernel(x_ref, w1_ref, b1_ref, w2_ref, out_ref, h1_acc):
    k = pl.program_id(1)

    @pl.when(k == 0)
    def _():
        h1_acc[...] = jnp.zeros_like(h1_acc)

    h1_acc[...] += jnp.dot(x_ref[...].astype(jnp.bfloat16), w1_ref[...],
                           preferred_element_type=jnp.float32)

    @pl.when(k == pl.num_programs(1) - 1)
    def _():
        h1 = jnp.maximum(h1_acc[...] + b1_ref[...], 0.0)        # (B, 256) half
        out_ref[...] = jnp.dot(h1, w2_ref[...],
                               preferred_element_type=jnp.float32
                               )[None].astype(out_ref.dtype)


def fc_forward(x_flat, params):
    """x_flat: (B, 20992) -> logits (B, 2)."""
    B = x_flat.shape[0]
    TK = 41 * 128                 # 5248: lane-aligned, FLAT // TK == 4 steps
    n_k = FLAT // TK
    # bf16 fc_w1: the FC head is weight-streaming bound at small B, so halving
    # the ~41 MiB stream ~halves its wall time (f32 accumulation kept).
    w1 = params["fc_w1"].astype(jnp.bfloat16)
    # TODO(synk): for B >~ 256 add a batch grid axis so the (B, TK) x-tiles and
    # the (B, 256) accumulator stay bounded in VMEM.

    part = pl.pallas_call(
        fc_kernel,
        out_shape=jax.ShapeDtypeStruct((2, B, HIDDEN), jnp.float32),
        grid_spec=pltpu.PrefetchScalarGridSpec(
            num_scalar_prefetch=0,
            grid=(2, n_k),
            in_specs=[
                pl.BlockSpec((B, TK), lambda j, k: (0, k)),
                pl.BlockSpec((TK, HALF_FC), lambda j, k: (k, j)),
                pl.BlockSpec((1, HALF_FC), lambda j, k: (0, j)),
                pl.BlockSpec((HALF_FC, HIDDEN), lambda j, k: (j, 0)),
            ],
            out_specs=pl.BlockSpec((1, B, HIDDEN), lambda j, k: (j, 0, 0)),
            scratch_shapes=[pltpu.VMEM((B, HALF_FC), jnp.float32)],
        ),
        compiler_params=pltpu.CompilerParams(
            # parallel column halves keep both v7x TensorCores busy; explicit
            # 32 MiB limit documents/covers v5e's 16 MiB scoped default.
            dimension_semantics=("parallel", "arbitrary"),
            vmem_limit_bytes=32 * 1024 * 1024),
    )(x_flat, w1, params["fc_b1"], params["fc_w2"])

    # Tiny exact epilogue: h1@w2 = relu(h1_lo)@w2[:256] + relu(h1_hi)@w2[256:].
    h2 = jnp.maximum(part[0] + part[1] + params["fc_b2"], 0.0)   # (B, 128)
    return jnp.dot(h2, params["fc_w3"]) + params["fc_b3"]        # (B, 2)


# ---------------------------------------------------------------------------
# Parameter init (deterministic, synthetic) + full forward
# ---------------------------------------------------------------------------
def init_params(key):
    ks = jax.random.split(key, 16)

    def lin(k, fan_in, fan_out, scale=0.02):
        return jax.random.normal(k, (fan_in, fan_out), jnp.float32) * scale

    params = {
        # graphModel stub (78 -> 78)
        "wg": lin(ks[0], NUM_FEATURES, NUM_FEATURES),
        "bg": jnp.zeros((1, NUM_FEATURES), jnp.float32),
        # plm_head (1280 -> 128), bias init to 0 as in init_weights()
        "wp": lin(ks[1], PLM_NUM, HIDDEN),
        "bp": jnp.zeros((1, HIDDEN), jnp.float32),
        # plm_layer_norm
        "ln_g": jnp.ones((1, HIDDEN), jnp.float32),
        "ln_b": jnp.zeros((1, HIDDEN), jnp.float32),
        # graph_head (78 -> 128)
        "wgr": lin(ks[2], NUM_FEATURES, HIDDEN),
        "bgr": jax.random.normal(ks[3], (1, HIDDEN), jnp.float32) * 0.02,
        # SelfAttention: Q, K, V, O projections packed as (4, H, H) / (4, H)
        "sa_w": jax.random.normal(ks[4], (4, HIDDEN, HIDDEN), jnp.float32) * 0.02,
        "sa_b": jnp.zeros((4, HIDDEN), jnp.float32),
        # CrossAttention (shared for both directions)
        "co_w": jax.random.normal(ks[5], (4, HIDDEN, HIDDEN), jnp.float32) * 0.02,
        "co_b": jnp.zeros((4, HIDDEN), jnp.float32),
        # fc head
        "fc_w1": jax.random.normal(ks[6], (FLAT, FUSED), jnp.float32) * 0.01,
        "fc_b1": jnp.zeros((1, FUSED), jnp.float32),
        "fc_w2": jax.random.normal(ks[7], (FUSED, HIDDEN), jnp.float32) * 0.02,
        "fc_b2": jnp.zeros((1, HIDDEN), jnp.float32),
        "fc_w3": jax.random.normal(ks[8], (HIDDEN, 2), jnp.float32) * 0.02,
        "fc_b3": jnp.zeros((1, 2), jnp.float32),
    }
    return params


@jax.jit
def coattention_model_forward(plm_flat, node_flat, params):
    fused = coattention_forward(plm_flat, node_flat, params)   # (B, 41, 512)
    flat = fused.reshape(fused.shape[0], FLAT)                  # free reshape
    return fc_forward(flat, params)                             # (B, 2)


if __name__ == "__main__":
    key = jax.random.PRNGKey(0)
    k_params, k_plm, k_node = jax.random.split(key, 3)

    B = 2
    params = init_params(k_params)
    # batched_graphs.ndata['plm_features'] : (B*41, 1280)
    plm_flat = jax.random.normal(k_plm, (B * NODE_NUM, PLM_NUM), jnp.float32)
    # batched_graphs.ndata['feat'] : (B*41, 78)
    node_flat = jax.random.normal(k_node, (B * NODE_NUM, NUM_FEATURES), jnp.float32)

    logits = coattention_model_forward(plm_flat, node_flat, params)
    jax.block_until_ready(logits)
    assert logits.shape == (B, 2)
    assert bool(jnp.all(jnp.isfinite(logits)))
    print("KERNEL_OK")
</pallas_src>

<mosaic_0001>
module attributes {stable_mosaic.version = 11 : i64} {
  func.func @fc_kernel(%arg0: i32, %arg1: i32, %arg2: memref<2x5248xf32, #tpu.memory_space<vmem>>, %arg3: memref<5248x256xbf16, #tpu.memory_space<vmem>>, %arg4: memref<1x256xf32, #tpu.memory_space<vmem>>, %arg5: memref<256x128xf32, #tpu.memory_space<vmem>>, %arg6: memref<1x2x128xf32, #tpu.memory_space<vmem>>, %arg7: memref<2x256xf32, #tpu.memory_space<vmem>>) attributes {dimension_semantics = [#tpu.dimension_semantics<parallel>, #tpu.dimension_semantics<arbitrary>], iteration_bounds = array<i64: 2, 4>, scalar_prefetch = 0 : i64, scratch_operands = 1 : i64, tpu.core_type = #tpu.core_type<tc>, window_params = [{transform_indices = @transform_0, window_bounds = array<i64: 2, 5248>}, {transform_indices = @transform_1, window_bounds = array<i64: 5248, 256>}, {transform_indices = @transform_2, window_bounds = array<i64: 1, 256>}, {transform_indices = @transform_3, window_bounds = array<i64: 256, 128>}, {transform_indices = @transform_4, window_bounds = array<i64: 1, 2, 128>}]} {
    %c0_i32 = arith.constant 0 : i32
    %0 = arith.cmpi eq, %arg1, %c0_i32 : i32
    %1 = arith.extui %0 : i1 to i32
    %c0_i32_0 = arith.constant 0 : i32
    %2 = arith.cmpi ne, %1, %c0_i32_0 : i32
    scf.if %2 {
      %cst_9 = arith.constant 0.000000e+00 : f32
      %13 = vector.broadcast %cst_9 : f32 to vector<2x256xf32>
      %c0_10 = arith.constant 0 : index
      %c0_11 = arith.constant 0 : index
      %14 = vector.load %arg7[%c0_10, %c0_11] : memref<2x256xf32, #tpu.memory_space<vmem>>, vector<2x256xf32>
      tpu.vector_store %arg7[%c0_10, %c0_11], %13 {strides = array<i32>} : memref<2x256xf32, #tpu.memory_space<vmem>>, vector<2x256xf32>,
    } else {
    }
    %c0 = arith.constant 0 : index
    %c0_1 = arith.constant 0 : index
    %3 = vector.load %arg7[%c0, %c0_1] : memref<2x256xf32, #tpu.memory_space<vmem>>, vector<2x256xf32>
    %c0_2 = arith.constant 0 : index
    %c0_3 = arith.constant 0 : index
    %4 = vector.load %arg2[%c0_2, %c0_3] : memref<2x5248xf32, #tpu.memory_space<vmem>>, vector<2x5248xf32>
    %5 = arith.truncf %4 : vector<2x5248xf32> to vector<2x5248xbf16>
    %c0_4 = arith.constant 0 : index
    %c0_5 = arith.constant 0 : index
    %6 = vector.load %arg3[%c0_4, %c0_5] : memref<5248x256xbf16, #tpu.memory_space<vmem>>, vector<5248x256xbf16>
    %cst = arith.constant dense<0.000000e+00> : vector<2x256xf32>
    %7 = tpu.matmul %5, %6, %cst {dimension_numbers = #tpu.dot_dimension_numbers<[1], [0], [0], [1], [0, 0, 1, 1], [], []>} : vector<2x5248xbf16>, vector<5248x256xbf16>, vector<2x256xf32> -> vector<2x256xf32>
    %8 = arith.addf %3, %7 : vector<2x256xf32>
    %c0_6 = arith.constant 0 : index
    %c0_7 = arith.constant 0 : index
    %9 = vector.load %arg7[%c0_6, %c0_7] : memref<2x256xf32, #tpu.memory_space<vmem>>, vector<2x256xf32>
    tpu.vector_store %arg7[%c0_6, %c0_7], %8 {strides = array<i32>} : memref<2x256xf32, #tpu.memory_space<vmem>>, vector<2x256xf32>,
    %c3_i32 = arith.constant 3 : i32
    %10 = arith.cmpi eq, %arg1, %c3_i32 : i32
    %11 = arith.extui %10 : i1 to i32
    %c0_i32_8 = arith.constant 0 : i32
    %12 = arith.cmpi ne, %11, %c0_i32_8 : i32
    scf.if %12 {
      %c0_9 = arith.constant 0 : index
      %c0_10 = arith.constant 0 : index
      %13 = vector.load %arg7[%c0_9, %c0_10] : memref<2x256xf32, #tpu.memory_space<vmem>>, vector<2x256xf32>
      %c0_11 = arith.constant 0 : index
      %c0_12 = arith.constant 0 : index
      %14 = vector.load %arg4[%c0_11, %c0_12] : memref<1x256xf32, #tpu.memory_space<vmem>>, vector<1x256xf32>
      %15 = vector.broadcast %14 : vector<1x256xf32> to vector<2x256xf32>
      %16 = arith.addf %13, %15 : vector<2x256xf32>
      %cst_13 = arith.constant 0.000000e+00 : f32
      %17 = vector.broadcast %cst_13 : f32 to vector<2x256xf32>
      %18 = arith.maximumf %16, %17 : vector<2x256xf32>
      %c0_14 = arith.constant 0 : index
      %c0_15 = arith.constant 0 : index
      %19 = vector.load %arg5[%c0_14, %c0_15] : memref<256x128xf32, #tpu.memory_space<vmem>>, vector<256x128xf32>
      %cst_16 = arith.constant dense<0.000000e+00> : vector<2x128xf32>
      %20 = tpu.matmul %18, %19, %cst_16 {dimension_numbers = #tpu.dot_dimension_numbers<[1], [0], [0], [1], [0, 0, 1, 1], [], []>} : vector<2x256xf32>, vector<256x128xf32>, vector<2x128xf32> -> vector<2x128xf32>
      %21 = vector.shape_cast %20 : vector<2x128xf32> to vector<1x2x128xf32>
      %c0_17 = arith.constant 0 : index
      %c0_18 = arith.constant 0 : index
      %c0_19 = arith.constant 0 : index
      %22 = vector.load %arg6[%c0_17, %c0_18, %c0_19] : memref<1x2x128xf32, #tpu.memory_space<vmem>>, vector<1x2x128xf32>
      tpu.vector_store %arg6[%c0_17, %c0_18, %c0_19], %21 {strides = array<i32>} : memref<1x2x128xf32, #tpu.memory_space<vmem>>, vector<1x2x128xf32>,
    } else {
    }
    return
  }
  func.func @transform_0(%arg0: i32, %arg1: i32) -> (i32, i32) {
    %c0_i32 = arith.constant 0 : i32
    %c0_i32_0 = arith.constant 0 : i32
    return %c0_i32, %arg1 : i32, i32
  }
  func.func @transform_1(%arg0: i32, %arg1: i32) -> (i32, i32) {
    %c0_i32 = arith.constant 0 : i32
    return %arg1, %arg0 : i32, i32
  }
  func.func @transform_2(%arg0: i32, %arg1: i32) -> (i32, i32) {
    %c0_i32 = arith.constant 0 : i32
    %c0_i32_0 = arith.constant 0 : i32
    return %c0_i32, %arg0 : i32, i32
  }
  func.func @transform_3(%arg0: i32, %arg1: i32) -> (i32, i32) {
    %c0_i32 = arith.constant 0 : i32
    %c0_i32_0 = arith.constant 0 : i32
    return %arg0, %c0_i32 : i32, i32
  }
  func.func @transform_4(%arg0: i32, %arg1: i32) -> (i32, i32, i32) {
    %c0_i32 = arith.constant 0 : i32
    %c0_i32_0 = arith.constant 0 : i32
    %c0_i32_1 = arith.constant 0 : i32
    return %arg0, %c0_i32, %c0_i32_0 : i32, i32, i32
  }
}

module attributes {stable_mosaic.version = 11 : i64} {
  func.func @coattention_kernel(%arg0: i32, %arg1: memref<1x41x1280xf32, #tpu.memory_space<vmem>>, %arg2: memref<1x41x78xf32, #tpu.memory_space<vmem>>, %arg3: memref<1280x128xbf16, #tpu.memory_space<vmem>>, %arg4: memref<1x128xf32, #tpu.memory_space<vmem>>, %arg5: memref<1x128xf32, #tpu.memory_space<vmem>>, %arg6: memref<1x128xf32, #tpu.memory_space<vmem>>, %arg7: memref<128x128xbf16, #tpu.memory_space<vmem>>, %arg8: memref<1x128xf32, #tpu.memory_space<vmem>>, %arg9: memref<128x384xf32, #tpu.memory_space<vmem>>, %arg10: memref<1x384xf32, #tpu.memory_space<vmem>>, %arg11: memref<128x128xf32, #tpu.memory_space<vmem>>, %arg12: memref<1x128xf32, #tpu.memory_space<vmem>>, %arg13: memref<128x128xf32, #tpu.memory_space<vmem>>, %arg14: memref<1x128xf32, #tpu.memory_space<vmem>>, %arg15: memref<128x256xf32, #tpu.memory_space<vmem>>, %arg16: memref<1x256xf32, #tpu.memory_space<vmem>>, %arg17: memref<128x128xf32, #tpu.memory_space<vmem>>, %arg18: memref<1x128xf32, #tpu.memory_space<vmem>>, %arg19: memref<1x41x512xf32, #tpu.memory_space<vmem>>, %arg20: memref<1x48x128xf32, #tpu.memory_space<vmem>>, %arg21: memref<1x48x128xf32, #tpu.memory_space<vmem>>) attributes {dimension_semantics = [#tpu.dimension_semantics<parallel>], iteration_bounds = array<i64: 2>, scalar_prefetch = 0 : i64, scratch_operands = 2 : i64, tpu.core_type = #tpu.core_type<tc>, window_params = [{transform_indices = @transform_0, window_bounds = array<i64: 1, 41, 1280>}, {transform_indices = @transform_1, window_bounds = array<i64: 1, 41, 78>}, {pipeline_mode = #tpu.pipeline_mode<synchronous>, transform_indices = @transform_2, window_bounds = array<i64: 1280, 128>}, {pipeline_mode = #tpu.pipeline_mode<synchronous>, transform_indices = @transform_3, window_bounds = array<i64: 1, 128>}, {pipeline_mode = #tpu.pipeline_mode<synchronous>, transform_indices = @transform_4, window_bounds = array<i64: 1, 128>}, {pipeline_mode = #tpu.pipeline_mode<synchronous>, transform_indices = @transform_5, window_bounds = array<i64: 1, 128>}, {pipeline_mode = #tpu.pipeline_mode<synchronous>, transform_indices = @transform_6, window_bounds = array<i64: 128, 128>}, {pipeline_mode = #tpu.pipeline_mode<synchronous>, transform_indices = @transform_7, window_bounds = array<i64: 1, 128>}, {pipeline_mode = #tpu.pipeline_mode<synchronous>, transform_indices = @transform_8, window_bounds = array<i64: 128, 384>}, {pipeline_mode = #tpu.pipeline_mode<synchronous>, transform_indices = @transform_9, window_bounds = array<i64: 1, 384>}, {pipeline_mode = #tpu.pipeline_mode<synchronous>, transform_indices = @transform_10, window_bounds = array<i64: 128, 128>}, {pipeline_mode = #tpu.pipeline_mode<synchronous>, transform_indices = @transform_11, window_bounds = array<i64: 1, 128>}, {pipeline_mode = #tpu.pipeline_mode<synchronous>, transform_indices = @transform_12, window_bounds = array<i64: 128, 128>}, {pipeline_mode = #tpu.pipeline_mode<synchronous>, transform_indices = @transform_13, window_bounds = array<i64: 1, 128>}, {pipeline_mode = #tpu.pipeline_mode<synchronous>, transform_indices = @transform_14, window_bounds = array<i64: 128, 256>}, {pipeline_mode = #tpu.pipeline_mode<synchronous>, transform_indices = @transform_15, window_bounds = array<i64: 1, 256>}, {pipeline_mode = #tpu.pipeline_mode<synchronous>, transform_indices = @transform_16, window_bounds = array<i64: 128, 128>}, {pipeline_mode = #tpu.pipeline_mode<synchronous>, transform_indices = @transform_17, window_bounds = array<i64: 1, 128>}, {transform_indices = @transform_18, window_bounds = array<i64: 1, 41, 512>}]} {
    %cst = arith.constant 0.000000e+00 : f32
    %0 = vector.broadcast %cst : f32 to vector<1x48x128xf32>
    %c0 = arith.constant 0 : index
    %c0_0 = arith.constant 0 : index
    %c0_1 = arith.constant 0 : index
    %1 = vector.load %arg20[%c0, %c0_0, %c0_1] : memref<1x48x128xf32, #tpu.memory_space<vmem>>, vector<1x48x128xf32>
    tpu.vector_store %arg20[%c0, %c0_0, %c0_1], %0 {strides = array<i32>} : memref<1x48x128xf32, #tpu.memory_space<vmem>>, vector<1x48x128xf32>,
    %cst_2 = arith.constant 0.000000e+00 : f32
    %2 = vector.broadcast %cst_2 : f32 to vector<1x48x128xf32>
    %c0_3 = arith.constant 0 : index
    %c0_4 = arith.constant 0 : index
    %c0_5 = arith.constant 0 : index
    %3 = vector.load %arg21[%c0_3, %c0_4, %c0_5] : memref<1x48x128xf32, #tpu.memory_space<vmem>>, vector<1x48x128xf32>
    tpu.vector_store %arg21[%c0_3, %c0_4, %c0_5], %2 {strides = array<i32>} : memref<1x48x128xf32, #tpu.memory_space<vmem>>, vector<1x48x128xf32>,
    %c0_6 = arith.constant 0 : index
    %c0_7 = arith.constant 0 : index
    %c0_8 = arith.constant 0 : index
    %4 = vector.load %arg1[%c0_6, %c0_7, %c0_8] : memref<1x41x1280xf32, #tpu.memory_space<vmem>>, vector<1x41x1280xf32>
    %5 = vector.shape_cast %4 : vector<1x41x1280xf32> to vector<41x1280xf32>
    %6 = arith.truncf %5 : vector<41x1280xf32> to vector<41x1280xbf16>
    %c0_9 = arith.constant 0 : index
    %c0_10 = arith.constant 0 : index
    %7 = vector.load %arg3[%c0_9, %c0_10] : memref<1280x128xbf16, #tpu.memory_space<vmem>>, vector<1280x128xbf16>
    %cst_11 = arith.constant dense<0.000000e+00> : vector<41x128xf32>
    %8 = tpu.matmul %6, %7, %cst_11 {dimension_numbers = #tpu.dot_dimension_numbers<[1], [0], [0], [1], [0, 0, 1, 1], [], []>} : vector<41x1280xbf16>, vector<1280x128xbf16>, vector<41x128xf32> -> vector<41x128xf32>
    %c0_12 = arith.constant 0 : index
    %c0_13 = arith.constant 0 : index
    %9 = vector.load %arg4[%c0_12, %c0_13] : memref<1x128xf32, #tpu.memory_space<vmem>>, vector<1x128xf32>
    %10 = vector.broadcast %9 : vector<1x128xf32> to vector<41x128xf32>
    %11 = arith.addf %8, %10 : vector<41x128xf32>
    %c0_14 = arith.constant 0 : index
    %c0_15 = arith.constant 0 : index
    %c0_16 = arith.constant 0 : index
    %12 = vector.load %arg20[%c0_14, %c0_15, %c0_16] : memref<1x48x128xf32, #tpu.memory_space<vmem>>, vector<1x41x128xf32>
    %13 = vector.shape_cast %12 : vector<1x41x128xf32> to vector<41x128xf32>
    %14 = vector.shape_cast %11 : vector<41x128xf32> to vector<1x41x128xf32>
    tpu.vector_store %arg20[%c0_14, %c0_15, %c0_16], %14 {strides = array<i32>} : memref<1x48x128xf32, #tpu.memory_space<vmem>>, vector<1x41x128xf32>,
    %c0_17 = arith.constant 0 : index
    %c0_18 = arith.constant 0 : index
    %c0_19 = arith.constant 0 : index
    %15 = vector.load %arg2[%c0_17, %c0_18, %c0_19] : memref<1x41x78xf32, #tpu.memory_space<vmem>>, vector<1x41x78xf32>
    %c0_20 = arith.constant 0 : index
    %c0_21 = arith.constant 0 : index
    %c0_22 = arith.constant 0 : index
    %16 = vector.load %arg21[%c0_20, %c0_21, %c0_22] : memref<1x48x128xf32, #tpu.memory_space<vmem>>, vector<1x41x78xf32>
    tpu.vector_store %arg21[%c0_20, %c0_21, %c0_22], %15 {strides = array<i32>} : memref<1x48x128xf32, #tpu.memory_space<vmem>>, vector<1x41x78xf32>,
    %c0_23 = arith.constant 0 : index
    %c0_24 = arith.constant 0 : index
    %c0_25 = arith.constant 0 : index
    %17 = vector.load %arg20[%c0_23, %c0_24, %c0_25] : memref<1x48x128xf32, #tpu.memory_space<vmem>>, vector<1x48x128xf32>
    %18 = vector.shape_cast %17 : vector<1x48x128xf32> to vector<48x128xf32>
    %cst_26 = arith.constant dense<0.000000e+00> : vector<48xf32>
    %19 = vector.multi_reduction <add>, %18, %cst_26 [1] : vector<48x128xf32> to vector<48xf32>
    %20 = vector.shape_cast %19 : vector<48xf32> to vector<48x1xf32>
    %cst_27 = arith.constant 1.280000e+02 : f32
    %21 = vector.broadcast %cst_27 : f32 to vector<48x1xf32>
    %22 = arith.divf %20, %21 : vector<48x1xf32>
    %23 = vector.broadcast %22 : vector<48x1xf32> to vector<48x128xf32>
    %24 = arith.subf %18, %23 : vector<48x128xf32>
    %25 = vector.broadcast %22 : vector<48x1xf32> to vector<48x128xf32>
    %26 = arith.subf %18, %25 : vector<48x128xf32>
    %27 = arith.mulf %24, %26 : vector<48x128xf32>
    %cst_28 = arith.constant dense<0.000000e+00> : vector<48xf32>
    %28 = vector.multi_reduction <add>, %27, %cst_28 [1] : vector<48x128xf32> to vector<48xf32>
    %29 = vector.shape_cast %28 : vector<48xf32> to vector<48x1xf32>
    %cst_29 = arith.constant 1.280000e+02 : f32
    %30 = vector.broadcast %cst_29 : f32 to vector<48x1xf32>
    %31 = arith.divf %29, %30 : vector<48x1xf32>
    %32 = vector.broadcast %22 : vector<48x1xf32> to vector<48x128xf32>
    %33 = arith.subf %18, %32 : vector<48x128xf32>
    %cst_30 = arith.constant 9.99999974E-6 : f32
    %34 = vector.broadcast %cst_30 : f32 to vector<48x1xf32>
    %35 = arith.addf %31, %34 : vector<48x1xf32>
    %36 = math.rsqrt %35 : vector<48x1xf32>
    %37 = vector.broadcast %36 : vector<48x1xf32> to vector<48x128xf32>
    %38 = arith.mulf %33, %37 : vector<48x128xf32>
    %c0_31 = arith.constant 0 : index
    %c0_32 = arith.constant 0 : index
    %39 = vector.load %arg5[%c0_31, %c0_32] : memref<1x128xf32, #tpu.memory_space<vmem>>, vector<1x128xf32>
    %40 = vector.broadcast %39 : vector<1x128xf32> to vector<48x128xf32>
    %41 = arith.mulf %38, %40 : vector<48x128xf32>
    %c0_33 = arith.constant 0 : index
    %c0_34 = arith.constant 0 : index
    %42 = vector.load %arg6[%c0_33, %c0_34] : memref<1x128xf32, #tpu.memory_space<vmem>>, vector<1x128xf32>
    %43 = vector.broadcast %42 : vector<1x128xf32> to vector<48x128xf32>
    %44 = arith.addf %41, %43 : vector<48x128xf32>
    %c0_35 = arith.constant 0 : index
    %c0_36 = arith.constant 0 : index
    %c0_37 = arith.constant 0 : index
    %45 = vector.load %arg21[%c0_35, %c0_36, %c0_37] : memref<1x48x128xf32, #tpu.memory_space<vmem>>, vector<1x48x128xf32>
    %46 = vector.shape_cast %45 : vector<1x48x128xf32> to vector<48x128xf32>
    %47 = arith.truncf %46 : vector<48x128xf32> to vector<48x128xbf16>
    %c0_38 = arith.constant 0 : index
    %c0_39 = arith.constant 0 : index
    %48 = vector.load %arg7[%c0_38, %c0_39] : memref<128x128xbf16, #tpu.memory_space<vmem>>, vector<128x128xbf16>
    %cst_40 = arith.constant dense<0.000000e+00> : vector<48x128xf32>
    %49 = tpu.matmul %47, %48, %cst_40 {dimension_numbers = #tpu.dot_dimension_numbers<[1], [0], [0], [1], [0, 0, 1, 1], [], []>} : vector<48x128xbf16>, vector<128x128xbf16>, vector<48x128xf32> -> vector<48x128xf32>
    %c0_41 = arith.constant 0 : index
    %c0_42 = arith.constant 0 : index
    %50 = vector.load %arg8[%c0_41, %c0_42] : memref<1x128xf32, #tpu.memory_space<vmem>>, vector<1x128xf32>
    %51 = vector.broadcast %50 : vector<1x128xf32> to vector<48x128xf32>
    %52 = arith.addf %49, %51 : vector<48x128xf32>
    %53 = vector.shape_cast %44 : vector<48x128xf32> to vector<1x48x128xf32>
    %54 = vector.shape_cast %52 : vector<48x128xf32> to vector<1x48x128xf32>
    %55 = tpu.iota {dimensions = array<i32: 2>} : vector<1x1x48xi32>
    %c41_i32 = arith.constant 41 : i32
    %56 = vector.broadcast %c41_i32 : i32 to vector<1x1x48xi32>
    %57 = arith.cmpi slt, %55, %56 : vector<1x1x48xi32>
    %58 = tpu.concatenate %53, %54 in 0 : vector<1x48x128xf32>, vector<1x48x128xf32> -> vector<2x48x128xf32>
    %59 = vector.shape_cast %58 : vector<2x48x128xf32> to vector<96x128xf32>
    %c0_43 = arith.constant 0 : index
    %c0_44 = arith.constant 0 : index
    %60 = vector.load %arg9[%c0_43, %c0_44] : memref<128x384xf32, #tpu.memory_space<vmem>>, vector<128x384xf32>
    %cst_45 = arith.constant dense<0.000000e+00> : vector<96x384xf32>
    %61 = tpu.matmul %59, %60, %cst_45 {dimension_numbers = #tpu.dot_dimension_numbers<[1], [0], [0], [1], [0, 0, 1, 1], [], []>} : vector<96x128xf32>, vector<128x384xf32>, vector<96x384xf32> -> vector<96x384xf32>
    %c0_46 = arith.constant 0 : index
    %c0_47 = arith.constant 0 : index
    %62 = vector.load %arg10[%c0_46, %c0_47] : memref<1x384xf32, #tpu.memory_space<vmem>>, vector<1x384xf32>
    %63 = vector.broadcast %62 : vector<1x384xf32> to vector<96x384xf32>
    %64 = arith.addf %61, %63 : vector<96x384xf32>
    %65 = vector.extract_strided_slice %64 {offsets = [0, 0], sizes = [96, 128], strides = [1, 1]} : vector<96x384xf32> to vector<96x128xf32>
    %66 = vector.shape_cast %65 : vector<96x128xf32> to vector<2x48x128xf32>
    %67 = vector.extract_strided_slice %64 {offsets = [0, 128], sizes = [96, 128], strides = [1, 1]} : vector<96x384xf32> to vector<96x128xf32>
    %68 = vector.shape_cast %67 : vector<96x128xf32> to vector<2x48x128xf32>
    %69 = vector.extract_strided_slice %64 {offsets = [0, 256], sizes = [96, 128], strides = [1, 1]} : vector<96x384xf32> to vector<96x128xf32>
    %70 = vector.shape_cast %69 : vector<96x128xf32> to vector<2x48x128xf32>
    "tpu.trace_start"() <{level = 10 : i32, message = "bqd,bkd->bqk"}> : () -> ()
    %cst_48 = arith.constant dense<0.000000e+00> : vector<2x48x48xf32>
    %71 = tpu.matmul %66, %68, %cst_48 {dimension_numbers = #tpu.dot_dimension_numbers<[2], [2], [1], [1], [0, 0, 0, 1, 1, 1], [0], [0]>} : vector<2x48x128xf32>, vector<2x48x128xf32>, vector<2x48x48xf32> -> vector<2x48x48xf32>
    "tpu.trace_stop"() : () -> ()
    %cst_49 = arith.constant 0.0883883461 : f32
    %72 = vector.broadcast %cst_49 : f32 to vector<2x48x48xf32>
    %73 = arith.mulf %71, %72 : vector<2x48x48xf32>
    %cst_50 = arith.constant -1.000000e+30 : f32
    %74 = vector.shape_cast %57 : vector<1x1x48xi1> to vector<1x1x48xi1>
    %75 = vector.broadcast %74 : vector<1x1x48xi1> to vector<2x48x48xi1>
    %76 = vector.broadcast %cst_50 : f32 to vector<2x48x48xf32>
    %77 = arith.select %75, %73, %76 : vector<2x48x48xi1>, vector<2x48x48xf32>
    %cst_51 = arith.constant dense<0xFF800000> : vector<2x48xf32>
    %78 = vector.multi_reduction <maximumf>, %77, %cst_51 [2] : vector<2x48x48xf32> to vector<2x48xf32>
    %79 = vector.shape_cast %78 : vector<2x48xf32> to vector<2x48x1xf32>
    %80 = vector.broadcast %79 : vector<2x48x1xf32> to vector<2x48x48xf32>
    %81 = arith.subf %77, %80 : vector<2x48x48xf32>
    %82 = math.exp %81 : vector<2x48x48xf32>
    %cst_52 = arith.constant dense<0.000000e+00> : vector<2x48xf32>
    %83 = vector.multi_reduction <add>, %82, %cst_52 [2] : vector<2x48x48xf32> to vector<2x48xf32>
    %84 = vector.shape_cast %83 : vector<2x48xf32> to vector<2x48x1xf32>
    %85 = tpu.reciprocal %84 {approx = true} : vector<2x48x1xf32> -> vector<2x48x1xf32>
    %86 = vector.broadcast %85 : vector<2x48x1xf32> to vector<2x48x48xf32>
    %87 = arith.mulf %82, %86 : vector<2x48x48xf32>
    "tpu.trace_start"() <{level = 10 : i32, message = "bqk,bkd->bqd"}> : () -> ()
    %cst_53 = arith.constant dense<0.000000e+00> : vector<2x48x128xf32>
    %88 = tpu.matmul %87, %70, %cst_53 {dimension_numbers = #tpu.dot_dimension_numbers<[2], [1], [1], [2], [0, 0, 0, 1, 1, 2], [0], [0]>} : vector<2x48x48xf32>, vector<2x48x128xf32>, vector<2x48x128xf32> -> vector<2x48x128xf32>
    "tpu.trace_stop"() : () -> ()
    %89 = vector.shape_cast %88 : vector<2x48x128xf32> to vector<96x128xf32>
    %c0_54 = arith.constant 0 : index
    %c0_55 = arith.constant 0 : index
    %90 = vector.load %arg11[%c0_54, %c0_55] : memref<128x128xf32, #tpu.memory_space<vmem>>, vector<128x128xf32>
    %cst_56 = arith.constant dense<0.000000e+00> : vector<96x128xf32>
    %91 = tpu.matmul %89, %90, %cst_56 {dimension_numbers = #tpu.dot_dimension_numbers<[1], [0], [0], [1], [0, 0, 1, 1], [], []>} : vector<96x128xf32>, vector<128x128xf32>, vector<96x128xf32> -> vector<96x128xf32>
    %c0_57 = arith.constant 0 : index
    %c0_58 = arith.constant 0 : index
    %92 = vector.load %arg12[%c0_57, %c0_58] : memref<1x128xf32, #tpu.memory_space<vmem>>, vector<1x128xf32>
    %93 = vector.broadcast %92 : vector<1x128xf32> to vector<96x128xf32>
    %94 = arith.addf %91, %93 : vector<96x128xf32>
    %95 = vector.shape_cast %94 : vector<96x128xf32> to vector<2x48x128xf32>
    %96 = vector.shape_cast %95 : vector<2x48x128xf32> to vector<96x128xf32>
    %c0_59 = arith.constant 0 : index
    %c0_60 = arith.constant 0 : index
    %97 = vector.load %arg13[%c0_59, %c0_60] : memref<128x128xf32, #tpu.memory_space<vmem>>, vector<128x128xf32>
    %cst_61 = arith.constant dense<0.000000e+00> : vector<96x128xf32>
    %98 = tpu.matmul %96, %97, %cst_61 {dimension_numbers = #tpu.dot_dimension_numbers<[1], [0], [0], [1], [0, 0, 1, 1], [], []>} : vector<96x128xf32>, vector<128x128xf32>, vector<96x128xf32> -> vector<96x128xf32>
    %c0_62 = arith.constant 0 : index
    %c0_63 = arith.constant 0 : index
    %99 = vector.load %arg14[%c0_62, %c0_63] : memref<1x128xf32, #tpu.memory_space<vmem>>, vector<1x128xf32>
    %100 = vector.broadcast %99 : vector<1x128xf32> to vector<96x128xf32>
    %101 = arith.addf %98, %100 : vector<96x128xf32>
    %102 = vector.shape_cast %101 : vector<96x128xf32> to vector<2x48x128xf32>
    %103 = vector.extract_strided_slice %95 {offsets = [1, 0, 0], sizes = [1, 48, 128], strides = [1, 1, 1]} : vector<2x48x128xf32> to vector<1x48x128xf32>
    %104 = vector.extract_strided_slice %95 {offsets = [0, 0, 0], sizes = [1, 48, 128], strides = [1, 1, 1]} : vector<2x48x128xf32> to vector<1x48x128xf32>
    %105 = tpu.concatenate %103, %104 in 0 : vector<1x48x128xf32>, vector<1x48x128xf32> -> vector<2x48x128xf32>
    %106 = vector.shape_cast %105 : vector<2x48x128xf32> to vector<96x128xf32>
    %c0_64 = arith.constant 0 : index
    %c0_65 = arith.constant 0 : index
    %107 = vector.load %arg15[%c0_64, %c0_65] : memref<128x256xf32, #tpu.memory_space<vmem>>, vector<128x256xf32>
    %cst_66 = arith.constant dense<0.000000e+00> : vector<96x256xf32>
    %108 = tpu.matmul %106, %107, %cst_66 {dimension_numbers = #tpu.dot_dimension_numbers<[1], [0], [0], [1], [0, 0, 1, 1], [], []>} : vector<96x128xf32>, vector<128x256xf32>, vector<96x256xf32> -> vector<96x256xf32>
    %c0_67 = arith.constant 0 : index
    %c0_68 = arith.constant 0 : index
    %109 = vector.load %arg16[%c0_67, %c0_68] : memref<1x256xf32, #tpu.memory_space<vmem>>, vector<1x256xf32>
    %110 = vector.broadcast %109 : vector<1x256xf32> to vector<96x256xf32>
    %111 = arith.addf %108, %110 : vector<96x256xf32>
    %112 = vector.extract_strided_slice %111 {offsets = [0, 0], sizes = [96, 128], strides = [1, 1]} : vector<96x256xf32> to vector<96x128xf32>
    %113 = vector.shape_cast %112 : vector<96x128xf32> to vector<2x48x128xf32>
    %114 = vector.extract_strided_slice %111 {offsets = [0, 128], sizes = [96, 128], strides = [1, 1]} : vector<96x256xf32> to vector<96x128xf32>
    %115 = vector.shape_cast %114 : vector<96x128xf32> to vector<2x48x128xf32>
    "tpu.trace_start"() <{level = 10 : i32, message = "bqd,bkd->bqk"}> : () -> ()
    %cst_69 = arith.constant dense<0.000000e+00> : vector<2x48x48xf32>
    %116 = tpu.matmul %102, %113, %cst_69 {dimension_numbers = #tpu.dot_dimension_numbers<[2], [2], [1], [1], [0, 0, 0, 1, 1, 1], [0], [0]>} : vector<2x48x128xf32>, vector<2x48x128xf32>, vector<2x48x48xf32> -> vector<2x48x48xf32>
    "tpu.trace_stop"() : () -> ()
    %cst_70 = arith.constant 0.0883883461 : f32
    %117 = vector.broadcast %cst_70 : f32 to vector<2x48x48xf32>
    %118 = arith.mulf %116, %117 : vector<2x48x48xf32>
    %cst_71 = arith.constant -1.000000e+30 : f32
    %119 = vector.shape_cast %57 : vector<1x1x48xi1> to vector<1x1x48xi1>
    %120 = vector.broadcast %119 : vector<1x1x48xi1> to vector<2x48x48xi1>
    %121 = vector.broadcast %cst_71 : f32 to vector<2x48x48xf32>
    %122 = arith.select %120, %118, %121 : vector<2x48x48xi1>, vector<2x48x48xf32>
    %cst_72 = arith.constant dense<0xFF800000> : vector<2x48xf32>
    %123 = vector.multi_reduction <maximumf>, %122, %cst_72 [2] : vector<2x48x48xf32> to vector<2x48xf32>
    %124 = vector.shape_cast %123 : vector<2x48xf32> to vector<2x48x1xf32>
    %125 = vector.broadcast %124 : vector<2x48x1xf32> to vector<2x48x48xf32>
    %126 = arith.subf %122, %125 : vector<2x48x48xf32>
    %127 = math.exp %126 : vector<2x48x48xf32>
    %cst_73 = arith.constant dense<0.000000e+00> : vector<2x48xf32>
    %128 = vector.multi_reduction <add>, %127, %cst_73 [2] : vector<2x48x48xf32> to vector<2x48xf32>
    %129 = vector.shape_cast %128 : vector<2x48xf32> to vector<2x48x1xf32>
    %130 = tpu.reciprocal %129 {approx = true} : vector<2x48x1xf32> -> vector<2x48x1xf32>
    %131 = vector.broadcast %130 : vector<2x48x1xf32> to vector<2x48x48xf32>
    %132 = arith.mulf %127, %131 : vector<2x48x48xf32>
    "tpu.trace_start"() <{level = 10 : i32, message = "bqk,bkd->bqd"}> : () -> ()
    %cst_74 = arith.constant dense<0.000000e+00> : vector<2x48x128xf32>
    %133 = tpu.matmul %132, %115, %cst_74 {dimension_numbers = #tpu.dot_dimension_numbers<[2], [1], [1], [2], [0, 0, 0, 1, 1, 2], [0], [0]>} : vector<2x48x48xf32>, vector<2x48x128xf32>, vector<2x48x128xf32> -> vector<2x48x128xf32>
    "tpu.trace_stop"() : () -> ()
    %134 = vector.shape_cast %133 : vector<2x48x128xf32> to vector<96x128xf32>
    %c0_75 = arith.constant 0 : index
    %c0_76 = arith.constant 0 : index
    %135 = vector.load %arg17[%c0_75, %c0_76] : memref<128x128xf32, #tpu.memory_space<vmem>>, vector<128x128xf32>
    %cst_77 = arith.constant dense<0.000000e+00> : vector<96x128xf32>
    %136 = tpu.matmul %134, %135, %cst_77 {dimension_numbers = #tpu.dot_dimension_numbers<[1], [0], [0], [1], [0, 0, 1, 1], [], []>} : vector<96x128xf32>, vector<128x128xf32>, vector<96x128xf32> -> vector<96x128xf32>
    %c0_78 = arith.constant 0 : index
    %c0_79 = arith.constant 0 : index
    %137 = vector.load %arg18[%c0_78, %c0_79] : memref<1x128xf32, #tpu.memory_space<vmem>>, vector<1x128xf32>
    %138 = vector.broadcast %137 : vector<1x128xf32> to vector<96x128xf32>
    %139 = arith.addf %136, %138 : vector<96x128xf32>
    %140 = vector.shape_cast %139 : vector<96x128xf32> to vector<2x48x128xf32>
    %141 = vector.extract_strided_slice %140 {offsets = [0, 0, 0], sizes = [1, 41, 128], strides = [1, 1, 1]} : vector<2x48x128xf32> to vector<1x41x128xf32>
    %c0_80 = arith.constant 0 : index
    %c0_81 = arith.constant 0 : index
    %c0_82 = arith.constant 0 : index
    %142 = vector.load %arg19[%c0_80, %c0_81, %c0_82] : memref<1x41x512xf32, #tpu.memory_space<vmem>>, vector<1x41x128xf32>
    tpu.vector_store %arg19[%c0_80, %c0_81, %c0_82], %141 {strides = array<i32>} : memref<1x41x512xf32, #tpu.memory_space<vmem>>, vector<1x41x128xf32>,
    %143 = vector.extract_strided_slice %140 {offsets = [1, 0, 0], sizes = [1, 41, 128], strides = [1, 1, 1]} : vector<2x48x128xf32> to vector<1x41x128xf32>
    %c0_83 = arith.constant 0 : index
    %c0_84 = arith.constant 0 : index
    %c128 = arith.constant 128 : index
    %144 = vector.load %arg19[%c0_83, %c0_84, %c128] : memref<1x41x512xf32, #tpu.memory_space<vmem>>, vector<1x41x128xf32>
    tpu.vector_store %arg19[%c0_83, %c0_84, %c128], %143 {strides = array<i32>} : memref<1x41x512xf32, #tpu.memory_space<vmem>>, vector<1x41x128xf32>,
    %145 = vector.extract_strided_slice %53 {offsets = [0, 0, 0], sizes = [1, 41, 128], strides = [1, 1, 1]} : vector<1x48x128xf32> to vector<1x41x128xf32>
    %c0_85 = arith.constant 0 : index
    %c0_86 = arith.constant 0 : index
    %c256 = arith.constant 256 : index
    %146 = vector.load %arg19[%c0_85, %c0_86, %c256] : memref<1x41x512xf32, #tpu.memory_space<vmem>>, vector<1x41x128xf32>
    tpu.vector_store %arg19[%c0_85, %c0_86, %c256], %145 {strides = array<i32>} : memref<1x41x512xf32, #tpu.memory_space<vmem>>, vector<1x41x128xf32>,
    %147 = vector.extract_strided_slice %54 {offsets = [0, 0, 0], sizes = [1, 41, 128], strides = [1, 1, 1]} : vector<1x48x128xf32> to vector<1x41x128xf32>
    %c0_87 = arith.constant 0 : index
    %c0_88 = arith.constant 0 : index
    %c384 = arith.constant 384 : index
    %148 = vector.load %arg19[%c0_87, %c0_88, %c384] : memref<1x41x512xf32, #tpu.memory_space<vmem>>, vector<1x41x128xf32>
    tpu.vector_store %arg19[%c0_87, %c0_88, %c384], %147 {strides = array<i32>} : memref<1x41x512xf32, #tpu.memory_space<vmem>>, vector<1x41x128xf32>,
    return
  }
  func.func @transform_0(%arg0: i32) -> (i32, i32, i32) {
    %c0_i32 = arith.constant 0 : i32
    %c0_i32_0 = arith.constant 0 : i32
    %c0_i32_1 = arith.constant 0 : i32
    return %arg0, %c0_i32, %c0_i32_0 : i32, i32, i32
  }
  func.func @transform_1(%arg0: i32) -> (i32, i32, i32) {
    %c0_i32 = arith.constant 0 : i32
    %c0_i32_0 = arith.constant 0 : i32
    %c0_i32_1 = arith.constant 0 : i32
    return %arg0, %c0_i32, %c0_i32_0 : i32, i32, i32
  }
  func.func @transform_2(%arg0: i32) -> (i32, i32) {
    %c0_i32 = arith.constant 0 : i32
    %c0_i32_0 = arith.constant 0 : i32
    %c0_i32_1 = arith.constant 0 : i32
    return %c0_i32, %c0_i32_0 : i32, i32
  }
  func.func @transform_3(%arg0: i32) -> (i32, i32) {
    %c0_i32 = arith.constant 0 : i32
    %c0_i32_0 = arith.constant 0 : i32
    %c0_i32_1 = arith.constant 0 : i32
    return %c0_i32, %c0_i32_0 : i32, i32
  }
  func.func @transform_4(%arg0: i32) -> (i32, i32) {
    %c0_i32 = arith.constant 0 : i32
    %c0_i32_0 = arith.constant 0 : i32
    %c0_i32_1 = arith.constant 0 : i32
    return %c0_i32, %c0_i32_0 : i32, i32
  }
  func.func @transform_5(%arg0: i32) -> (i32, i32) {
    %c0_i32 = arith.constant 0 : i32
    %c0_i32_0 = arith.constant 0 : i32
    %c0_i32_1 = arith.constant 0 : i32
    return %c0_i32, %c0_i32_0 : i32, i32
  }
  func.func @transform_6(%arg0: i32) -> (i32, i32) {
    %c0_i32 = arith.constant 0 : i32
    %c0_i32_0 = arith.constant 0 : i32
    %c0_i32_1 = arith.constant 0 : i32
    return %c0_i32, %c0_i32_0 : i32, i32
  }
  func.func @transform_7(%arg0: i32) -> (i32, i32) {
    %c0_i32 = arith.constant 0 : i32
    %c0_i32_0 = arith.constant 0 : i32
    %c0_i32_1 = arith.constant 0 : i32
    return %c0_i32, %c0_i32_0 : i32, i32
  }
  func.func @transform_8(%arg0: i32) -> (i32, i32) {
    %c0_i32 = arith.constant 0 : i32
    %c0_i32_0 = arith.constant 0 : i32
    %c0_i32_1 = arith.constant 0 : i32
    return %c0_i32, %c0_i32_0 : i32, i32
  }
  func.func @transform_9(%arg0: i32) -> (i32, i32) {
    %c0_i32 = arith.constant 0 : i32
    %c0_i32_0 = arith.constant 0 : i32
    %c0_i32_1 = arith.constant 0 : i32
    return %c0_i32, %c0_i32_0 : i32, i32
  }
  func.func @transform_10(%arg0: i32) -> (i32, i32) {
    %c0_i32 = arith.constant 0 : i32
    %c0_i32_0 = arith.constant 0 : i32
    %c0_i32_1 = arith.constant 0 : i32
    return %c0_i32, %c0_i32_0 : i32, i32
  }
  func.func @transform_11(%arg0: i32) -> (i32, i32) {
    %c0_i32 = arith.constant 0 : i32
    %c0_i32_0 = arith.constant 0 : i32
    %c0_i32_1 = arith.constant 0 : i32
    return %c0_i32, %c0_i32_0 : i32, i32
  }
  func.func @transform_12(%arg0: i32) -> (i32, i32) {
    %c0_i32 = arith.constant 0 : i32
    %c0_i32_0 = arith.constant 0 : i32
    %c0_i32_1 = arith.constant 0 : i32
    return %c0_i32, %c0_i32_0 : i32, i32
  }
  func.func @transform_13(%arg0: i32) -> (i32, i32) {
    %c0_i32 = arith.constant 0 : i32
    %c0_i32_0 = arith.constant 0 : i32
    %c0_i32_1 = arith.constant 0 : i32
    return %c0_i32, %c0_i32_0 : i32, i32
  }
  func.func @transform_14(%arg0: i32) -> (i32, i32) {
    %c0_i32 = arith.constant 0 : i32
    %c0_i32_0 = arith.constant 0 : i32
    %c0_i32_1 = arith.constant 0 : i32
    return %c0_i32, %c0_i32_0 : i32, i32
  }
  func.func @transform_15(%arg0: i32) -> (i32, i32) {
    %c0_i32 = arith.constant 0 : i32
    %c0_i32_0 = arith.constant 0 : i32
    %c0_i32_1 = arith.constant 0 : i32
    return %c0_i32, %c0_i32_0 : i32, i32
  }
  func.func @transform_16(%arg0: i32) -> (i32, i32) {
    %c0_i32 = arith.constant 0 : i32
    %c0_i32_0 = arith.constant 0 : i32
    %c0_i32_1 = arith.constant 0 : i32
    return %c0_i32, %c0_i32_0 : i32, i32
  }
  func.func @transform_17(%arg0: i32) -> (i32, i32) {
    %c0_i32 = arith.constant 0 : i32
    %c0_i32_0 = arith.constant 0 : i32
    %c0_i32_1 = arith.constant 0 : i32
    return %c0_i32, %c0_i32_0 : i32, i32
  }
  func.func @transform_18(%arg0: i32) -> (i32, i32, i32) {
    %c0_i32 = arith.constant 0 : i32
    %c0_i32_0 = arith.constant 0 : i32
    %c0_i32_1 = arith.constant 0 : i32
    return %arg0, %c0_i32, %c0_i32_0 : i32, i32, i32
  }
}

</mosaic_0001>

<bundles_post_ra>
// kernel: coattention_model_forward.2
= control target key start
LH: loop header
LB: loop body
LE: loop exit
PB: predicated region body
PF: predicated region fallthrough
CT: control target
= control target key end

     0   :  { %s5457_s0 = inlined_call_operand.vmem [shape: f32[2,41,1280], index: 0, kind: input, shape index: {}]   ;;  %s5458_s1 = inlined_call_operand.vmem [shape: f32[2,41,78], index: 1, kind: input, shape index: {}]   ;;  %s5459_s2 = inlined_call_operand.vmem [shape: bf16[1280,128], index: 2, kind: input, shape index: {}]   ;;  %s5460_s3 = inlined_call_operand.hbm [shape: f32[1,128], index: 3, kind: input, shape index: {}]   ;;  %s5461_s4 = inlined_call_operand.hbm [shape: f32[1,128], index: 4, kind: input, shape index: {}]   ;;  %s5462_s5 = inlined_call_operand.hbm [shape: f32[1,128], index: 5, kind: input, shape index: {}]   ;;  %s5463_s6 = inlined_call_operand.vmem [shape: bf16[128,128], index: 6, kind: input, shape index: {}]   ;;  %s5464_s7 = inlined_call_operand.vmem [shape: f32[1,128], index: 7, kind: input, shape index: {}]   ;;  %s5465_s8 = inlined_call_operand.vmem [shape: f32[128,384], index: 8, kind: input, shape index: {}]   ;;  %s5466_s9 = inlined_call_operand.vmem [shape: f32[1,384], index: 9, kind: input, shape index: {}]   ;;  %s5467_s10 = inlined_call_operand.vmem [shape: f32[128,128], index: 10, kind: input, shape index: {}]   ;;  %s5468_s11 = inlined_call_operand.vmem [shape: f32[1,128], index: 11, kind: input, shape index: {}]   ;;  %s5469_s12 = inlined_call_operand.vmem [shape: f32[128,128], index: 12, kind: input, shape index: {}]   ;;  %s5470_s13 = inlined_call_operand.vmem [shape: f32[1,128], index: 13, kind: input, shape index: {}]   ;;  %s5471_s14 = inlined_call_operand.vmem [shape: f32[128,256], index: 14, kind: input, shape index: {}]   ;;  %s5472_s15 = inlined_call_operand.vmem [shape: f32[1,256], index: 15, kind: input, shape index: {}]   ;;  %s5473_s16 = inlined_call_operand.vmem [shape: f32[128,128], index: 16, kind: input, shape index: {}]   ;;  %s5474_s17 = inlined_call_operand.vmem [shape: f32[1,128], index: 17, kind: input, shape index: {}]   ;;  %s5475_s18 = inlined_call_operand.vmem [shape: f32[2,41,512], index: 18, kind: output, shape index: {}]  }
   0x1   :  { %5477 = sst [smem:[#allocation11_spill]] %s5457_s0 }
   0x2   :  { %5478 = sst [smem:[#allocation12_spill]] %s5458_s1 }
   0x3   :  { %5479 = sst [smem:[#allocation13_spill]] %s5459_s2 }
   0x4   :  { %23 = vsyncpa [#allocation5], 0 }
   0x5   :  { %24 = vsyncpa [#allocation7], 0  ;;  %s4141_s27 = smov 0  }
   0x6 LB: > { %s476_s30 = sshll.u32 %s5461_s4, 4  ;;  %s4150_s0 = sadd.s32 4294967295, %s4039_s27   ;;  %s4039_s27 = sphi %s4141_s27, %s30_s27   ;;  %s477_s30 = int_to_ptr.hbm [resolvable:$true] %s476_s30 }
   0x7   : > { %p3272_p0 = scmp.ge.s32.totalorder %s4039_s27, 1  ;;  %p449_p1 = scmp.lt.s32.totalorder %s4039_s27, 3 }
   0x8   : > { %p3799_p2 = scmp.eq.s32.totalorder %s4150_s0, 0  ;;  %s4041_s1 = smov [#allocation6]  }
   0x9   : > { %p4155_p3 = pnand %p3272_p0, %p449_p1  ;;  %s478_s20 = sshll.u32 %s4041_s1, 4  ;;  %s479_s20 = int_to_ptr.vmem [resolvable:$true] %s478_s20 }
   0xa   : > { %s464_s2 = sshll.u32 %s5460_s3, 4  ;;  %s488_s25 = sshll.u32 %s5462_s5, 4  ;;  %s465_s2 = int_to_ptr.hbm [resolvable:$true] %s464_s2  ;;  %s489_s25 = int_to_ptr.hbm [resolvable:$true] %s488_s25 }
   0xb   : > { %p3789_p4 = pneg %p4155_p3  ;;  %s4042_s26 = smov [#allocation4]  }
   0xc   : > { %s466_s28 = sshll.u32 %s4042_s26, 4  ;;  %s4043_s29 = smov [#allocation8]   ;;  %s467_s28 = int_to_ptr.vmem [resolvable:$true] %s466_s28 }
   0xd   : > { %p3790_p5 = pnand %p3799_p2, %p3789_p4  ;;  %s490_s1 = sshll.u32 %s4043_s29, 4  ;;  %s491_s1 = int_to_ptr.vmem [resolvable:$true] %s490_s1 }
   0xe   : > { %555 = sbr.rel (%p4155_p3) target bundleno = 2535 (0x9e7), region = 92 }
   0xf   : > { %3795 = dma.hbm_to_vmem [thread:$0]  (!%p3790_p5), %s477_s30, 16, %s479_s20, [#allocation7]  }
  0x10   : > { %3792 = dma.hbm_to_vmem [thread:$0]  (!%p3790_p5), %s465_s2, 16, %s467_s28, [#allocation5]  }
  0x11   : > { %3798 = dma.hbm_to_vmem [thread:$0]  (!%p3790_p5), %s489_s25, 16, %s491_s1, [#allocation7]  }
  0x13   : > { %4030 = dma.done.wait (%p3799_p2), [#allocation5], 16  }
  0x14   : > { %4032 = vsyncadd (%p3799_p2), [#allocation5], 4294967280 }
  0x15   : > { %4034 = dma.done.wait (%p3799_p2), [#allocation7], 32  }
  0x16   : > { %4036 = vsyncadd (%p3799_p2), [#allocation7], 4294967264  ;;  %s5481_s21 = sld [smem:[#allocation13_spill]]  ;;  %p625_p6 = scmp.lt.s32.totalorder %s4150_s0, 1  ;;  %vm1638_vm1 = vcmask 637952   ;;  %vm1644_vm2 = vcmask 630784  }
  0x17   : > { %s5482_s1 = sld [smem:[#allocation11_spill]] }
  0x18   : > { %s5485_s0 = smov (!%p625_p6, %s4150_s0), 1  ;;  %s5483_s25 = sld [smem:[#allocation12_spill]] }
  0x19   : > { %s3774_s30 = smul.u32 480, %s5485_s0 }
  0x1a   : > { %s3775_s2 = smul.u32 48, %s5485_s0 }
  0x1c   : > { %v3677_v0 = vld [vmem:[%s5481_s21 + $0x78] sm:$0xff]  ;;  %v3676_v2 = vld [vmem:[%s5481_s21 + $0x70] sm:$0xff]  ;;  %v3675_v4 = vld [vmem:[%s5481_s21 + $0x68] sm:$0xff] }
  0x1d   : > { %v3669_v1 = vld [vmem:[%s5481_s21 + $0x38] sm:$0xff]  ;;  %1410 = vmatpush.bf16.msra.mxu2 %v3677_v0  ;;  %v3668_v3 = vld [vmem:[%s5481_s21 + $0x30] sm:$0xff]  ;;  %v3667_v5 = vld [vmem:[%s5481_s21 + $0x28] sm:$0xff]  ;;  %s4235_s20 = scalar_lea.vmem %s5482_s1, %s3774_s30  ;;  %s3776_s30 = smul.u32 192, %s5485_s0 }
  0x1e   : > { %1386 = vmatpush.bf16.msra.mxu0 %v3669_v1  ;;  %3750 = vmatpush.bf16.msra.mxu3 %v3669_v1  ;;  %v3674_v6 = vld [vmem:[%s5481_s21 + $0x60] sm:$0xff]  ;;  %v3673_v8 = vld [vmem:[%s5481_s21 + $0x58] sm:$0xff]  ;;  %v3672_v10 = vld [vmem:[%s5481_s21 + $0x50] sm:$0xff] }
  0x1f   : > { %v3666_v7 = vld [vmem:[%s5481_s21 + $0x20] sm:$0xff]  ;;  %v3665_v9 = vld [vmem:[%s5481_s21 + $0x18] sm:$0xff]  ;;  %v3664_v11 = vld [vmem:[%s5481_s21 + $0x10] sm:$0xff] }
  0x20   : > { %v3709_v12 = vld [vmem:[%s5481_s21 + $0x178] sm:$0xff]  ;;  %v3708_v13 = vld [vmem:[%s5481_s21 + $0x170] sm:$0xff]  ;;  %v3671_v14 = vld [vmem:[%s5481_s21 + $0x48] sm:$0xff] }
  0x21   : > { %1411 = vmatpush.bf16.msra.mxu2 %v3676_v2  ;;  %1506 = vmatpush.bf16.msra.mxu1 %v3709_v12  ;;  %v3663_v15 = vld [vmem:[%s5481_s21 + $0x8] sm:$0xff]  ;;  %v3670_v17 = vld [vmem:[%s5481_s21 + $0x40] sm:$0xff]  ;;  %v663_v19 = vld [vmem:[%s4235_s20 + $0x58] sm:$0xff] }
  0x22   : > { %1387 = vmatpush.bf16.msra.mxu0 %v3668_v3  ;;  %3751 = vmatpush.bf16.msra.mxu3 %v3668_v3  ;;  %v3707_v16 = vld [vmem:[%s5481_s21 + $0x168] sm:$0xff]  ;;  %v3662_v20 = vld [vmem:[%s5481_s21] sm:$0xff]  ;;  %v662_v22 = vld [vmem:[%s4235_s20 + $0x50] sm:$0xff] }
  0x23   : > { %v653_v18 = vld [vmem:[%s4235_s20 + $0x8] sm:$0xff]  ;;  %v652_v21 = vld [vmem:[%s4235_s20] sm:$0xff]  ;;  %v3685_v23 = vld [vmem:[%s5481_s21 + $0xb8] sm:$0xff] }
  0x24   : > { %v692_v24 = vld [vmem:[%s4235_s20 + $0x140] sm:$0xff]  ;;  %v702_v25 = vld [vmem:[%s4235_s20 + $0x190] sm:$0x1]  ;;  %v3693_v26 = vld [vmem:[%s5481_s21 + $0xf8] sm:$0xff]  ;;  %v713_v28 = vpack.c.bf16 %v663_v19, %v653_v18  ;;  %v712_v29 = vpack.c.bf16 %v662_v22, %v652_v21 }
  0x25   : > { %1412 = vmatpush.bf16.msra.mxu2 %v3675_v4  ;;  %1507 = vmatpush.bf16.msra.mxu1 %v3708_v13  ;;  %v3701_v27 = vld [vmem:[%s5481_s21 + $0x138] sm:$0xff]  ;;  %v732_v30 = vpack.c.bf16 %v702_v25, %v692_v24  ;;  %v3684_v31 = vld [vmem:[%s5481_s21 + $0xb0] sm:$0xff]  ;;  %v3706_v34 = vld [vmem:[%s5481_s21 + $0x160] sm:$0xff] }
  0x26   : > { %1388 = vmatpush.bf16.msra.mxu0 %v3667_v5  ;;  %3752 = vmatpush.bf16.msra.mxu3 %v3667_v5  ;;  %v3692_v32 = vld [vmem:[%s5481_s21 + $0xf0] sm:$0xff]  ;;  %v3705_v35 = vld [vmem:[%s5481_s21 + $0x158] sm:$0xff]  ;;  %v3683_v36 = vld [vmem:[%s5481_s21 + $0xa8] sm:$0xff] }
  0x27   : > { %v3700_v33 = vld [vmem:[%s5481_s21 + $0x130] sm:$0xff]  ;;  %v3691_v37 = vld [vmem:[%s5481_s21 + $0xe8] sm:$0xff]  ;;  %v3682_v40 = vld [vmem:[%s5481_s21 + $0xa0] sm:$0xff] }
  0x28   : > { %v3699_v38 = vld [vmem:[%s5481_s21 + $0x128] sm:$0xff]  ;;  %v3704_v39 = vld [vmem:[%s5481_s21 + $0x150] sm:$0xff]  ;;  %v3690_v41 = vld [vmem:[%s5481_s21 + $0xe0] sm:$0xff] }
  0x29   : > { %1413 = vmatpush.bf16.msra.mxu2 %v3674_v6  ;;  %1508 = vmatpush.bf16.msra.mxu1 %v3707_v16  ;;  %v3698_v42 = vld [vmem:[%s5481_s21 + $0x120] sm:$0xff]  ;;  %v673_v43 = vld [vmem:[%s4235_s20 + $0xa8] sm:$0xff]  ;;  %v683_v44 = vld [vmem:[%s4235_s20 + $0xf8] sm:$0xff] }
  0x2a   : > { %1389 = vmatpush.bf16.msra.mxu0 %v3666_v7  ;;  %3753 = vmatpush.bf16.msra.mxu3 %v3666_v7  ;;  %v672_v45 = vld [vmem:[%s4235_s20 + $0xa0] sm:$0xff]  ;;  %v682_v46 = vld [vmem:[%s4235_s20 + $0xf0] sm:$0xff]  ;;  %v3703_v47 = vld [vmem:[%s5481_s21 + $0x148] sm:$0xff]  ;;  %v723_v51 = vpack.c.bf16 %v683_v44, %v673_v43 }
  0x2b   : > { %v3681_v48 = vld [vmem:[%s5481_s21 + $0x98] sm:$0xff]  ;;  %v722_v52 = vpack.c.bf16 %v682_v46, %v672_v45  ;;  %v3680_v53 = vld [vmem:[%s5481_s21 + $0x90] sm:$0xff]  ;;  %v3702_v56 = vld [vmem:[%s5481_s21 + $0x140] sm:$0xff] }
  0x2c   : > { %v3689_v49 = vld [vmem:[%s5481_s21 + $0xd8] sm:$0xff]  ;;  %v3688_v54 = vld [vmem:[%s5481_s21 + $0xd0] sm:$0xff]  ;;  %v657_v57 = vld [vmem:[%s4235_s20 + $0x28] sm:$0xff] }
  0x2d   : > { %1414 = vmatpush.bf16.msra.mxu2 %v3673_v8  ;;  %1509 = vmatpush.bf16.msra.mxu1 %v3706_v34  ;;  %v3697_v50 = vld [vmem:[%s5481_s21 + $0x118] sm:$0xff]  ;;  %v3696_v55 = vld [vmem:[%s5481_s21 + $0x110] sm:$0xff]  ;;  %v3679_v60 = vld [vmem:[%s5481_s21 + $0x88] sm:$0xff] }
  0x2e   : > { %1390 = vmatpush.bf16.msra.mxu0 %v3665_v9  ;;  %3754 = vmatpush.bf16.msra.mxu3 %v3665_v9  ;;  %v667_v58 = vld [vmem:[%s4235_s20 + $0x78] sm:$0xff]  ;;  %v3687_v61 = vld [vmem:[%s5481_s21 + $0xc8] sm:$0xff]  ;;  %v3686_v63 = vld [vmem:[%s5481_s21 + $0xc0] sm:$0xff] }
  0x2f   : > { %v717_v59 = vpack.c.bf16 %v667_v58, %v657_v57  ;;  %v3695_v62 = vld [vmem:[%s5481_s21 + $0x108] sm:$0xff]  ;;  %v3678_v0 = vld [vmem:[%s5481_s21 + $0x80] sm:$0xff]  ;;  %v655_v1 = vld [vmem:[%s4235_s20 + $0x18] sm:$0xff] }
  0x30   : > { %v665_v2 = vld [vmem:[%s4235_s20 + $0x68] sm:$0xff]  ;;  %v3694_v3 = vld [vmem:[%s5481_s21 + $0x100] sm:$0xff]  ;;  %v3725_v5 = vld [vmem:[%s5481_s21 + $0x1f8] sm:$0xff] }
  0x31   : > { %1415 = vmatpush.bf16.msra.mxu2 %v3672_v10  ;;  %1510 = vmatpush.bf16.msra.mxu1 %v3705_v35  ;;  %v693_v4 = vld [vmem:[%s4235_s20 + $0x148] sm:$0xff]  ;;  %v703_v6 = vld [vmem:[%s4235_s20 + $0x198] sm:$0x1]  ;;  %v656_v7 = vld [vmem:[%s4235_s20 + $0x20] sm:$0xff]  ;;  %v715_v9 = vpack.c.bf16 %v665_v2, %v655_v1 }
  0x32   : > { %1391 = vmatpush.bf16.msra.mxu0 %v3664_v11  ;;  %3755 = vmatpush.bf16.msra.mxu3 %v3664_v11  ;;  %v666_v8 = vld [vmem:[%s4235_s20 + $0x70] sm:$0xff]  ;;  %v733_v10 = vpack.c.bf16 %v703_v6, %v693_v4  ;;  %v3717_v13 = vld [vmem:[%s5481_s21 + $0x1b8] sm:$0xff]  ;;  %v677_v16 = vld [vmem:[%s4235_s20 + $0xc8] sm:$0xff] }
  0x33   : > { %v716_v11 = vpack.c.bf16 %v666_v8, %v656_v7  ;;  %v3724_v12 = vld [vmem:[%s5481_s21 + $0x1f0] sm:$0xff]  ;;  %v3741_v19 = vld [vmem:[%s5481_s21 + $0x278] sm:$0xff]  ;;  %v3715_v24 = vld [vmem:[%s5481_s21 + $0x1a8] sm:$0xff] }
  0x34   : > { %v3716_v18 = vld [vmem:[%s5481_s21 + $0x1b0] sm:$0xff]  ;;  %v3731_v25 = vld [vmem:[%s5481_s21 + $0x228] sm:$0xff]  ;;  %v3714_v34 = vld [vmem:[%s5481_s21 + $0x1a0] sm:$0xff] }
  0x35   : > { %1416 = vmatpush.bf16.msra.mxu2 %v3671_v14  ;;  %1511 = vmatpush.bf16.msra.mxu1 %v3704_v39  ;;  %v3723_v14 = vld [vmem:[%s5481_s21 + $0x1e8] sm:$0xff]  ;;  %v3732_v21 = vld [vmem:[%s5481_s21 + $0x230] sm:$0xff]  ;;  %v3729_v43 = vld [vmem:[%s5481_s21 + $0x218] sm:$0xff] }
  0x36   : > { %1392 = vmatpush.bf16.msra.mxu0 %v3663_v15  ;;  %3756 = vmatpush.bf16.msra.mxu3 %v3663_v15  ;;  %v3733_v15 = vld [vmem:[%s5481_s21 + $0x238] sm:$0xff]  ;;  %v3740_v22 = vld [vmem:[%s5481_s21 + $0x270] sm:$0xff]  ;;  %v697_v44 = vld [vmem:[%s4235_s20 + $0x168] sm:$0xff] }
  0x37   : > { %v3720_v39 = vld [vmem:[%s5481_s21 + $0x1d0] sm:$0xff]  ;;  %v707_v45 = vld [vmem:[%s4235_s20 + $0x1b8] sm:$0x1]  ;;  %v684_v57 = vld [vmem:[%s4235_s20 + $0x100] sm:$0xff] }
  0x38   : > { %v3712_v46 = vld [vmem:[%s5481_s21 + $0x190] sm:$0xff]  ;;  %v696_v58 = vld [vmem:[%s4235_s20 + $0x160] sm:$0xff]  ;;  %v671_v4 = vld [vmem:[%s4235_s20 + $0x98] sm:$0xff] }
  0x39   : > { %1417 = vmatpush.bf16.msra.mxu2 %v3670_v17  ;;  %1512 = vmatpush.bf16.msra.mxu1 %v3703_v47  ;;  %v687_v17 = vld [vmem:[%s4235_s20 + $0x118] sm:$0xff]  ;;  %v737_v47 = vpack.c.bf16 %v707_v45, %v697_v44  ;;  %v3734_v2 = vld [vmem:[%s5481_s21 + $0x240] sm:$0xff]  ;;  %v669_v7 = vld [vmem:[%s4235_s20 + $0x88] sm:$0xff] }
  0x3a   : > { %1393 = vmatpush.bf16.msra.mxu0 %v3662_v20  ;;  %3757 = vmatpush.bf16.msra.mxu3 %v3662_v20  ;;  %v727_v20 = vpack.c.bf16 %v687_v17, %v677_v16  ;;  %v659_v6 = vld [vmem:[%s4235_s20 + $0x38] sm:$0xff]  ;;  %v694_v8 = vld [vmem:[%s4235_s20 + $0x150] sm:$0xff] }
  0x3b   : > { %v691_v16 = vld [vmem:[%s4235_s20 + $0x138] sm:$0xff] }
  0x3c   : > { %1418 = vmatmul.bf16.vlgmr.msra.gmra.mxu2 %v713_v28  ;;  %v3739_v28 = vld [vmem:[%s5481_s21 + $0x268] sm:$0xff] }
  0x3d   : > { %1434 = vmatpush.bf16.msrb.mxu2 %v3685_v23  ;;  %1394 = vmatmul.bf16.vlgmr.msra.gmra.mxu0 %v712_v29  ;;  %v3722_v23 = vld [vmem:[%s5481_s21 + $0x1e0] sm:$0xff]  ;;  %v654_v29 = vld [vmem:[%s4235_s20 + $0x10] sm:$0xff] }
  0x3e   : > { %1458 = vmatpush.bf16.msrb.mxu3 %v3693_v26  ;;  %1482 = vmatpush.bf16.msrb.mxu0 %v3701_v27  ;;  %v675_v26 = vld [vmem:[%s4235_s20 + $0xb8] sm:$0xff]  ;;  %v685_v27 = vld [vmem:[%s4235_s20 + $0x108] sm:$0xff] }
  0x3f   : > { %1404 = vmatmul.bf16.vlgmr.msra.gmra.mxu3 %v732_v30  ;;  %1513 = vmatpush.bf16.msra.mxu1 %v3702_v56  ;;  %v664_v30 = vld [vmem:[%s4235_s20 + $0x60] sm:$0xff]  ;;  %v725_v35 = vpack.c.bf16 %v685_v27, %v675_v26  ;;  %v674_v56 = vld [vmem:[%s4235_s20 + $0xb0] sm:$0xff]  ;;  %v701_v27 = vld [vmem:[%s4235_s20 + $0x188] sm:$0xff] }
  0x41   : > { %1435 = vmatpush.bf16.msrb.mxu2 %v3684_v31  ;;  %v676_v31 = vld [vmem:[%s4235_s20 + $0xc0] sm:$0xff] }
  0x42   : > { %1459 = vmatpush.bf16.msrb.mxu3 %v3692_v32  ;;  %1483 = vmatpush.bf16.msrb.mxu0 %v3700_v33  ;;  %v686_v32 = vld [vmem:[%s4235_s20 + $0x110] sm:$0xff]  ;;  %v3721_v33 = vld [vmem:[%s5481_s21 + $0x1d8] sm:$0xff] }
  0x43   : > { %1514 = vmatmul.bf16.vlgmr.msra.gmra.mxu1 %v717_v59  ;;  %v706_v59 = vld [vmem:[%s4235_s20 + $0x1b0] sm:$0x1] }
  0x44   : > { %1602 = vmatpush.bf16.msrb.mxu1 %v3741_v19  ;;  %v736_v1 = vpack.c.bf16 %v706_v59, %v696_v58  ;;  %v689_v19 = vld [vmem:[%s4235_s20 + $0x128] sm:$0xff] }
  0x45   : > { %1436 = vmatpush.bf16.msrb.mxu2 %v3683_v36  ;;  %v3730_v36 = vld [vmem:[%s5481_s21 + $0x220] sm:$0xff] }
  0x46   : > { %1460 = vmatpush.bf16.msrb.mxu3 %v3691_v37  ;;  %1484 = vmatpush.bf16.msrb.mxu0 %v3699_v38  ;;  %v714_v37 = vpack.c.bf16 %v664_v30, %v654_v29  ;;  %v726_v38 = vpack.c.bf16 %v686_v32, %v676_v31  ;;  %v699_v30 = vld [vmem:[%s4235_s20 + $0x178] sm:$0xff]  ;;  %v709_v31 = vld [vmem:[%s4235_s20 + $0x1c8] sm:$0x1]  ;;  %v678_v32 = vld [vmem:[%s4235_s20 + $0xd0] sm:$0xff] }
  0x48   : > { %1603 = vmatpush.bf16.msrb.mxu1 %v3740_v22  ;;  %v680_v22 = vld [vmem:[%s4235_s20 + $0xe0] sm:$0xff] }
  0x49   : > { %1437 = vmatpush.bf16.msrb.mxu2 %v3682_v40  ;;  %v3713_v40 = vld [vmem:[%s5481_s21 + $0x198] sm:$0xff] }
  0x4a   : > { %1461 = vmatpush.bf16.msrb.mxu3 %v3690_v41  ;;  %1485 = vmatpush.bf16.msrb.mxu0 %v3698_v42  ;;  %v3738_v41 = vld [vmem:[%s5481_s21 + $0x260] sm:$0xff]  ;;  %v3719_v42 = vld [vmem:[%s5481_s21 + $0x1c8] sm:$0xff] }
  0x4c   : > { %1423 = vmatmul.bf16.gmra.mxu2 %v723_v51  ;;  %1604 = vmatpush.bf16.msrb.mxu1 %v3739_v28  ;;  %v3711_v51 = vld [vmem:[%s5481_s21 + $0x188] sm:$0xff]  ;;  %v711_v28 = vld [vmem:[%s4235_s20 + $0x1d8] sm:$0x1] }
  0x4d   : > { %1438 = vmatpush.bf16.msrb.mxu2 %v3681_v48  ;;  %1399 = vmatmul.bf16.gmra.mxu0 %v722_v52  ;;  %v3737_v48 = vld [vmem:[%s5481_s21 + $0x258] sm:$0xff]  ;;  %v3736_v52 = vld [vmem:[%s5481_s21 + $0x250] sm:$0xff]  ;;  %v741_v29 = vpack.c.bf16 %v711_v28, %v701_v27 }
  0x4e   : > { %1462 = vmatpush.bf16.msrb.mxu3 %v3689_v49  ;;  %1486 = vmatpush.bf16.msrb.mxu0 %v3697_v50  ;;  %v3728_v49 = vld [vmem:[%s5481_s21 + $0x210] sm:$0xff]  ;;  %v3718_v50 = vld [vmem:[%s5481_s21 + $0x1c0] sm:$0xff] }
  0x50   : > { %1605 = vmatpush.bf16.msrb.mxu1 %v3738_v41 }
  0x51   : > { %1439 = vmatpush.bf16.msrb.mxu2 %v3680_v53  ;;  %v3727_v53 = vld [vmem:[%s5481_s21 + $0x208] sm:$0xff] }
  0x52   : > { %1463 = vmatpush.bf16.msrb.mxu3 %v3688_v54  ;;  %1487 = vmatpush.bf16.msrb.mxu0 %v3696_v55  ;;  %v695_v54 = vld [vmem:[%s4235_s20 + $0x158] sm:$0xff]  ;;  %v705_v55 = vld [vmem:[%s4235_s20 + $0x1a8] sm:$0x1] }
  0x53   : > { %1519 = vmatmul.bf16.gmra.mxu1 %v727_v20  ;;  %v658_v20 = vld [vmem:[%s4235_s20 + $0x30] sm:$0xff] }
  0x54   : > { %1606 = vmatpush.bf16.msrb.mxu1 %v3737_v48 }
  0x55   : > { %1440 = vmatpush.bf16.msrb.mxu2 %v3679_v60  ;;  %v3710_v60 = vld [vmem:[%s5481_s21 + $0x180] sm:$0xff] }
  0x56   : > { %1464 = vmatpush.bf16.msrb.mxu3 %v3687_v61  ;;  %1488 = vmatpush.bf16.msrb.mxu0 %v3695_v62  ;;  %v735_v61 = vpack.c.bf16 %v705_v55, %v695_v54  ;;  %v3735_v62 = vld [vmem:[%s5481_s21 + $0x248] sm:$0xff] }
  0x58   : > { %1607 = vmatpush.bf16.msrb.mxu1 %v3736_v52 }
  0x59   : > { %1441 = vmatpush.bf16.msrb.mxu2 %v3678_v0  ;;  %v724_v0 = vpack.c.bf16 %v684_v57, %v674_v56 }
  0x5a   : > { %1465 = vmatpush.bf16.msrb.mxu3 %v3686_v63  ;;  %1489 = vmatpush.bf16.msrb.mxu0 %v3694_v3  ;;  %v3726_v63 = vld [vmem:[%s5481_s21 + $0x200] sm:$0xff]  ;;  %v661_v3 = vld [vmem:[%s4235_s20 + $0x48] sm:$0xff] }
  0x5c   : > { %1428 = vmatmul.bf16.gmra.mxu2 %v733_v10  ;;  %1608 = vmatpush.bf16.msrb.mxu1 %v3735_v62  ;;  %v660_v10 = vld [vmem:[%s4235_s20 + $0x40] sm:$0xff] }
  0x5d   : > { %1466 = vmatmul.bf16.vlgmr.msrb.gmra.mxu3 %v715_v9  ;;  %1490 = vmatmul.bf16.vlgmr.msrb.gmra.mxu0 %v716_v11  ;;  %v704_v9 = vld [vmem:[%s4235_s20 + $0x1a0] sm:$0x1]  ;;  %v670_v11 = vld [vmem:[%s4235_s20 + $0x90] sm:$0xff] }
  0x5e   : > { %1554 = vmatpush.bf16.msra.mxu3 %v3725_v5  ;;  %1530 = vmatpush.bf16.msra.mxu2 %v3717_v13  ;;  %v721_v5 = vpack.c.bf16 %v671_v4, %v661_v3  ;;  %v734_v13 = vpack.c.bf16 %v704_v9, %v694_v8  ;;  %v4044_v3 = vmov 0.0  }
  0x5f   : > { %1578 = vmatpush.bf16.msra.mxu0 %v3733_v15  ;;  %v681_v15 = vld [vmem:[%s4235_s20 + $0xe8] sm:$0xff]  ;;  %645 = vst [vmem:[#allocation2 + $0x20] sm:$0xff] %v4044_v3 }
  0x60   : > { %1609 = vmatpush.bf16.msrb.mxu1 %v3734_v2  ;;  %v731_v17 = vpack.c.bf16 %v691_v16, %v681_v15  ;;  %646 = vst [vmem:[#allocation3] sm:$0xff] %v4044_v3 }
  0x61   : > { %647 = vst [vmem:[#allocation3 + $0x8] sm:$0xff] %v4044_v3 }
  0x62   : > { %1555 = vmatpush.bf16.msra.mxu3 %v3724_v12  ;;  %1531 = vmatpush.bf16.msra.mxu2 %v3716_v18  ;;  %v719_v12 = vpack.c.bf16 %v669_v7, %v659_v6  ;;  %v679_v18 = vld [vmem:[%s4235_s20 + $0xd8] sm:$0xff]  ;;  %648 = vst [vmem:[#allocation3 + $0x10] sm:$0xff] %v4044_v3 }
  0x63   : > { %1579 = vmatpush.bf16.msra.mxu0 %v3732_v21  ;;  %1524 = vmatmul.bf16.gmra.mxu1 %v737_v47  ;;  %v668_v21 = vld [vmem:[%s4235_s20 + $0x80] sm:$0xff]  ;;  %649 = vst [vmem:[#allocation3 + $0x18] sm:$0xff] %v4044_v3 }
  0x64   : > { %650 = vst [vmem:[#allocation3 + $0x20] sm:$0xff] %v4044_v3 }
  0x65   : > { %651 = vst [vmem:[#allocation3 + $0x28] sm:$0xff] %v4044_v3 }
  0x66   : > { %1556 = vmatpush.bf16.msra.mxu3 %v3723_v14  ;;  %1532 = vmatpush.bf16.msra.mxu2 %v3715_v24  ;;  %v720_v14 = vpack.c.bf16 %v670_v11, %v660_v10  ;;  %v729_v24 = vpack.c.bf16 %v689_v19, %v679_v18  ;;  %v3818_v10 = vld [vmem:[#allocation4] ss:$0 sm:$0xff] }
  0x67   : > { %1580 = vmatpush.bf16.msra.mxu0 %v3731_v25  ;;  %v718_v25 = vpack.c.bf16 %v668_v21, %v658_v20 }
  0x6a   : > { %1557 = vmatpush.bf16.msra.mxu3 %v3722_v23  ;;  %1533 = vmatpush.bf16.msra.mxu2 %v3714_v34  ;;  %v690_v23 = vld [vmem:[%s4235_s20 + $0x130] sm:$0xff]  ;;  %v700_v34 = vld [vmem:[%s4235_s20 + $0x180] sm:$0xff] }
  0x6b   : > { %1581 = vmatpush.bf16.msra.mxu0 %v3730_v36  ;;  %v730_v26 = vpack.c.bf16 %v690_v23, %v680_v22  ;;  %v739_v36 = vpack.c.bf16 %v709_v31, %v699_v30 }
  0x6c   : > { %1442 = vmatmul.bf16.vlgmr.msrb.gmra.mxu2 %v714_v37 }
  0x6d   : > { %1471 = vmatmul.bf16.gmra.mxu3 %v725_v35  ;;  %1495 = vmatmul.bf16.gmra.mxu0 %v726_v38  ;;  %v710_v35 = vld [vmem:[%s4235_s20 + $0x1d0] sm:$0x1] }
  0x6e   : > { %1558 = vmatpush.bf16.msra.mxu3 %v3721_v33  ;;  %1534 = vmatpush.bf16.msra.mxu2 %v3713_v40  ;;  %v688_v33 = vld [vmem:[%s4235_s20 + $0x120] sm:$0xff]  ;;  %v740_v38 = vpack.c.bf16 %v710_v35, %v700_v34 }
  0x6f   : > { %1582 = vmatpush.bf16.msra.mxu0 %v3729_v43  ;;  %v728_v37 = vpack.c.bf16 %v688_v33, %v678_v32  ;;  %v708_v40 = vld [vmem:[%s4235_s20 + $0x1c0] sm:$0x1] }
  0x72   : > { %1559 = vmatpush.bf16.msra.mxu3 %v3720_v39  ;;  %1535 = vmatpush.bf16.msra.mxu2 %v3712_v46  ;;  %v698_v39 = vld [vmem:[%s4235_s20 + $0x170] sm:$0xff]  ;;  %s634_s20 = scalar_lea.vmem %s5483_s25, %s3775_s2 }
  0x73   : > { %1583 = vmatpush.bf16.msra.mxu0 %v3728_v49  ;;  %1610 = vmatmul.bf16.vlgmr.msrb.gmra.mxu1 %v721_v5  ;;  %v738_v41 = vpack.c.bf16 %v708_v40, %v698_v39 }
  0x76   : > { %1560 = vmatpush.bf16.msra.mxu3 %v3719_v42  ;;  %1536 = vmatpush.bf16.msra.mxu2 %v3711_v51 }
  0x77   : > { %1584 = vmatpush.bf16.msra.mxu0 %v3727_v53 }
  0x7a   : > { %1561 = vmatpush.bf16.msra.mxu3 %v3718_v50  ;;  %1537 = vmatpush.bf16.msra.mxu2 %v3710_v60 }
  0x7b   : > { %1585 = vmatpush.bf16.msra.mxu0 %v3726_v63 }
  0x7c   : > { %1447 = vmatmul.bf16.gmra.mxu2 %v724_v0 }
  0x7d   : > { %1476 = vmatmul.bf16.gmra.mxu3 %v735_v61  ;;  %1500 = vmatmul.bf16.gmra.mxu0 %v736_v1 }
  0x83   : > { %1615 = vmatmul.bf16.gmra.mxu1 %v731_v17 }
  0x8c   : > { %1452 = vmatmul.bf16.gmra.mxu2 %v734_v13 }
  0x8d   : > { %1562 = vmatmul.bf16.vlgmr.msra.gmra.mxu3 %v719_v12  ;;  %1586 = vmatmul.bf16.vlgmr.msra.gmra.mxu0 %v720_v14 }
  0x93   : > { %1620 = vmatmul.bf16.gmra.mxu1 %v741_v29 }
  0x9c   : > { %1538 = vmatmul.bf16.vlgmr.msra.gmra.mxu2 %v718_v25 }
  0x9d   : > { %1567 = vmatmul.bf16.gmra.mxu3 %v729_v24  ;;  %1591 = vmatmul.bf16.gmra.mxu0 %v730_v26 }
  0xac   : > { %1543 = vmatmul.bf16.gmra.mxu2 %v728_v37 }
  0xad   : > { %1572 = vmatmul.bf16.gmra.mxu3 %v739_v36  ;;  %1596 = vmatmul.bf16.gmra.mxu0 %v740_v38 }
  0xba   : > { %v1395_v42 = vpop.f32.mrf.mxu0 }
  0xbb   : > { %v1396_v11 = vadd.f32 %v3818_v10, %v1395_v42 }
  0xbc   : > { %1548 = vmatmul.bf16.gmra.mxu2 %v738_v41 }
  0xbf   : > { %v1419_v43 = vpop.f32.mrf.mxu2 }
  0xc0   : > { %v1515_v55 = vpop.f32.mrf.mxu1  ;;  %v1420_v15 = vadd.f32 %v1419_v43, %v1396_v11 }
  0xc2   : > { %v1397_v44 = vpop.f32.mrf.mxu0  ;;  %v4489_v46 = vpop.f32.mrf.mxu3 }
  0xc3   : > { %v1398_v18 = vadd.f32 %v3818_v10, %v1397_v44 }
  0xc7   : > { %v1421_v45 = vpop.f32.mrf.mxu2 }
  0xc8   : > { %v1517_v59 = vpop.f32.mrf.mxu1  ;;  %v1422_v22 = vadd.f32 %v1421_v45, %v1398_v18 }
  0xca   : > { %v1400_v47 = vpop.f32.mrf.mxu0  ;;  %v4491_v49 = vpop.f32.mrf.mxu3 }
  0xcb   : > { %v1401_v27 = vadd.f32 %v3818_v10, %v1400_v47 }
  0xcf   : > { %v1424_v48 = vpop.f32.mrf.mxu2 }
  0xd0   : > { %v4499_v63 = vpop.f32.mrf.mxu1  ;;  %v1425_v31 = vadd.f32 %v1424_v48, %v1401_v27 }
  0xd2   : > { %v1402_v50 = vpop.f32.mrf.mxu0 }
  0xd3   : > { %v1403_v38 = vadd.f32 %v3818_v10, %v1402_v50 }
  0xd7   : > { %v4493_v51 = vpop.f32.mrf.mxu2 }
  0xd8   : > { %v4503_v4 = vpop.f32.mrf.mxu1  ;;  %v1427_v45 = vadd.f32 %v4493_v51, %v1403_v38 }
  0xda   : > { %v1491_v53 = vpop.f32.mrf.mxu0 }
  0xdf   : > { %v4495_v54 = vpop.f32.mrf.mxu2 }
  0xe0   : > { %v1467_v52 = vpop.f32.mrf.mxu3  ;;  %v4509_v9 = vpop.f32.mrf.mxu1 }
  0xe2   : > { %v1493_v58 = vpop.f32.mrf.mxu0 }
  0xe7   : > { %v4497_v57 = vpop.f32.mrf.mxu2 }
  0xe8   : > { %v1469_v56 = vpop.f32.mrf.mxu3  ;;  %v4515_v16 = vpop.f32.mrf.mxu1 }
  0xea   : > { %v1496_v62 = vpop.f32.mrf.mxu0 }
  0xef   : > { %v1443_v60 = vpop.f32.mrf.mxu2 }
  0xf0   : > { %v1472_v61 = vpop.f32.mrf.mxu3  ;;  %v1444_v17 = vadd.f32 %v1443_v60, %v1420_v15  ;;  %v1611_v26 = vpop.f32.mrf.mxu1 }
  0xf2   : > { %v4501_v2 = vpop.f32.mrf.mxu0  ;;  %v1468_v19 = vadd.f32 %v1467_v52, %v1444_v17  ;;  %v1408_v17 = vadd.f32 %v3818_v10, %v4491_v49 }
  0xf4   : > { %v1492_v25 = vadd.f32 %v1491_v53, %v1468_v19 }
  0xf6   : > { %v1516_v29 = vadd.f32 %v1515_v55, %v1492_v25 }
  0xf7   : > { %v1445_v0 = vpop.f32.mrf.mxu2 }
  0xf8   : > { %v1474_v1 = vpop.f32.mrf.mxu3  ;;  %v1446_v24 = vadd.f32 %v1445_v0, %v1422_v22  ;;  %v1613_v40 = vpop.f32.mrf.mxu1 }
  0xfa   : > { %v4507_v7 = vpop.f32.mrf.mxu0  ;;  %v1470_v28 = vadd.f32 %v1469_v56, %v1446_v24  ;;  %v1406_v56 = vadd.f32 %v3818_v10, %v4489_v46 }
  0xfc   : > { %v1494_v36 = vadd.f32 %v1493_v58, %v1470_v28  ;;  %v1430_v51 = vadd.f32 %v4495_v54, %v1406_v56  ;;  %v1432_v54 = vadd.f32 %v4497_v57, %v1408_v17  ;;  %v1635_v17 = vld [vmem:[%s634_s20 + $0x18] sm:$0xff] }
  0xfd   : > { %1642 = vst.msk [vmem:[#allocation3 + $0x18] sm:$0xff] %vm1638_vm1, %v1635_v17  ;;  %v1917_v17 = vld [vmem:[%s5465_s8 + $0x70] sm:$0xff] }
  0xfe   : > { %v1518_v43 = vadd.f32 %v1517_v59, %v1494_v36 }
  0xff   : > { %v1448_v5 = vpop.f32.mrf.mxu2 }
 0x100   : > { %v4505_v6 = vpop.f32.mrf.mxu3  ;;  %v1449_v34 = vadd.f32 %v1448_v5, %v1425_v31  ;;  %v1616_v59 = vpop.f32.mrf.mxu1 }
 0x102   : > { %v4513_v14 = vpop.f32.mrf.mxu0  ;;  %v1473_v41 = vadd.f32 %v1472_v61, %v1449_v34 }
 0x104   : > { %v1497_v53 = vadd.f32 %v1496_v62, %v1473_v41 }
 0x106   : > { %v1521_v61 = vadd.f32 %v4499_v63, %v1497_v53 }
 0x107   : > { %v1450_v8 = vpop.f32.mrf.mxu2 }
 0x108   : > { %v4511_v12 = vpop.f32.mrf.mxu3  ;;  %v1451_v48 = vadd.f32 %v1450_v8, %v1427_v45 }
 0x10a   : > { %v1587_v23 = vpop.f32.mrf.mxu0  ;;  %v1475_v60 = vadd.f32 %v1474_v1, %v1451_v48 }
 0x10c   : > { %v1499_v62 = vadd.f32 %v4501_v2, %v1475_v60 }
 0x10e   : > { %v1523_v63 = vadd.f32 %v4503_v4, %v1499_v62  ;;  %v1633_v62 = vld [vmem:[%s634_s20 + $0x8] sm:$0xff] }
 0x10f   : > { %v1453_v13 = vpop.f32.mrf.mxu2  ;;  %1640 = vst.msk [vmem:[#allocation3 + $0x8] sm:$0xff] %vm1638_vm1, %v1633_v62  ;;  %v1920_v62 = vld [vmem:[%s5465_s8 + $0x88] sm:$0xff] }
 0x110   : > { %v1563_v21 = vpop.f32.mrf.mxu3  ;;  %v1454_v8 = vadd.f32 %v1453_v13, %v1430_v51  ;;  %v1618_v13 = vpop.f32.mrf.mxu1 }
 0x112   : > { %v1589_v37 = vpop.f32.mrf.mxu0  ;;  %v1478_v1 = vadd.f32 %v4505_v6, %v1454_v8 }
 0x114   : > { %v1502_v24 = vadd.f32 %v4507_v7, %v1478_v1  ;;  %v3744_v1 = vld [vmem:[%s5463_s6 + $0x10] sm:$0xff] }
 0x116   : > { %v1526_v10 = vadd.f32 %v4509_v9, %v1502_v24  ;;  %v1800_v24 = vld [vmem:[#allocation3 + $0x8] sm:$0xff] }
 0x117   : > { %v1455_v20 = vpop.f32.mrf.mxu2 }
 0x118   : > { %v1565_v33 = vpop.f32.mrf.mxu3 }
 0x11a   : > { %v1592_v50 = vpop.f32.mrf.mxu0 }
 0x11f   : > { %v1539_v30 = vpop.f32.mrf.mxu2 }
 0x120   : > { %v1540_v32 = vadd.f32 %v1539_v30, %v1516_v29  ;;  %v1568_v55 = vpop.f32.mrf.mxu3 }
 0x122   : > { %v1564_v35 = vadd.f32 %v1563_v21, %v1540_v32  ;;  %v1594_v19 = vpop.f32.mrf.mxu0 }
 0x124   : > { %v1588_v39 = vadd.f32 %v1587_v23, %v1564_v35  ;;  %v1456_v23 = vadd.f32 %v1455_v20, %v1432_v54  ;;  %v1621_v20 = vpop.f32.mrf.mxu1  ;;  %v3743_v54 = vld [vmem:[%s5463_s6 + $0x8] sm:$0xff] }
 0x126   : > { %v4517_v42 = vadd.f32 %v1611_v26, %v1588_v39  ;;  %v1480_v49 = vadd.f32 %v4511_v12, %v1456_v23  ;;  %v3742_v23 = vld [vmem:[%s5463_s6] sm:$0xff] }
 0x127   : > { %v1541_v44 = vpop.f32.mrf.mxu2 }
 0x128   : > { %v1542_v47 = vadd.f32 %v1541_v44, %v1518_v43  ;;  %1652 = vadd.xlane.f32.xlu0 %v4517_v42  ;;  %v1570_v46 = vpop.f32.mrf.mxu3  ;;  %v1504_v29 = vadd.f32 %v4513_v14, %v1480_v49  ;;  %v4045_v14 = vmov 128.0  }
 0x129   : > { %3825 = vrcp.f32 %v4045_v14  ;;  %v1940_v14 = vld [vmem:[%s5465_s8 + $0x128] sm:$0xff] }
 0x12a   : > { %v1566_v52 = vadd.f32 %v1565_v33, %v1542_v47  ;;  %v1597_v57 = vpop.f32.mrf.mxu0  ;;  %v1528_v7 = vadd.f32 %v4515_v16, %v1504_v29 }
 0x12c   : > { %v1590_v58 = vadd.f32 %v1589_v37, %v1566_v52  ;;  %v1623_v36 = vpop.f32.mrf.mxu1  ;;  %v3749_v52 = vld [vmem:[%s5463_s6 + $0x38] sm:$0xff] }
 0x12d   : > { %1876 = vmatpush.bf16.msrb.mxu2 %v3749_v52  ;;  %v1930_v52 = vld [vmem:[%s5465_s8 + $0xd8] sm:$0xff] }
 0x12e   : > { %v4522_v0 = vadd.f32 %v1613_v40, %v1590_v58 }
 0x12f   : > { %v1544_v3 = vpop.f32.mrf.mxu2  ;;  %v3826_v39 = vpop.eup %3825 }
 0x130   : > { %v1545_v5 = vadd.f32 %v1544_v3, %v1521_v61  ;;  %1654 = vadd.xlane.f32.xlu0 %v4522_v0  ;;  %v1573_v4 = vpop.f32.mrf.mxu3  ;;  %v1665_v40 = vmul.f32 128.0, %v3826_v39  ;;  %vm1669_vm0 = vweird.f32 %v3826_v39  ;;  %v3747_v61 = vld [vmem:[%s5463_s6 + $0x28] sm:$0xff] }
 0x132   : > { %v1569_v11 = vadd.f32 %v1568_v55, %v1545_v5  ;;  %v1599_v34 = vpop.f32.mrf.mxu0  ;;  %v1666_v16 = vsub.f32 1.0, %v1665_v40  ;;  %v3748_v55 = vld [vmem:[%s5463_s6 + $0x30] sm:$0xff]  ;;  %v3745_v5 = vld [vmem:[%s5463_s6 + $0x18] sm:$0xff]  ;;  %v1936_v40 = vld [vmem:[%s5465_s8 + $0x108] sm:$0xff] }
 0x133   : > { %1877 = vmatpush.bf16.msrb.mxu2 %v3748_v55  ;;  %v1932_v55 = vld [vmem:[%s5465_s8 + $0xe8] sm:$0xff] }
 0x134   : > { %v1593_v15 = vadd.f32 %v1592_v50, %v1569_v11  ;;  %v1667_v41 = vmul.f32 %v3826_v39, %v1666_v16  ;;  %v1632_v11 = vld [vmem:[%s634_s20] sm:$0xff]  ;;  %v1937_v16 = vld [vmem:[%s5465_s8 + $0x110] sm:$0xff] }
 0x135   : > { %1639 = vst.msk [vmem:[#allocation3] sm:$0xff] %vm1638_vm1, %v1632_v11  ;;  %v1919_v11 = vld [vmem:[%s5465_s8 + $0x80] sm:$0xff] }
 0x136   : > { %v4530_v18 = vadd.f32 %v1616_v59, %v1593_v15  ;;  %v1668_v43 = vadd.f32 %v3826_v39, %v1667_v41  ;;  %v1938_v41 = vld [vmem:[%s5465_s8 + $0x118] sm:$0xff] }
 0x137   : > { %v1546_v21 = vpop.f32.mrf.mxu2  ;;  %1878 = vmatpush.bf16.msrb.mxu2 %v3747_v61  ;;  %v1925_v61 = vld [vmem:[%s5465_s8 + $0xb0] sm:$0xff] }
 0x138   : > { %v1547_v22 = vadd.f32 %v1546_v21, %v1523_v63  ;;  %1656 = vadd.xlane.f32.xlu1 %v4530_v18  ;;  %v1575_v9 = vpop.f32.mrf.mxu3  ;;  %v4549_v44 = vsel %vm1669_vm0, %v3826_v39, %v1668_v43  ;;  %v1941_v39 = vld [vmem:[%s5465_s8 + $0x130] sm:$0xff] }
 0x139   : > { %v1933_v43 = vld [vmem:[%s5465_s8 + $0xf0] sm:$0xff] }
 0x13a   : > { %v1571_v2 = vadd.f32 %v1570_v46, %v1547_v22  ;;  %v1634_v46 = vld [vmem:[%s634_s20 + $0x10] sm:$0xff] }
 0x13b   : > { %1641 = vst.msk [vmem:[#allocation3 + $0x10] sm:$0xff] %vm1638_vm1, %v1634_v46  ;;  %v1916_v46 = vld [vmem:[%s5465_s8 + $0x68] sm:$0xff] }
 0x13c   : > { %v1595_v25 = vadd.f32 %v1594_v19, %v1571_v2  ;;  %v1637_v19 = vld [vmem:[%s634_s20 + $0x28] sm:$0x1]  ;;  %v1799_v2 = vld [vmem:[#allocation3] sm:$0xff] }
 0x13d   : > { %1645 = vst.msk [vmem:[#allocation3 + $0x28] sm:$0x1] %vm1644_vm2, %v1637_v19  ;;  %v1914_v19 = vld [vmem:[%s5465_s8 + $0x58] sm:$0xff] }
 0x13e   : > { %v4537_v6 = vadd.f32 %v1618_v13, %v1595_v25 }
 0x13f   : > { %v1549_v26 = vpop.f32.mrf.mxu2 }
 0x140   : > { %v1550_v27 = vadd.f32 %v1549_v26, %v1526_v10  ;;  %1658 = vadd.xlane.f32.xlu1 %v4537_v6  ;;  %v1948_v10 = vld [vmem:[%s5465_s8 + $0x168] sm:$0xff]  ;;  %v1950_v26 = vld [vmem:[%s5465_s8 + $0x178] sm:$0xff] }
 0x141   : > { %1959 = vmatpush.msrb.mxu3 %v1948_v10  ;;  %2065 = vmatpush.msra.mxu1 %v1950_v26 }
 0x142   : > { %v1574_v28 = vadd.f32 %v1573_v4, %v1550_v27  ;;  %v1949_v4 = vld [vmem:[%s5465_s8 + $0x170] sm:$0xff] }
 0x143   : > { %2012 = vmatpush.msrb.mxu0 %v1949_v4  ;;  %v1945_v27 = vld [vmem:[%s5465_s8 + $0x150] sm:$0xff] }
 0x144   : > { %v1598_v30 = vadd.f32 %v1597_v57, %v1574_v28  ;;  %v1946_v57 = vld [vmem:[%s5465_s8 + $0x158] sm:$0xff]  ;;  %v1947_v28 = vld [vmem:[%s5465_s8 + $0x160] sm:$0xff]  ;;  %1960 = vmatpush.msrb.mxu3 %v1945_v27 }
 0x145   : > { %2013 = vmatpush.msrb.mxu0 %v1946_v57  ;;  %2066 = vmatpush.msra.mxu1 %v1947_v28 }
 0x146   : > { %v4542_v31 = vadd.f32 %v1621_v20, %v1598_v30  ;;  %v1801_v30 = vld [vmem:[#allocation3 + $0x10] sm:$0xff] }
 0x147   : > { %v1551_v12 = vpop.f32.mrf.mxu2 }
 0x148   : > { %v1552_v32 = vadd.f32 %v1551_v12, %v1528_v7  ;;  %1660 = vadd.xlane.f32.xlu2 %v4542_v31 }
 0x14a   : > { %v1576_v33 = vadd.f32 %v1575_v9, %v1552_v32 }
 0x14c   : > { %v1600_v35 = vadd.f32 %v1599_v34, %v1576_v33  ;;  %v1804_v33 = vld [vmem:[#allocation3 + $0x28] sm:$0xff] }
 0x14e   : > { %v1624_v37 = vadd.f32 %v1623_v36, %v1600_v35  ;;  %v1942_v35 = vld [vmem:[%s5465_s8 + $0x138] sm:$0xff]  ;;  %v1943_v36 = vld [vmem:[%s5465_s8 + $0x140] sm:$0xff] }
 0x14f   : > { %1961 = vmatpush.msrb.mxu3 %v1942_v35  ;;  %2014 = vmatpush.msrb.mxu0 %v1943_v36 }
 0x150   : > { %1631 = vst [vmem:[#allocation2 + $0x20] sm:$0x1] %v1624_v37  ;;  %v1944_v37 = vld [vmem:[%s5465_s8 + $0x148] sm:$0xff] }
 0x151   : > { %2067 = vmatpush.msra.mxu1 %v1944_v37  ;;  %2015 = vmatpush.msrb.mxu0 %v1940_v14  ;;  %v4767_v37 = vld [vmem:[#allocation6] ss:$0 sm:$0xff] }
 0x153   : > { %2068 = vmatpush.msra.mxu1 %v1941_v39  ;;  %2016 = vmatpush.msrb.mxu0 %v1937_v16 }
 0x155   : > { %2069 = vmatpush.msra.mxu1 %v1938_v41 }
 0x157   : > { %v4546_v38 = vld [vmem:[#allocation2 + $0x20] sm:$0xff] }
 0x158   : > { %1662 = vadd.xlane.f32.xlu2 %v4546_v38 }
 0x19b   : > { %v1653_v45 = vpop.xlane.xlu0 %1652 }
 0x19c   : > { %v1671_v47 = vmul.f32 %v4549_v44, %v1653_v45  ;;  %v1934_v45 = vld [vmem:[%s5465_s8 + $0xf8] sm:$0xff] }
 0x19d   : > { %2017 = vmatpush.msrb.mxu0 %v1934_v45 }
 0x19e   : > { %v4553_v48 = vsub.f32 %v4517_v42, %v1671_v47  ;;  %v1935_v47 = vld [vmem:[%s5465_s8 + $0x100] sm:$0xff] }
 0x19f   : > { %2070 = vmatpush.msra.mxu1 %v1935_v47 }
 0x1a0   : > { %v1683_v53 = vmul.f32 %v4553_v48, %v4553_v48 }
 0x1a1   : > { %2071 = vmatpush.msra.mxu1 %v1932_v55 }
 0x1a2   : > { %1689 = vadd.xlane.f32.xlu0 %v1683_v53  ;;  %v1931_v53 = vld [vmem:[%s5465_s8 + $0xe0] sm:$0xff] }
 0x1a3   : > { %v1655_v56 = vpop.xlane.xlu0 %1654  ;;  %2018 = vmatpush.msrb.mxu0 %v1931_v53 }
 0x1a4   : > { %v1672_v58 = vmul.f32 %v4549_v44, %v1655_v56  ;;  %v1927_v56 = vld [vmem:[%s5465_s8 + $0xc0] sm:$0xff] }
 0x1a6   : > { %v4565_v42 = vsub.f32 %v4522_v0, %v1672_v58  ;;  %v3746_v0 = vld [vmem:[%s5463_s6 + $0x20] sm:$0xff]  ;;  %v1928_v58 = vld [vmem:[%s5465_s8 + $0xc8] sm:$0xff] }
 0x1a7   : > { %1879 = vmatpush.bf16.msrb.mxu2 %v3746_v0  ;;  %2019 = vmatpush.msrb.mxu0 %v1928_v58  ;;  %v1921_v0 = vld [vmem:[%s5465_s8 + $0x90] sm:$0xff] }
 0x1a8   : > { %v1684_v50 = vmul.f32 %v4565_v42, %v4565_v42 }
 0x1a9   : > { %2020 = vmatpush.msrb.mxu0 %v1925_v61 }
 0x1aa   : > { %1691 = vadd.xlane.f32.xlu1 %v1684_v50  ;;  %v1929_v50 = vld [vmem:[%s5465_s8 + $0xd0] sm:$0xff] }
 0x1ab   : > { %v1657_v60 = vpop.xlane.xlu1 %1656  ;;  %1880 = vmatpush.bf16.msrb.mxu2 %v3745_v5  ;;  %2072 = vmatpush.msra.mxu1 %v1929_v50  ;;  %v1923_v5 = vld [vmem:[%s5465_s8 + $0xa0] sm:$0xff] }
 0x1ac   : > { %v1673_v59 = vmul.f32 %v4549_v44, %v1657_v60  ;;  %v1924_v60 = vld [vmem:[%s5465_s8 + $0xa8] sm:$0xff] }
 0x1ae   : > { %v4575_v3 = vsub.f32 %v4530_v18, %v1673_v59  ;;  %v1636_v18 = vld [vmem:[%s634_s20 + $0x20] sm:$0xff]  ;;  %v1926_v59 = vld [vmem:[%s5465_s8 + $0xb8] sm:$0xff]  ;;  %s4778_s20 = scalar_lea.vmem %s5475_s18, %s3776_s30 }
 0x1af   : > { %1643 = vst.msk [vmem:[#allocation3 + $0x20] sm:$0xff] %vm1638_vm1, %v1636_v18  ;;  %1881 = vmatpush.bf16.msrb.mxu2 %v3744_v1  ;;  %2073 = vmatpush.msra.mxu1 %v1926_v59  ;;  %v1912_v1 = vld [vmem:[%s5465_s8 + $0x48] sm:$0xff]  ;;  %v1913_v18 = vld [vmem:[%s5465_s8 + $0x50] sm:$0xff] }
 0x1b0   : > { %v1685_v51 = vmul.f32 %v4575_v3, %v4575_v3 }
 0x1b1   : > { %2074 = vmatpush.msra.mxu1 %v1923_v5 }
 0x1b2   : > { %1693 = vadd.xlane.f32.xlu2 %v1685_v51  ;;  %v1922_v51 = vld [vmem:[%s5465_s8 + $0x98] sm:$0xff] }
 0x1b3   : > { %v1659_v8 = vpop.xlane.xlu1 %1658  ;;  %1882 = vmatpush.bf16.msrb.mxu2 %v3743_v54  ;;  %2021 = vmatpush.msrb.mxu0 %v1922_v51  ;;  %v1910_v54 = vld [vmem:[%s5465_s8 + $0x38] sm:$0xff] }
 0x1b4   : > { %v1674_v15 = vmul.f32 %v4549_v44, %v1659_v8  ;;  %v1918_v8 = vld [vmem:[%s5465_s8 + $0x78] sm:$0xff]  ;;  %2075 = vmatpush.msra.mxu1 %v1920_v62 }
 0x1b5   : > { %2022 = vmatpush.msrb.mxu0 %v1919_v11 }
 0x1b6   : > { %v4595_v63 = vsub.f32 %v4537_v6, %v1674_v15  ;;  %v1805_v6 = vpack.c.bf16 %v1800_v24, %v1799_v2  ;;  %v1803_v9 = vld [vmem:[#allocation3 + $0x20] sm:$0xff]  ;;  %v1915_v15 = vld [vmem:[%s5465_s8 + $0x60] sm:$0xff]  ;;  %2076 = vmatpush.msra.mxu1 %v1917_v17  ;;  %v1908_v2 = vld [vmem:[%s5465_s8 + $0x28] sm:$0xff] }
 0x1b7   : > { %1883 = vmatpush.bf16.msrb.mxu2 %v3742_v23  ;;  %v1807_v34 = vpack.c.bf16 %v1804_v33, %v1803_v9  ;;  %2023 = vmatpush.msrb.mxu0 %v1916_v46  ;;  %v1907_v23 = vld [vmem:[%s5465_s8 + $0x20] sm:$0xff] }
 0x1b8   : > { %v1686_v21 = vmul.f32 %v4595_v63, %v4595_v63  ;;  %2077 = vmatpush.msra.mxu1 %v1914_v19  ;;  %v1903_v24 = vld [vmem:[%s5465_s8] sm:$0xff] }
 0x1b9   : > { %2024 = vmatpush.msrb.mxu0 %v1913_v18 }
 0x1ba   : > { %1695 = vadd.xlane.f32.xlu0 %v1686_v21  ;;  %1884 = vmatmul.bf16.vlgmr.msrb.gmra.mxu2 %v1805_v6  ;;  %v1909_v21 = vld [vmem:[%s5465_s8 + $0x30] sm:$0xff] }
 0x1bb   : > { %v1661_v22 = vpop.xlane.xlu2 %1660  ;;  %2025 = vmatpush.msrb.mxu0 %v1910_v54  ;;  %v1905_v6 = vld [vmem:[%s5465_s8 + $0x10] sm:$0xff] }
 0x1bc   : > { %v1675_v13 = vmul.f32 %v4549_v44, %v1661_v22  ;;  %v1911_v22 = vld [vmem:[%s5465_s8 + $0x40] sm:$0xff] }
 0x1bd   : > { %2078 = vmatpush.msra.mxu1 %v1911_v22  ;;  %2026 = vmatpush.msrb.mxu0 %v1907_v23 }
 0x1be   : > { %v4610_v25 = vsub.f32 %v4542_v31, %v1675_v13  ;;  %v1802_v31 = vld [vmem:[#allocation3 + $0x18] sm:$0xff]  ;;  %v1906_v13 = vld [vmem:[%s5465_s8 + $0x18] sm:$0xff] }
 0x1bf   : > { %v1806_v32 = vpack.c.bf16 %v1802_v31, %v1801_v30  ;;  %2079 = vmatpush.msra.mxu1 %v1908_v2 }
 0x1c0   : > { %v1687_v49 = vmul.f32 %v4610_v25, %v4610_v25 }
 0x1c1   : > { %2080 = vmatpush.msra.mxu1 %v1905_v6 }
 0x1c2   : > { %1697 = vadd.xlane.f32.xlu1 %v1687_v49  ;;  %v1904_v49 = vld [vmem:[%s5465_s8 + $0x8] sm:$0xff] }
 0x1c3   : > { %2027 = vmatpush.msrb.mxu0 %v1904_v49 }
 0x1ca   : > { %1889 = vmatmul.bf16.gmra.mxu2 %v1806_v32 }
 0x1cb   : > { %v1663_v29 = vpop.xlane.xlu2 %1662 }
 0x1cc   : > { %v1676_v20 = vmul.f32 %v4549_v44, %v1663_v29 }
 0x1ce   : > { %v4634_v7 = vsub.f32 %v4546_v38, %v1676_v20  ;;  %v1939_v38 = vld [vmem:[%s5465_s8 + $0x120] sm:$0xff] }
 0x1cf   : > { %1962 = vmatpush.msrb.mxu3 %v1939_v38 }
 0x1d0   : > { %v1688_v12 = vmul.f32 %v4634_v7, %v4634_v7 }
 0x1d1   : > { %1963 = vmatpush.msrb.mxu3 %v1936_v40  ;;  %v4771_v40 = vld [vmem:[#allocation8] ss:$0 sm:$0xff] }
 0x1d2   : > { %1699 = vadd.xlane.f32.xlu2 %v1688_v12 }
 0x1d3   : > { %1964 = vmatpush.msrb.mxu3 %v1933_v43 }
 0x1d5   : > { %1965 = vmatpush.msrb.mxu3 %v1930_v52 }
 0x1d7   : > { %1966 = vmatpush.msrb.mxu3 %v1927_v56 }
 0x1d9   : > { %1967 = vmatpush.msrb.mxu3 %v1924_v60 }
 0x1da   : > { %1894 = vmatmul.bf16.gmra.mxu2 %v1807_v34 }
 0x1db   : > { %1968 = vmatpush.msrb.mxu3 %v1921_v0 }
 0x1dd   : > { %1969 = vmatpush.msrb.mxu3 %v1918_v8 }
 0x1df   : > { %1970 = vmatpush.msrb.mxu3 %v1915_v15 }
 0x1e1   : > { %1971 = vmatpush.msrb.mxu3 %v1912_v1 }
 0x1e3   : > { %1972 = vmatpush.msrb.mxu3 %v1909_v21 }
 0x1e5   : > { %1973 = vmatpush.msrb.mxu3 %v1906_v13 }
 0x1e7   : > { %1974 = vmatpush.msrb.mxu3 %v1903_v24 }
 0x215   : > { %v1690_v10 = vpop.xlane.xlu0 %1689 }
 0x216   : > { %v1701_v4 = vmul.f32 %v1690_v10, %v4549_v44  ;;  %v3821_v10 = vld [vmem:[%s5464_s7] ss:$0 sm:$0xff] }
 0x218   : > { %v1707_v26 = vadd.f32 1e-05, %v1701_v4 }
 0x21a   : > { %3827 = vrsqrt.f32 %v1707_v26  ;;  %vm1719_vm4 = vweird.f32 %v1707_v26 }
 0x21d   : > { %v1692_v27 = vpop.xlane.xlu1 %1691 }
 0x21e   : > { %v1702_v57 = vmul.f32 %v1692_v27, %v4549_v44 }
 0x220   : > { %v3828_v28 = vpop.eup %3827  ;;  %v1708_v29 = vadd.f32 1e-05, %v1702_v57 }
 0x221   : > { %v1714_v20 = vmul.f32 %v3828_v28, %v1707_v26  ;;  %vm1720_vm3 = vweird.f32 %v3828_v28 }
 0x222   : > { %3829 = vrsqrt.f32 %v1708_v29  ;;  %vm1721_vm5 = vmor %vm1719_vm4, %vm1720_vm3  ;;  %vm1729_vm7 = vweird.f32 %v1708_v29 }
 0x223   : > { %v1715_v30 = vmul.f32 %v3828_v28, %v1714_v20 }
 0x225   : > { %v1716_v31 = vmul.f32 0.5, %v1715_v30  ;;  %v1694_v12 = vpop.xlane.xlu2 %1693 }
 0x226   : > { %v1703_v32 = vmul.f32 %v1694_v12, %v4549_v44 }
 0x227   : > { %v1717_v9 = vsub.f32 1.5, %v1716_v31 }
 0x228   : > { %v3830_v33 = vpop.eup %3829  ;;  %v1709_v34 = vadd.f32 1e-05, %v1703_v32 }
 0x229   : > { %v1718_v35 = vmul.f32 %v3828_v28, %v1717_v9  ;;  %v1724_v36 = vmul.f32 %v3830_v33, %v1708_v29  ;;  %vm1730_vm6 = vweird.f32 %v3830_v33 }
 0x22a   : > { %3831 = vrsqrt.f32 %v1709_v34  ;;  %vm1731_vm8 = vmor %vm1729_vm7, %vm1730_vm6  ;;  %vm1739_vm10 = vweird.f32 %v1709_v34  ;;  %vm2214_vm6 = vcmask 392192  }
 0x22b   : > { %v1722_v38 = vsel %vm1721_vm5, %v3828_v28, %v1718_v35  ;;  %v1725_v14 = vmul.f32 %v3830_v33, %v1724_v36 }
 0x22c   : > { %v1773_v39 = vmul.f32 %v1722_v38, %v4553_v48 }
 0x22d   : > { %v1726_v16 = vmul.f32 0.5, %v1725_v14  ;;  %v1696_v41 = vpop.xlane.xlu0 %1695 }
 0x22e   : > { %v1704_v43 = vmul.f32 %v1696_v41, %v4549_v44  ;;  %v1783_v45 = vmul.f32 %v4767_v37, %v1773_v39 }
 0x22f   : > { %v1727_v47 = vsub.f32 1.5, %v1726_v16 }
 0x230   : > { %v3832_v52 = vpop.eup %3831  ;;  %v1710_v53 = vadd.f32 1e-05, %v1704_v43  ;;  %v1793_v48 = vadd.f32 %v4771_v40, %v1783_v45 }
 0x231   : > { %v1728_v55 = vmul.f32 %v3830_v33, %v1727_v47  ;;  %v1734_v56 = vmul.f32 %v3832_v52, %v1709_v34  ;;  %vm1740_vm9 = vweird.f32 %v3832_v52 }
 0x232   : > { %3833 = vrsqrt.f32 %v1710_v53  ;;  %1975 = vmatmul.f32.vlgmr.msrb.gmra.mxu3 %v1793_v48  ;;  %3160 = vst [vmem:[%s4778_s20 + $0x10] sm:$0xff] %v1793_v48  ;;  %2028 = vmatmul.f32.vlgmr.msrb.gmra.mxu0 %v1793_v48  ;;  %vm1741_vm11 = vmor %vm1739_vm10, %vm1740_vm9  ;;  %vm1749_vm13 = vweird.f32 %v1710_v53 }
 0x233   : > { %v1732_v58 = vsel %vm1731_vm8, %v3830_v33, %v1728_v55  ;;  %v1735_v50 = vmul.f32 %v3832_v52, %v1734_v56  ;;  %2081 = vmatmul.f32.vlgmr.msra.gmra.mxu1 %v1793_v48 }
 0x234   : > { %v1774_v60 = vmul.f32 %v1732_v58, %v4565_v42 }
 0x235   : > { %v1736_v61 = vmul.f32 0.5, %v1735_v50  ;;  %v1698_v59 = vpop.xlane.xlu1 %1697 }
 0x236   : > { %v1705_v0 = vmul.f32 %v1698_v59, %v4549_v44  ;;  %v1784_v51 = vmul.f32 %v4767_v37, %v1774_v60 }
 0x237   : > { %v1737_v5 = vsub.f32 1.5, %v1736_v61 }
 0x238   : > { %v3834_v8 = vpop.eup %3833  ;;  %v1711_v11 = vadd.f32 1e-05, %v1705_v0  ;;  %v1794_v62 = vadd.f32 %v4771_v40, %v1784_v51 }
 0x239   : > { %v1738_v15 = vmul.f32 %v3832_v52, %v1737_v5  ;;  %v1744_v46 = vmul.f32 %v3834_v8, %v1710_v53  ;;  %vm1750_vm12 = vweird.f32 %v3834_v8  ;;  %v1951_v5 = vld [vmem:[%s5466_s9] sm:$0x7] }
 0x23a   : > { %3835 = vrsqrt.f32 %v1711_v11  ;;  %1978 = vmatmul.f32.gmra.mxu3 %v1794_v62  ;;  %3161 = vst [vmem:[%s4778_s20 + $0x30] sm:$0xff] %v1794_v62  ;;  %2031 = vmatmul.f32.gmra.mxu0 %v1794_v62  ;;  %vm1751_vm14 = vmor %vm1749_vm13, %vm1750_vm12  ;;  %vm1759_vm0 = vweird.f32 %v1711_v11 }
 0x23b   : > { %v1742_v42 = vsel %vm1741_vm11, %v3832_v52, %v1738_v15  ;;  %v1745_v17 = vmul.f32 %v3834_v8, %v1744_v46  ;;  %2084 = vmatmul.f32.gmra.mxu1 %v1794_v62 }
 0x23c   : > { %v1775_v1 = vmul.f32 %v1742_v42, %v4575_v3 }
 0x23d   : > { %v1746_v18 = vmul.f32 0.5, %v1745_v17  ;;  %v1885_v57 = vpop.f32.mrf.mxu2 }
 0x23e   : > { %v1785_v19 = vmul.f32 %v4767_v37, %v1775_v1 }
 0x23f   : > { %v1747_v21 = vsub.f32 1.5, %v1746_v18 }
 0x240   : > { %v3836_v54 = vpop.eup %3835  ;;  %v1795_v22 = vadd.f32 %v4771_v40, %v1785_v19 }
 0x241   : > { %v1748_v13 = vmul.f32 %v3834_v8, %v1747_v21  ;;  %v1754_v23 = vmul.f32 %v3836_v54, %v1711_v11  ;;  %vm1760_vm15 = vweird.f32 %v3836_v54  ;;  %v4818_v11 = vperm.slane %v1951_v5, 2 }
 0x242   : > { %1981 = vmatmul.f32.gmra.mxu3 %v1795_v22  ;;  %3162 = vst [vmem:[%s4778_s20 + $0x50] sm:$0xff] %v1795_v22  ;;  %2034 = vmatmul.f32.gmra.mxu0 %v1795_v22  ;;  %vm1761_vm1 = vmor %vm1759_vm0, %vm1760_vm15 }
 0x243   : > { %v1752_v2 = vsel %vm1751_vm14, %v3834_v8, %v1748_v13  ;;  %v1755_v24 = vmul.f32 %v3836_v54, %v1754_v23  ;;  %2087 = vmatmul.f32.gmra.mxu1 %v1795_v22  ;;  %v4816_v8 = vperm.slane %v1951_v5, 1 }
 0x244   : > { %v1776_v3 = vmul.f32 %v1752_v2, %v4595_v63  ;;  %v1886_v63 = vadd.f32 %v3821_v10, %v1885_v57 }
 0x245   : > { %v1756_v49 = vmul.f32 0.5, %v1755_v24  ;;  %v1700_v6 = vpop.xlane.xlu2 %1699  ;;  %v1887_v12 = vpop.f32.mrf.mxu2 }
 0x246   : > { %v1706_v4 = vmul.f32 %v1700_v6, %v4549_v44  ;;  %v1786_v26 = vmul.f32 %v4767_v37, %v1776_v3  ;;  %3166 = vst [vmem:[%s4778_s20 + $0x18] sm:$0xff] %v1886_v63  ;;  %v1888_v34 = vadd.f32 %v3821_v10, %v1887_v12 }
 0x247   : > { %v1757_v27 = vsub.f32 1.5, %v1756_v49 }
 0x248   : > { %v1712_v28 = vadd.f32 1e-05, %v1706_v4  ;;  %v1796_v29 = vadd.f32 %v4771_v40, %v1786_v26  ;;  %3167 = vst [vmem:[%s4778_s20 + $0x38] sm:$0xff] %v1888_v34  ;;  %v4833_v4 = vperm.slane %v1951_v5, 0 }
 0x249   : > { %v1758_v20 = vmul.f32 %v3836_v54, %v1757_v27 }
 0x24a   : > { %3837 = vrsqrt.f32 %v1712_v28  ;;  %1984 = vmatmul.f32.gmra.mxu3 %v1796_v29  ;;  %3163 = vst [vmem:[%s4778_s20 + $0x70] sm:$0xff] %v1796_v29  ;;  %2037 = vmatmul.f32.gmra.mxu0 %v1796_v29  ;;  %vm1769_vm3 = vweird.f32 %v1712_v28 }
 0x24b   : > { %v1762_v44 = vsel %vm1761_vm1, %v3836_v54, %v1758_v20  ;;  %2090 = vmatmul.f32.gmra.mxu1 %v1796_v29 }
 0x24c   : > { %v1777_v30 = vmul.f32 %v1762_v44, %v4610_v25 }
 0x24d   : > { %v1890_v25 = vpop.f32.mrf.mxu2 }
 0x24e   : > { %v1787_v31 = vmul.f32 %v4767_v37, %v1777_v30  ;;  %v1891_v14 = vadd.f32 %v3821_v10, %v1890_v25 }
 0x250   : > { %v3838_v32 = vpop.eup %3837  ;;  %v1797_v9 = vadd.f32 %v4771_v40, %v1787_v31  ;;  %3168 = vst [vmem:[%s4778_s20 + $0x58] sm:$0xff] %v1891_v14 }
 0x251   : > { %v1764_v33 = vmul.f32 %v3838_v32, %v1712_v28  ;;  %vm1770_vm2 = vweird.f32 %v3838_v32 }
 0x252   : > { %1987 = vmatmul.f32.gmra.mxu3 %v1797_v9  ;;  %3164 = vst [vmem:[%s4778_s20 + $0x90] sm:$0xff] %v1797_v9  ;;  %2040 = vmatmul.f32.gmra.mxu0 %v1797_v9  ;;  %vm1771_vm4 = vmor %vm1769_vm3, %vm1770_vm2 }
 0x253   : > { %v1765_v35 = vmul.f32 %v3838_v32, %v1764_v33  ;;  %2093 = vmatmul.f32.gmra.mxu1 %v1797_v9 }
 0x255   : > { %v1766_v36 = vmul.f32 0.5, %v1765_v35  ;;  %v1892_v45 = vpop.f32.mrf.mxu2 }
 0x256   : > { %v1893_v52 = vadd.f32 %v3821_v10, %v1892_v45 }
 0x257   : > { %v1767_v38 = vsub.f32 1.5, %v1766_v36 }
 0x258   : > { %3169 = vst [vmem:[%s4778_s20 + $0x78] sm:$0xff] %v1893_v52 }
 0x259   : > { %v1768_v39 = vmul.f32 %v3838_v32, %v1767_v38 }
 0x25b   : > { %v1772_v16 = vsel %vm1771_vm4, %v3838_v32, %v1768_v39 }
 0x25c   : > { %v1778_v41 = vmul.f32 %v1772_v16, %v4634_v7 }
 0x25d   : > { %v1895_v53 = vpop.f32.mrf.mxu2 }
 0x25e   : > { %v1788_v43 = vmul.f32 %v4767_v37, %v1778_v41  ;;  %v1896_v48 = vadd.f32 %v3821_v10, %v1895_v53 }
 0x260   : > { %v1798_v47 = vadd.f32 %v4771_v40, %v1788_v43  ;;  %3170 = vst [vmem:[%s4778_s20 + $0x98] sm:$0xff] %v1896_v48 }
 0x262   : > { %1990 = vmatmul.f32.gmra.mxu3 %v1798_v47  ;;  %3165 = vst [vmem:[%s4778_s20 + $0xb0] sm:$0x1] %v1798_v47  ;;  %2043 = vmatmul.f32.gmra.mxu0 %v1798_v47 }
 0x263   : > { %2096 = vmatmul.f32.gmra.mxu1 %v1798_v47 }
 0x265   : > { %v1897_v55 = vpop.f32.mrf.mxu2 }
 0x266   : > { %v1898_v7 = vadd.f32 %v3821_v10, %v1897_v55 }
 0x268   : > { %3171 = vst [vmem:[%s4778_s20 + $0xb8] sm:$0x1] %v1898_v7 }
 0x26a   : > { %2046 = vmatmul.f32.gmra.mxu0 %v1886_v63  ;;  %1993 = vmatmul.f32.gmra.mxu3 %v1886_v63 }
 0x26b   : > { %2099 = vmatmul.f32.gmra.mxu1 %v1886_v63 }
 0x272   : > { %2049 = vmatmul.f32.gmra.mxu0 %v1888_v34  ;;  %1996 = vmatmul.f32.gmra.mxu3 %v1888_v34 }
 0x273   : > { %2102 = vmatmul.f32.gmra.mxu1 %v1888_v34 }
 0x27a   : > { %2052 = vmatmul.f32.gmra.mxu0 %v1891_v14  ;;  %1999 = vmatmul.f32.gmra.mxu3 %v1891_v14 }
 0x27b   : > { %2105 = vmatmul.f32.gmra.mxu1 %v1891_v14 }
 0x282   : > { %2055 = vmatmul.f32.gmra.mxu0 %v1893_v52  ;;  %2002 = vmatmul.f32.gmra.mxu3 %v1893_v52 }
 0x283   : > { %2108 = vmatmul.f32.gmra.mxu1 %v1893_v52 }
 0x28a   : > { %2058 = vmatmul.f32.gmra.mxu0 %v1896_v48  ;;  %2005 = vmatmul.f32.gmra.mxu3 %v1896_v48 }
 0x28b   : > { %2111 = vmatmul.f32.gmra.mxu1 %v1896_v48 }
 0x292   : > { %2061 = vmatmul.f32.gmra.mxu0 %v1898_v7  ;;  %2008 = vmatmul.f32.gmra.mxu3 %v1898_v7 }
 0x293   : > { %2114 = vmatmul.f32.gmra.mxu1 %v1898_v7 }
 0x2af   : > { %v2029_v37 = vpop.f32.mrf.mxu0 }
 0x2b0   : > { %v2082_v40 = vpop.f32.mrf.mxu1  ;;  %v2030_v26 = vadd.f32 %v2029_v37, %v4816_v8 }
 0x2b1   : > { %v2083_v2 = vadd.f32 %v2082_v40, %v4818_v11 }
 0x2b5   : > { %v1976_v17 = vpop.f32.mrf.mxu3 }
 0x2b6   : > { %v1977_v57 = vadd.f32 %v1976_v17, %v4833_v4 }
 0x2b7   : > { %v2032_v56 = vpop.f32.mrf.mxu0 }
 0x2b8   : > { %v2085_v58 = vpop.f32.mrf.mxu1  ;;  %v2033_v6 = vadd.f32 %v2032_v56, %v4816_v8 }
 0x2b9   : > { %v2086_v23 = vadd.f32 %v2085_v58, %v4818_v11 }
 0x2bd   : > { %v1979_v24 = vpop.f32.mrf.mxu3 }
 0x2be   : > { %v1980_v20 = vadd.f32 %v1979_v24, %v4833_v4 }
 0x2bf   : > { %v2035_v50 = vpop.f32.mrf.mxu0 }
 0x2c0   : > { %v2088_v60 = vpop.f32.mrf.mxu1  ;;  %v2036_v3 = vadd.f32 %v2035_v50, %v4816_v8 }
 0x2c1   : > { %v2089_v21 = vadd.f32 %v2088_v60, %v4818_v11 }
 0x2c5   : > { %v1982_v27 = vpop.f32.mrf.mxu3 }
 0x2c6   : > { %v1983_v31 = vadd.f32 %v1982_v27, %v4833_v4 }
 0x2c7   : > { %v2038_v61 = vpop.f32.mrf.mxu0 }
 0x2c8   : > { %v2091_v59 = vpop.f32.mrf.mxu1  ;;  %v2039_v22 = vadd.f32 %v2038_v61, %v4816_v8 }
 0x2c9   : > { %v2092_v19 = vadd.f32 %v2091_v59, %v4818_v11 }
 0x2cd   : > { %v1985_v44 = vpop.f32.mrf.mxu3 }
 0x2ce   : > { %v1986_v33 = vadd.f32 %v1985_v44, %v4833_v4 }
 0x2cf   : > { %v2041_v0 = vpop.f32.mrf.mxu0 }
 0x2d0   : > { %v2094_v51 = vpop.f32.mrf.mxu1  ;;  %v2042_v18 = vadd.f32 %v2041_v0, %v4816_v8 }
 0x2d1   : > { %v2095_v1 = vadd.f32 %v2094_v51, %v4818_v11 }
 0x2d5   : > { %v1988_v9 = vpop.f32.mrf.mxu3 }
 0x2d6   : > { %v1989_v45 = vadd.f32 %v1988_v9, %v4833_v4 }
 0x2df   : > { %v2044_v62 = vpop.f32.mrf.mxu0 }
 0x2e0   : > { %v2045_v15 = vadd.f32 %v2044_v62, %v4816_v8  ;;  %v2097_v46 = vpop.f32.mrf.mxu1 }
 0x2e1   : > { %v2098_v42 = vadd.f32 %v2097_v46, %v4818_v11 }
 0x2e2   : > { %2128 = vmatpush.xpose.msra.mxu2 %v2045_v15 }
 0x2e3   : > { %2375 = vmatpush.msra.mxu3 %v2098_v42 }
 0x2e5   : > { %2376 = vmatpush.msra.mxu3 %v2095_v1  ;;  %v1991_v14 = vpop.f32.mrf.mxu3 }
 0x2e6   : > { %2129 = vmatpush.xpose.msra.mxu2 %v2042_v18  ;;  %v1992_v7 = vadd.f32 %v1991_v14, %v4833_v4 }
 0x2e7   : > { %2377 = vmatpush.msra.mxu3 %v2092_v19  ;;  %v4826_v54 = vpop.f32.mrf.mxu0 }
 0x2e8   : > { %v2100_v13 = vpop.f32.mrf.mxu1  ;;  %v2048_v37 = vadd.f32 %v4826_v54, %v4816_v8 }
 0x2e9   : > { %2378 = vmatpush.msra.mxu3 %v2089_v21  ;;  %v2101_v52 = vadd.f32 %v2100_v13, %v4818_v11 }
 0x2ea   : > { %2130 = vmatpush.xpose.msra.mxu2 %v2039_v22 }
 0x2eb   : > { %2379 = vmatpush.msra.mxu3 %v2086_v23 }
 0x2ed   : > { %2380 = vmatpush.msra.mxu3 %v2083_v2  ;;  %v1994_v48 = vpop.f32.mrf.mxu3 }
 0x2ee   : > { %2131 = vmatpush.xpose.msra.mxu2 %v2036_v3  ;;  %v1995_v56 = vadd.f32 %v1994_v48, %v4833_v4 }
 0x2ef   : > { %v2050_v49 = vpop.f32.mrf.mxu0 }
 0x2f0   : > { %v2103_v10 = vpop.f32.mrf.mxu1  ;;  %v2051_v55 = vadd.f32 %v2050_v49, %v4816_v8 }
 0x2f1   : > { %v2104_v47 = vadd.f32 %v2103_v10, %v4818_v11 }
 0x2f2   : > { %2132 = vmatpush.xpose.msra.mxu2 %v2033_v6 }
 0x2f5   : > { %v1997_v40 = vpop.f32.mrf.mxu3 }
 0x2f6   : > { %2133 = vmatpush.xpose.msra.mxu2 %v2030_v26  ;;  %v1998_v50 = vadd.f32 %v1997_v40, %v4833_v4 }
 0x2f7   : > { %v2053_v28 = vpop.f32.mrf.mxu0 }
 0x2f8   : > { %v2106_v29 = vpop.f32.mrf.mxu1  ;;  %v2054_v53 = vadd.f32 %v2053_v28, %v4816_v8 }
 0x2f9   : > { %2134 = vmatmul.f32.vlgmr.msra.gmra.mxu2 %v1977_v57  ;;  %v2107_v41 = vadd.f32 %v2106_v29, %v4818_v11 }
 0x2fd   : > { %v2000_v58 = vpop.f32.mrf.mxu3 }
 0x2fe   : > { %v2001_v60 = vadd.f32 %v2000_v58, %v4833_v4 }
 0x2ff   : > { %v2056_v63 = vpop.f32.mrf.mxu0 }
 0x300   : > { %v2109_v30 = vpop.f32.mrf.mxu1  ;;  %v2057_v43 = vadd.f32 %v2056_v63, %v4816_v8 }
 0x301   : > { %2137 = vmatmul.f32.gmra.mxu2 %v1980_v20  ;;  %v2110_v16 = vadd.f32 %v2109_v30, %v4818_v11 }
 0x305   : > { %v2003_v61 = vpop.f32.mrf.mxu3 }
 0x306   : > { %v2004_v59 = vadd.f32 %v2003_v61, %v4833_v4 }
 0x307   : > { %v2059_v12 = vpop.f32.mrf.mxu0 }
 0x308   : > { %v2112_v32 = vpop.f32.mrf.mxu1  ;;  %v2060_v39 = vadd.f32 %v2059_v12, %v4816_v8 }
 0x309   : > { %2140 = vmatmul.f32.gmra.mxu2 %v1983_v31  ;;  %v2113_v38 = vadd.f32 %v2112_v32, %v4818_v11 }
 0x30d   : > { %v2006_v0 = vpop.f32.mrf.mxu3 }
 0x30e   : > { %v2007_v51 = vadd.f32 %v2006_v0, %v4833_v4 }
 0x30f   : > { %v2062_v34 = vpop.f32.mrf.mxu0 }
 0x310   : > { %v2063_v35 = vadd.f32 %v2062_v34, %v4816_v8  ;;  %v2115_v36 = vpop.f32.mrf.mxu1 }
 0x311   : > { %2143 = vmatmul.f32.gmra.mxu2 %v1986_v33  ;;  %v2116_v25 = vadd.f32 %v2115_v36, %v4818_v11  ;;  %v1900_v11 = vlaneseq }
 0x312   : > { %2163 = vmatpush.xpose.msrb.mxu2 %v2063_v35 }
 0x313   : > { %2428 = vmatpush.msra.mxu0 %v2116_v25  ;;  %v4861_v62 = vand.u32 127, %v1900_v11 }
 0x315   : > { %2429 = vmatpush.msra.mxu0 %v2113_v38  ;;  %v2009_v5 = vpop.f32.mrf.mxu3  ;;  %vm1902_vm5 = vcmp.lt.s32.totalorder %v4861_v62, 41 }
 0x316   : > { %2164 = vmatpush.xpose.msrb.mxu2 %v2060_v39  ;;  %v2010_v8 = vadd.f32 %v2009_v5, %v4833_v4 }
 0x317   : > { %2430 = vmatpush.msra.mxu0 %v2110_v16 }
 0x319   : > { %2146 = vmatmul.f32.gmra.mxu2 %v1989_v45  ;;  %2431 = vmatpush.msra.mxu0 %v2107_v41 }
 0x31a   : > { %2165 = vmatpush.xpose.msrb.mxu2 %v2057_v43 }
 0x31b   : > { %2432 = vmatpush.msra.mxu0 %v2104_v47 }
 0x31d   : > { %2433 = vmatpush.msra.mxu0 %v2101_v52 }
 0x31e   : > { %2166 = vmatpush.xpose.msrb.mxu2 %v2054_v53 }
 0x321   : > { %2149 = vmatmul.f32.gmra.mxu2 %v1992_v7 }
 0x322   : > { %2167 = vmatpush.xpose.msrb.mxu2 %v2051_v55 }
 0x326   : > { %2168 = vmatpush.xpose.msrb.mxu2 %v2048_v37 }
 0x329   : > { %2169 = vmatmul.f32.vlgmr.msrb.gmra.mxu2 %v1995_v56 }
 0x331   : > { %2172 = vmatmul.f32.gmra.mxu2 %v1998_v50 }
 0x339   : > { %2175 = vmatmul.f32.gmra.mxu2 %v2001_v60 }
 0x341   : > { %2178 = vmatmul.f32.gmra.mxu2 %v2004_v59 }
 0x349   : > { %2181 = vmatmul.f32.gmra.mxu2 %v2007_v51 }
 0x351   : > { %2184 = vmatmul.f32.gmra.mxu2 %v2010_v8 }
 0x37c   : > { %v2135_v15 = vpop.f32.mrf.mxu2 }
 0x37d   : > { %v2188_v46 = vmul.f32 0.088388346, %v2135_v15 }
 0x37f   : > { %v2202_v42 = vsel %vm1902_vm5, %v2188_v46, -1e+30 }
 0x380   : > { %v2215_v17 = vsel %vm2214_vm6, %v2202_v42, -inf }
 0x381   : > { %2216 = vmax.xlane.f32.xlu0 %v2215_v17 }
 0x384   : > { %v2138_v1 = vpop.f32.mrf.mxu2 }
 0x385   : > { %v2189_v18 = vmul.f32 0.088388346, %v2138_v1 }
 0x387   : > { %v2203_v19 = vsel %vm1902_vm5, %v2189_v18, -1e+30 }
 0x388   : > { %v2218_v21 = vsel %vm2214_vm6, %v2203_v19, -inf }
 0x389   : > { %2219 = vmax.xlane.f32.xlu1 %v2218_v21 }
 0x38c   : > { %v2141_v54 = vpop.f32.mrf.mxu2 }
 0x38d   : > { %v2190_v22 = vmul.f32 0.088388346, %v2141_v54 }
 0x38f   : > { %v2204_v13 = vsel %vm1902_vm5, %v2190_v22, -1e+30 }
 0x390   : > { %v2221_v23 = vsel %vm2214_vm6, %v2204_v13, -inf }
 0x391   : > { %2222 = vmax.xlane.f32.xlu2 %v2221_v23 }
 0x394   : > { %v2144_v2 = vpop.f32.mrf.mxu2 }
 0x395   : > { %v2191_v24 = vmul.f32 0.088388346, %v2144_v2 }
 0x397   : > { %v2205_v3 = vsel %vm1902_vm5, %v2191_v24, -1e+30 }
 0x398   : > { %v2224_v49 = vsel %vm2214_vm6, %v2205_v3, -inf }
 0x399   : > { %2225 = vmax.xlane.f32.xlu0 %v2224_v49 }
 0x39c   : > { %v2147_v6 = vpop.f32.mrf.mxu2 }
 0x39d   : > { %v2192_v10 = vmul.f32 0.088388346, %v2147_v6 }
 0x39f   : > { %v2206_v4 = vsel %vm1902_vm5, %v2192_v10, -1e+30 }
 0x3a0   : > { %v2227_v26 = vsel %vm2214_vm6, %v2206_v4, -inf }
 0x3a1   : > { %2228 = vmax.xlane.f32.xlu1 %v2227_v26 }
 0x3a4   : > { %v2150_v27 = vpop.f32.mrf.mxu2 }
 0x3a5   : > { %v2193_v57 = vmul.f32 0.088388346, %v2150_v27 }
 0x3a7   : > { %v2207_v28 = vsel %vm1902_vm5, %v2193_v57, -1e+30 }
 0x3a8   : > { %v2230_v29 = vsel %vm2214_vm6, %v2207_v28, -inf }
 0x3a9   : > { %2231 = vmax.xlane.f32.xlu2 %v2230_v29 }
 0x3ac   : > { %v2170_v20 = vpop.f32.mrf.mxu2 }
 0x3ad   : > { %v2194_v63 = vmul.f32 0.088388346, %v2170_v20 }
 0x3af   : > { %v4884_v44 = vsel %vm1902_vm5, %v2194_v63, -1e+30 }
 0x3b0   : > { %v2233_v30 = vsel %vm2214_vm6, %v4884_v44, -inf }
 0x3b1   : > { %2234 = vmax.xlane.f32.xlu1 %v2233_v30 }
 0x3b4   : > { %v2173_v32 = vpop.f32.mrf.mxu2 }
 0x3b5   : > { %v2195_v14 = vmul.f32 0.088388346, %v2173_v32 }
 0x3b7   : > { %v4894_v41 = vsel %vm1902_vm5, %v2195_v14, -1e+30 }
 0x3b8   : > { %v2236_v52 = vsel %vm2214_vm6, %v4894_v41, -inf }
 0x3bc   : > { %v2176_v38 = vpop.f32.mrf.mxu2 }
 0x3bd   : > { %v2196_v53 = vmul.f32 0.088388346, %v2176_v38 }
 0x3bf   : > { %v4904_v37 = vsel %vm1902_vm5, %v2196_v53, -1e+30  ;;  %v2465_v53 = vld [vmem:[%s5467_s10 + $0x60] sm:$0xff] }
 0x3c0   : > { %v2239_v50 = vsel %vm2214_vm6, %v4904_v37, -inf }
 0x3c4   : > { %v2179_v48 = vpop.f32.mrf.mxu2 }
 0x3c5   : > { %v2197_v60 = vmul.f32 0.088388346, %v2179_v48 }
 0x3c7   : > { %v4914_v51 = vsel %vm1902_vm5, %v2197_v60, -1e+30 }
 0x3c8   : > { %v2242_v15 = vsel %vm2214_vm6, %v4914_v51, -inf }
 0x3cc   : > { %v2182_v61 = vpop.f32.mrf.mxu2 }
 0x3cd   : > { %v2198_v46 = vmul.f32 0.088388346, %v2182_v61 }
 0x3cf   : > { %v4924_v1 = vsel %vm1902_vm5, %v2198_v46, -1e+30 }
 0x3d0   : > { %v2245_v22 = vsel %vm2214_vm6, %v4924_v1, -inf }
 0x3d4   : > { %v2185_v18 = vpop.f32.mrf.mxu2 }
 0x3f4   : > { %v2217_v31 = vpop.xlane.xlu0 %2216 }
 0x3f5   : > { %v2251_v12 = vsub.f32 %v2202_v42, %v2217_v31 }
 0x3f7   : > { %v2263_v9 = vmul.f32 1.442695, %v2251_v12 }
 0x3f9   : > { %3839 = vpow2.f32 %v2263_v9 }
 0x3fc   : > { %v2220_v33 = vpop.xlane.xlu1 %2219 }
 0x3fd   : > { %v2252_v34 = vsub.f32 %v2203_v19, %v2220_v33 }
 0x3ff   : > { %v4888_v35 = vpop.eup %3839  ;;  %v2265_v36 = vmul.f32 1.442695, %v2252_v34 }
 0x400   : > { %v2287_v25 = vsel %vm2214_vm6, %v4888_v35, 0.0 }
 0x401   : > { %3841 = vpow2.f32 %v2265_v36  ;;  %2288 = vadd.xlane.f32.xlu0 %v2287_v25 }
 0x404   : > { %v2223_v39 = vpop.xlane.xlu2 %2222 }
 0x405   : > { %v2253_v16 = vsub.f32 %v2204_v13, %v2223_v39  ;;  %v2199_v13 = vmul.f32 0.088388346, %v2185_v18 }
 0x407   : > { %v4896_v43 = vpop.eup %3841  ;;  %v2267_v45 = vmul.f32 1.442695, %v2253_v16  ;;  %v4935_v24 = vsel %vm1902_vm5, %v2199_v13, -1e+30  ;;  %v2468_v16 = vld [vmem:[%s5467_s10 + $0x78] sm:$0xff] }
 0x408   : > { %v2290_v47 = vsel %vm2214_vm6, %v4896_v43, 0.0  ;;  %v2248_v10 = vsel %vm2214_vm6, %v4935_v24, -inf  ;;  %2473 = vmatpush.msrb.mxu1 %v2468_v16 }
 0x409   : > { %3843 = vpow2.f32 %v2267_v45  ;;  %2291 = vadd.xlane.f32.xlu2 %v2290_v47  ;;  %2237 = vmax.xlane.f32.xlu0 %v2236_v52  ;;  %v2466_v52 = vld [vmem:[%s5467_s10 + $0x68] sm:$0xff] }
 0x40c   : > { %v2226_v55 = vpop.xlane.xlu0 %2225 }
 0x40d   : > { %v2254_v7 = vsub.f32 %v2205_v3, %v2226_v55 }
 0x40f   : > { %v4906_v40 = vpop.eup %3843  ;;  %v2269_v56 = vmul.f32 1.442695, %v2254_v7 }
 0x410   : > { %v2293_v58 = vsel %vm2214_vm6, %v4906_v40, 0.0 }
 0x411   : > { %3845 = vpow2.f32 %v2269_v56  ;;  %2294 = vadd.xlane.f32.xlu1 %v2293_v58  ;;  %2240 = vmax.xlane.f32.xlu2 %v2239_v50  ;;  %v2463_v58 = vld [vmem:[%s5467_s10 + $0x50] sm:$0xff] }
 0x414   : > { %v2229_v59 = vpop.xlane.xlu1 %2228 }
 0x415   : > { %v2255_v0 = vsub.f32 %v2206_v4, %v2229_v59  ;;  %v2462_v59 = vld [vmem:[%s5467_s10 + $0x48] sm:$0xff] }
 0x417   : > { %v4916_v5 = vpop.eup %3845  ;;  %v2271_v8 = vmul.f32 1.442695, %v2255_v0  ;;  %v2461_v0 = vld [vmem:[%s5467_s10 + $0x40] sm:$0xff] }
 0x418   : > { %v2296_v11 = vsel %vm2214_vm6, %v4916_v5, 0.0 }
 0x419   : > { %3847 = vpow2.f32 %v2271_v8  ;;  %2297 = vadd.xlane.f32.xlu0 %v2296_v11  ;;  %2243 = vmax.xlane.f32.xlu1 %v2242_v15  ;;  %v2460_v15 = vld [vmem:[%s5467_s10 + $0x38] sm:$0xff] }
 0x41c   : > { %v2232_v42 = vpop.xlane.xlu2 %2231 }
 0x41d   : > { %v2256_v17 = vsub.f32 %v2207_v28, %v2232_v42  ;;  %v2459_v42 = vld [vmem:[%s5467_s10 + $0x30] sm:$0xff] }
 0x41f   : > { %v4926_v19 = vpop.eup %3847  ;;  %v2273_v21 = vmul.f32 1.442695, %v2256_v17 }
 0x420   : > { %v2299_v54 = vsel %vm2214_vm6, %v4926_v19, 0.0 }
 0x421   : > { %3849 = vpow2.f32 %v2273_v21  ;;  %2300 = vadd.xlane.f32.xlu2 %v2299_v54  ;;  %2246 = vmax.xlane.f32.xlu0 %v2245_v22  ;;  %v2457_v21 = vld [vmem:[%s5467_s10 + $0x20] sm:$0xff] }
 0x424   : > { %v2235_v23 = vpop.xlane.xlu1 %2234 }
 0x425   : > { %v2257_v2 = vsub.f32 %v4884_v44, %v2235_v23  ;;  %v2456_v23 = vld [vmem:[%s5467_s10 + $0x18] sm:$0xff] }
 0x427   : > { %v4937_v3 = vpop.eup %3849  ;;  %v2275_v49 = vmul.f32 1.442695, %v2257_v2 }
 0x428   : > { %v2302_v6 = vsel %vm2214_vm6, %v4937_v3, 0.0 }
 0x429   : > { %3851 = vpow2.f32 %v2275_v49  ;;  %2303 = vadd.xlane.f32.xlu1 %v2302_v6  ;;  %2249 = vmax.xlane.f32.xlu2 %v2248_v10  ;;  %v2454_v10 = vld [vmem:[%s5467_s10 + $0x8] sm:$0xff] }
 0x42f   : > { %v4943_v4 = vpop.eup %3851 }
 0x430   : > { %v2305_v26 = vsel %vm2214_vm6, %v4943_v4, 0.0 }
 0x431   : > { %2306 = vadd.xlane.f32.xlu0 %v2305_v26  ;;  %v2453_v26 = vld [vmem:[%s5467_s10] sm:$0xff] }
 0x474   : > { %v2289_v27 = vpop.xlane.xlu0 %2288 }
 0x475   : > { %3853 = vrcp.f32 %v2289_v27 }
 0x47b   : > { %v3854_v57 = vpop.eup %3853 }
 0x47c   : > { %v2335_v28 = vmul.f32 %v3854_v57, %v4888_v35  ;;  %v2292_v29 = vpop.xlane.xlu2 %2291  ;;  %v2238_v20 = vpop.xlane.xlu0 %2237 }
 0x47d   : > { %3855 = vrcp.f32 %v2292_v29  ;;  %v2258_v63 = vsub.f32 %v4894_v41, %v2238_v20  ;;  %v2467_v41 = vld [vmem:[%s5467_s10 + $0x70] sm:$0xff] }
 0x47e   : > { %3636 = vmatmul.msk.f32.vlgmr.msra.gmra.mxu3 %vm2214_vm6, %v2335_v28  ;;  %2474 = vmatpush.msrb.mxu1 %v2467_v41 }
 0x47f   : > { %v2277_v44 = vmul.f32 1.442695, %v2258_v63 }
 0x480   : > { %2475 = vmatpush.msrb.mxu1 %v2466_v52 }
 0x481   : > { %3857 = vpow2.f32 %v2277_v44 }
 0x482   : > { %2476 = vmatpush.msrb.mxu1 %v2465_v53  ;;  %v2532_v53 = vld [vmem:[%s5469_s12 + $0x30] sm:$0xff] }
 0x483   : > { %v3856_v30 = vpop.eup %3855 }
 0x484   : > { %v2295_v31 = vpop.xlane.xlu1 %2294  ;;  %v2241_v12 = vpop.xlane.xlu2 %2240  ;;  %v2336_v32 = vmul.f32 %v3856_v30, %v4896_v43 }
 0x485   : > { %3859 = vrcp.f32 %v2295_v31  ;;  %v2259_v9 = vsub.f32 %v4904_v37, %v2241_v12  ;;  %v2541_v12 = vld [vmem:[%s5469_s12 + $0x78] sm:$0xff] }
 0x486   : > { %3637 = vmatmul.msk.f32.gmra.mxu3 %vm2214_vm6, %v2336_v32  ;;  %v2540_v32 = vld [vmem:[%s5469_s12 + $0x70] sm:$0xff]  ;;  %2546 = vmatpush.msra.mxu2 %v2541_v12 }
 0x487   : > { %v4953_v33 = vpop.eup %3857  ;;  %v2279_v34 = vmul.f32 1.442695, %v2259_v9 }
 0x488   : > { %v2308_v35 = vsel %vm2214_vm6, %v4953_v33, 0.0  ;;  %2547 = vmatpush.msra.mxu2 %v2540_v32  ;;  %v2601_v32 = vld [vmem:[%s5471_s14 + $0x10] sm:$0xff] }
 0x489   : > { %3861 = vpow2.f32 %v2279_v34  ;;  %2309 = vadd.xlane.f32.xlu1 %v2308_v35  ;;  %v2539_v35 = vld [vmem:[%s5469_s12 + $0x68] sm:$0xff] }
 0x48a   : > { %2548 = vmatpush.msra.mxu2 %v2539_v35  ;;  %v2600_v35 = vld [vmem:[%s5471_s14 + $0x8] sm:$0xff] }
 0x48b   : > { %v3860_v36 = vpop.eup %3859 }
 0x48c   : > { %v2298_v38 = vpop.xlane.xlu0 %2297  ;;  %v2244_v25 = vpop.xlane.xlu1 %2243  ;;  %v2337_v14 = vmul.f32 %v3860_v36, %v4906_v40  ;;  %v2464_v40 = vld [vmem:[%s5467_s10 + $0x58] sm:$0xff]  ;;  %v2538_v36 = vld [vmem:[%s5469_s12 + $0x60] sm:$0xff] }
 0x48d   : > { %3863 = vrcp.f32 %v2298_v38  ;;  %v2260_v39 = vsub.f32 %v4914_v51, %v2244_v25  ;;  %2477 = vmatpush.msrb.mxu1 %v2464_v40  ;;  %v2537_v38 = vld [vmem:[%s5469_s12 + $0x58] sm:$0xff]  ;;  %2549 = vmatpush.msra.mxu2 %v2538_v36 }
 0x48e   : > { %3638 = vmatmul.msk.f32.gmra.mxu3 %vm2214_vm6, %v2337_v14  ;;  %v2536_v14 = vld [vmem:[%s5469_s12 + $0x50] sm:$0xff]  ;;  %v2529_v40 = vld [vmem:[%s5469_s12 + $0x18] sm:$0xff] }
 0x48f   : > { %v4966_v43 = vpop.eup %3861  ;;  %v2281_v45 = vmul.f32 1.442695, %v2260_v39  ;;  %2478 = vmatpush.msrb.mxu1 %v2463_v58  ;;  %2550 = vmatpush.msra.mxu2 %v2537_v38  ;;  %v2528_v58 = vld [vmem:[%s5469_s12 + $0x10] sm:$0xff] }
 0x490   : > { %v2311_v47 = vsel %vm2214_vm6, %v4966_v43, 0.0 }
 0x491   : > { %3865 = vpow2.f32 %v2281_v45  ;;  %2312 = vadd.xlane.f32.xlu2 %v2311_v47  ;;  %2479 = vmatpush.msrb.mxu1 %v2462_v59  ;;  %v2534_v45 = vld [vmem:[%s5469_s12 + $0x40] sm:$0xff]  ;;  %v2533_v47 = vld [vmem:[%s5469_s12 + $0x38] sm:$0xff]  ;;  %v2629_v59 = vld [vmem:[%s5471_s14 + $0xf0] sm:$0xff] }
 0x492   : > { %2551 = vmatpush.msra.mxu2 %v2536_v14  ;;  %2637 = vmatpush.msrb.mxu3 %v2629_v59 }
 0x493   : > { %v3864_v48 = vpop.eup %3863  ;;  %2480 = vmatpush.msrb.mxu1 %v2461_v0  ;;  %v2630_v0 = vld [vmem:[%s5471_s14 + $0xf8] sm:$0xff] }
 0x494   : > { %v2301_v55 = vpop.xlane.xlu2 %2300  ;;  %v2247_v7 = vpop.xlane.xlu0 %2246  ;;  %v2338_v37 = vmul.f32 %v3864_v48, %v4916_v5  ;;  %2690 = vmatpush.msrb.mxu0 %v2630_v0 }
 0x495   : > { %3867 = vrcp.f32 %v2301_v55  ;;  %v2261_v56 = vsub.f32 %v4924_v1, %v2247_v7  ;;  %2481 = vmatpush.msrb.mxu1 %v2460_v15  ;;  %v2531_v7 = vld [vmem:[%s5469_s12 + $0x28] sm:$0xff]  ;;  %v2623_v15 = vld [vmem:[%s5471_s14 + $0xc0] sm:$0xff] }
 0x496   : > { %3639 = vmatmul.msk.f32.gmra.mxu3 %vm2214_vm6, %v2338_v37  ;;  %v2530_v37 = vld [vmem:[%s5469_s12 + $0x20] sm:$0xff] }
 0x497   : > { %v4985_v50 = vpop.eup %3865  ;;  %v2283_v60 = vmul.f32 1.442695, %v2261_v56  ;;  %2482 = vmatpush.msrb.mxu1 %v2459_v42  ;;  %v2621_v42 = vld [vmem:[%s5471_s14 + $0xb0] sm:$0xff] }
 0x498   : > { %v2314_v61 = vsel %vm2214_vm6, %v4985_v50, 0.0 }
 0x499   : > { %3869 = vpow2.f32 %v2283_v60  ;;  %2315 = vadd.xlane.f32.xlu0 %v2314_v61  ;;  %v2527_v60 = vld [vmem:[%s5469_s12 + $0x8] sm:$0xff]  ;;  %v2526_v61 = vld [vmem:[%s5469_s12] sm:$0xff] }
 0x49b   : > { %v3868_v51 = vpop.eup %3867 }
 0x49c   : > { %v2304_v5 = vpop.xlane.xlu1 %2303  ;;  %v2250_v8 = vpop.xlane.xlu2 %2249  ;;  %v2339_v11 = vmul.f32 %v3868_v51, %v4926_v19  ;;  %v2458_v19 = vld [vmem:[%s5467_s10 + $0x28] sm:$0xff]  ;;  %v2627_v51 = vld [vmem:[%s5471_s14 + $0xe0] sm:$0xff] }
 0x49d   : > { %3871 = vrcp.f32 %v2304_v5  ;;  %v2262_v46 = vsub.f32 %v4935_v24, %v2250_v8  ;;  %2483 = vmatpush.msrb.mxu1 %v2458_v19  ;;  %v2628_v5 = vld [vmem:[%s5471_s14 + $0xe8] sm:$0xff]  ;;  %2638 = vmatpush.msrb.mxu3 %v2627_v51  ;;  %v2625_v8 = vld [vmem:[%s5471_s14 + $0xd0] sm:$0xff] }
 0x49e   : > { %3640 = vmatmul.msk.f32.gmra.mxu3 %vm2214_vm6, %v2339_v11  ;;  %2691 = vmatpush.msrb.mxu0 %v2628_v5  ;;  %v2626_v11 = vld [vmem:[%s5471_s14 + $0xd8] sm:$0xff]  ;;  %v2620_v19 = vld [vmem:[%s5471_s14 + $0xa8] sm:$0xff] }
 0x49f   : > { %v5004_v17 = vpop.eup %3869  ;;  %v2285_v1 = vmul.f32 1.442695, %v2262_v46  ;;  %2484 = vmatpush.msrb.mxu1 %v2457_v21  ;;  %2639 = vmatpush.msrb.mxu3 %v2625_v8  ;;  %v2624_v46 = vld [vmem:[%s5471_s14 + $0xc8] sm:$0xff] }
 0x4a0   : > { %v2317_v18 = vsel %vm2214_vm6, %v5004_v17, 0.0  ;;  %2692 = vmatpush.msrb.mxu0 %v2626_v11 }
 0x4a1   : > { %3873 = vpow2.f32 %v2285_v1  ;;  %2318 = vadd.xlane.f32.xlu1 %v2317_v18  ;;  %2485 = vmatpush.msrb.mxu1 %v2456_v23  ;;  %v5125_v1 = vld [vmem:[%s5468_s11] ss:$0 sm:$0xff] }
 0x4a2   : > { %2640 = vmatpush.msrb.mxu3 %v2623_v15  ;;  %2693 = vmatpush.msrb.mxu0 %v2624_v46  ;;  %v2619_v18 = vld [vmem:[%s5471_s14 + $0xa0] sm:$0xff] }
 0x4a3   : > { %v3872_v54 = vpop.eup %3871  ;;  %v2615_v23 = vld [vmem:[%s5471_s14 + $0x80] sm:$0xff] }
 0x4a4   : > { %v2307_v22 = vpop.xlane.xlu0 %2306  ;;  %v2340_v13 = vmul.f32 %v3872_v54, %v4937_v3  ;;  %v2455_v3 = vld [vmem:[%s5467_s10 + $0x10] sm:$0xff]  ;;  %2641 = vmatpush.msrb.mxu3 %v2621_v42  ;;  %v2631_v42 = vld [vmem:[%s5472_s15] sm:$0x3] }
 0x4a5   : > { %3875 = vrcp.f32 %v2307_v22  ;;  %2486 = vmatpush.msrb.mxu1 %v2455_v3  ;;  %v2617_v54 = vld [vmem:[%s5471_s14 + $0x90] sm:$0xff]  ;;  %v2618_v22 = vld [vmem:[%s5471_s14 + $0x98] sm:$0xff]  ;;  %v2611_v3 = vld [vmem:[%s5471_s14 + $0x60] sm:$0xff] }
 0x4a6   : > { %3641 = vmatmul.msk.f32.gmra.mxu3 %vm2214_vm6, %v2340_v13 }
 0x4a7   : > { %v5019_v2 = vpop.eup %3873  ;;  %2487 = vmatpush.msrb.mxu1 %v2454_v10  ;;  %2642 = vmatpush.msrb.mxu3 %v2619_v18  ;;  %v2612_v10 = vld [vmem:[%s5471_s14 + $0x68] sm:$0xff] }
 0x4a8   : > { %v2320_v24 = vsel %vm2214_vm6, %v5019_v2, 0.0 }
 0x4a9   : > { %2321 = vadd.xlane.f32.xlu2 %v2320_v24  ;;  %2488 = vmatpush.msrb.mxu1 %v2453_v26 }
 0x4aa   : > { %2643 = vmatpush.msrb.mxu3 %v2617_v54  ;;  %v5222_v54 = vperm.slane %v2631_v42, 0 }
 0x4ab   : > { %v3876_v49 = vpop.eup %3875 }
 0x4ac   : > { %v2341_v6 = vmul.f32 %v3876_v49, %v4943_v4  ;;  %2644 = vmatpush.msrb.mxu3 %v2615_v23  ;;  %v2613_v49 = vld [vmem:[%s5471_s14 + $0x70] sm:$0xff] }
 0x4ae   : > { %3642 = vmatmul.msk.f32.vlgmr.msra.gmra.mxu0 %vm2214_vm6, %v2341_v6  ;;  %v2614_v6 = vld [vmem:[%s5471_s14 + $0x78] sm:$0xff]  ;;  %2645 = vmatpush.msrb.mxu3 %v2613_v49 }
 0x4b0   : > { %2646 = vmatpush.msrb.mxu3 %v2611_v3 }
 0x4fc   : > { %v2310_v27 = vpop.xlane.xlu1 %2309 }
 0x4fd   : > { %3877 = vrcp.f32 %v2310_v27  ;;  %v2609_v27 = vld [vmem:[%s5471_s14 + $0x50] sm:$0xff] }
 0x4fe   : > { %2647 = vmatpush.msrb.mxu3 %v2609_v27 }
 0x501   : > { %v2382_v4 = vpop.f32.mrf.mxu3 }
 0x502   : > { %2489 = vmatmul.f32.vlgmr.msrb.gmra.mxu1 %v2382_v4  ;;  %v2610_v4 = vld [vmem:[%s5471_s14 + $0x58] sm:$0xff] }
 0x503   : > { %v3878_v57 = vpop.eup %3877 }
 0x504   : > { %v2313_v28 = vpop.xlane.xlu2 %2312  ;;  %v2342_v29 = vmul.f32 %v3878_v57, %v4953_v33 }
 0x505   : > { %3879 = vrcp.f32 %v2313_v28  ;;  %v2607_v28 = vld [vmem:[%s5471_s14 + $0x40] sm:$0xff] }
 0x506   : > { %3643 = vmatmul.msk.f32.gmra.mxu0 %vm2214_vm6, %v2342_v29  ;;  %v2608_v29 = vld [vmem:[%s5471_s14 + $0x48] sm:$0xff]  ;;  %2648 = vmatpush.msrb.mxu3 %v2607_v28 }
 0x509   : > { %v2385_v20 = vpop.f32.mrf.mxu3 }
 0x50a   : > { %2492 = vmatmul.f32.gmra.mxu1 %v2385_v20  ;;  %v2605_v20 = vld [vmem:[%s5471_s14 + $0x30] sm:$0xff] }
 0x50b   : > { %v3880_v63 = vpop.eup %3879  ;;  %2649 = vmatpush.msrb.mxu3 %v2605_v20 }
 0x50c   : > { %v2316_v44 = vpop.xlane.xlu0 %2315  ;;  %v2343_v30 = vmul.f32 %v3880_v63, %v4966_v43  ;;  %v2535_v43 = vld [vmem:[%s5469_s12 + $0x48] sm:$0xff]  ;;  %v2606_v63 = vld [vmem:[%s5471_s14 + $0x38] sm:$0xff] }
 0x50d   : > { %3881 = vrcp.f32 %v2316_v44  ;;  %2552 = vmatpush.msra.mxu2 %v2535_v43 }
 0x50e   : > { %3644 = vmatmul.msk.f32.gmra.mxu0 %vm2214_vm6, %v2343_v30  ;;  %v2603_v30 = vld [vmem:[%s5471_s14 + $0x20] sm:$0xff] }
 0x50f   : > { %2553 = vmatpush.msra.mxu2 %v2534_v45  ;;  %2650 = vmatpush.msrb.mxu3 %v2603_v30 }
 0x511   : > { %v2388_v31 = vpop.f32.mrf.mxu3  ;;  %2554 = vmatpush.msra.mxu2 %v2533_v47  ;;  %2651 = vmatpush.msrb.mxu3 %v2601_v32 }
 0x512   : > { %2495 = vmatmul.f32.gmra.mxu1 %v2388_v31  ;;  %v2604_v31 = vld [vmem:[%s5471_s14 + $0x28] sm:$0xff] }
 0x513   : > { %v3882_v9 = vpop.eup %3881  ;;  %2555 = vmatpush.msra.mxu2 %v2532_v53 }
 0x514   : > { %v2319_v33 = vpop.xlane.xlu1 %2318  ;;  %v2344_v34 = vmul.f32 %v3882_v9, %v4985_v50  ;;  %v2602_v9 = vld [vmem:[%s5471_s14 + $0x18] sm:$0xff] }
 0x515   : > { %3883 = vrcp.f32 %v2319_v33  ;;  %2556 = vmatpush.msra.mxu2 %v2531_v7 }
 0x516   : > { %3645 = vmatmul.msk.f32.gmra.mxu0 %vm2214_vm6, %v2344_v34  ;;  %v2599_v34 = vld [vmem:[%s5471_s14] sm:$0xff] }
 0x517   : > { %2557 = vmatpush.msra.mxu2 %v2530_v37  ;;  %2652 = vmatpush.msrb.mxu3 %v2599_v34 }
 0x519   : > { %v2391_v25 = vpop.f32.mrf.mxu3  ;;  %2558 = vmatpush.msra.mxu2 %v2529_v40 }
 0x51a   : > { %2498 = vmatmul.f32.gmra.mxu1 %v2391_v25 }
 0x51b   : > { %v3884_v39 = vpop.eup %3883  ;;  %2559 = vmatpush.msra.mxu2 %v2528_v58 }
 0x51c   : > { %v2322_v16 = vpop.xlane.xlu2 %2321  ;;  %v2345_v41 = vmul.f32 %v3884_v39, %v5004_v17  ;;  %v2622_v17 = vld [vmem:[%s5471_s14 + $0xb8] sm:$0xff] }
 0x51d   : > { %3885 = vrcp.f32 %v2322_v16  ;;  %2560 = vmatpush.msra.mxu2 %v2527_v60  ;;  %2694 = vmatpush.msrb.mxu0 %v2622_v17 }
 0x51e   : > { %3646 = vmatmul.msk.f32.gmra.mxu0 %vm2214_vm6, %v2345_v41 }
 0x51f   : > { %2561 = vmatpush.msra.mxu2 %v2526_v61  ;;  %2695 = vmatpush.msrb.mxu0 %v2620_v19 }
 0x521   : > { %v2394_v52 = vpop.f32.mrf.mxu3  ;;  %2696 = vmatpush.msrb.mxu0 %v2618_v22 }
 0x522   : > { %2501 = vmatmul.f32.gmra.mxu1 %v2394_v52 }
 0x523   : > { %v3886_v48 = vpop.eup %3885 }
 0x524   : > { %v2346_v55 = vmul.f32 %v3886_v48, %v5019_v2  ;;  %v2616_v2 = vld [vmem:[%s5471_s14 + $0x88] sm:$0xff] }
 0x525   : > { %2697 = vmatpush.msrb.mxu0 %v2616_v2 }
 0x526   : > { %3647 = vmatmul.msk.f32.gmra.mxu0 %vm2214_vm6, %v2346_v55 }
 0x527   : > { %2698 = vmatpush.msrb.mxu0 %v2614_v6 }
 0x529   : > { %v2397_v56 = vpop.f32.mrf.mxu3  ;;  %2699 = vmatpush.msrb.mxu0 %v2612_v10 }
 0x52a   : > { %2504 = vmatmul.f32.gmra.mxu1 %v2397_v56 }
 0x52b   : > { %v2435_v50 = vpop.f32.mrf.mxu0  ;;  %2700 = vmatpush.msrb.mxu0 %v2610_v4 }
 0x52d   : > { %2701 = vmatpush.msrb.mxu0 %v2608_v29 }
 0x52f   : > { %2702 = vmatpush.msrb.mxu0 %v2606_v63 }
 0x531   : > { %2703 = vmatpush.msrb.mxu0 %v2604_v31 }
 0x532   : > { %2507 = vmatmul.f32.gmra.mxu1 %v2435_v50 }
 0x533   : > { %2704 = vmatpush.msrb.mxu0 %v2602_v9 }
 0x535   : > { %2705 = vmatpush.msrb.mxu0 %v2600_v35 }
 0x57f   : > { %v2490_v21 = vpop.f32.mrf.mxu1 }
 0x580   : > { %v5140_v13 = vadd.f32 %v5125_v1, %v2490_v21 }
 0x582   : > { %2562 = vmatmul.f32.vlgmr.msra.gmra.mxu2 %v5140_v13 }
 0x583   : > { %v2438_v24 = vpop.f32.mrf.mxu0 }
 0x584   : > { %2510 = vmatmul.f32.gmra.mxu1 %v2438_v24 }
 0x587   : > { %v2493_v26 = vpop.f32.mrf.mxu1 }
 0x588   : > { %v5168_v57 = vadd.f32 %v5125_v1, %v2493_v26 }
 0x58a   : > { %2565 = vmatmul.f32.gmra.mxu2 %v5168_v57 }
 0x58b   : > { %v2441_v44 = vpop.f32.mrf.mxu0 }
 0x58c   : > { %2513 = vmatmul.f32.gmra.mxu1 %v2441_v44  ;;  %v5236_v44 = vld [vmem:[%s5470_s13] ss:$0 sm:$0xff] }
 0x58f   : > { %v2496_v12 = vpop.f32.mrf.mxu1 }
 0x590   : > { %v2497_v33 = vadd.f32 %v5125_v1, %v2496_v12 }
 0x592   : > { %2568 = vmatmul.f32.gmra.mxu2 %v2497_v33 }
 0x593   : > { %v2444_v36 = vpop.f32.mrf.mxu0 }
 0x594   : > { %2516 = vmatmul.f32.gmra.mxu1 %v2444_v36 }
 0x597   : > { %v2499_v38 = vpop.f32.mrf.mxu1 }
 0x598   : > { %v2500_v25 = vadd.f32 %v5125_v1, %v2499_v38 }
 0x59a   : > { %2571 = vmatmul.f32.gmra.mxu2 %v2500_v25 }
 0x59b   : > { %v2447_v14 = vpop.f32.mrf.mxu0 }
 0x59c   : > { %2519 = vmatmul.f32.gmra.mxu1 %v2447_v14 }
 0x59f   : > { %v2502_v39 = vpop.f32.mrf.mxu1 }
 0x5a0   : > { %v2503_v16 = vadd.f32 %v5125_v1, %v2502_v39 }
 0x5a2   : > { %2574 = vmatmul.f32.gmra.mxu2 %v2503_v16 }
 0x5a3   : > { %v2450_v41 = vpop.f32.mrf.mxu0 }
 0x5a4   : > { %2522 = vmatmul.f32.gmra.mxu1 %v2450_v41 }
 0x5a7   : > { %v2505_v43 = vpop.f32.mrf.mxu1 }
 0x5a8   : > { %v2506_v45 = vadd.f32 %v5125_v1, %v2505_v43 }
 0x5aa   : > { %2577 = vmatmul.f32.gmra.mxu2 %v2506_v45 }
 0x5af   : > { %v2508_v47 = vpop.f32.mrf.mxu1 }
 0x5b0   : > { %v2509_v52 = vadd.f32 %v5125_v1, %v2508_v47 }
 0x5b2   : > { %2580 = vmatmul.f32.gmra.mxu2 %v2509_v52  ;;  %2653 = vmatmul.f32.vlgmr.msrb.gmra.mxu3 %v2509_v52 }
 0x5b3   : > { %2706 = vmatmul.f32.vlgmr.msrb.gmra.mxu0 %v2509_v52 }
 0x601   : > { %v2511_v53 = vpop.f32.mrf.mxu1 }
 0x602   : > { %v2512_v48 = vadd.f32 %v5125_v1, %v2511_v53 }
 0x604   : > { %2583 = vmatmul.f32.gmra.mxu2 %v2512_v48  ;;  %2656 = vmatmul.f32.gmra.mxu3 %v2512_v48 }
 0x605   : > { %2709 = vmatmul.f32.gmra.mxu0 %v2512_v48  ;;  %v2563_v23 = vpop.f32.mrf.mxu2 }
 0x606   : > { %v2564_v12 = vadd.f32 %v5236_v44, %v2563_v23 }
 0x609   : > { %v2514_v55 = vpop.f32.mrf.mxu1 }
 0x60a   : > { %v2515_v7 = vadd.f32 %v5125_v1, %v2514_v55 }
 0x60c   : > { %2586 = vmatmul.f32.gmra.mxu2 %v2515_v7  ;;  %2659 = vmatmul.f32.gmra.mxu3 %v2515_v7 }
 0x60d   : > { %2712 = vmatmul.f32.gmra.mxu0 %v2515_v7  ;;  %v2566_v4 = vpop.f32.mrf.mxu2 }
 0x60e   : > { %v2567_v34 = vadd.f32 %v5236_v44, %v2566_v4 }
 0x611   : > { %v2517_v37 = vpop.f32.mrf.mxu1 }
 0x612   : > { %v2518_v40 = vadd.f32 %v5125_v1, %v2517_v37 }
 0x614   : > { %2589 = vmatmul.f32.gmra.mxu2 %v2518_v40  ;;  %2662 = vmatmul.f32.gmra.mxu3 %v2518_v40 }
 0x615   : > { %2715 = vmatmul.f32.gmra.mxu0 %v2518_v40  ;;  %v2569_v30 = vpop.f32.mrf.mxu2 }
 0x616   : > { %v2570_v38 = vadd.f32 %v5236_v44, %v2569_v30 }
 0x619   : > { %v2520_v56 = vpop.f32.mrf.mxu1 }
 0x61a   : > { %v2521_v58 = vadd.f32 %v5125_v1, %v2520_v56 }
 0x61c   : > { %2592 = vmatmul.f32.gmra.mxu2 %v2521_v58  ;;  %2665 = vmatmul.f32.gmra.mxu3 %v2521_v58 }
 0x61d   : > { %2718 = vmatmul.f32.gmra.mxu0 %v2521_v58 }
 0x621   : > { %v2523_v50 = vpop.f32.mrf.mxu1 }
 0x622   : > { %v2524_v60 = vadd.f32 %v5125_v1, %v2523_v50  ;;  %v5218_v1 = vperm.slane %v2631_v42, 1 }
 0x624   : > { %2595 = vmatmul.f32.gmra.mxu2 %v2524_v60  ;;  %2668 = vmatmul.f32.gmra.mxu3 %v2524_v60 }
 0x625   : > { %2721 = vmatmul.f32.gmra.mxu0 %v2524_v60 }
 0x62c   : > { %2671 = vmatmul.f32.gmra.mxu3 %v5140_v13 }
 0x62d   : > { %2724 = vmatmul.f32.gmra.mxu0 %v5140_v13 }
 0x630   : > { %v2707_v61 = vpop.f32.mrf.mxu0 }
 0x631   : > { %v2708_v10 = vadd.f32 %v2707_v61, %v5218_v1 }
 0x634   : > { %2674 = vmatmul.f32.gmra.mxu3 %v5168_v57 }
 0x635   : > { %2727 = vmatmul.f32.gmra.mxu0 %v5168_v57  ;;  %v2654_v59 = vpop.f32.mrf.mxu3 }
 0x636   : > { %v2655_v31 = vadd.f32 %v2654_v59, %v5222_v54 }
 0x63c   : > { %2677 = vmatmul.f32.gmra.mxu3 %v2497_v33 }
 0x63d   : > { %2730 = vmatmul.f32.gmra.mxu0 %v2497_v33  ;;  %v2572_v33 = vpop.f32.mrf.mxu2 }
 0x63e   : > { %v2573_v43 = vadd.f32 %v5236_v44, %v2572_v33 }
 0x644   : > { %2680 = vmatmul.f32.gmra.mxu3 %v2500_v25 }
 0x645   : > { %2733 = vmatmul.f32.gmra.mxu0 %v2500_v25  ;;  %v2575_v14 = vpop.f32.mrf.mxu2 }
 0x646   : > { %v2576_v40 = vadd.f32 %v5236_v44, %v2575_v14 }
 0x64c   : > { %2683 = vmatmul.f32.gmra.mxu3 %v2503_v16 }
 0x64d   : > { %2736 = vmatmul.f32.gmra.mxu0 %v2503_v16  ;;  %v2578_v48 = vpop.f32.mrf.mxu2 }
 0x64e   : > { %v2579_v60 = vadd.f32 %v5236_v44, %v2578_v48 }
 0x654   : > { %2686 = vmatmul.f32.gmra.mxu3 %v2506_v45 }
 0x655   : > { %2739 = vmatmul.f32.gmra.mxu0 %v2506_v45  ;;  %v2581_v58 = vpop.f32.mrf.mxu2 }
 0x682   : > { %v2710_v0 = vpop.f32.mrf.mxu0 }
 0x683   : > { %v2711_v6 = vadd.f32 %v2710_v0, %v5218_v1 }
 0x687   : > { %v2657_v51 = vpop.f32.mrf.mxu3  ;;  %v2584_v59 = vpop.f32.mrf.mxu2 }
 0x688   : > { %v2658_v20 = vadd.f32 %v2657_v51, %v5222_v54  ;;  %v2582_v51 = vadd.f32 %v5236_v44, %v2581_v58 }
 0x68a   : > { %v2713_v5 = vpop.f32.mrf.mxu0 }
 0x68b   : > { %v2714_v24 = vadd.f32 %v2713_v5, %v5218_v1 }
 0x68f   : > { %v2660_v8 = vpop.f32.mrf.mxu3  ;;  %v2587_v5 = vpop.f32.mrf.mxu2 }
 0x690   : > { %v2661_v28 = vadd.f32 %v2660_v8, %v5222_v54  ;;  %v2585_v8 = vadd.f32 %v5236_v44, %v2584_v59 }
 0x692   : > { %v2716_v11 = vpop.f32.mrf.mxu0 }
 0x693   : > { %v2717_v22 = vadd.f32 %v2716_v11, %v5218_v1  ;;  %v2588_v11 = vadd.f32 %v5236_v44, %v2587_v5 }
 0x697   : > { %v2663_v15 = vpop.f32.mrf.mxu3 }
 0x698   : > { %v2664_v27 = vadd.f32 %v2663_v15, %v5222_v54  ;;  %v2590_v15 = vpop.f32.mrf.mxu2 }
 0x69a   : > { %v2719_v46 = vpop.f32.mrf.mxu0 }
 0x69b   : > { %v2720_v21 = vadd.f32 %v2719_v46, %v5218_v1  ;;  %v2591_v46 = vadd.f32 %v5236_v44, %v2590_v15 }
 0x69f   : > { %v2666_v17 = vpop.f32.mrf.mxu3 }
 0x6a0   : > { %v2667_v3 = vadd.f32 %v2666_v17, %v5222_v54  ;;  %v2593_v42 = vpop.f32.mrf.mxu2 }
 0x6a1   : > { %v2594_v17 = vadd.f32 %v5236_v44, %v2593_v42 }
 0x6a2   : > { %v2722_v18 = vpop.f32.mrf.mxu0 }
 0x6a3   : > { %v2723_v19 = vadd.f32 %v2722_v18, %v5218_v1 }
 0x6a5   : > { %2997 = vmatpush.msra.mxu3 %v2723_v19 }
 0x6a7   : > { %2998 = vmatpush.msra.mxu3 %v2720_v21  ;;  %v2669_v13 = vpop.f32.mrf.mxu3 }
 0x6a8   : > { %v2670_v2 = vadd.f32 %v2669_v13, %v5222_v54 }
 0x6a9   : > { %2999 = vmatpush.msra.mxu3 %v2717_v22 }
 0x6aa   : > { %v2725_v49 = vpop.f32.mrf.mxu0  ;;  %2753 = vmatpush.xpose.msra.mxu1 %v2670_v2 }
 0x6ab   : > { %3000 = vmatpush.msra.mxu3 %v2714_v24  ;;  %v2726_v37 = vadd.f32 %v2725_v49, %v5218_v1 }
 0x6ad   : > { %3001 = vmatpush.msra.mxu3 %v2711_v6 }
 0x6ae   : > { %2754 = vmatpush.xpose.msra.mxu1 %v2667_v3 }
 0x6af   : > { %3002 = vmatpush.msra.mxu3 %v2708_v10  ;;  %v2672_v26 = vpop.f32.mrf.mxu3 }
 0x6b0   : > { %v2673_v0 = vadd.f32 %v2672_v26, %v5222_v54 }
 0x6b2   : > { %v2728_v57 = vpop.f32.mrf.mxu0  ;;  %2755 = vmatpush.xpose.msra.mxu1 %v2664_v27 }
 0x6b3   : > { %v2729_v55 = vadd.f32 %v2728_v57, %v5218_v1 }
 0x6b6   : > { %2756 = vmatpush.xpose.msra.mxu1 %v2661_v28 }
 0x6b7   : > { %v2675_v29 = vpop.f32.mrf.mxu3 }
 0x6b8   : > { %v2676_v61 = vadd.f32 %v2675_v29, %v5222_v54 }
 0x6ba   : > { %v2731_v63 = vpop.f32.mrf.mxu0  ;;  %2757 = vmatpush.xpose.msra.mxu1 %v2658_v20 }
 0x6bb   : > { %v2732_v53 = vadd.f32 %v2731_v63, %v5218_v1 }
 0x6be   : > { %2758 = vmatpush.xpose.msra.mxu1 %v2655_v31 }
 0x6bf   : > { %v2678_v32 = vpop.f32.mrf.mxu3 }
 0x6c0   : > { %v2679_v50 = vadd.f32 %v2678_v32, %v5222_v54 }
 0x6c1   : > { %2759 = vmatmul.f32.vlgmr.msra.gmra.mxu1 %v2564_v12 }
 0x6c2   : > { %v2734_v9 = vpop.f32.mrf.mxu0 }
 0x6c3   : > { %v2735_v45 = vadd.f32 %v2734_v9, %v5218_v1 }
 0x6c7   : > { %v2681_v35 = vpop.f32.mrf.mxu3 }
 0x6c8   : > { %v2682_v56 = vadd.f32 %v2681_v35, %v5222_v54 }
 0x6c9   : > { %2762 = vmatmul.f32.gmra.mxu1 %v2567_v34 }
 0x6ca   : > { %v2737_v36 = vpop.f32.mrf.mxu0 }
 0x6cb   : > { %v2738_v41 = vadd.f32 %v2737_v36, %v5218_v1 }
 0x6cf   : > { %v2684_v25 = vpop.f32.mrf.mxu3 }
 0x6d0   : > { %v2685_v7 = vadd.f32 %v2684_v25, %v5222_v54 }
 0x6d1   : > { %2765 = vmatmul.f32.gmra.mxu1 %v2570_v38 }
 0x6d2   : > { %v2740_v39 = vpop.f32.mrf.mxu0 }
 0x6d3   : > { %v2741_v16 = vadd.f32 %v2740_v39, %v5218_v1  ;;  %v2596_v1 = vpop.f32.mrf.mxu2 }
 0x6d4   : > { %v2597_v18 = vadd.f32 %v5236_v44, %v2596_v1 }
 0x6d5   : > { %3050 = vmatpush.msra.mxu0 %v2741_v16 }
 0x6d7   : > { %3051 = vmatpush.msra.mxu0 %v2738_v41  ;;  %v2687_v47 = vpop.f32.mrf.mxu3 }
 0x6d8   : > { %v2688_v52 = vadd.f32 %v2687_v47, %v5222_v54 }
 0x6d9   : > { %3052 = vmatpush.msra.mxu0 %v2735_v45  ;;  %2768 = vmatmul.f32.gmra.mxu1 %v2573_v43 }
 0x6da   : > { %2788 = vmatpush.xpose.msrb.mxu2 %v2688_v52 }
 0x6db   : > { %3053 = vmatpush.msra.mxu0 %v2732_v53 }
 0x6dd   : > { %3054 = vmatpush.msra.mxu0 %v2729_v55 }
 0x6de   : > { %2789 = vmatpush.xpose.msrb.mxu2 %v2685_v7 }
 0x6df   : > { %3055 = vmatpush.msra.mxu0 %v2726_v37 }
 0x6e1   : > { %2771 = vmatmul.f32.gmra.mxu1 %v2576_v40 }
 0x6e2   : > { %2790 = vmatpush.xpose.msrb.mxu2 %v2682_v56 }
 0x6e6   : > { %2791 = vmatpush.xpose.msrb.mxu2 %v2679_v50 }
 0x6e9   : > { %2774 = vmatmul.f32.gmra.mxu1 %v2579_v60 }
 0x6ea   : > { %2792 = vmatpush.xpose.msrb.mxu2 %v2676_v61 }
 0x6ee   : > { %2793 = vmatpush.xpose.msrb.mxu2 %v2673_v0 }
 0x6f1   : > { %2794 = vmatmul.f32.vlgmr.msrb.gmra.mxu2 %v2582_v51 }
 0x6f9   : > { %2797 = vmatmul.f32.gmra.mxu2 %v2585_v8 }
 0x701   : > { %2800 = vmatmul.f32.gmra.mxu2 %v2588_v11 }
 0x709   : > { %2803 = vmatmul.f32.gmra.mxu2 %v2591_v46 }
 0x711   : > { %2806 = vmatmul.f32.gmra.mxu2 %v2594_v17 }
 0x719   : > { %2809 = vmatmul.f32.gmra.mxu2 %v2597_v18 }
 0x73e   : > { %v2760_v19 = vpop.f32.mrf.mxu1 }
 0x73f   : > { %v2813_v21 = vmul.f32 0.088388346, %v2760_v19 }
 0x741   : > { %v2825_v54 = vsel %vm1902_vm5, %v2813_v21, -1e+30 }
 0x742   : > { %v2837_v22 = vsel %vm2214_vm6, %v2825_v54, -inf }
 0x743   : > { %2838 = vmax.xlane.f32.xlu0 %v2837_v22 }
 0x746   : > { %v2763_v13 = vpop.f32.mrf.mxu1 }
 0x747   : > { %v2814_v23 = vmul.f32 0.088388346, %v2763_v13 }
 0x749   : > { %v2826_v2 = vsel %vm1902_vm5, %v2814_v23, -1e+30 }
 0x74a   : > { %v2840_v24 = vsel %vm2214_vm6, %v2826_v2, -inf }
 0x74b   : > { %2841 = vmax.xlane.f32.xlu1 %v2840_v24 }
 0x74e   : > { %v2766_v49 = vpop.f32.mrf.mxu1 }
 0x74f   : > { %v2815_v6 = vmul.f32 0.088388346, %v2766_v49 }
 0x751   : > { %v2827_v3 = vsel %vm1902_vm5, %v2815_v6, -1e+30 }
 0x752   : > { %v2843_v10 = vsel %vm2214_vm6, %v2827_v3, -inf }
 0x753   : > { %2844 = vmax.xlane.f32.xlu2 %v2843_v10 }
 0x756   : > { %v2769_v26 = vpop.f32.mrf.mxu1 }
 0x757   : > { %v2816_v27 = vmul.f32 0.088388346, %v2769_v26 }
 0x759   : > { %v2828_v4 = vsel %vm1902_vm5, %v2816_v27, -1e+30 }
 0x75a   : > { %v2846_v57 = vsel %vm2214_vm6, %v2828_v4, -inf }
 0x75b   : > { %2847 = vmax.xlane.f32.xlu0 %v2846_v57 }
 0x75e   : > { %v2772_v28 = vpop.f32.mrf.mxu1 }
 0x75f   : > { %v2817_v29 = vmul.f32 0.088388346, %v2772_v28 }
 0x761   : > { %v2829_v20 = vsel %vm1902_vm5, %v2817_v29, -1e+30 }
 0x762   : > { %v2849_v63 = vsel %vm2214_vm6, %v2829_v20, -inf }
 0x763   : > { %2850 = vmax.xlane.f32.xlu1 %v2849_v63 }
 0x766   : > { %v2775_v44 = vpop.f32.mrf.mxu1 }
 0x767   : > { %v2818_v30 = vmul.f32 0.088388346, %v2775_v44 }
 0x769   : > { %v2830_v31 = vsel %vm1902_vm5, %v2818_v30, -1e+30 }
 0x76a   : > { %v2852_v12 = vsel %vm2214_vm6, %v2830_v31, -inf }
 0x76b   : > { %2853 = vmax.xlane.f32.xlu2 %v2852_v12 }
 0x774   : > { %v2795_v32 = vpop.f32.mrf.mxu2 }
 0x775   : > { %v2819_v9 = vmul.f32 0.088388346, %v2795_v32 }
 0x777   : > { %v5283_v33 = vsel %vm1902_vm5, %v2819_v9, -1e+30 }
 0x778   : > { %v2855_v34 = vsel %vm2214_vm6, %v5283_v33, -inf }
 0x779   : > { %2856 = vmax.xlane.f32.xlu1 %v2855_v34 }
 0x77c   : > { %v2798_v38 = vpop.f32.mrf.mxu2 }
 0x77d   : > { %v2820_v47 = vmul.f32 0.088388346, %v2798_v38 }
 0x77f   : > { %v5293_v48 = vsel %vm1902_vm5, %v2820_v47, -1e+30 }
 0x780   : > { %v2858_v40 = vsel %vm2214_vm6, %v5293_v48, -inf }
 0x784   : > { %v2801_v43 = vpop.f32.mrf.mxu2 }
 0x785   : > { %v2821_v56 = vmul.f32 0.088388346, %v2801_v43 }
 0x787   : > { %v5303_v61 = vsel %vm1902_vm5, %v2821_v56, -1e+30  ;;  %v3090_v56 = vld [vmem:[%s5473_s16 + $0x78] sm:$0xff] }
 0x788   : > { %v2861_v5 = vsel %vm2214_vm6, %v5303_v61, -inf  ;;  %3758 = vmatpush.msrb.mxu1 %v3090_v56  ;;  %3095 = vmatpush.msrb.mxu0 %v3090_v56 }
 0x78c   : > { %v2804_v58 = vpop.f32.mrf.mxu2 }
 0x78d   : > { %v2822_v8 = vmul.f32 0.088388346, %v2804_v58  ;;  %v3089_v58 = vld [vmem:[%s5473_s16 + $0x70] sm:$0xff] }
 0x78e   : > { %3759 = vmatpush.msrb.mxu1 %v3089_v58  ;;  %3096 = vmatpush.msrb.mxu0 %v3089_v58 }
 0x78f   : > { %v5313_v42 = vsel %vm1902_vm5, %v2822_v8, -1e+30 }
 0x790   : > { %v2864_v19 = vsel %vm2214_vm6, %v5313_v42, -inf }
 0x794   : > { %v2807_v11 = vpop.f32.mrf.mxu2 }
 0x795   : > { %v2823_v21 = vmul.f32 0.088388346, %v2807_v11 }
 0x797   : > { %v5323_v13 = vsel %vm1902_vm5, %v2823_v21, -1e+30 }
 0x798   : > { %v2867_v6 = vsel %vm2214_vm6, %v5323_v13, -inf }
 0x79c   : > { %v2810_v23 = vpop.f32.mrf.mxu2 }
 0x7b6   : > { %v2839_v35 = vpop.xlane.xlu0 %2838 }
 0x7b7   : > { %v2873_v36 = vsub.f32 %v2825_v54, %v2839_v35 }
 0x7b9   : > { %v2885_v25 = vmul.f32 1.442695, %v2873_v36 }
 0x7bb   : > { %3887 = vpow2.f32 %v2885_v25 }
 0x7be   : > { %v2842_v14 = vpop.xlane.xlu1 %2841 }
 0x7bf   : > { %v2874_v39 = vsub.f32 %v2826_v2, %v2842_v14 }
 0x7c1   : > { %v5287_v16 = vpop.eup %3887  ;;  %v2887_v41 = vmul.f32 1.442695, %v2874_v39 }
 0x7c2   : > { %v2909_v45 = vsel %vm2214_vm6, %v5287_v16, 0.0 }
 0x7c3   : > { %3889 = vpow2.f32 %v2887_v41  ;;  %2910 = vadd.xlane.f32.xlu0 %v2909_v45 }
 0x7c6   : > { %v2845_v52 = vpop.xlane.xlu2 %2844 }
 0x7c7   : > { %v2875_v53 = vsub.f32 %v2827_v3, %v2845_v52  ;;  %v2824_v3 = vmul.f32 0.088388346, %v2810_v23 }
 0x7c9   : > { %v5295_v55 = vpop.eup %3889  ;;  %v2889_v7 = vmul.f32 1.442695, %v2875_v53  ;;  %v5333_v10 = vsel %vm1902_vm5, %v2824_v3, -1e+30 }
 0x7ca   : > { %v2912_v37 = vsel %vm2214_vm6, %v5295_v55, 0.0 }
 0x7cb   : > { %3891 = vpow2.f32 %v2889_v7  ;;  %2913 = vadd.xlane.f32.xlu2 %v2912_v37  ;;  %2859 = vmax.xlane.f32.xlu0 %v2858_v40 }
 0x7ce   : > { %v2848_v50 = vpop.xlane.xlu0 %2847 }
 0x7cf   : > { %v2876_v60 = vsub.f32 %v2828_v4, %v2848_v50  ;;  %v2870_v4 = vsel %vm2214_vm6, %v5333_v10, -inf }
 0x7d1   : > { %v5305_v59 = vpop.eup %3891  ;;  %v2891_v0 = vmul.f32 1.442695, %v2876_v60  ;;  %v3088_v60 = vld [vmem:[%s5473_s16 + $0x68] sm:$0xff] }
 0x7d2   : > { %v2915_v51 = vsel %vm2214_vm6, %v5305_v59, 0.0  ;;  %3760 = vmatpush.msrb.mxu1 %v3088_v60  ;;  %3097 = vmatpush.msrb.mxu0 %v3088_v60 }
 0x7d3   : > { %3893 = vpow2.f32 %v2891_v0  ;;  %2916 = vadd.xlane.f32.xlu1 %v2915_v51  ;;  %2862 = vmax.xlane.f32.xlu2 %v2861_v5  ;;  %v3087_v51 = vld [vmem:[%s5473_s16 + $0x60] sm:$0xff]  ;;  %v3086_v5 = vld [vmem:[%s5473_s16 + $0x58] sm:$0xff] }
 0x7d4   : > { %3761 = vmatpush.msrb.mxu1 %v3087_v51  ;;  %3098 = vmatpush.msrb.mxu0 %v3087_v51 }
 0x7d6   : > { %v2851_v15 = vpop.xlane.xlu1 %2850  ;;  %3762 = vmatpush.msrb.mxu1 %v3086_v5  ;;  %3099 = vmatpush.msrb.mxu0 %v3086_v5 }
 0x7d7   : > { %v2877_v46 = vsub.f32 %v2829_v20, %v2851_v15 }
 0x7d9   : > { %v5315_v17 = vpop.eup %3893  ;;  %v2893_v1 = vmul.f32 1.442695, %v2877_v46 }
 0x7da   : > { %v2918_v18 = vsel %vm2214_vm6, %v5315_v17, 0.0 }
 0x7db   : > { %3895 = vpow2.f32 %v2893_v1  ;;  %2919 = vadd.xlane.f32.xlu0 %v2918_v18  ;;  %2865 = vmax.xlane.f32.xlu1 %v2864_v19  ;;  %v3084_v1 = vld [vmem:[%s5473_s16 + $0x48] sm:$0xff] }
 0x7de   : > { %v2854_v54 = vpop.xlane.xlu2 %2853 }
 0x7df   : > { %v2878_v22 = vsub.f32 %v2830_v31, %v2854_v54  ;;  %v3083_v54 = vld [vmem:[%s5473_s16 + $0x40] sm:$0xff] }
 0x7e1   : > { %v5325_v2 = vpop.eup %3895  ;;  %v2895_v24 = vmul.f32 1.442695, %v2878_v22  ;;  %v3082_v22 = vld [vmem:[%s5473_s16 + $0x38] sm:$0xff] }
 0x7e2   : > { %v2921_v49 = vsel %vm2214_vm6, %v5325_v2, 0.0 }
 0x7e3   : > { %3897 = vpow2.f32 %v2895_v24  ;;  %2922 = vadd.xlane.f32.xlu2 %v2921_v49  ;;  %2868 = vmax.xlane.f32.xlu0 %v2867_v6 }
 0x7e9   : > { %v5335_v26 = vpop.eup %3897 }
 0x7ea   : > { %v2924_v27 = vsel %vm2214_vm6, %v5335_v26, 0.0 }
 0x7eb   : > { %2925 = vadd.xlane.f32.xlu1 %v2924_v27  ;;  %2871 = vmax.xlane.f32.xlu2 %v2870_v4  ;;  %v3079_v27 = vld [vmem:[%s5473_s16 + $0x20] sm:$0xff]  ;;  %v3078_v4 = vld [vmem:[%s5473_s16 + $0x18] sm:$0xff] }
 0x7ec   : > { %v2857_v57 = vpop.xlane.xlu1 %2856 }
 0x7ed   : > { %v2879_v28 = vsub.f32 %v5283_v33, %v2857_v57  ;;  %v3077_v57 = vld [vmem:[%s5473_s16 + $0x10] sm:$0xff] }
 0x7ef   : > { %v2897_v29 = vmul.f32 1.442695, %v2879_v28  ;;  %v3076_v28 = vld [vmem:[%s5473_s16 + $0x8] sm:$0xff] }
 0x7f1   : > { %3899 = vpow2.f32 %v2897_v29  ;;  %v3075_v29 = vld [vmem:[%s5473_s16] sm:$0xff] }
 0x7f7   : > { %v5342_v20 = vpop.eup %3899 }
 0x7f8   : > { %v2927_v62 = vsel %vm2214_vm6, %v5342_v20, 0.0 }
 0x7f9   : > { %2928 = vadd.xlane.f32.xlu0 %v2927_v62 }
 0x836   : > { %v2911_v63 = vpop.xlane.xlu0 %2910 }
 0x837   : > { %3901 = vrcp.f32 %v2911_v63 }
 0x83d   : > { %v3902_v44 = vpop.eup %3901 }
 0x83e   : > { %v2957_v30 = vmul.f32 %v3902_v44, %v5287_v16  ;;  %v2914_v31 = vpop.xlane.xlu2 %2913  ;;  %v2860_v12 = vpop.xlane.xlu0 %2859 }
 0x83f   : > { %3903 = vrcp.f32 %v2914_v31  ;;  %v2880_v32 = vsub.f32 %v5293_v48, %v2860_v12 }
 0x840   : > { %3648 = vmatmul.msk.f32.vlgmr.msra.gmra.mxu3 %vm2214_vm6, %v2957_v30 }
 0x841   : > { %v2899_v9 = vmul.f32 1.442695, %v2880_v32 }
 0x843   : > { %3905 = vpow2.f32 %v2899_v9 }
 0x845   : > { %v3904_v33 = vpop.eup %3903 }
 0x846   : > { %v2917_v34 = vpop.xlane.xlu1 %2916  ;;  %v2863_v35 = vpop.xlane.xlu2 %2862  ;;  %v2958_v36 = vmul.f32 %v3904_v33, %v5295_v55 }
 0x847   : > { %3907 = vrcp.f32 %v2917_v34  ;;  %v2881_v38 = vsub.f32 %v5303_v61, %v2863_v35 }
 0x848   : > { %3649 = vmatmul.msk.f32.gmra.mxu3 %vm2214_vm6, %v2958_v36 }
 0x849   : > { %v5352_v25 = vpop.eup %3905  ;;  %v2901_v14 = vmul.f32 1.442695, %v2881_v38 }
 0x84a   : > { %v2930_v39 = vsel %vm2214_vm6, %v5352_v25, 0.0 }
 0x84b   : > { %3909 = vpow2.f32 %v2901_v14  ;;  %2931 = vadd.xlane.f32.xlu1 %v2930_v39 }
 0x84d   : > { %v3908_v16 = vpop.eup %3907 }
 0x84e   : > { %v2920_v41 = vpop.xlane.xlu0 %2919  ;;  %v2866_v43 = vpop.xlane.xlu1 %2865  ;;  %v2959_v45 = vmul.f32 %v3908_v16, %v5305_v59 }
 0x84f   : > { %3911 = vrcp.f32 %v2920_v41  ;;  %v2882_v47 = vsub.f32 %v5313_v42, %v2866_v43  ;;  %v3085_v42 = vld [vmem:[%s5473_s16 + $0x50] sm:$0xff] }
 0x850   : > { %3650 = vmatmul.msk.f32.gmra.mxu3 %vm2214_vm6, %v2959_v45  ;;  %3763 = vmatpush.msrb.mxu1 %v3085_v42 }
 0x851   : > { %v5359_v52 = vpop.eup %3909  ;;  %v2903_v53 = vmul.f32 1.442695, %v2882_v47  ;;  %3100 = vmatpush.msrb.mxu0 %v3085_v42 }
 0x852   : > { %v2933_v48 = vsel %vm2214_vm6, %v5359_v52, 0.0  ;;  %3764 = vmatpush.msrb.mxu1 %v3084_v1 }
 0x853   : > { %3913 = vpow2.f32 %v2903_v53  ;;  %2934 = vadd.xlane.f32.xlu2 %v2933_v48  ;;  %3101 = vmatpush.msrb.mxu0 %v3084_v1  ;;  %v3824_v53 = vld [vmem:[%s5474_s17] ss:$0 sm:$0xff] }
 0x854   : > { %3765 = vmatpush.msrb.mxu1 %v3083_v54 }
 0x855   : > { %v3912_v55 = vpop.eup %3911  ;;  %3102 = vmatpush.msrb.mxu0 %v3083_v54 }
 0x856   : > { %v2923_v7 = vpop.xlane.xlu2 %2922  ;;  %v2869_v37 = vpop.xlane.xlu0 %2868  ;;  %v2960_v40 = vmul.f32 %v3912_v55, %v5315_v17  ;;  %3766 = vmatpush.msrb.mxu1 %v3082_v22 }
 0x857   : > { %3915 = vrcp.f32 %v2923_v7  ;;  %v2883_v50 = vsub.f32 %v5323_v13, %v2869_v37  ;;  %3103 = vmatpush.msrb.mxu0 %v3082_v22 }
 0x858   : > { %3651 = vmatmul.msk.f32.gmra.mxu3 %vm2214_vm6, %v2960_v40 }
 0x859   : > { %v5375_v61 = vpop.eup %3913  ;;  %v2905_v59 = vmul.f32 1.442695, %v2883_v50 }
 0x85a   : > { %v2936_v0 = vsel %vm2214_vm6, %v5375_v61, 0.0 }
 0x85b   : > { %3917 = vpow2.f32 %v2905_v59  ;;  %2937 = vadd.xlane.f32.xlu0 %v2936_v0 }
 0x85d   : > { %v3916_v8 = vpop.eup %3915 }
 0x85e   : > { %v2926_v11 = vpop.xlane.xlu1 %2925  ;;  %v2872_v15 = vpop.xlane.xlu2 %2871  ;;  %v2961_v46 = vmul.f32 %v3916_v8, %v5325_v2 }
 0x85f   : > { %3919 = vrcp.f32 %v2926_v11  ;;  %v2884_v17 = vsub.f32 %v5333_v10, %v2872_v15  ;;  %v3081_v10 = vld [vmem:[%s5473_s16 + $0x30] sm:$0xff] }
 0x860   : > { %3652 = vmatmul.msk.f32.gmra.mxu3 %vm2214_vm6, %v2961_v46  ;;  %3767 = vmatpush.msrb.mxu1 %v3081_v10 }
 0x861   : > { %v5394_v18 = vpop.eup %3917  ;;  %v2907_v19 = vmul.f32 1.442695, %v2884_v17  ;;  %3104 = vmatpush.msrb.mxu0 %v3081_v10 }
 0x862   : > { %v2939_v21 = vsel %vm2214_vm6, %v5394_v18, 0.0 }
 0x863   : > { %3921 = vpow2.f32 %v2907_v19  ;;  %2940 = vadd.xlane.f32.xlu1 %v2939_v21 }
 0x865   : > { %v3920_v13 = vpop.eup %3919 }
 0x866   : > { %v2962_v23 = vmul.f32 %v3920_v13, %v5335_v26  ;;  %v3080_v26 = vld [vmem:[%s5473_s16 + $0x28] sm:$0xff] }
 0x867   : > { %3768 = vmatpush.msrb.mxu1 %v3080_v26  ;;  %3105 = vmatpush.msrb.mxu0 %v3080_v26 }
 0x868   : > { %3653 = vmatmul.msk.f32.gmra.mxu3 %vm2214_vm6, %v2962_v23 }
 0x869   : > { %v3922_v2 = vpop.eup %3921  ;;  %3769 = vmatpush.msrb.mxu1 %v3079_v27  ;;  %3106 = vmatpush.msrb.mxu0 %v3079_v27 }
 0x86a   : > { %v2942_v24 = vsel %vm2214_vm6, %v3922_v2, 0.0 }
 0x86b   : > { %2943 = vadd.xlane.f32.xlu2 %v2942_v24  ;;  %3770 = vmatpush.msrb.mxu1 %v3078_v4 }
 0x86c   : > { %v2929_v49 = vpop.xlane.xlu0 %2928  ;;  %3107 = vmatpush.msrb.mxu0 %v3078_v4 }
 0x86d   : > { %3923 = vrcp.f32 %v2929_v49  ;;  %3771 = vmatpush.msrb.mxu1 %v3077_v57 }
 0x86e   : > { %3108 = vmatpush.msrb.mxu0 %v3077_v57 }
 0x86f   : > { %3772 = vmatpush.msrb.mxu1 %v3076_v28 }
 0x870   : > { %3109 = vmatpush.msrb.mxu0 %v3076_v28 }
 0x871   : > { %3773 = vmatpush.msrb.mxu1 %v3075_v29 }
 0x872   : > { %3110 = vmatpush.msrb.mxu0 %v3075_v29 }
 0x873   : > { %v3924_v6 = vpop.eup %3923 }
 0x874   : > { %v2963_v3 = vmul.f32 %v3924_v6, %v5342_v20 }
 0x876   : > { %3654 = vmatmul.msk.f32.vlgmr.msra.gmra.mxu0 %vm2214_vm6, %v2963_v3 }
 0x8be   : > { %v2932_v20 = vpop.xlane.xlu1 %2931 }
 0x8bf   : > { %3925 = vrcp.f32 %v2932_v20 }
 0x8c3   : > { %v3004_v62 = vpop.f32.mrf.mxu3 }
 0x8c5   : > { %v3926_v63 = vpop.eup %3925 }
 0x8c6   : > { %v2935_v44 = vpop.xlane.xlu2 %2934  ;;  %v2964_v30 = vmul.f32 %v3926_v63, %v5352_v25 }
 0x8c7   : > { %3927 = vrcp.f32 %v2935_v44 }
 0x8c8   : > { %3655 = vmatmul.msk.f32.gmra.mxu0 %vm2214_vm6, %v2964_v30 }
 0x8cb   : > { %v3007_v31 = vpop.f32.mrf.mxu3 }
 0x8cc   : > { %3114 = vmatmul.f32.vlgmr.msrb.gmra.mxu1 %v3007_v31 }
 0x8cd   : > { %v3928_v12 = vpop.eup %3927 }
 0x8ce   : > { %v2938_v32 = vpop.xlane.xlu0 %2937  ;;  %v2965_v9 = vmul.f32 %v3928_v12, %v5359_v52 }
 0x8cf   : > { %3929 = vrcp.f32 %v2938_v32 }
 0x8d0   : > { %3656 = vmatmul.msk.f32.gmra.mxu0 %vm2214_vm6, %v2965_v9 }
 0x8d3   : > { %v3010_v33 = vpop.f32.mrf.mxu3 }
 0x8d4   : > { %3117 = vmatmul.f32.gmra.mxu1 %v3010_v33 }
 0x8d5   : > { %v3930_v34 = vpop.eup %3929 }
 0x8d6   : > { %v2966_v35 = vmul.f32 %v3930_v34, %v5375_v61  ;;  %v2941_v36 = vpop.xlane.xlu1 %2940 }
 0x8d7   : > { %3931 = vrcp.f32 %v2941_v36 }
 0x8d8   : > { %3657 = vmatmul.msk.f32.gmra.mxu0 %vm2214_vm6, %v2966_v35 }
 0x8db   : > { %v3013_v38 = vpop.f32.mrf.mxu3 }
 0x8dc   : > { %3120 = vmatmul.f32.gmra.mxu1 %v3013_v38 }
 0x8dd   : > { %v3932_v25 = vpop.eup %3931 }
 0x8de   : > { %v2967_v14 = vmul.f32 %v3932_v25, %v5394_v18  ;;  %v2944_v39 = vpop.xlane.xlu2 %2943 }
 0x8df   : > { %3933 = vrcp.f32 %v2944_v39 }
 0x8e0   : > { %3658 = vmatmul.msk.f32.gmra.mxu0 %vm2214_vm6, %v2967_v14 }
 0x8e3   : > { %v3016_v16 = vpop.f32.mrf.mxu3 }
 0x8e4   : > { %3123 = vmatmul.f32.gmra.mxu1 %v3016_v16 }
 0x8e5   : > { %v3934_v41 = vpop.eup %3933 }
 0x8e6   : > { %v2968_v43 = vmul.f32 %v3934_v41, %v3922_v2 }
 0x8e8   : > { %3659 = vmatmul.msk.f32.gmra.mxu0 %vm2214_vm6, %v2968_v43 }
 0x8eb   : > { %v3019_v45 = vpop.f32.mrf.mxu3 }
 0x8ec   : > { %3126 = vmatmul.f32.gmra.mxu1 %v3019_v45 }
 0x8f0   : > { %3111 = vmatmul.f32.vlgmr.msrb.gmra.mxu0 %v3004_v62 }
 0x8f3   : > { %v3057_v47 = vpop.f32.mrf.mxu0 }
 0x8f4   : > { %3129 = vmatmul.f32.gmra.mxu1 %v3057_v47 }
 0x945   : > { %v3060_v52 = vpop.f32.mrf.mxu0 }
 0x946   : > { %3132 = vmatmul.f32.gmra.mxu1 %v3060_v52 }
 0x949   : > { %v3115_v48 = vpop.f32.mrf.mxu1 }
 0x94a   : > { %v3116_v55 = vadd.f32 %v3824_v53, %v3115_v48 }
 0x94c   : > { %3149 = vst [vmem:[%s4778_s20 + $0x20] sm:$0xff] %v3116_v55 }
 0x94d   : > { %v3063_v7 = vpop.f32.mrf.mxu0 }
 0x94e   : > { %3135 = vmatmul.f32.gmra.mxu1 %v3063_v7 }
 0x951   : > { %v3118_v37 = vpop.f32.mrf.mxu1 }
 0x952   : > { %v3119_v40 = vadd.f32 %v3824_v53, %v3118_v37 }
 0x954   : > { %3150 = vst [vmem:[%s4778_s20 + $0x40] sm:$0xff] %v3119_v40 }
 0x955   : > { %v3066_v56 = vpop.f32.mrf.mxu0 }
 0x956   : > { %3138 = vmatmul.f32.gmra.mxu1 %v3066_v56 }
 0x959   : > { %v3121_v58 = vpop.f32.mrf.mxu1 }
 0x95a   : > { %v3122_v50 = vadd.f32 %v3824_v53, %v3121_v58 }
 0x95c   : > { %3151 = vst [vmem:[%s4778_s20 + $0x60] sm:$0xff] %v3122_v50 }
 0x95d   : > { %v3069_v60 = vpop.f32.mrf.mxu0 }
 0x95e   : > { %3141 = vmatmul.f32.gmra.mxu1 %v3069_v60 }
 0x961   : > { %v3124_v61 = vpop.f32.mrf.mxu1 }
 0x962   : > { %v3125_v59 = vadd.f32 %v3824_v53, %v3124_v61 }
 0x964   : > { %3152 = vst [vmem:[%s4778_s20 + $0x80] sm:$0xff] %v3125_v59 }
 0x965   : > { %v3072_v0 = vpop.f32.mrf.mxu0 }
 0x966   : > { %3144 = vmatmul.f32.gmra.mxu1 %v3072_v0 }
 0x969   : > { %v3127_v51 = vpop.f32.mrf.mxu1 }
 0x96a   : > { %v3128_v5 = vadd.f32 %v3824_v53, %v3127_v51 }
 0x96c   : > { %3153 = vst [vmem:[%s4778_s20 + $0xa0] sm:$0x1] %v3128_v5 }
 0x96d   : > { %v3112_v8 = vpop.f32.mrf.mxu0 }
 0x96e   : > { %v3113_v11 = vadd.f32 %v3824_v53, %v3112_v8 }
 0x970   : > { %3148 = vst [vmem:[%s4778_s20] sm:$0xff] %v3113_v11 }
 0x971   : > { %v3130_v15 = vpop.f32.mrf.mxu1 }
 0x972   : > { %v3131_v46 = vadd.f32 %v3824_v53, %v3130_v15 }
 0x974   : > { %3154 = vst [vmem:[%s4778_s20 + $0x8] sm:$0xff] %v3131_v46 }
 0x9c3   : > { %v3133_v42 = vpop.f32.mrf.mxu1 }
 0x9c4   : > { %v3134_v17 = vadd.f32 %v3824_v53, %v3133_v42 }
 0x9c6   : > { %3155 = vst [vmem:[%s4778_s20 + $0x28] sm:$0xff] %v3134_v17 }
 0x9cb   : > { %v3136_v1 = vpop.f32.mrf.mxu1 }
 0x9cc   : > { %v3137_v18 = vadd.f32 %v3824_v53, %v3136_v1 }
 0x9ce   : > { %3156 = vst [vmem:[%s4778_s20 + $0x48] sm:$0xff] %v3137_v18 }
 0x9d3   : > { %v3139_v19 = vpop.f32.mrf.mxu1 }
 0x9d4   : > { %v3140_v21 = vadd.f32 %v3824_v53, %v3139_v19 }
 0x9d6   : > { %3157 = vst [vmem:[%s4778_s20 + $0x68] sm:$0xff] %v3140_v21 }
 0x9db   : > { %v3142_v54 = vpop.f32.mrf.mxu1 }
 0x9dc   : > { %v3143_v22 = vadd.f32 %v3824_v53, %v3142_v54 }
 0x9de   : > { %3158 = vst [vmem:[%s4778_s20 + $0x88] sm:$0xff] %v3143_v22 }
 0x9e3   : > { %v3145_v13 = vpop.f32.mrf.mxu1 }
 0x9e4   : > { %v3146_v23 = vadd.f32 %v3824_v53, %v3145_v13 }
 0x9e6   : > { %3159 = vst [vmem:[%s4778_s20 + $0xa8] sm:$0x1] %v3146_v23 }
 0x9e7 PF: > { %s30_s27 = sadd.s32 1, %s4039_s27  }
 0x9e8   : > { %p27_p7 = scmp.ge.s32.totalorder %s30_s27, 4  }
 0x9ea   :  { %29 = sbr.rel (!%p27_p7) target bundleno = 6 (0x6), region = 138 }
 0x9ef   :  { %3193 = vsyncpa [#allocation5], 1 }
 0x9f0   :  { %3195 = vsyncpa [#allocation5 + $0x1], 1 }
 0x9f1   :  { %3196 = vsyncpa [#allocation7], 1 }

// kernel: coattention_model_forward.3
= control target key start
LH: loop header
LB: loop body
LE: loop exit
PB: predicated region body
PF: predicated region fallthrough
CT: control target
= control target key end

     0   :  { %s14414_s15 = smov 0   ;;  %s14416_s16 = smov 0   ;;  %s17448_s0 = inlined_call_operand.vmem [shape: f32[2,20992], index: 0, kind: input, shape index: {}]   ;;  %s17449_s1 = inlined_call_operand.vmem [shape: bf16[20992,512], index: 1, kind: input, shape index: {}]   ;;  %s17450_s2 = inlined_call_operand.vmem [shape: f32[1,512], index: 2, kind: input, shape index: {}]   ;;  %s17451_s3 = inlined_call_operand.vmem [shape: f32[512,128], index: 3, kind: input, shape index: {}]   ;;  %s17452_s4 = inlined_call_operand.vmem [shape: f32[2,2,128], index: 4, kind: output, shape index: {}]  }
   0x1   :  { %s14418_s17 = smov 0   ;;  %s14420_s18 = smov 0  }
   0x2   :  { %s14422_s19 = smov 0   ;;  %s14424_s20 = smov 0  }
   0x3   :  { %s14426_s21 = smov 0  }
   0x4 LB: > { %s23_s22 = sadd.s32 1, %s14378_s19  ;;  %s26_s23 = sadd.s32 1, %s14382_s20  ;;  %s14386_s21 = sphi %s14426_s21, %s14_s21   ;;  %s14382_s20 = sphi %s14424_s20, %s17476_s20   ;;  %s14378_s19 = sphi %s14422_s19, %s17475_s19   ;;  %s14374_s18 = sphi %s14420_s18, %s17474_s18   ;;  %s14370_s17 = sphi %s14418_s17, %s17473_s17   ;;  %s14366_s16 = sphi %s14416_s16, %s17472_s16   ;;  %s14362_s15 = sphi %s14414_s15, %s17471_s15  }
   0x5   : > { %p24_p0 = scmp.ge.s32.totalorder %s23_s22, 4  ;;  %p68_p1 = scmp.ne.s32.totalorder %s14366_s16, %s14362_s15 }
   0x6   : > { %p69_p2 = scmp.eq.s32.totalorder %s14386_s21, 0  ;;  %s61_s27 = sadd.s32 1, %s14366_s16 }
   0x7   : > { %s17478_s22 = smov (%p24_p0, %s23_s22), 0  ;;  %s17480_s23 = smov (!%p24_p0, %s26_s23), %s14382_s20 }
   0x8   : > { %p70_p3 = por %p69_p2, %p68_p1  ;;  %p28_p4 = scmp.ge.s32.totalorder %s17480_s23, 2 }
   0x9   : > { %s56_s24 = ssub.s32 %s14378_s19, %s17478_s22  ;;  %p10978_p6 = scmp.ge.s32.totalorder %s14386_s21, 8 }
   0xa   : > { %s17482_s23 = smov (%p28_p4, %s17480_s23), 0 }
   0xb   : > { %s57_s25 = ssub.s32 %s14382_s20, %s17482_s23  ;;  %172 = sbr.rel (%p10978_p6) target bundleno = 680 (0x2a8), region = 16 }
   0xc   : > { %s58_s26 = sor.u32 %s57_s25, %s56_s24 }
   0xd   : > { %p59_p5 = scmp.eq.s32.totalorder %s58_s26, 0 }
   0xf   : > { %s14465_s28 = scalar_select %p59_p5, %s14366_s16, %s61_s27  }
  0x10   : > { %184 = sbr.rel (!%p70_p3) target bundleno = 680 (0x2a8), region = 24  ;;  %s186_s29 = sand.u32 (%p70_p3), 1, %s14366_s16  }
  0x11   : > { %s14273_s30 = smul.u32 (%p70_p3), 5248, %s186_s29  ;;  %s10979_s5 = sshll.u32 (%p70_p3), %s14382_s20, 1 }
  0x12   : > { %s13616_s6 = smul.u32 (%p70_p3), 2624, %s14378_s19 }
  0x13   : > { %s14479_s12 = scalar_lea.vmem (%p70_p3), [#allocation3], %s14273_s30 }
  0x14   : > { %s192_s7 = sadd.s32 (%p70_p3), %s13616_s6, %s10979_s5 }
  0x15   : > { %s10981_s8 = sshll.u32 %s192_s7, 2 }
  0x16   : > { %s14474_s11 = scalar_lea.vmem %s17449_s1, %s10981_s8 }
  0x17   : > { %v1534_v0 = vld [vmem:[%s14474_s11] sm:$0xff]  ;;  %v1536_v1 = vld [vmem:[%s14474_s11 + $0x10] sm:$0xff] }
  0x18   : > { %v1538_v2 = vld [vmem:[%s14474_s11 + $0x20] sm:$0xff]  ;;  %1535 = vst [vmem:[%s14479_s12] sm:$0xff] %v1534_v0  ;;  %v1540_v3 = vld [vmem:[%s14474_s11 + $0x30] sm:$0xff] }
  0x19   : > { %1537 = vst [vmem:[%s14479_s12 + $0x8] sm:$0xff] %v1536_v1  ;;  %v1542_v4 = vld [vmem:[%s14474_s11 + $0x40] sm:$0xff]  ;;  %v1544_v5 = vld [vmem:[%s14474_s11 + $0x50] sm:$0xff] }
  0x1a   : > { %1539 = vst [vmem:[%s14479_s12 + $0x10] sm:$0xff] %v1538_v2  ;;  %v1546_v6 = vld [vmem:[%s14474_s11 + $0x60] sm:$0xff]  ;;  %v1548_v7 = vld [vmem:[%s14474_s11 + $0x70] sm:$0xff] }
  0x1b   : > { %1541 = vst [vmem:[%s14479_s12 + $0x18] sm:$0xff] %v1540_v3  ;;  %v1550_v8 = vld [vmem:[%s14474_s11 + $0x80] sm:$0xff]  ;;  %v1552_v9 = vld [vmem:[%s14474_s11 + $0x90] sm:$0xff] }
  0x1c   : > { %1543 = vst [vmem:[%s14479_s12 + $0x20] sm:$0xff] %v1542_v4  ;;  %v1554_v10 = vld [vmem:[%s14474_s11 + $0xa0] sm:$0xff]  ;;  %v1556_v11 = vld [vmem:[%s14474_s11 + $0xb0] sm:$0xff] }
  0x1d   : > { %1545 = vst [vmem:[%s14479_s12 + $0x28] sm:$0xff] %v1544_v5  ;;  %v1558_v12 = vld [vmem:[%s14474_s11 + $0xc0] sm:$0xff]  ;;  %v1560_v13 = vld [vmem:[%s14474_s11 + $0xd0] sm:$0xff] }
  0x1e   : > { %1547 = vst [vmem:[%s14479_s12 + $0x30] sm:$0xff] %v1546_v6  ;;  %v1562_v14 = vld [vmem:[%s14474_s11 + $0xe0] sm:$0xff]  ;;  %v1564_v15 = vld [vmem:[%s14474_s11 + $0xf0] sm:$0xff] }
  0x1f   : > { %1549 = vst [vmem:[%s14479_s12 + $0x38] sm:$0xff] %v1548_v7  ;;  %v1566_v16 = vld [vmem:[%s14474_s11 + $0x100] sm:$0xff]  ;;  %v1568_v17 = vld [vmem:[%s14474_s11 + $0x110] sm:$0xff] }
  0x20   : > { %1551 = vst [vmem:[%s14479_s12 + $0x40] sm:$0xff] %v1550_v8  ;;  %v1570_v18 = vld [vmem:[%s14474_s11 + $0x120] sm:$0xff]  ;;  %v1572_v19 = vld [vmem:[%s14474_s11 + $0x130] sm:$0xff] }
  0x21   : > { %1553 = vst [vmem:[%s14479_s12 + $0x48] sm:$0xff] %v1552_v9  ;;  %v1574_v20 = vld [vmem:[%s14474_s11 + $0x140] sm:$0xff]  ;;  %v1576_v21 = vld [vmem:[%s14474_s11 + $0x150] sm:$0xff] }
  0x22   : > { %1555 = vst [vmem:[%s14479_s12 + $0x50] sm:$0xff] %v1554_v10  ;;  %v1578_v22 = vld [vmem:[%s14474_s11 + $0x160] sm:$0xff]  ;;  %v1580_v23 = vld [vmem:[%s14474_s11 + $0x170] sm:$0xff] }
  0x23   : > { %1557 = vst [vmem:[%s14479_s12 + $0x58] sm:$0xff] %v1556_v11  ;;  %v1582_v24 = vld [vmem:[%s14474_s11 + $0x180] sm:$0xff]  ;;  %v1584_v25 = vld [vmem:[%s14474_s11 + $0x190] sm:$0xff] }
  0x24   : > { %1559 = vst [vmem:[%s14479_s12 + $0x60] sm:$0xff] %v1558_v12  ;;  %v1586_v26 = vld [vmem:[%s14474_s11 + $0x1a0] sm:$0xff]  ;;  %v1588_v27 = vld [vmem:[%s14474_s11 + $0x1b0] sm:$0xff] }
  0x25   : > { %1561 = vst [vmem:[%s14479_s12 + $0x68] sm:$0xff] %v1560_v13  ;;  %v1590_v28 = vld [vmem:[%s14474_s11 + $0x1c0] sm:$0xff]  ;;  %v1592_v29 = vld [vmem:[%s14474_s11 + $0x1d0] sm:$0xff] }
  0x26   : > { %1563 = vst [vmem:[%s14479_s12 + $0x70] sm:$0xff] %v1562_v14  ;;  %v1594_v30 = vld [vmem:[%s14474_s11 + $0x1e0] sm:$0xff]  ;;  %v1596_v31 = vld [vmem:[%s14474_s11 + $0x1f0] sm:$0xff] }
  0x27   : > { %1565 = vst [vmem:[%s14479_s12 + $0x78] sm:$0xff] %v1564_v15  ;;  %v1598_v32 = vld [vmem:[%s14474_s11 + $0x200] sm:$0xff]  ;;  %v1600_v33 = vld [vmem:[%s14474_s11 + $0x210] sm:$0xff] }
  0x28   : > { %1567 = vst [vmem:[%s14479_s12 + $0x80] sm:$0xff] %v1566_v16  ;;  %v1602_v34 = vld [vmem:[%s14474_s11 + $0x220] sm:$0xff]  ;;  %v1604_v35 = vld [vmem:[%s14474_s11 + $0x230] sm:$0xff] }
  0x29   : > { %1569 = vst [vmem:[%s14479_s12 + $0x88] sm:$0xff] %v1568_v17  ;;  %v1606_v36 = vld [vmem:[%s14474_s11 + $0x240] sm:$0xff]  ;;  %v1608_v37 = vld [vmem:[%s14474_s11 + $0x250] sm:$0xff] }
  0x2a   : > { %1571 = vst [vmem:[%s14479_s12 + $0x90] sm:$0xff] %v1570_v18  ;;  %v1610_v38 = vld [vmem:[%s14474_s11 + $0x260] sm:$0xff]  ;;  %v1612_v39 = vld [vmem:[%s14474_s11 + $0x270] sm:$0xff] }
  0x2b   : > { %1573 = vst [vmem:[%s14479_s12 + $0x98] sm:$0xff] %v1572_v19  ;;  %v1614_v40 = vld [vmem:[%s14474_s11 + $0x280] sm:$0xff]  ;;  %v1616_v41 = vld [vmem:[%s14474_s11 + $0x290] sm:$0xff] }
  0x2c   : > { %1575 = vst [vmem:[%s14479_s12 + $0xa0] sm:$0xff] %v1574_v20  ;;  %v1618_v42 = vld [vmem:[%s14474_s11 + $0x2a0] sm:$0xff]  ;;  %v1620_v43 = vld [vmem:[%s14474_s11 + $0x2b0] sm:$0xff] }
  0x2d   : > { %1577 = vst [vmem:[%s14479_s12 + $0xa8] sm:$0xff] %v1576_v21  ;;  %v1622_v44 = vld [vmem:[%s14474_s11 + $0x2c0] sm:$0xff]  ;;  %v1624_v45 = vld [vmem:[%s14474_s11 + $0x2d0] sm:$0xff] }
  0x2e   : > { %1579 = vst [vmem:[%s14479_s12 + $0xb0] sm:$0xff] %v1578_v22  ;;  %v1626_v46 = vld [vmem:[%s14474_s11 + $0x2e0] sm:$0xff]  ;;  %v1628_v47 = vld [vmem:[%s14474_s11 + $0x2f0] sm:$0xff] }
  0x2f   : > { %1581 = vst [vmem:[%s14479_s12 + $0xb8] sm:$0xff] %v1580_v23  ;;  %v1630_v48 = vld [vmem:[%s14474_s11 + $0x300] sm:$0xff]  ;;  %v1632_v49 = vld [vmem:[%s14474_s11 + $0x310] sm:$0xff] }
  0x30   : > { %1583 = vst [vmem:[%s14479_s12 + $0xc0] sm:$0xff] %v1582_v24  ;;  %v1634_v50 = vld [vmem:[%s14474_s11 + $0x320] sm:$0xff]  ;;  %v1636_v51 = vld [vmem:[%s14474_s11 + $0x330] sm:$0xff] }
  0x31   : > { %1585 = vst [vmem:[%s14479_s12 + $0xc8] sm:$0xff] %v1584_v25  ;;  %v1638_v52 = vld [vmem:[%s14474_s11 + $0x340] sm:$0xff]  ;;  %v1640_v53 = vld [vmem:[%s14474_s11 + $0x350] sm:$0xff] }
  0x32   : > { %1587 = vst [vmem:[%s14479_s12 + $0xd0] sm:$0xff] %v1586_v26  ;;  %v1642_v54 = vld [vmem:[%s14474_s11 + $0x360] sm:$0xff]  ;;  %v1644_v55 = vld [vmem:[%s14474_s11 + $0x370] sm:$0xff] }
  0x33   : > { %1589 = vst [vmem:[%s14479_s12 + $0xd8] sm:$0xff] %v1588_v27  ;;  %v1646_v56 = vld [vmem:[%s14474_s11 + $0x380] sm:$0xff]  ;;  %v1648_v57 = vld [vmem:[%s14474_s11 + $0x390] sm:$0xff] }
  0x34   : > { %1591 = vst [vmem:[%s14479_s12 + $0xe0] sm:$0xff] %v1590_v28  ;;  %v1650_v58 = vld [vmem:[%s14474_s11 + $0x3a0] sm:$0xff]  ;;  %v1652_v59 = vld [vmem:[%s14474_s11 + $0x3b0] sm:$0xff] }
  0x35   : > { %1593 = vst [vmem:[%s14479_s12 + $0xe8] sm:$0xff] %v1592_v29  ;;  %v1654_v60 = vld [vmem:[%s14474_s11 + $0x3c0] sm:$0xff]  ;;  %v1656_v61 = vld [vmem:[%s14474_s11 + $0x3d0] sm:$0xff] }
  0x36   : > { %1595 = vst [vmem:[%s14479_s12 + $0xf0] sm:$0xff] %v1594_v30  ;;  %v1658_v62 = vld [vmem:[%s14474_s11 + $0x3e0] sm:$0xff]  ;;  %v1660_v63 = vld [vmem:[%s14474_s11 + $0x3f0] sm:$0xff] }
  0x37   : > { %1597 = vst [vmem:[%s14479_s12 + $0xf8] sm:$0xff] %v1596_v31  ;;  %v1662_v0 = vld [vmem:[%s14474_s11 + $0x400] sm:$0xff]  ;;  %v1664_v1 = vld [vmem:[%s14474_s11 + $0x410] sm:$0xff] }
  0x38   : > { %1599 = vst [vmem:[%s14479_s12 + $0x100] sm:$0xff] %v1598_v32  ;;  %v1666_v2 = vld [vmem:[%s14474_s11 + $0x420] sm:$0xff]  ;;  %v1668_v3 = vld [vmem:[%s14474_s11 + $0x430] sm:$0xff] }
  0x39   : > { %1601 = vst [vmem:[%s14479_s12 + $0x108] sm:$0xff] %v1600_v33  ;;  %v1670_v4 = vld [vmem:[%s14474_s11 + $0x440] sm:$0xff]  ;;  %v1672_v5 = vld [vmem:[%s14474_s11 + $0x450] sm:$0xff] }
  0x3a   : > { %1603 = vst [vmem:[%s14479_s12 + $0x110] sm:$0xff] %v1602_v34  ;;  %v1674_v6 = vld [vmem:[%s14474_s11 + $0x460] sm:$0xff]  ;;  %v1676_v7 = vld [vmem:[%s14474_s11 + $0x470] sm:$0xff] }
  0x3b   : > { %1605 = vst [vmem:[%s14479_s12 + $0x118] sm:$0xff] %v1604_v35  ;;  %v1678_v8 = vld [vmem:[%s14474_s11 + $0x480] sm:$0xff]  ;;  %v1680_v9 = vld [vmem:[%s14474_s11 + $0x490] sm:$0xff] }
  0x3c   : > { %1607 = vst [vmem:[%s14479_s12 + $0x120] sm:$0xff] %v1606_v36  ;;  %v1682_v10 = vld [vmem:[%s14474_s11 + $0x4a0] sm:$0xff]  ;;  %v1684_v11 = vld [vmem:[%s14474_s11 + $0x4b0] sm:$0xff] }
  0x3d   : > { %1609 = vst [vmem:[%s14479_s12 + $0x128] sm:$0xff] %v1608_v37  ;;  %v1686_v12 = vld [vmem:[%s14474_s11 + $0x4c0] sm:$0xff]  ;;  %v1688_v13 = vld [vmem:[%s14474_s11 + $0x4d0] sm:$0xff] }
  0x3e   : > { %1611 = vst [vmem:[%s14479_s12 + $0x130] sm:$0xff] %v1610_v38  ;;  %v1690_v14 = vld [vmem:[%s14474_s11 + $0x4e0] sm:$0xff]  ;;  %v1692_v15 = vld [vmem:[%s14474_s11 + $0x4f0] sm:$0xff] }
  0x3f   : > { %1613 = vst [vmem:[%s14479_s12 + $0x138] sm:$0xff] %v1612_v39  ;;  %v1694_v16 = vld [vmem:[%s14474_s11 + $0x500] sm:$0xff]  ;;  %v1696_v17 = vld [vmem:[%s14474_s11 + $0x510] sm:$0xff] }
  0x40   : > { %1615 = vst [vmem:[%s14479_s12 + $0x140] sm:$0xff] %v1614_v40  ;;  %v1698_v18 = vld [vmem:[%s14474_s11 + $0x520] sm:$0xff]  ;;  %v1700_v19 = vld [vmem:[%s14474_s11 + $0x530] sm:$0xff] }
  0x41   : > { %1617 = vst [vmem:[%s14479_s12 + $0x148] sm:$0xff] %v1616_v41  ;;  %v1702_v20 = vld [vmem:[%s14474_s11 + $0x540] sm:$0xff]  ;;  %v1704_v21 = vld [vmem:[%s14474_s11 + $0x550] sm:$0xff] }
  0x42   : > { %1619 = vst [vmem:[%s14479_s12 + $0x150] sm:$0xff] %v1618_v42  ;;  %v1706_v22 = vld [vmem:[%s14474_s11 + $0x560] sm:$0xff]  ;;  %v1708_v23 = vld [vmem:[%s14474_s11 + $0x570] sm:$0xff] }
  0x43   : > { %1621 = vst [vmem:[%s14479_s12 + $0x158] sm:$0xff] %v1620_v43  ;;  %v1710_v24 = vld [vmem:[%s14474_s11 + $0x580] sm:$0xff]  ;;  %v1712_v25 = vld [vmem:[%s14474_s11 + $0x590] sm:$0xff] }
  0x44   : > { %1623 = vst [vmem:[%s14479_s12 + $0x160] sm:$0xff] %v1622_v44  ;;  %v1714_v26 = vld [vmem:[%s14474_s11 + $0x5a0] sm:$0xff]  ;;  %v1716_v27 = vld [vmem:[%s14474_s11 + $0x5b0] sm:$0xff] }
  0x45   : > { %1625 = vst [vmem:[%s14479_s12 + $0x168] sm:$0xff] %v1624_v45  ;;  %v1718_v28 = vld [vmem:[%s14474_s11 + $0x5c0] sm:$0xff]  ;;  %v1720_v29 = vld [vmem:[%s14474_s11 + $0x5d0] sm:$0xff] }
  0x46   : > { %1627 = vst [vmem:[%s14479_s12 + $0x170] sm:$0xff] %v1626_v46  ;;  %v1722_v30 = vld [vmem:[%s14474_s11 + $0x5e0] sm:$0xff]  ;;  %v1724_v31 = vld [vmem:[%s14474_s11 + $0x5f0] sm:$0xff] }
  0x47   : > { %1629 = vst [vmem:[%s14479_s12 + $0x178] sm:$0xff] %v1628_v47  ;;  %v1726_v32 = vld [vmem:[%s14474_s11 + $0x600] sm:$0xff]  ;;  %v1728_v33 = vld [vmem:[%s14474_s11 + $0x610] sm:$0xff] }
  0x48   : > { %1631 = vst [vmem:[%s14479_s12 + $0x180] sm:$0xff] %v1630_v48  ;;  %v1730_v34 = vld [vmem:[%s14474_s11 + $0x620] sm:$0xff]  ;;  %v1732_v35 = vld [vmem:[%s14474_s11 + $0x630] sm:$0xff] }
  0x49   : > { %1633 = vst [vmem:[%s14479_s12 + $0x188] sm:$0xff] %v1632_v49  ;;  %v1734_v36 = vld [vmem:[%s14474_s11 + $0x640] sm:$0xff]  ;;  %v1736_v37 = vld [vmem:[%s14474_s11 + $0x650] sm:$0xff] }
  0x4a   : > { %1635 = vst [vmem:[%s14479_s12 + $0x190] sm:$0xff] %v1634_v50  ;;  %v1738_v38 = vld [vmem:[%s14474_s11 + $0x660] sm:$0xff]  ;;  %v1740_v39 = vld [vmem:[%s14474_s11 + $0x670] sm:$0xff] }
  0x4b   : > { %1637 = vst [vmem:[%s14479_s12 + $0x198] sm:$0xff] %v1636_v51  ;;  %v1742_v40 = vld [vmem:[%s14474_s11 + $0x680] sm:$0xff]  ;;  %v1744_v41 = vld [vmem:[%s14474_s11 + $0x690] sm:$0xff] }
  0x4c   : > { %1639 = vst [vmem:[%s14479_s12 + $0x1a0] sm:$0xff] %v1638_v52  ;;  %v1746_v42 = vld [vmem:[%s14474_s11 + $0x6a0] sm:$0xff]  ;;  %v1748_v43 = vld [vmem:[%s14474_s11 + $0x6b0] sm:$0xff] }
  0x4d   : > { %1641 = vst [vmem:[%s14479_s12 + $0x1a8] sm:$0xff] %v1640_v53  ;;  %v1750_v44 = vld [vmem:[%s14474_s11 + $0x6c0] sm:$0xff]  ;;  %v1752_v45 = vld [vmem:[%s14474_s11 + $0x6d0] sm:$0xff] }
  0x4e   : > { %1643 = vst [vmem:[%s14479_s12 + $0x1b0] sm:$0xff] %v1642_v54  ;;  %v1754_v46 = vld [vmem:[%s14474_s11 + $0x6e0] sm:$0xff]  ;;  %v1756_v47 = vld [vmem:[%s14474_s11 + $0x6f0] sm:$0xff] }
  0x4f   : > { %1645 = vst [vmem:[%s14479_s12 + $0x1b8] sm:$0xff] %v1644_v55  ;;  %v1758_v48 = vld [vmem:[%s14474_s11 + $0x700] sm:$0xff]  ;;  %v1760_v49 = vld [vmem:[%s14474_s11 + $0x710] sm:$0xff] }
  0x50   : > { %1647 = vst [vmem:[%s14479_s12 + $0x1c0] sm:$0xff] %v1646_v56  ;;  %v1762_v50 = vld [vmem:[%s14474_s11 + $0x720] sm:$0xff]  ;;  %v1764_v51 = vld [vmem:[%s14474_s11 + $0x730] sm:$0xff] }
  0x51   : > { %1649 = vst [vmem:[%s14479_s12 + $0x1c8] sm:$0xff] %v1648_v57  ;;  %v1766_v52 = vld [vmem:[%s14474_s11 + $0x740] sm:$0xff]  ;;  %v1768_v53 = vld [vmem:[%s14474_s11 + $0x750] sm:$0xff] }
  0x52   : > { %1651 = vst [vmem:[%s14479_s12 + $0x1d0] sm:$0xff] %v1650_v58  ;;  %v1770_v54 = vld [vmem:[%s14474_s11 + $0x760] sm:$0xff]  ;;  %v1772_v55 = vld [vmem:[%s14474_s11 + $0x770] sm:$0xff] }
  0x53   : > { %1653 = vst [vmem:[%s14479_s12 + $0x1d8] sm:$0xff] %v1652_v59  ;;  %v1774_v56 = vld [vmem:[%s14474_s11 + $0x780] sm:$0xff]  ;;  %v1776_v57 = vld [vmem:[%s14474_s11 + $0x790] sm:$0xff] }
  0x54   : > { %1655 = vst [vmem:[%s14479_s12 + $0x1e0] sm:$0xff] %v1654_v60  ;;  %v1778_v58 = vld [vmem:[%s14474_s11 + $0x7a0] sm:$0xff]  ;;  %v1780_v59 = vld [vmem:[%s14474_s11 + $0x7b0] sm:$0xff] }
  0x55   : > { %1657 = vst [vmem:[%s14479_s12 + $0x1e8] sm:$0xff] %v1656_v61  ;;  %v1782_v60 = vld [vmem:[%s14474_s11 + $0x7c0] sm:$0xff]  ;;  %v1784_v61 = vld [vmem:[%s14474_s11 + $0x7d0] sm:$0xff] }
  0x56   : > { %1659 = vst [vmem:[%s14479_s12 + $0x1f0] sm:$0xff] %v1658_v62  ;;  %v1786_v62 = vld [vmem:[%s14474_s11 + $0x7e0] sm:$0xff] }
  0x57   : > { %1661 = vst [vmem:[%s14479_s12 + $0x1f8] sm:$0xff] %v1660_v63  ;;  %v1788_v63 = vld [vmem:[%s14474_s11 + $0x7f0] sm:$0xff] }
  0x58   : > { %1663 = vst [vmem:[%s14479_s12 + $0x200] sm:$0xff] %v1662_v0  ;;  %v1790_v0 = vld [vmem:[%s14474_s11 + $0x800] sm:$0xff] }
  0x59   : > { %1665 = vst [vmem:[%s14479_s12 + $0x208] sm:$0xff] %v1664_v1  ;;  %v1792_v1 = vld [vmem:[%s14474_s11 + $0x810] sm:$0xff] }
  0x5a   : > { %1667 = vst [vmem:[%s14479_s12 + $0x210] sm:$0xff] %v1666_v2  ;;  %v1794_v2 = vld [vmem:[%s14474_s11 + $0x820] sm:$0xff] }
  0x5b   : > { %1669 = vst [vmem:[%s14479_s12 + $0x218] sm:$0xff] %v1668_v3  ;;  %v1796_v3 = vld [vmem:[%s14474_s11 + $0x830] sm:$0xff] }
  0x5c   : > { %1671 = vst [vmem:[%s14479_s12 + $0x220] sm:$0xff] %v1670_v4  ;;  %v1798_v4 = vld [vmem:[%s14474_s11 + $0x840] sm:$0xff] }
  0x5d   : > { %1673 = vst [vmem:[%s14479_s12 + $0x228] sm:$0xff] %v1672_v5  ;;  %v1800_v5 = vld [vmem:[%s14474_s11 + $0x850] sm:$0xff] }
  0x5e   : > { %1675 = vst [vmem:[%s14479_s12 + $0x230] sm:$0xff] %v1674_v6  ;;  %v1802_v6 = vld [vmem:[%s14474_s11 + $0x860] sm:$0xff] }
  0x5f   : > { %1677 = vst [vmem:[%s14479_s12 + $0x238] sm:$0xff] %v1676_v7  ;;  %v1804_v7 = vld [vmem:[%s14474_s11 + $0x870] sm:$0xff] }
  0x60   : > { %1679 = vst [vmem:[%s14479_s12 + $0x240] sm:$0xff] %v1678_v8  ;;  %v1806_v8 = vld [vmem:[%s14474_s11 + $0x880] sm:$0xff] }
  0x61   : > { %1681 = vst [vmem:[%s14479_s12 + $0x248] sm:$0xff] %v1680_v9  ;;  %v1808_v9 = vld [vmem:[%s14474_s11 + $0x890] sm:$0xff] }
  0x62   : > { %1683 = vst [vmem:[%s14479_s12 + $0x250] sm:$0xff] %v1682_v10  ;;  %v1810_v10 = vld [vmem:[%s14474_s11 + $0x8a0] sm:$0xff] }
  0x63   : > { %1685 = vst [vmem:[%s14479_s12 + $0x258] sm:$0xff] %v1684_v11  ;;  %v1812_v11 = vld [vmem:[%s14474_s11 + $0x8b0] sm:$0xff] }
  0x64   : > { %1687 = vst [vmem:[%s14479_s12 + $0x260] sm:$0xff] %v1686_v12  ;;  %v1814_v12 = vld [vmem:[%s14474_s11 + $0x8c0] sm:$0xff] }
  0x65   : > { %1689 = vst [vmem:[%s14479_s12 + $0x268] sm:$0xff] %v1688_v13  ;;  %v1816_v13 = vld [vmem:[%s14474_s11 + $0x8d0] sm:$0xff] }
  0x66   : > { %1691 = vst [vmem:[%s14479_s12 + $0x270] sm:$0xff] %v1690_v14  ;;  %v1818_v14 = vld [vmem:[%s14474_s11 + $0x8e0] sm:$0xff] }
  0x67   : > { %1693 = vst [vmem:[%s14479_s12 + $0x278] sm:$0xff] %v1692_v15  ;;  %v1820_v15 = vld [vmem:[%s14474_s11 + $0x8f0] sm:$0xff] }
  0x68   : > { %1695 = vst [vmem:[%s14479_s12 + $0x280] sm:$0xff] %v1694_v16  ;;  %v1822_v16 = vld [vmem:[%s14474_s11 + $0x900] sm:$0xff] }
  0x69   : > { %1697 = vst [vmem:[%s14479_s12 + $0x288] sm:$0xff] %v1696_v17  ;;  %v1824_v17 = vld [vmem:[%s14474_s11 + $0x910] sm:$0xff] }
  0x6a   : > { %1699 = vst [vmem:[%s14479_s12 + $0x290] sm:$0xff] %v1698_v18  ;;  %v1826_v18 = vld [vmem:[%s14474_s11 + $0x920] sm:$0xff] }
  0x6b   : > { %1701 = vst [vmem:[%s14479_s12 + $0x298] sm:$0xff] %v1700_v19  ;;  %v1828_v19 = vld [vmem:[%s14474_s11 + $0x930] sm:$0xff] }
  0x6c   : > { %1703 = vst [vmem:[%s14479_s12 + $0x2a0] sm:$0xff] %v1702_v20  ;;  %v1830_v20 = vld [vmem:[%s14474_s11 + $0x940] sm:$0xff] }
  0x6d   : > { %1705 = vst [vmem:[%s14479_s12 + $0x2a8] sm:$0xff] %v1704_v21  ;;  %v1832_v21 = vld [vmem:[%s14474_s11 + $0x950] sm:$0xff] }
  0x6e   : > { %1707 = vst [vmem:[%s14479_s12 + $0x2b0] sm:$0xff] %v1706_v22  ;;  %v1834_v22 = vld [vmem:[%s14474_s11 + $0x960] sm:$0xff] }
  0x6f   : > { %1709 = vst [vmem:[%s14479_s12 + $0x2b8] sm:$0xff] %v1708_v23  ;;  %v1836_v23 = vld [vmem:[%s14474_s11 + $0x970] sm:$0xff] }
  0x70   : > { %1711 = vst [vmem:[%s14479_s12 + $0x2c0] sm:$0xff] %v1710_v24  ;;  %v1838_v24 = vld [vmem:[%s14474_s11 + $0x980] sm:$0xff] }
  0x71   : > { %1713 = vst [vmem:[%s14479_s12 + $0x2c8] sm:$0xff] %v1712_v25  ;;  %v1840_v25 = vld [vmem:[%s14474_s11 + $0x990] sm:$0xff] }
  0x72   : > { %1715 = vst [vmem:[%s14479_s12 + $0x2d0] sm:$0xff] %v1714_v26  ;;  %v1842_v26 = vld [vmem:[%s14474_s11 + $0x9a0] sm:$0xff] }
  0x73   : > { %1717 = vst [vmem:[%s14479_s12 + $0x2d8] sm:$0xff] %v1716_v27  ;;  %v1844_v27 = vld [vmem:[%s14474_s11 + $0x9b0] sm:$0xff] }
  0x74   : > { %1719 = vst [vmem:[%s14479_s12 + $0x2e0] sm:$0xff] %v1718_v28  ;;  %v1846_v28 = vld [vmem:[%s14474_s11 + $0x9c0] sm:$0xff] }
  0x75   : > { %1721 = vst [vmem:[%s14479_s12 + $0x2e8] sm:$0xff] %v1720_v29  ;;  %v1848_v29 = vld [vmem:[%s14474_s11 + $0x9d0] sm:$0xff] }
  0x76   : > { %1723 = vst [vmem:[%s14479_s12 + $0x2f0] sm:$0xff] %v1722_v30  ;;  %v1850_v30 = vld [vmem:[%s14474_s11 + $0x9e0] sm:$0xff] }
  0x77   : > { %1725 = vst [vmem:[%s14479_s12 + $0x2f8] sm:$0xff] %v1724_v31  ;;  %v1852_v31 = vld [vmem:[%s14474_s11 + $0x9f0] sm:$0xff] }
  0x78   : > { %1727 = vst [vmem:[%s14479_s12 + $0x300] sm:$0xff] %v1726_v32  ;;  %v1854_v32 = vld [vmem:[%s14474_s11 + $0xa00] sm:$0xff] }
  0x79   : > { %1729 = vst [vmem:[%s14479_s12 + $0x308] sm:$0xff] %v1728_v33  ;;  %v1856_v33 = vld [vmem:[%s14474_s11 + $0xa10] sm:$0xff] }
  0x7a   : > { %1731 = vst [vmem:[%s14479_s12 + $0x310] sm:$0xff] %v1730_v34  ;;  %v1858_v34 = vld [vmem:[%s14474_s11 + $0xa20] sm:$0xff] }
  0x7b   : > { %1733 = vst [vmem:[%s14479_s12 + $0x318] sm:$0xff] %v1732_v35  ;;  %v1860_v35 = vld [vmem:[%s14474_s11 + $0xa30] sm:$0xff] }
  0x7c   : > { %1735 = vst [vmem:[%s14479_s12 + $0x320] sm:$0xff] %v1734_v36  ;;  %v1862_v36 = vld [vmem:[%s14474_s11 + $0xa40] sm:$0xff] }
  0x7d   : > { %1737 = vst [vmem:[%s14479_s12 + $0x328] sm:$0xff] %v1736_v37  ;;  %v1864_v37 = vld [vmem:[%s14474_s11 + $0xa50] sm:$0xff] }
  0x7e   : > { %1739 = vst [vmem:[%s14479_s12 + $0x330] sm:$0xff] %v1738_v38  ;;  %v1866_v38 = vld [vmem:[%s14474_s11 + $0xa60] sm:$0xff] }
  0x7f   : > { %1741 = vst [vmem:[%s14479_s12 + $0x338] sm:$0xff] %v1740_v39  ;;  %v1868_v39 = vld [vmem:[%s14474_s11 + $0xa70] sm:$0xff] }
  0x80   : > { %1743 = vst [vmem:[%s14479_s12 + $0x340] sm:$0xff] %v1742_v40  ;;  %v1870_v40 = vld [vmem:[%s14474_s11 + $0xa80] sm:$0xff] }
  0x81   : > { %1745 = vst [vmem:[%s14479_s12 + $0x348] sm:$0xff] %v1744_v41  ;;  %v1872_v41 = vld [vmem:[%s14474_s11 + $0xa90] sm:$0xff] }
  0x82   : > { %1747 = vst [vmem:[%s14479_s12 + $0x350] sm:$0xff] %v1746_v42  ;;  %v1874_v42 = vld [vmem:[%s14474_s11 + $0xaa0] sm:$0xff] }
  0x83   : > { %1749 = vst [vmem:[%s14479_s12 + $0x358] sm:$0xff] %v1748_v43  ;;  %v1876_v43 = vld [vmem:[%s14474_s11 + $0xab0] sm:$0xff] }
  0x84   : > { %1751 = vst [vmem:[%s14479_s12 + $0x360] sm:$0xff] %v1750_v44  ;;  %v1878_v44 = vld [vmem:[%s14474_s11 + $0xac0] sm:$0xff] }
  0x85   : > { %1753 = vst [vmem:[%s14479_s12 + $0x368] sm:$0xff] %v1752_v45  ;;  %v1880_v45 = vld [vmem:[%s14474_s11 + $0xad0] sm:$0xff] }
  0x86   : > { %1755 = vst [vmem:[%s14479_s12 + $0x370] sm:$0xff] %v1754_v46  ;;  %v1882_v46 = vld [vmem:[%s14474_s11 + $0xae0] sm:$0xff] }
  0x87   : > { %1757 = vst [vmem:[%s14479_s12 + $0x378] sm:$0xff] %v1756_v47  ;;  %v1884_v47 = vld [vmem:[%s14474_s11 + $0xaf0] sm:$0xff] }
  0x88   : > { %1759 = vst [vmem:[%s14479_s12 + $0x380] sm:$0xff] %v1758_v48  ;;  %v1886_v48 = vld [vmem:[%s14474_s11 + $0xb00] sm:$0xff] }
  0x89   : > { %1761 = vst [vmem:[%s14479_s12 + $0x388] sm:$0xff] %v1760_v49  ;;  %v1888_v49 = vld [vmem:[%s14474_s11 + $0xb10] sm:$0xff] }
  0x8a   : > { %1763 = vst [vmem:[%s14479_s12 + $0x390] sm:$0xff] %v1762_v50  ;;  %v1890_v50 = vld [vmem:[%s14474_s11 + $0xb20] sm:$0xff] }
  0x8b   : > { %1765 = vst [vmem:[%s14479_s12 + $0x398] sm:$0xff] %v1764_v51  ;;  %v1892_v51 = vld [vmem:[%s14474_s11 + $0xb30] sm:$0xff] }
  0x8c   : > { %1767 = vst [vmem:[%s14479_s12 + $0x3a0] sm:$0xff] %v1766_v52  ;;  %v1894_v52 = vld [vmem:[%s14474_s11 + $0xb40] sm:$0xff] }
  0x8d   : > { %1769 = vst [vmem:[%s14479_s12 + $0x3a8] sm:$0xff] %v1768_v53  ;;  %v1896_v53 = vld [vmem:[%s14474_s11 + $0xb50] sm:$0xff] }
  0x8e   : > { %1771 = vst [vmem:[%s14479_s12 + $0x3b0] sm:$0xff] %v1770_v54  ;;  %v1898_v54 = vld [vmem:[%s14474_s11 + $0xb60] sm:$0xff] }
  0x8f   : > { %1773 = vst [vmem:[%s14479_s12 + $0x3b8] sm:$0xff] %v1772_v55  ;;  %v1900_v55 = vld [vmem:[%s14474_s11 + $0xb70] sm:$0xff] }
  0x90   : > { %1775 = vst [vmem:[%s14479_s12 + $0x3c0] sm:$0xff] %v1774_v56  ;;  %v1902_v56 = vld [vmem:[%s14474_s11 + $0xb80] sm:$0xff] }
  0x91   : > { %1777 = vst [vmem:[%s14479_s12 + $0x3c8] sm:$0xff] %v1776_v57  ;;  %v1904_v57 = vld [vmem:[%s14474_s11 + $0xb90] sm:$0xff] }
  0x92   : > { %1779 = vst [vmem:[%s14479_s12 + $0x3d0] sm:$0xff] %v1778_v58  ;;  %v1906_v58 = vld [vmem:[%s14474_s11 + $0xba0] sm:$0xff] }
  0x93   : > { %1781 = vst [vmem:[%s14479_s12 + $0x3d8] sm:$0xff] %v1780_v59  ;;  %v1908_v59 = vld [vmem:[%s14474_s11 + $0xbb0] sm:$0xff] }
  0x94   : > { %1783 = vst [vmem:[%s14479_s12 + $0x3e0] sm:$0xff] %v1782_v60  ;;  %v1910_v60 = vld [vmem:[%s14474_s11 + $0xbc0] sm:$0xff] }
  0x95   : > { %1785 = vst [vmem:[%s14479_s12 + $0x3e8] sm:$0xff] %v1784_v61  ;;  %v1912_v61 = vld [vmem:[%s14474_s11 + $0xbd0] sm:$0xff] }
  0x96   : > { %1787 = vst [vmem:[%s14479_s12 + $0x3f0] sm:$0xff] %v1786_v62  ;;  %v1914_v62 = vld [vmem:[%s14474_s11 + $0xbe0] sm:$0xff] }
  0x97   : > { %1789 = vst [vmem:[%s14479_s12 + $0x3f8] sm:$0xff] %v1788_v63  ;;  %v1916_v63 = vld [vmem:[%s14474_s11 + $0xbf0] sm:$0xff] }
  0x98   : > { %1791 = vst [vmem:[%s14479_s12 + $0x400] sm:$0xff] %v1790_v0  ;;  %v1918_v0 = vld [vmem:[%s14474_s11 + $0xc00] sm:$0xff] }
  0x99   : > { %1793 = vst [vmem:[%s14479_s12 + $0x408] sm:$0xff] %v1792_v1  ;;  %v1920_v1 = vld [vmem:[%s14474_s11 + $0xc10] sm:$0xff] }
  0x9a   : > { %1795 = vst [vmem:[%s14479_s12 + $0x410] sm:$0xff] %v1794_v2  ;;  %v1922_v2 = vld [vmem:[%s14474_s11 + $0xc20] sm:$0xff] }
  0x9b   : > { %1797 = vst [vmem:[%s14479_s12 + $0x418] sm:$0xff] %v1796_v3  ;;  %v1924_v3 = vld [vmem:[%s14474_s11 + $0xc30] sm:$0xff] }
  0x9c   : > { %1799 = vst [vmem:[%s14479_s12 + $0x420] sm:$0xff] %v1798_v4  ;;  %v1926_v4 = vld [vmem:[%s14474_s11 + $0xc40] sm:$0xff] }
  0x9d   : > { %1801 = vst [vmem:[%s14479_s12 + $0x428] sm:$0xff] %v1800_v5  ;;  %v1928_v5 = vld [vmem:[%s14474_s11 + $0xc50] sm:$0xff] }
  0x9e   : > { %1803 = vst [vmem:[%s14479_s12 + $0x430] sm:$0xff] %v1802_v6  ;;  %v1930_v6 = vld [vmem:[%s14474_s11 + $0xc60] sm:$0xff] }
  0x9f   : > { %1805 = vst [vmem:[%s14479_s12 + $0x438] sm:$0xff] %v1804_v7  ;;  %v1932_v7 = vld [vmem:[%s14474_s11 + $0xc70] sm:$0xff] }
  0xa0   : > { %1807 = vst [vmem:[%s14479_s12 + $0x440] sm:$0xff] %v1806_v8  ;;  %v1934_v8 = vld [vmem:[%s14474_s11 + $0xc80] sm:$0xff] }
  0xa1   : > { %1809 = vst [vmem:[%s14479_s12 + $0x448] sm:$0xff] %v1808_v9  ;;  %v1936_v9 = vld [vmem:[%s14474_s11 + $0xc90] sm:$0xff] }
  0xa2   : > { %1811 = vst [vmem:[%s14479_s12 + $0x450] sm:$0xff] %v1810_v10  ;;  %v1938_v10 = vld [vmem:[%s14474_s11 + $0xca0] sm:$0xff] }
  0xa3   : > { %1813 = vst [vmem:[%s14479_s12 + $0x458] sm:$0xff] %v1812_v11  ;;  %v1940_v11 = vld [vmem:[%s14474_s11 + $0xcb0] sm:$0xff] }
  0xa4   : > { %1815 = vst [vmem:[%s14479_s12 + $0x460] sm:$0xff] %v1814_v12  ;;  %v1942_v12 = vld [vmem:[%s14474_s11 + $0xcc0] sm:$0xff] }
  0xa5   : > { %1817 = vst [vmem:[%s14479_s12 + $0x468] sm:$0xff] %v1816_v13  ;;  %v1944_v13 = vld [vmem:[%s14474_s11 + $0xcd0] sm:$0xff] }
  0xa6   : > { %1819 = vst [vmem:[%s14479_s12 + $0x470] sm:$0xff] %v1818_v14  ;;  %v1946_v14 = vld [vmem:[%s14474_s11 + $0xce0] sm:$0xff] }
  0xa7   : > { %1821 = vst [vmem:[%s14479_s12 + $0x478] sm:$0xff] %v1820_v15  ;;  %v1948_v15 = vld [vmem:[%s14474_s11 + $0xcf0] sm:$0xff] }
  0xa8   : > { %1823 = vst [vmem:[%s14479_s12 + $0x480] sm:$0xff] %v1822_v16  ;;  %v1950_v16 = vld [vmem:[%s14474_s11 + $0xd00] sm:$0xff] }
  0xa9   : > { %1825 = vst [vmem:[%s14479_s12 + $0x488] sm:$0xff] %v1824_v17  ;;  %v1952_v17 = vld [vmem:[%s14474_s11 + $0xd10] sm:$0xff] }
  0xaa   : > { %1827 = vst [vmem:[%s14479_s12 + $0x490] sm:$0xff] %v1826_v18  ;;  %v1954_v18 = vld [vmem:[%s14474_s11 + $0xd20] sm:$0xff] }
  0xab   : > { %1829 = vst [vmem:[%s14479_s12 + $0x498] sm:$0xff] %v1828_v19  ;;  %v1956_v19 = vld [vmem:[%s14474_s11 + $0xd30] sm:$0xff] }
  0xac   : > { %1831 = vst [vmem:[%s14479_s12 + $0x4a0] sm:$0xff] %v1830_v20  ;;  %v1958_v20 = vld [vmem:[%s14474_s11 + $0xd40] sm:$0xff] }
  0xad   : > { %1833 = vst [vmem:[%s14479_s12 + $0x4a8] sm:$0xff] %v1832_v21  ;;  %v1960_v21 = vld [vmem:[%s14474_s11 + $0xd50] sm:$0xff] }
  0xae   : > { %1835 = vst [vmem:[%s14479_s12 + $0x4b0] sm:$0xff] %v1834_v22  ;;  %v1962_v22 = vld [vmem:[%s14474_s11 + $0xd60] sm:$0xff] }
  0xaf   : > { %1837 = vst [vmem:[%s14479_s12 + $0x4b8] sm:$0xff] %v1836_v23  ;;  %v1964_v23 = vld [vmem:[%s14474_s11 + $0xd70] sm:$0xff] }
  0xb0   : > { %1839 = vst [vmem:[%s14479_s12 + $0x4c0] sm:$0xff] %v1838_v24  ;;  %v1966_v24 = vld [vmem:[%s14474_s11 + $0xd80] sm:$0xff] }
  0xb1   : > { %1841 = vst [vmem:[%s14479_s12 + $0x4c8] sm:$0xff] %v1840_v25  ;;  %v1968_v25 = vld [vmem:[%s14474_s11 + $0xd90] sm:$0xff] }
  0xb2   : > { %1843 = vst [vmem:[%s14479_s12 + $0x4d0] sm:$0xff] %v1842_v26  ;;  %v1970_v26 = vld [vmem:[%s14474_s11 + $0xda0] sm:$0xff] }
  0xb3   : > { %1845 = vst [vmem:[%s14479_s12 + $0x4d8] sm:$0xff] %v1844_v27  ;;  %v1972_v27 = vld [vmem:[%s14474_s11 + $0xdb0] sm:$0xff] }
  0xb4   : > { %1847 = vst [vmem:[%s14479_s12 + $0x4e0] sm:$0xff] %v1846_v28  ;;  %v1974_v28 = vld [vmem:[%s14474_s11 + $0xdc0] sm:$0xff] }
  0xb5   : > { %1849 = vst [vmem:[%s14479_s12 + $0x4e8] sm:$0xff] %v1848_v29  ;;  %v1976_v29 = vld [vmem:[%s14474_s11 + $0xdd0] sm:$0xff] }
  0xb6   : > { %1851 = vst [vmem:[%s14479_s12 + $0x4f0] sm:$0xff] %v1850_v30  ;;  %v1978_v30 = vld [vmem:[%s14474_s11 + $0xde0] sm:$0xff] }
  0xb7   : > { %1853 = vst [vmem:[%s14479_s12 + $0x4f8] sm:$0xff] %v1852_v31  ;;  %v1980_v31 = vld [vmem:[%s14474_s11 + $0xdf0] sm:$0xff] }
  0xb8   : > { %1855 = vst [vmem:[%s14479_s12 + $0x500] sm:$0xff] %v1854_v32  ;;  %v1982_v32 = vld [vmem:[%s14474_s11 + $0xe00] sm:$0xff] }
  0xb9   : > { %1857 = vst [vmem:[%s14479_s12 + $0x508] sm:$0xff] %v1856_v33  ;;  %v1984_v33 = vld [vmem:[%s14474_s11 + $0xe10] sm:$0xff] }
  0xba   : > { %1859 = vst [vmem:[%s14479_s12 + $0x510] sm:$0xff] %v1858_v34  ;;  %v1986_v34 = vld [vmem:[%s14474_s11 + $0xe20] sm:$0xff] }
  0xbb   : > { %1861 = vst [vmem:[%s14479_s12 + $0x518] sm:$0xff] %v1860_v35  ;;  %v1988_v35 = vld [vmem:[%s14474_s11 + $0xe30] sm:$0xff] }
  0xbc   : > { %1863 = vst [vmem:[%s14479_s12 + $0x520] sm:$0xff] %v1862_v36  ;;  %v1990_v36 = vld [vmem:[%s14474_s11 + $0xe40] sm:$0xff] }
  0xbd   : > { %1865 = vst [vmem:[%s14479_s12 + $0x528] sm:$0xff] %v1864_v37  ;;  %v1992_v37 = vld [vmem:[%s14474_s11 + $0xe50] sm:$0xff] }
  0xbe   : > { %1867 = vst [vmem:[%s14479_s12 + $0x530] sm:$0xff] %v1866_v38  ;;  %v1994_v38 = vld [vmem:[%s14474_s11 + $0xe60] sm:$0xff] }
  0xbf   : > { %1869 = vst [vmem:[%s14479_s12 + $0x538] sm:$0xff] %v1868_v39  ;;  %v1996_v39 = vld [vmem:[%s14474_s11 + $0xe70] sm:$0xff] }
  0xc0   : > { %1871 = vst [vmem:[%s14479_s12 + $0x540] sm:$0xff] %v1870_v40  ;;  %v1998_v40 = vld [vmem:[%s14474_s11 + $0xe80] sm:$0xff] }
  0xc1   : > { %1873 = vst [vmem:[%s14479_s12 + $0x548] sm:$0xff] %v1872_v41  ;;  %v2000_v41 = vld [vmem:[%s14474_s11 + $0xe90] sm:$0xff] }
  0xc2   : > { %1875 = vst [vmem:[%s14479_s12 + $0x550] sm:$0xff] %v1874_v42  ;;  %v2002_v42 = vld [vmem:[%s14474_s11 + $0xea0] sm:$0xff] }
  0xc3   : > { %1877 = vst [vmem:[%s14479_s12 + $0x558] sm:$0xff] %v1876_v43  ;;  %v2004_v43 = vld [vmem:[%s14474_s11 + $0xeb0] sm:$0xff] }
  0xc4   : > { %1879 = vst [vmem:[%s14479_s12 + $0x560] sm:$0xff] %v1878_v44  ;;  %v2006_v44 = vld [vmem:[%s14474_s11 + $0xec0] sm:$0xff] }
  0xc5   : > { %1881 = vst [vmem:[%s14479_s12 + $0x568] sm:$0xff] %v1880_v45  ;;  %v2008_v45 = vld [vmem:[%s14474_s11 + $0xed0] sm:$0xff] }
  0xc6   : > { %1883 = vst [vmem:[%s14479_s12 + $0x570] sm:$0xff] %v1882_v46  ;;  %v2010_v46 = vld [vmem:[%s14474_s11 + $0xee0] sm:$0xff] }
  0xc7   : > { %1885 = vst [vmem:[%s14479_s12 + $0x578] sm:$0xff] %v1884_v47  ;;  %v2012_v47 = vld [vmem:[%s14474_s11 + $0xef0] sm:$0xff] }
  0xc8   : > { %1887 = vst [vmem:[%s14479_s12 + $0x580] sm:$0xff] %v1886_v48  ;;  %v2014_v48 = vld [vmem:[%s14474_s11 + $0xf00] sm:$0xff] }
  0xc9   : > { %1889 = vst [vmem:[%s14479_s12 + $0x588] sm:$0xff] %v1888_v49  ;;  %v2016_v49 = vld [vmem:[%s14474_s11 + $0xf10] sm:$0xff] }
  0xca   : > { %1891 = vst [vmem:[%s14479_s12 + $0x590] sm:$0xff] %v1890_v50  ;;  %v2018_v50 = vld [vmem:[%s14474_s11 + $0xf20] sm:$0xff] }
  0xcb   : > { %1893 = vst [vmem:[%s14479_s12 + $0x598] sm:$0xff] %v1892_v51  ;;  %v2020_v51 = vld [vmem:[%s14474_s11 + $0xf30] sm:$0xff] }
  0xcc   : > { %1895 = vst [vmem:[%s14479_s12 + $0x5a0] sm:$0xff] %v1894_v52  ;;  %v2022_v52 = vld [vmem:[%s14474_s11 + $0xf40] sm:$0xff] }
  0xcd   : > { %1897 = vst [vmem:[%s14479_s12 + $0x5a8] sm:$0xff] %v1896_v53  ;;  %v2024_v53 = vld [vmem:[%s14474_s11 + $0xf50] sm:$0xff] }
  0xce   : > { %1899 = vst [vmem:[%s14479_s12 + $0x5b0] sm:$0xff] %v1898_v54  ;;  %v2026_v54 = vld [vmem:[%s14474_s11 + $0xf60] sm:$0xff] }
  0xcf   : > { %1901 = vst [vmem:[%s14479_s12 + $0x5b8] sm:$0xff] %v1900_v55  ;;  %v2028_v55 = vld [vmem:[%s14474_s11 + $0xf70] sm:$0xff] }
  0xd0   : > { %1903 = vst [vmem:[%s14479_s12 + $0x5c0] sm:$0xff] %v1902_v56  ;;  %v2030_v56 = vld [vmem:[%s14474_s11 + $0xf80] sm:$0xff] }
  0xd1   : > { %1905 = vst [vmem:[%s14479_s12 + $0x5c8] sm:$0xff] %v1904_v57  ;;  %v2032_v57 = vld [vmem:[%s14474_s11 + $0xf90] sm:$0xff] }
  0xd2   : > { %1907 = vst [vmem:[%s14479_s12 + $0x5d0] sm:$0xff] %v1906_v58  ;;  %v2034_v58 = vld [vmem:[%s14474_s11 + $0xfa0] sm:$0xff] }
  0xd3   : > { %1909 = vst [vmem:[%s14479_s12 + $0x5d8] sm:$0xff] %v1908_v59  ;;  %v2036_v59 = vld [vmem:[%s14474_s11 + $0xfb0] sm:$0xff] }
  0xd4   : > { %1911 = vst [vmem:[%s14479_s12 + $0x5e0] sm:$0xff] %v1910_v60  ;;  %v2038_v60 = vld [vmem:[%s14474_s11 + $0xfc0] sm:$0xff] }
  0xd5   : > { %1913 = vst [vmem:[%s14479_s12 + $0x5e8] sm:$0xff] %v1912_v61  ;;  %v2040_v61 = vld [vmem:[%s14474_s11 + $0xfd0] sm:$0xff] }
  0xd6   : > { %1915 = vst [vmem:[%s14479_s12 + $0x5f0] sm:$0xff] %v1914_v62  ;;  %v2042_v62 = vld [vmem:[%s14474_s11 + $0xfe0] sm:$0xff] }
  0xd7   : > { %1917 = vst [vmem:[%s14479_s12 + $0x5f8] sm:$0xff] %v1916_v63  ;;  %v2044_v63 = vld [vmem:[%s14474_s11 + $0xff0] sm:$0xff] }
  0xd8   : > { %1919 = vst [vmem:[%s14479_s12 + $0x600] sm:$0xff] %v1918_v0  ;;  %v2046_v0 = vld [vmem:[%s14474_s11 + $0x1000] sm:$0xff] }
  0xd9   : > { %1921 = vst [vmem:[%s14479_s12 + $0x608] sm:$0xff] %v1920_v1  ;;  %v2048_v1 = vld [vmem:[%s14474_s11 + $0x1010] sm:$0xff] }
  0xda   : > { %1923 = vst [vmem:[%s14479_s12 + $0x610] sm:$0xff] %v1922_v2  ;;  %v2050_v2 = vld [vmem:[%s14474_s11 + $0x1020] sm:$0xff] }
  0xdb   : > { %1925 = vst [vmem:[%s14479_s12 + $0x618] sm:$0xff] %v1924_v3  ;;  %v2052_v3 = vld [vmem:[%s14474_s11 + $0x1030] sm:$0xff] }
  0xdc   : > { %1927 = vst [vmem:[%s14479_s12 + $0x620] sm:$0xff] %v1926_v4  ;;  %v2054_v4 = vld [vmem:[%s14474_s11 + $0x1040] sm:$0xff] }
  0xdd   : > { %1929 = vst [vmem:[%s14479_s12 + $0x628] sm:$0xff] %v1928_v5  ;;  %v2056_v5 = vld [vmem:[%s14474_s11 + $0x1050] sm:$0xff] }
  0xde   : > { %1931 = vst [vmem:[%s14479_s12 + $0x630] sm:$0xff] %v1930_v6  ;;  %v2058_v6 = vld [vmem:[%s14474_s11 + $0x1060] sm:$0xff] }
  0xdf   : > { %1933 = vst [vmem:[%s14479_s12 + $0x638] sm:$0xff] %v1932_v7  ;;  %v2060_v7 = vld [vmem:[%s14474_s11 + $0x1070] sm:$0xff] }
  0xe0   : > { %1935 = vst [vmem:[%s14479_s12 + $0x640] sm:$0xff] %v1934_v8  ;;  %v2062_v8 = vld [vmem:[%s14474_s11 + $0x1080] sm:$0xff] }
  0xe1   : > { %1937 = vst [vmem:[%s14479_s12 + $0x648] sm:$0xff] %v1936_v9  ;;  %v2064_v9 = vld [vmem:[%s14474_s11 + $0x1090] sm:$0xff] }
  0xe2   : > { %1939 = vst [vmem:[%s14479_s12 + $0x650] sm:$0xff] %v1938_v10  ;;  %v2066_v10 = vld [vmem:[%s14474_s11 + $0x10a0] sm:$0xff] }
  0xe3   : > { %1941 = vst [vmem:[%s14479_s12 + $0x658] sm:$0xff] %v1940_v11  ;;  %v2068_v11 = vld [vmem:[%s14474_s11 + $0x10b0] sm:$0xff] }
  0xe4   : > { %1943 = vst [vmem:[%s14479_s12 + $0x660] sm:$0xff] %v1942_v12  ;;  %v2070_v12 = vld [vmem:[%s14474_s11 + $0x10c0] sm:$0xff] }
  0xe5   : > { %1945 = vst [vmem:[%s14479_s12 + $0x668] sm:$0xff] %v1944_v13  ;;  %v2072_v13 = vld [vmem:[%s14474_s11 + $0x10d0] sm:$0xff] }
  0xe6   : > { %1947 = vst [vmem:[%s14479_s12 + $0x670] sm:$0xff] %v1946_v14  ;;  %v2074_v14 = vld [vmem:[%s14474_s11 + $0x10e0] sm:$0xff] }
  0xe7   : > { %1949 = vst [vmem:[%s14479_s12 + $0x678] sm:$0xff] %v1948_v15  ;;  %v2076_v15 = vld [vmem:[%s14474_s11 + $0x10f0] sm:$0xff] }
  0xe8   : > { %1951 = vst [vmem:[%s14479_s12 + $0x680] sm:$0xff] %v1950_v16  ;;  %v2078_v16 = vld [vmem:[%s14474_s11 + $0x1100] sm:$0xff] }
  0xe9   : > { %1953 = vst [vmem:[%s14479_s12 + $0x688] sm:$0xff] %v1952_v17  ;;  %v2080_v17 = vld [vmem:[%s14474_s11 + $0x1110] sm:$0xff] }
  0xea   : > { %1955 = vst [vmem:[%s14479_s12 + $0x690] sm:$0xff] %v1954_v18  ;;  %v2082_v18 = vld [vmem:[%s14474_s11 + $0x1120] sm:$0xff] }
  0xeb   : > { %1957 = vst [vmem:[%s14479_s12 + $0x698] sm:$0xff] %v1956_v19  ;;  %v2084_v19 = vld [vmem:[%s14474_s11 + $0x1130] sm:$0xff] }
  0xec   : > { %1959 = vst [vmem:[%s14479_s12 + $0x6a0] sm:$0xff] %v1958_v20  ;;  %v2086_v20 = vld [vmem:[%s14474_s11 + $0x1140] sm:$0xff] }
  0xed   : > { %1961 = vst [vmem:[%s14479_s12 + $0x6a8] sm:$0xff] %v1960_v21  ;;  %v2088_v21 = vld [vmem:[%s14474_s11 + $0x1150] sm:$0xff] }
  0xee   : > { %1963 = vst [vmem:[%s14479_s12 + $0x6b0] sm:$0xff] %v1962_v22  ;;  %v2090_v22 = vld [vmem:[%s14474_s11 + $0x1160] sm:$0xff] }
  0xef   : > { %1965 = vst [vmem:[%s14479_s12 + $0x6b8] sm:$0xff] %v1964_v23  ;;  %v2092_v23 = vld [vmem:[%s14474_s11 + $0x1170] sm:$0xff] }
  0xf0   : > { %1967 = vst [vmem:[%s14479_s12 + $0x6c0] sm:$0xff] %v1966_v24  ;;  %v2094_v24 = vld [vmem:[%s14474_s11 + $0x1180] sm:$0xff] }
  0xf1   : > { %1969 = vst [vmem:[%s14479_s12 + $0x6c8] sm:$0xff] %v1968_v25  ;;  %v2096_v25 = vld [vmem:[%s14474_s11 + $0x1190] sm:$0xff] }
  0xf2   : > { %1971 = vst [vmem:[%s14479_s12 + $0x6d0] sm:$0xff] %v1970_v26  ;;  %v2098_v26 = vld [vmem:[%s14474_s11 + $0x11a0] sm:$0xff] }
  0xf3   : > { %1973 = vst [vmem:[%s14479_s12 + $0x6d8] sm:$0xff] %v1972_v27  ;;  %v2100_v27 = vld [vmem:[%s14474_s11 + $0x11b0] sm:$0xff] }
  0xf4   : > { %1975 = vst [vmem:[%s14479_s12 + $0x6e0] sm:$0xff] %v1974_v28  ;;  %v2102_v28 = vld [vmem:[%s14474_s11 + $0x11c0] sm:$0xff] }
  0xf5   : > { %1977 = vst [vmem:[%s14479_s12 + $0x6e8] sm:$0xff] %v1976_v29  ;;  %v2104_v29 = vld [vmem:[%s14474_s11 + $0x11d0] sm:$0xff] }
  0xf6   : > { %1979 = vst [vmem:[%s14479_s12 + $0x6f0] sm:$0xff] %v1978_v30  ;;  %v2106_v30 = vld [vmem:[%s14474_s11 + $0x11e0] sm:$0xff] }
  0xf7   : > { %1981 = vst [vmem:[%s14479_s12 + $0x6f8] sm:$0xff] %v1980_v31  ;;  %v2108_v31 = vld [vmem:[%s14474_s11 + $0x11f0] sm:$0xff] }
  0xf8   : > { %1983 = vst [vmem:[%s14479_s12 + $0x700] sm:$0xff] %v1982_v32  ;;  %v2110_v32 = vld [vmem:[%s14474_s11 + $0x1200] sm:$0xff] }
  0xf9   : > { %1985 = vst [vmem:[%s14479_s12 + $0x708] sm:$0xff] %v1984_v33  ;;  %v2112_v33 = vld [vmem:[%s14474_s11 + $0x1210] sm:$0xff] }
  0xfa   : > { %1987 = vst [vmem:[%s14479_s12 + $0x710] sm:$0xff] %v1986_v34  ;;  %v2114_v34 = vld [vmem:[%s14474_s11 + $0x1220] sm:$0xff] }
  0xfb   : > { %1989 = vst [vmem:[%s14479_s12 + $0x718] sm:$0xff] %v1988_v35  ;;  %v2116_v35 = vld [vmem:[%s14474_s11 + $0x1230] sm:$0xff] }
  0xfc   : > { %1991 = vst [vmem:[%s14479_s12 + $0x720] sm:$0xff] %v1990_v36  ;;  %v2118_v36 = vld [vmem:[%s14474_s11 + $0x1240] sm:$0xff] }
  0xfd   : > { %1993 = vst [vmem:[%s14479_s12 + $0x728] sm:$0xff] %v1992_v37  ;;  %v2120_v37 = vld [vmem:[%s14474_s11 + $0x1250] sm:$0xff] }
  0xfe   : > { %1995 = vst [vmem:[%s14479_s12 + $0x730] sm:$0xff] %v1994_v38  ;;  %v2122_v38 = vld [vmem:[%s14474_s11 + $0x1260] sm:$0xff] }
  0xff   : > { %1997 = vst [vmem:[%s14479_s12 + $0x738] sm:$0xff] %v1996_v39  ;;  %v2124_v39 = vld [vmem:[%s14474_s11 + $0x1270] sm:$0xff] }
 0x100   : > { %1999 = vst [vmem:[%s14479_s12 + $0x740] sm:$0xff] %v1998_v40  ;;  %v2126_v40 = vld [vmem:[%s14474_s11 + $0x1280] sm:$0xff] }
 0x101   : > { %2001 = vst [vmem:[%s14479_s12 + $0x748] sm:$0xff] %v2000_v41  ;;  %v2128_v41 = vld [vmem:[%s14474_s11 + $0x1290] sm:$0xff] }
 0x102   : > { %2003 = vst [vmem:[%s14479_s12 + $0x750] sm:$0xff] %v2002_v42  ;;  %v2130_v42 = vld [vmem:[%s14474_s11 + $0x12a0] sm:$0xff] }
 0x103   : > { %2005 = vst [vmem:[%s14479_s12 + $0x758] sm:$0xff] %v2004_v43  ;;  %v2132_v43 = vld [vmem:[%s14474_s11 + $0x12b0] sm:$0xff] }
 0x104   : > { %2007 = vst [vmem:[%s14479_s12 + $0x760] sm:$0xff] %v2006_v44  ;;  %v2134_v44 = vld [vmem:[%s14474_s11 + $0x12c0] sm:$0xff] }
 0x105   : > { %2009 = vst [vmem:[%s14479_s12 + $0x768] sm:$0xff] %v2008_v45  ;;  %v2136_v45 = vld [vmem:[%s14474_s11 + $0x12d0] sm:$0xff] }
 0x106   : > { %2011 = vst [vmem:[%s14479_s12 + $0x770] sm:$0xff] %v2010_v46  ;;  %v2138_v46 = vld [vmem:[%s14474_s11 + $0x12e0] sm:$0xff] }
 0x107   : > { %2013 = vst [vmem:[%s14479_s12 + $0x778] sm:$0xff] %v2012_v47  ;;  %v2140_v47 = vld [vmem:[%s14474_s11 + $0x12f0] sm:$0xff] }
 0x108   : > { %2015 = vst [vmem:[%s14479_s12 + $0x780] sm:$0xff] %v2014_v48  ;;  %v2142_v48 = vld [vmem:[%s14474_s11 + $0x1300] sm:$0xff] }
 0x109   : > { %2017 = vst [vmem:[%s14479_s12 + $0x788] sm:$0xff] %v2016_v49  ;;  %v2144_v49 = vld [vmem:[%s14474_s11 + $0x1310] sm:$0xff] }
 0x10a   : > { %2019 = vst [vmem:[%s14479_s12 + $0x790] sm:$0xff] %v2018_v50  ;;  %v2146_v50 = vld [vmem:[%s14474_s11 + $0x1320] sm:$0xff] }
 0x10b   : > { %2021 = vst [vmem:[%s14479_s12 + $0x798] sm:$0xff] %v2020_v51  ;;  %v2148_v51 = vld [vmem:[%s14474_s11 + $0x1330] sm:$0xff] }
 0x10c   : > { %2023 = vst [vmem:[%s14479_s12 + $0x7a0] sm:$0xff] %v2022_v52  ;;  %v2150_v52 = vld [vmem:[%s14474_s11 + $0x1340] sm:$0xff] }
 0x10d   : > { %2025 = vst [vmem:[%s14479_s12 + $0x7a8] sm:$0xff] %v2024_v53  ;;  %v2152_v53 = vld [vmem:[%s14474_s11 + $0x1350] sm:$0xff] }
 0x10e   : > { %2027 = vst [vmem:[%s14479_s12 + $0x7b0] sm:$0xff] %v2026_v54  ;;  %v2154_v54 = vld [vmem:[%s14474_s11 + $0x1360] sm:$0xff] }
 0x10f   : > { %2029 = vst [vmem:[%s14479_s12 + $0x7b8] sm:$0xff] %v2028_v55  ;;  %v2156_v55 = vld [vmem:[%s14474_s11 + $0x1370] sm:$0xff] }
 0x110   : > { %2031 = vst [vmem:[%s14479_s12 + $0x7c0] sm:$0xff] %v2030_v56  ;;  %v2158_v56 = vld [vmem:[%s14474_s11 + $0x1380] sm:$0xff] }
 0x111   : > { %2033 = vst [vmem:[%s14479_s12 + $0x7c8] sm:$0xff] %v2032_v57  ;;  %v2160_v57 = vld [vmem:[%s14474_s11 + $0x1390] sm:$0xff] }
 0x112   : > { %2035 = vst [vmem:[%s14479_s12 + $0x7d0] sm:$0xff] %v2034_v58  ;;  %v2162_v58 = vld [vmem:[%s14474_s11 + $0x13a0] sm:$0xff] }
 0x113   : > { %2037 = vst [vmem:[%s14479_s12 + $0x7d8] sm:$0xff] %v2036_v59  ;;  %v2164_v59 = vld [vmem:[%s14474_s11 + $0x13b0] sm:$0xff] }
 0x114   : > { %2039 = vst [vmem:[%s14479_s12 + $0x7e0] sm:$0xff] %v2038_v60  ;;  %v2166_v60 = vld [vmem:[%s14474_s11 + $0x13c0] sm:$0xff] }
 0x115   : > { %2041 = vst [vmem:[%s14479_s12 + $0x7e8] sm:$0xff] %v2040_v61  ;;  %v2168_v61 = vld [vmem:[%s14474_s11 + $0x13d0] sm:$0xff] }
 0x116   : > { %2043 = vst [vmem:[%s14479_s12 + $0x7f0] sm:$0xff] %v2042_v62  ;;  %v2170_v62 = vld [vmem:[%s14474_s11 + $0x13e0] sm:$0xff] }
 0x117   : > { %2045 = vst [vmem:[%s14479_s12 + $0x7f8] sm:$0xff] %v2044_v63  ;;  %v2172_v63 = vld [vmem:[%s14474_s11 + $0x13f0] sm:$0xff] }
 0x118   : > { %2047 = vst [vmem:[%s14479_s12 + $0x800] sm:$0xff] %v2046_v0  ;;  %v2174_v0 = vld [vmem:[%s14474_s11 + $0x1400] sm:$0xff] }
 0x119   : > { %2049 = vst [vmem:[%s14479_s12 + $0x808] sm:$0xff] %v2048_v1  ;;  %v2176_v1 = vld [vmem:[%s14474_s11 + $0x1410] sm:$0xff] }
 0x11a   : > { %2051 = vst [vmem:[%s14479_s12 + $0x810] sm:$0xff] %v2050_v2  ;;  %v2178_v2 = vld [vmem:[%s14474_s11 + $0x1420] sm:$0xff] }
 0x11b   : > { %2053 = vst [vmem:[%s14479_s12 + $0x818] sm:$0xff] %v2052_v3  ;;  %v2180_v3 = vld [vmem:[%s14474_s11 + $0x1430] sm:$0xff] }
 0x11c   : > { %2055 = vst [vmem:[%s14479_s12 + $0x820] sm:$0xff] %v2054_v4  ;;  %v2182_v4 = vld [vmem:[%s14474_s11 + $0x1440] sm:$0xff] }
 0x11d   : > { %2057 = vst [vmem:[%s14479_s12 + $0x828] sm:$0xff] %v2056_v5  ;;  %v2184_v5 = vld [vmem:[%s14474_s11 + $0x1450] sm:$0xff] }
 0x11e   : > { %2059 = vst [vmem:[%s14479_s12 + $0x830] sm:$0xff] %v2058_v6  ;;  %v2186_v6 = vld [vmem:[%s14474_s11 + $0x1460] sm:$0xff] }
 0x11f   : > { %2061 = vst [vmem:[%s14479_s12 + $0x838] sm:$0xff] %v2060_v7  ;;  %v2188_v7 = vld [vmem:[%s14474_s11 + $0x1470] sm:$0xff] }
 0x120   : > { %2063 = vst [vmem:[%s14479_s12 + $0x840] sm:$0xff] %v2062_v8  ;;  %v2190_v8 = vld [vmem:[%s14474_s11 + $0x1480] sm:$0xff] }
 0x121   : > { %2065 = vst [vmem:[%s14479_s12 + $0x848] sm:$0xff] %v2064_v9  ;;  %v2192_v9 = vld [vmem:[%s14474_s11 + $0x1490] sm:$0xff] }
 0x122   : > { %2067 = vst [vmem:[%s14479_s12 + $0x850] sm:$0xff] %v2066_v10  ;;  %v2194_v10 = vld [vmem:[%s14474_s11 + $0x14a0] sm:$0xff] }
 0x123   : > { %2069 = vst [vmem:[%s14479_s12 + $0x858] sm:$0xff] %v2068_v11  ;;  %v2196_v11 = vld [vmem:[%s14474_s11 + $0x14b0] sm:$0xff] }
 0x124   : > { %2071 = vst [vmem:[%s14479_s12 + $0x860] sm:$0xff] %v2070_v12  ;;  %v2198_v12 = vld [vmem:[%s14474_s11 + $0x14c0] sm:$0xff] }
 0x125   : > { %2073 = vst [vmem:[%s14479_s12 + $0x868] sm:$0xff] %v2072_v13  ;;  %v2200_v13 = vld [vmem:[%s14474_s11 + $0x14d0] sm:$0xff] }
 0x126   : > { %2075 = vst [vmem:[%s14479_s12 + $0x870] sm:$0xff] %v2074_v14  ;;  %v2202_v14 = vld [vmem:[%s14474_s11 + $0x14e0] sm:$0xff] }
 0x127   : > { %2077 = vst [vmem:[%s14479_s12 + $0x878] sm:$0xff] %v2076_v15  ;;  %v2204_v15 = vld [vmem:[%s14474_s11 + $0x14f0] sm:$0xff] }
 0x128   : > { %2079 = vst [vmem:[%s14479_s12 + $0x880] sm:$0xff] %v2078_v16  ;;  %v2206_v16 = vld [vmem:[%s14474_s11 + $0x1500] sm:$0xff] }
 0x129   : > { %2081 = vst [vmem:[%s14479_s12 + $0x888] sm:$0xff] %v2080_v17  ;;  %v2208_v17 = vld [vmem:[%s14474_s11 + $0x1510] sm:$0xff] }
 0x12a   : > { %2083 = vst [vmem:[%s14479_s12 + $0x890] sm:$0xff] %v2082_v18  ;;  %v2210_v18 = vld [vmem:[%s14474_s11 + $0x1520] sm:$0xff] }
 0x12b   : > { %2085 = vst [vmem:[%s14479_s12 + $0x898] sm:$0xff] %v2084_v19  ;;  %v2212_v19 = vld [vmem:[%s14474_s11 + $0x1530] sm:$0xff] }
 0x12c   : > { %2087 = vst [vmem:[%s14479_s12 + $0x8a0] sm:$0xff] %v2086_v20  ;;  %v2214_v20 = vld [vmem:[%s14474_s11 + $0x1540] sm:$0xff] }
 0x12d   : > { %2089 = vst [vmem:[%s14479_s12 + $0x8a8] sm:$0xff] %v2088_v21  ;;  %v2216_v21 = vld [vmem:[%s14474_s11 + $0x1550] sm:$0xff] }
 0x12e   : > { %2091 = vst [vmem:[%s14479_s12 + $0x8b0] sm:$0xff] %v2090_v22  ;;  %v2218_v22 = vld [vmem:[%s14474_s11 + $0x1560] sm:$0xff] }
 0x12f   : > { %2093 = vst [vmem:[%s14479_s12 + $0x8b8] sm:$0xff] %v2092_v23  ;;  %v2220_v23 = vld [vmem:[%s14474_s11 + $0x1570] sm:$0xff] }
 0x130   : > { %2095 = vst [vmem:[%s14479_s12 + $0x8c0] sm:$0xff] %v2094_v24  ;;  %v2222_v24 = vld [vmem:[%s14474_s11 + $0x1580] sm:$0xff] }
 0x131   : > { %2097 = vst [vmem:[%s14479_s12 + $0x8c8] sm:$0xff] %v2096_v25  ;;  %v2224_v25 = vld [vmem:[%s14474_s11 + $0x1590] sm:$0xff] }
 0x132   : > { %2099 = vst [vmem:[%s14479_s12 + $0x8d0] sm:$0xff] %v2098_v26  ;;  %v2226_v26 = vld [vmem:[%s14474_s11 + $0x15a0] sm:$0xff] }
 0x133   : > { %2101 = vst [vmem:[%s14479_s12 + $0x8d8] sm:$0xff] %v2100_v27  ;;  %v2228_v27 = vld [vmem:[%s14474_s11 + $0x15b0] sm:$0xff] }
 0x134   : > { %2103 = vst [vmem:[%s14479_s12 + $0x8e0] sm:$0xff] %v2102_v28  ;;  %v2230_v28 = vld [vmem:[%s14474_s11 + $0x15c0] sm:$0xff] }
 0x135   : > { %2105 = vst [vmem:[%s14479_s12 + $0x8e8] sm:$0xff] %v2104_v29  ;;  %v2232_v29 = vld [vmem:[%s14474_s11 + $0x15d0] sm:$0xff] }
 0x136   : > { %2107 = vst [vmem:[%s14479_s12 + $0x8f0] sm:$0xff] %v2106_v30  ;;  %v2234_v30 = vld [vmem:[%s14474_s11 + $0x15e0] sm:$0xff] }
 0x137   : > { %2109 = vst [vmem:[%s14479_s12 + $0x8f8] sm:$0xff] %v2108_v31  ;;  %v2236_v31 = vld [vmem:[%s14474_s11 + $0x15f0] sm:$0xff] }
 0x138   : > { %2111 = vst [vmem:[%s14479_s12 + $0x900] sm:$0xff] %v2110_v32  ;;  %v2238_v32 = vld [vmem:[%s14474_s11 + $0x1600] sm:$0xff] }
 0x139   : > { %2113 = vst [vmem:[%s14479_s12 + $0x908] sm:$0xff] %v2112_v33  ;;  %v2240_v33 = vld [vmem:[%s14474_s11 + $0x1610] sm:$0xff] }
 0x13a   : > { %2115 = vst [vmem:[%s14479_s12 + $0x910] sm:$0xff] %v2114_v34  ;;  %v2242_v34 = vld [vmem:[%s14474_s11 + $0x1620] sm:$0xff] }
 0x13b   : > { %2117 = vst [vmem:[%s14479_s12 + $0x918] sm:$0xff] %v2116_v35  ;;  %v2244_v35 = vld [vmem:[%s14474_s11 + $0x1630] sm:$0xff] }
 0x13c   : > { %2119 = vst [vmem:[%s14479_s12 + $0x920] sm:$0xff] %v2118_v36  ;;  %v2246_v36 = vld [vmem:[%s14474_s11 + $0x1640] sm:$0xff] }
 0x13d   : > { %2121 = vst [vmem:[%s14479_s12 + $0x928] sm:$0xff] %v2120_v37  ;;  %v2248_v37 = vld [vmem:[%s14474_s11 + $0x1650] sm:$0xff] }
 0x13e   : > { %2123 = vst [vmem:[%s14479_s12 + $0x930] sm:$0xff] %v2122_v38  ;;  %v2250_v38 = vld [vmem:[%s14474_s11 + $0x1660] sm:$0xff] }
 0x13f   : > { %2125 = vst [vmem:[%s14479_s12 + $0x938] sm:$0xff] %v2124_v39  ;;  %v2252_v39 = vld [vmem:[%s14474_s11 + $0x1670] sm:$0xff] }
 0x140   : > { %2127 = vst [vmem:[%s14479_s12 + $0x940] sm:$0xff] %v2126_v40  ;;  %v2254_v40 = vld [vmem:[%s14474_s11 + $0x1680] sm:$0xff] }
 0x141   : > { %2129 = vst [vmem:[%s14479_s12 + $0x948] sm:$0xff] %v2128_v41  ;;  %v2256_v41 = vld [vmem:[%s14474_s11 + $0x1690] sm:$0xff] }
 0x142   : > { %2131 = vst [vmem:[%s14479_s12 + $0x950] sm:$0xff] %v2130_v42  ;;  %v2258_v42 = vld [vmem:[%s14474_s11 + $0x16a0] sm:$0xff] }
 0x143   : > { %2133 = vst [vmem:[%s14479_s12 + $0x958] sm:$0xff] %v2132_v43  ;;  %v2260_v43 = vld [vmem:[%s14474_s11 + $0x16b0] sm:$0xff] }
 0x144   : > { %2135 = vst [vmem:[%s14479_s12 + $0x960] sm:$0xff] %v2134_v44  ;;  %v2262_v44 = vld [vmem:[%s14474_s11 + $0x16c0] sm:$0xff] }
 0x145   : > { %2137 = vst [vmem:[%s14479_s12 + $0x968] sm:$0xff] %v2136_v45  ;;  %v2264_v45 = vld [vmem:[%s14474_s11 + $0x16d0] sm:$0xff] }
 0x146   : > { %2139 = vst [vmem:[%s14479_s12 + $0x970] sm:$0xff] %v2138_v46  ;;  %v2266_v46 = vld [vmem:[%s14474_s11 + $0x16e0] sm:$0xff] }
 0x147   : > { %2141 = vst [vmem:[%s14479_s12 + $0x978] sm:$0xff] %v2140_v47  ;;  %v2268_v47 = vld [vmem:[%s14474_s11 + $0x16f0] sm:$0xff] }
 0x148   : > { %2143 = vst [vmem:[%s14479_s12 + $0x980] sm:$0xff] %v2142_v48  ;;  %v2270_v48 = vld [vmem:[%s14474_s11 + $0x1700] sm:$0xff] }
 0x149   : > { %2145 = vst [vmem:[%s14479_s12 + $0x988] sm:$0xff] %v2144_v49  ;;  %v2272_v49 = vld [vmem:[%s14474_s11 + $0x1710] sm:$0xff] }
 0x14a   : > { %2147 = vst [vmem:[%s14479_s12 + $0x990] sm:$0xff] %v2146_v50  ;;  %v2274_v50 = vld [vmem:[%s14474_s11 + $0x1720] sm:$0xff] }
 0x14b   : > { %2149 = vst [vmem:[%s14479_s12 + $0x998] sm:$0xff] %v2148_v51  ;;  %v2276_v51 = vld [vmem:[%s14474_s11 + $0x1730] sm:$0xff] }
 0x14c   : > { %2151 = vst [vmem:[%s14479_s12 + $0x9a0] sm:$0xff] %v2150_v52  ;;  %v2278_v52 = vld [vmem:[%s14474_s11 + $0x1740] sm:$0xff] }
 0x14d   : > { %2153 = vst [vmem:[%s14479_s12 + $0x9a8] sm:$0xff] %v2152_v53  ;;  %v2280_v53 = vld [vmem:[%s14474_s11 + $0x1750] sm:$0xff] }
 0x14e   : > { %2155 = vst [vmem:[%s14479_s12 + $0x9b0] sm:$0xff] %v2154_v54  ;;  %v2282_v54 = vld [vmem:[%s14474_s11 + $0x1760] sm:$0xff] }
 0x14f   : > { %2157 = vst [vmem:[%s14479_s12 + $0x9b8] sm:$0xff] %v2156_v55  ;;  %v2284_v55 = vld [vmem:[%s14474_s11 + $0x1770] sm:$0xff] }
 0x150   : > { %2159 = vst [vmem:[%s14479_s12 + $0x9c0] sm:$0xff] %v2158_v56  ;;  %v2286_v56 = vld [vmem:[%s14474_s11 + $0x1780] sm:$0xff] }
 0x151   : > { %2161 = vst [vmem:[%s14479_s12 + $0x9c8] sm:$0xff] %v2160_v57  ;;  %v2288_v57 = vld [vmem:[%s14474_s11 + $0x1790] sm:$0xff] }
 0x152   : > { %2163 = vst [vmem:[%s14479_s12 + $0x9d0] sm:$0xff] %v2162_v58  ;;  %v2290_v58 = vld [vmem:[%s14474_s11 + $0x17a0] sm:$0xff] }
 0x153   : > { %2165 = vst [vmem:[%s14479_s12 + $0x9d8] sm:$0xff] %v2164_v59  ;;  %v2292_v59 = vld [vmem:[%s14474_s11 + $0x17b0] sm:$0xff] }
 0x154   : > { %2167 = vst [vmem:[%s14479_s12 + $0x9e0] sm:$0xff] %v2166_v60  ;;  %v2294_v60 = vld [vmem:[%s14474_s11 + $0x17c0] sm:$0xff] }
 0x155   : > { %2169 = vst [vmem:[%s14479_s12 + $0x9e8] sm:$0xff] %v2168_v61  ;;  %v2296_v61 = vld [vmem:[%s14474_s11 + $0x17d0] sm:$0xff] }
 0x156   : > { %2171 = vst [vmem:[%s14479_s12 + $0x9f0] sm:$0xff] %v2170_v62  ;;  %v2298_v62 = vld [vmem:[%s14474_s11 + $0x17e0] sm:$0xff] }
 0x157   : > { %2173 = vst [vmem:[%s14479_s12 + $0x9f8] sm:$0xff] %v2172_v63  ;;  %v2300_v63 = vld [vmem:[%s14474_s11 + $0x17f0] sm:$0xff] }
 0x158   : > { %2175 = vst [vmem:[%s14479_s12 + $0xa00] sm:$0xff] %v2174_v0  ;;  %v2302_v0 = vld [vmem:[%s14474_s11 + $0x1800] sm:$0xff] }
 0x159   : > { %2177 = vst [vmem:[%s14479_s12 + $0xa08] sm:$0xff] %v2176_v1  ;;  %v2304_v1 = vld [vmem:[%s14474_s11 + $0x1810] sm:$0xff] }
 0x15a   : > { %2179 = vst [vmem:[%s14479_s12 + $0xa10] sm:$0xff] %v2178_v2  ;;  %v2306_v2 = vld [vmem:[%s14474_s11 + $0x1820] sm:$0xff] }
 0x15b   : > { %2181 = vst [vmem:[%s14479_s12 + $0xa18] sm:$0xff] %v2180_v3  ;;  %v2308_v3 = vld [vmem:[%s14474_s11 + $0x1830] sm:$0xff] }
 0x15c   : > { %2183 = vst [vmem:[%s14479_s12 + $0xa20] sm:$0xff] %v2182_v4  ;;  %v2310_v4 = vld [vmem:[%s14474_s11 + $0x1840] sm:$0xff] }
 0x15d   : > { %2185 = vst [vmem:[%s14479_s12 + $0xa28] sm:$0xff] %v2184_v5  ;;  %v2312_v5 = vld [vmem:[%s14474_s11 + $0x1850] sm:$0xff] }
 0x15e   : > { %2187 = vst [vmem:[%s14479_s12 + $0xa30] sm:$0xff] %v2186_v6  ;;  %v2314_v6 = vld [vmem:[%s14474_s11 + $0x1860] sm:$0xff] }
 0x15f   : > { %2189 = vst [vmem:[%s14479_s12 + $0xa38] sm:$0xff] %v2188_v7  ;;  %v2316_v7 = vld [vmem:[%s14474_s11 + $0x1870] sm:$0xff] }
 0x160   : > { %2191 = vst [vmem:[%s14479_s12 + $0xa40] sm:$0xff] %v2190_v8  ;;  %v2318_v8 = vld [vmem:[%s14474_s11 + $0x1880] sm:$0xff] }
 0x161   : > { %2193 = vst [vmem:[%s14479_s12 + $0xa48] sm:$0xff] %v2192_v9  ;;  %v2320_v9 = vld [vmem:[%s14474_s11 + $0x1890] sm:$0xff] }
 0x162   : > { %2195 = vst [vmem:[%s14479_s12 + $0xa50] sm:$0xff] %v2194_v10  ;;  %v2322_v10 = vld [vmem:[%s14474_s11 + $0x18a0] sm:$0xff] }
 0x163   : > { %2197 = vst [vmem:[%s14479_s12 + $0xa58] sm:$0xff] %v2196_v11  ;;  %v2324_v11 = vld [vmem:[%s14474_s11 + $0x18b0] sm:$0xff] }
 0x164   : > { %2199 = vst [vmem:[%s14479_s12 + $0xa60] sm:$0xff] %v2198_v12  ;;  %v2326_v12 = vld [vmem:[%s14474_s11 + $0x18c0] sm:$0xff] }
 0x165   : > { %2201 = vst [vmem:[%s14479_s12 + $0xa68] sm:$0xff] %v2200_v13  ;;  %v2328_v13 = vld [vmem:[%s14474_s11 + $0x18d0] sm:$0xff] }
 0x166   : > { %2203 = vst [vmem:[%s14479_s12 + $0xa70] sm:$0xff] %v2202_v14  ;;  %v2330_v14 = vld [vmem:[%s14474_s11 + $0x18e0] sm:$0xff] }
 0x167   : > { %2205 = vst [vmem:[%s14479_s12 + $0xa78] sm:$0xff] %v2204_v15  ;;  %v2332_v15 = vld [vmem:[%s14474_s11 + $0x18f0] sm:$0xff] }
 0x168   : > { %2207 = vst [vmem:[%s14479_s12 + $0xa80] sm:$0xff] %v2206_v16  ;;  %v2334_v16 = vld [vmem:[%s14474_s11 + $0x1900] sm:$0xff] }
 0x169   : > { %2209 = vst [vmem:[%s14479_s12 + $0xa88] sm:$0xff] %v2208_v17  ;;  %v2336_v17 = vld [vmem:[%s14474_s11 + $0x1910] sm:$0xff] }
 0x16a   : > { %2211 = vst [vmem:[%s14479_s12 + $0xa90] sm:$0xff] %v2210_v18  ;;  %v2338_v18 = vld [vmem:[%s14474_s11 + $0x1920] sm:$0xff] }
 0x16b   : > { %2213 = vst [vmem:[%s14479_s12 + $0xa98] sm:$0xff] %v2212_v19  ;;  %v2340_v19 = vld [vmem:[%s14474_s11 + $0x1930] sm:$0xff] }
 0x16c   : > { %2215 = vst [vmem:[%s14479_s12 + $0xaa0] sm:$0xff] %v2214_v20  ;;  %v2342_v20 = vld [vmem:[%s14474_s11 + $0x1940] sm:$0xff] }
 0x16d   : > { %2217 = vst [vmem:[%s14479_s12 + $0xaa8] sm:$0xff] %v2216_v21  ;;  %v2344_v21 = vld [vmem:[%s14474_s11 + $0x1950] sm:$0xff] }
 0x16e   : > { %2219 = vst [vmem:[%s14479_s12 + $0xab0] sm:$0xff] %v2218_v22  ;;  %v2346_v22 = vld [vmem:[%s14474_s11 + $0x1960] sm:$0xff] }
 0x16f   : > { %2221 = vst [vmem:[%s14479_s12 + $0xab8] sm:$0xff] %v2220_v23  ;;  %v2348_v23 = vld [vmem:[%s14474_s11 + $0x1970] sm:$0xff] }
 0x170   : > { %2223 = vst [vmem:[%s14479_s12 + $0xac0] sm:$0xff] %v2222_v24  ;;  %v2350_v24 = vld [vmem:[%s14474_s11 + $0x1980] sm:$0xff] }
 0x171   : > { %2225 = vst [vmem:[%s14479_s12 + $0xac8] sm:$0xff] %v2224_v25  ;;  %v2352_v25 = vld [vmem:[%s14474_s11 + $0x1990] sm:$0xff] }
 0x172   : > { %2227 = vst [vmem:[%s14479_s12 + $0xad0] sm:$0xff] %v2226_v26  ;;  %v2354_v26 = vld [vmem:[%s14474_s11 + $0x19a0] sm:$0xff] }
 0x173   : > { %2229 = vst [vmem:[%s14479_s12 + $0xad8] sm:$0xff] %v2228_v27  ;;  %v2356_v27 = vld [vmem:[%s14474_s11 + $0x19b0] sm:$0xff] }
 0x174   : > { %2231 = vst [vmem:[%s14479_s12 + $0xae0] sm:$0xff] %v2230_v28  ;;  %v2358_v28 = vld [vmem:[%s14474_s11 + $0x19c0] sm:$0xff] }
 0x175   : > { %2233 = vst [vmem:[%s14479_s12 + $0xae8] sm:$0xff] %v2232_v29  ;;  %v2360_v29 = vld [vmem:[%s14474_s11 + $0x19d0] sm:$0xff] }
 0x176   : > { %2235 = vst [vmem:[%s14479_s12 + $0xaf0] sm:$0xff] %v2234_v30  ;;  %v2362_v30 = vld [vmem:[%s14474_s11 + $0x19e0] sm:$0xff] }
 0x177   : > { %2237 = vst [vmem:[%s14479_s12 + $0xaf8] sm:$0xff] %v2236_v31  ;;  %v2364_v31 = vld [vmem:[%s14474_s11 + $0x19f0] sm:$0xff] }
 0x178   : > { %2239 = vst [vmem:[%s14479_s12 + $0xb00] sm:$0xff] %v2238_v32  ;;  %v2366_v32 = vld [vmem:[%s14474_s11 + $0x1a00] sm:$0xff] }
 0x179   : > { %2241 = vst [vmem:[%s14479_s12 + $0xb08] sm:$0xff] %v2240_v33  ;;  %v2368_v33 = vld [vmem:[%s14474_s11 + $0x1a10] sm:$0xff] }
 0x17a   : > { %2243 = vst [vmem:[%s14479_s12 + $0xb10] sm:$0xff] %v2242_v34  ;;  %v2370_v34 = vld [vmem:[%s14474_s11 + $0x1a20] sm:$0xff] }
 0x17b   : > { %2245 = vst [vmem:[%s14479_s12 + $0xb18] sm:$0xff] %v2244_v35  ;;  %v2372_v35 = vld [vmem:[%s14474_s11 + $0x1a30] sm:$0xff] }
 0x17c   : > { %2247 = vst [vmem:[%s14479_s12 + $0xb20] sm:$0xff] %v2246_v36  ;;  %v2374_v36 = vld [vmem:[%s14474_s11 + $0x1a40] sm:$0xff] }
 0x17d   : > { %2249 = vst [vmem:[%s14479_s12 + $0xb28] sm:$0xff] %v2248_v37  ;;  %v2376_v37 = vld [vmem:[%s14474_s11 + $0x1a50] sm:$0xff] }
 0x17e   : > { %2251 = vst [vmem:[%s14479_s12 + $0xb30] sm:$0xff] %v2250_v38  ;;  %v2378_v38 = vld [vmem:[%s14474_s11 + $0x1a60] sm:$0xff] }
 0x17f   : > { %2253 = vst [vmem:[%s14479_s12 + $0xb38] sm:$0xff] %v2252_v39  ;;  %v2380_v39 = vld [vmem:[%s14474_s11 + $0x1a70] sm:$0xff] }
 0x180   : > { %2255 = vst [vmem:[%s14479_s12 + $0xb40] sm:$0xff] %v2254_v40  ;;  %v2382_v40 = vld [vmem:[%s14474_s11 + $0x1a80] sm:$0xff] }
 0x181   : > { %2257 = vst [vmem:[%s14479_s12 + $0xb48] sm:$0xff] %v2256_v41  ;;  %v2384_v41 = vld [vmem:[%s14474_s11 + $0x1a90] sm:$0xff] }
 0x182   : > { %2259 = vst [vmem:[%s14479_s12 + $0xb50] sm:$0xff] %v2258_v42  ;;  %v2386_v42 = vld [vmem:[%s14474_s11 + $0x1aa0] sm:$0xff] }
 0x183   : > { %2261 = vst [vmem:[%s14479_s12 + $0xb58] sm:$0xff] %v2260_v43  ;;  %v2388_v43 = vld [vmem:[%s14474_s11 + $0x1ab0] sm:$0xff] }
 0x184   : > { %2263 = vst [vmem:[%s14479_s12 + $0xb60] sm:$0xff] %v2262_v44  ;;  %v2390_v44 = vld [vmem:[%s14474_s11 + $0x1ac0] sm:$0xff] }
 0x185   : > { %2265 = vst [vmem:[%s14479_s12 + $0xb68] sm:$0xff] %v2264_v45  ;;  %v2392_v45 = vld [vmem:[%s14474_s11 + $0x1ad0] sm:$0xff] }
 0x186   : > { %2267 = vst [vmem:[%s14479_s12 + $0xb70] sm:$0xff] %v2266_v46  ;;  %v2394_v46 = vld [vmem:[%s14474_s11 + $0x1ae0] sm:$0xff] }
 0x187   : > { %2269 = vst [vmem:[%s14479_s12 + $0xb78] sm:$0xff] %v2268_v47  ;;  %v2396_v47 = vld [vmem:[%s14474_s11 + $0x1af0] sm:$0xff] }
 0x188   : > { %2271 = vst [vmem:[%s14479_s12 + $0xb80] sm:$0xff] %v2270_v48  ;;  %v2398_v48 = vld [vmem:[%s14474_s11 + $0x1b00] sm:$0xff] }
 0x189   : > { %2273 = vst [vmem:[%s14479_s12 + $0xb88] sm:$0xff] %v2272_v49  ;;  %v2400_v49 = vld [vmem:[%s14474_s11 + $0x1b10] sm:$0xff] }
 0x18a   : > { %2275 = vst [vmem:[%s14479_s12 + $0xb90] sm:$0xff] %v2274_v50  ;;  %v2402_v50 = vld [vmem:[%s14474_s11 + $0x1b20] sm:$0xff] }
 0x18b   : > { %2277 = vst [vmem:[%s14479_s12 + $0xb98] sm:$0xff] %v2276_v51  ;;  %v2404_v51 = vld [vmem:[%s14474_s11 + $0x1b30] sm:$0xff] }
 0x18c   : > { %2279 = vst [vmem:[%s14479_s12 + $0xba0] sm:$0xff] %v2278_v52  ;;  %v2406_v52 = vld [vmem:[%s14474_s11 + $0x1b40] sm:$0xff] }
 0x18d   : > { %2281 = vst [vmem:[%s14479_s12 + $0xba8] sm:$0xff] %v2280_v53  ;;  %v2408_v53 = vld [vmem:[%s14474_s11 + $0x1b50] sm:$0xff] }
 0x18e   : > { %2283 = vst [vmem:[%s14479_s12 + $0xbb0] sm:$0xff] %v2282_v54  ;;  %v2410_v54 = vld [vmem:[%s14474_s11 + $0x1b60] sm:$0xff] }
 0x18f   : > { %2285 = vst [vmem:[%s14479_s12 + $0xbb8] sm:$0xff] %v2284_v55  ;;  %v2412_v55 = vld [vmem:[%s14474_s11 + $0x1b70] sm:$0xff] }
 0x190   : > { %2287 = vst [vmem:[%s14479_s12 + $0xbc0] sm:$0xff] %v2286_v56  ;;  %v2414_v56 = vld [vmem:[%s14474_s11 + $0x1b80] sm:$0xff] }
 0x191   : > { %2289 = vst [vmem:[%s14479_s12 + $0xbc8] sm:$0xff] %v2288_v57  ;;  %v2416_v57 = vld [vmem:[%s14474_s11 + $0x1b90] sm:$0xff] }
 0x192   : > { %2291 = vst [vmem:[%s14479_s12 + $0xbd0] sm:$0xff] %v2290_v58  ;;  %v2418_v58 = vld [vmem:[%s14474_s11 + $0x1ba0] sm:$0xff] }
 0x193   : > { %2293 = vst [vmem:[%s14479_s12 + $0xbd8] sm:$0xff] %v2292_v59  ;;  %v2420_v59 = vld [vmem:[%s14474_s11 + $0x1bb0] sm:$0xff] }
 0x194   : > { %2295 = vst [vmem:[%s14479_s12 + $0xbe0] sm:$0xff] %v2294_v60  ;;  %v2422_v60 = vld [vmem:[%s14474_s11 + $0x1bc0] sm:$0xff] }
 0x195   : > { %2297 = vst [vmem:[%s14479_s12 + $0xbe8] sm:$0xff] %v2296_v61  ;;  %v2424_v61 = vld [vmem:[%s14474_s11 + $0x1bd0] sm:$0xff] }
 0x196   : > { %2299 = vst [vmem:[%s14479_s12 + $0xbf0] sm:$0xff] %v2298_v62  ;;  %v2426_v62 = vld [vmem:[%s14474_s11 + $0x1be0] sm:$0xff] }
 0x197   : > { %2301 = vst [vmem:[%s14479_s12 + $0xbf8] sm:$0xff] %v2300_v63  ;;  %v2428_v63 = vld [vmem:[%s14474_s11 + $0x1bf0] sm:$0xff] }
 0x198   : > { %2303 = vst [vmem:[%s14479_s12 + $0xc00] sm:$0xff] %v2302_v0  ;;  %v2430_v0 = vld [vmem:[%s14474_s11 + $0x1c00] sm:$0xff] }
 0x199   : > { %2305 = vst [vmem:[%s14479_s12 + $0xc08] sm:$0xff] %v2304_v1  ;;  %v2432_v1 = vld [vmem:[%s14474_s11 + $0x1c10] sm:$0xff] }
 0x19a   : > { %2307 = vst [vmem:[%s14479_s12 + $0xc10] sm:$0xff] %v2306_v2  ;;  %v2434_v2 = vld [vmem:[%s14474_s11 + $0x1c20] sm:$0xff] }
 0x19b   : > { %2309 = vst [vmem:[%s14479_s12 + $0xc18] sm:$0xff] %v2308_v3  ;;  %v2436_v3 = vld [vmem:[%s14474_s11 + $0x1c30] sm:$0xff] }
 0x19c   : > { %2311 = vst [vmem:[%s14479_s12 + $0xc20] sm:$0xff] %v2310_v4  ;;  %v2438_v4 = vld [vmem:[%s14474_s11 + $0x1c40] sm:$0xff] }
 0x19d   : > { %2313 = vst [vmem:[%s14479_s12 + $0xc28] sm:$0xff] %v2312_v5  ;;  %v2440_v5 = vld [vmem:[%s14474_s11 + $0x1c50] sm:$0xff] }
 0x19e   : > { %2315 = vst [vmem:[%s14479_s12 + $0xc30] sm:$0xff] %v2314_v6  ;;  %v2442_v6 = vld [vmem:[%s14474_s11 + $0x1c60] sm:$0xff] }
 0x19f   : > { %2317 = vst [vmem:[%s14479_s12 + $0xc38] sm:$0xff] %v2316_v7  ;;  %v2444_v7 = vld [vmem:[%s14474_s11 + $0x1c70] sm:$0xff] }
 0x1a0   : > { %2319 = vst [vmem:[%s14479_s12 + $0xc40] sm:$0xff] %v2318_v8  ;;  %v2446_v8 = vld [vmem:[%s14474_s11 + $0x1c80] sm:$0xff] }
 0x1a1   : > { %2321 = vst [vmem:[%s14479_s12 + $0xc48] sm:$0xff] %v2320_v9  ;;  %v2448_v9 = vld [vmem:[%s14474_s11 + $0x1c90] sm:$0xff] }
 0x1a2   : > { %2323 = vst [vmem:[%s14479_s12 + $0xc50] sm:$0xff] %v2322_v10  ;;  %v2450_v10 = vld [vmem:[%s14474_s11 + $0x1ca0] sm:$0xff] }
 0x1a3   : > { %2325 = vst [vmem:[%s14479_s12 + $0xc58] sm:$0xff] %v2324_v11  ;;  %v2452_v11 = vld [vmem:[%s14474_s11 + $0x1cb0] sm:$0xff] }
 0x1a4   : > { %2327 = vst [vmem:[%s14479_s12 + $0xc60] sm:$0xff] %v2326_v12  ;;  %v2454_v12 = vld [vmem:[%s14474_s11 + $0x1cc0] sm:$0xff] }
 0x1a5   : > { %2329 = vst [vmem:[%s14479_s12 + $0xc68] sm:$0xff] %v2328_v13  ;;  %v2456_v13 = vld [vmem:[%s14474_s11 + $0x1cd0] sm:$0xff] }
 0x1a6   : > { %2331 = vst [vmem:[%s14479_s12 + $0xc70] sm:$0xff] %v2330_v14  ;;  %v2458_v14 = vld [vmem:[%s14474_s11 + $0x1ce0] sm:$0xff] }
 0x1a7   : > { %2333 = vst [vmem:[%s14479_s12 + $0xc78] sm:$0xff] %v2332_v15  ;;  %v2460_v15 = vld [vmem:[%s14474_s11 + $0x1cf0] sm:$0xff] }
 0x1a8   : > { %2335 = vst [vmem:[%s14479_s12 + $0xc80] sm:$0xff] %v2334_v16  ;;  %v2462_v16 = vld [vmem:[%s14474_s11 + $0x1d00] sm:$0xff] }
 0x1a9   : > { %2337 = vst [vmem:[%s14479_s12 + $0xc88] sm:$0xff] %v2336_v17  ;;  %v2464_v17 = vld [vmem:[%s14474_s11 + $0x1d10] sm:$0xff] }
 0x1aa   : > { %2339 = vst [vmem:[%s14479_s12 + $0xc90] sm:$0xff] %v2338_v18  ;;  %v2466_v18 = vld [vmem:[%s14474_s11 + $0x1d20] sm:$0xff] }
 0x1ab   : > { %2341 = vst [vmem:[%s14479_s12 + $0xc98] sm:$0xff] %v2340_v19  ;;  %v2468_v19 = vld [vmem:[%s14474_s11 + $0x1d30] sm:$0xff] }
 0x1ac   : > { %2343 = vst [vmem:[%s14479_s12 + $0xca0] sm:$0xff] %v2342_v20  ;;  %v2470_v20 = vld [vmem:[%s14474_s11 + $0x1d40] sm:$0xff] }
 0x1ad   : > { %2345 = vst [vmem:[%s14479_s12 + $0xca8] sm:$0xff] %v2344_v21  ;;  %v2472_v21 = vld [vmem:[%s14474_s11 + $0x1d50] sm:$0xff] }
 0x1ae   : > { %2347 = vst [vmem:[%s14479_s12 + $0xcb0] sm:$0xff] %v2346_v22  ;;  %v2474_v22 = vld [vmem:[%s14474_s11 + $0x1d60] sm:$0xff] }
 0x1af   : > { %2349 = vst [vmem:[%s14479_s12 + $0xcb8] sm:$0xff] %v2348_v23  ;;  %v2476_v23 = vld [vmem:[%s14474_s11 + $0x1d70] sm:$0xff] }
 0x1b0   : > { %2351 = vst [vmem:[%s14479_s12 + $0xcc0] sm:$0xff] %v2350_v24  ;;  %v2478_v24 = vld [vmem:[%s14474_s11 + $0x1d80] sm:$0xff] }
 0x1b1   : > { %2353 = vst [vmem:[%s14479_s12 + $0xcc8] sm:$0xff] %v2352_v25  ;;  %v2480_v25 = vld [vmem:[%s14474_s11 + $0x1d90] sm:$0xff] }
 0x1b2   : > { %2355 = vst [vmem:[%s14479_s12 + $0xcd0] sm:$0xff] %v2354_v26  ;;  %v2482_v26 = vld [vmem:[%s14474_s11 + $0x1da0] sm:$0xff] }
 0x1b3   : > { %2357 = vst [vmem:[%s14479_s12 + $0xcd8] sm:$0xff] %v2356_v27  ;;  %v2484_v27 = vld [vmem:[%s14474_s11 + $0x1db0] sm:$0xff] }
 0x1b4   : > { %2359 = vst [vmem:[%s14479_s12 + $0xce0] sm:$0xff] %v2358_v28  ;;  %v2486_v28 = vld [vmem:[%s14474_s11 + $0x1dc0] sm:$0xff] }
 0x1b5   : > { %2361 = vst [vmem:[%s14479_s12 + $0xce8] sm:$0xff] %v2360_v29  ;;  %v2488_v29 = vld [vmem:[%s14474_s11 + $0x1dd0] sm:$0xff] }
 0x1b6   : > { %2363 = vst [vmem:[%s14479_s12 + $0xcf0] sm:$0xff] %v2362_v30  ;;  %v2490_v30 = vld [vmem:[%s14474_s11 + $0x1de0] sm:$0xff] }
 0x1b7   : > { %2365 = vst [vmem:[%s14479_s12 + $0xcf8] sm:$0xff] %v2364_v31  ;;  %v2492_v31 = vld [vmem:[%s14474_s11 + $0x1df0] sm:$0xff] }
 0x1b8   : > { %2367 = vst [vmem:[%s14479_s12 + $0xd00] sm:$0xff] %v2366_v32  ;;  %v2494_v32 = vld [vmem:[%s14474_s11 + $0x1e00] sm:$0xff] }
 0x1b9   : > { %2369 = vst [vmem:[%s14479_s12 + $0xd08] sm:$0xff] %v2368_v33  ;;  %v2496_v33 = vld [vmem:[%s14474_s11 + $0x1e10] sm:$0xff] }
 0x1ba   : > { %2371 = vst [vmem:[%s14479_s12 + $0xd10] sm:$0xff] %v2370_v34  ;;  %v2498_v34 = vld [vmem:[%s14474_s11 + $0x1e20] sm:$0xff] }
 0x1bb   : > { %2373 = vst [vmem:[%s14479_s12 + $0xd18] sm:$0xff] %v2372_v35  ;;  %v2500_v35 = vld [vmem:[%s14474_s11 + $0x1e30] sm:$0xff] }
 0x1bc   : > { %2375 = vst [vmem:[%s14479_s12 + $0xd20] sm:$0xff] %v2374_v36  ;;  %v2502_v36 = vld [vmem:[%s14474_s11 + $0x1e40] sm:$0xff] }
 0x1bd   : > { %2377 = vst [vmem:[%s14479_s12 + $0xd28] sm:$0xff] %v2376_v37  ;;  %v2504_v37 = vld [vmem:[%s14474_s11 + $0x1e50] sm:$0xff] }
 0x1be   : > { %2379 = vst [vmem:[%s14479_s12 + $0xd30] sm:$0xff] %v2378_v38  ;;  %v2506_v38 = vld [vmem:[%s14474_s11 + $0x1e60] sm:$0xff] }
 0x1bf   : > { %2381 = vst [vmem:[%s14479_s12 + $0xd38] sm:$0xff] %v2380_v39  ;;  %v2508_v39 = vld [vmem:[%s14474_s11 + $0x1e70] sm:$0xff] }
 0x1c0   : > { %2383 = vst [vmem:[%s14479_s12 + $0xd40] sm:$0xff] %v2382_v40  ;;  %v2510_v40 = vld [vmem:[%s14474_s11 + $0x1e80] sm:$0xff] }
 0x1c1   : > { %2385 = vst [vmem:[%s14479_s12 + $0xd48] sm:$0xff] %v2384_v41  ;;  %v2512_v41 = vld [vmem:[%s14474_s11 + $0x1e90] sm:$0xff] }
 0x1c2   : > { %2387 = vst [vmem:[%s14479_s12 + $0xd50] sm:$0xff] %v2386_v42  ;;  %v2514_v42 = vld [vmem:[%s14474_s11 + $0x1ea0] sm:$0xff] }
 0x1c3   : > { %2389 = vst [vmem:[%s14479_s12 + $0xd58] sm:$0xff] %v2388_v43  ;;  %v2516_v43 = vld [vmem:[%s14474_s11 + $0x1eb0] sm:$0xff] }
 0x1c4   : > { %2391 = vst [vmem:[%s14479_s12 + $0xd60] sm:$0xff] %v2390_v44  ;;  %v2518_v44 = vld [vmem:[%s14474_s11 + $0x1ec0] sm:$0xff] }
 0x1c5   : > { %2393 = vst [vmem:[%s14479_s12 + $0xd68] sm:$0xff] %v2392_v45  ;;  %v2520_v45 = vld [vmem:[%s14474_s11 + $0x1ed0] sm:$0xff] }
 0x1c6   : > { %2395 = vst [vmem:[%s14479_s12 + $0xd70] sm:$0xff] %v2394_v46  ;;  %v2522_v46 = vld [vmem:[%s14474_s11 + $0x1ee0] sm:$0xff] }
 0x1c7   : > { %2397 = vst [vmem:[%s14479_s12 + $0xd78] sm:$0xff] %v2396_v47  ;;  %v2524_v47 = vld [vmem:[%s14474_s11 + $0x1ef0] sm:$0xff] }
 0x1c8   : > { %2399 = vst [vmem:[%s14479_s12 + $0xd80] sm:$0xff] %v2398_v48  ;;  %v2526_v48 = vld [vmem:[%s14474_s11 + $0x1f00] sm:$0xff] }
 0x1c9   : > { %2401 = vst [vmem:[%s14479_s12 + $0xd88] sm:$0xff] %v2400_v49  ;;  %v2528_v49 = vld [vmem:[%s14474_s11 + $0x1f10] sm:$0xff] }
 0x1ca   : > { %2403 = vst [vmem:[%s14479_s12 + $0xd90] sm:$0xff] %v2402_v50  ;;  %v2530_v50 = vld [vmem:[%s14474_s11 + $0x1f20] sm:$0xff] }
 0x1cb   : > { %2405 = vst [vmem:[%s14479_s12 + $0xd98] sm:$0xff] %v2404_v51  ;;  %v2532_v51 = vld [vmem:[%s14474_s11 + $0x1f30] sm:$0xff] }
 0x1cc   : > { %2407 = vst [vmem:[%s14479_s12 + $0xda0] sm:$0xff] %v2406_v52  ;;  %v2534_v52 = vld [vmem:[%s14474_s11 + $0x1f40] sm:$0xff] }
 0x1cd   : > { %2409 = vst [vmem:[%s14479_s12 + $0xda8] sm:$0xff] %v2408_v53  ;;  %v2536_v53 = vld [vmem:[%s14474_s11 + $0x1f50] sm:$0xff] }
 0x1ce   : > { %2411 = vst [vmem:[%s14479_s12 + $0xdb0] sm:$0xff] %v2410_v54  ;;  %v2538_v54 = vld [vmem:[%s14474_s11 + $0x1f60] sm:$0xff] }
 0x1cf   : > { %2413 = vst [vmem:[%s14479_s12 + $0xdb8] sm:$0xff] %v2412_v55  ;;  %v2540_v55 = vld [vmem:[%s14474_s11 + $0x1f70] sm:$0xff] }
 0x1d0   : > { %2415 = vst [vmem:[%s14479_s12 + $0xdc0] sm:$0xff] %v2414_v56  ;;  %v2542_v56 = vld [vmem:[%s14474_s11 + $0x1f80] sm:$0xff] }
 0x1d1   : > { %2417 = vst [vmem:[%s14479_s12 + $0xdc8] sm:$0xff] %v2416_v57  ;;  %v2544_v57 = vld [vmem:[%s14474_s11 + $0x1f90] sm:$0xff] }
 0x1d2   : > { %2419 = vst [vmem:[%s14479_s12 + $0xdd0] sm:$0xff] %v2418_v58  ;;  %v2546_v58 = vld [vmem:[%s14474_s11 + $0x1fa0] sm:$0xff] }
 0x1d3   : > { %2421 = vst [vmem:[%s14479_s12 + $0xdd8] sm:$0xff] %v2420_v59  ;;  %v2548_v59 = vld [vmem:[%s14474_s11 + $0x1fb0] sm:$0xff] }
 0x1d4   : > { %2423 = vst [vmem:[%s14479_s12 + $0xde0] sm:$0xff] %v2422_v60  ;;  %v2550_v60 = vld [vmem:[%s14474_s11 + $0x1fc0] sm:$0xff] }
 0x1d5   : > { %2425 = vst [vmem:[%s14479_s12 + $0xde8] sm:$0xff] %v2424_v61  ;;  %v2552_v61 = vld [vmem:[%s14474_s11 + $0x1fd0] sm:$0xff] }
 0x1d6   : > { %2427 = vst [vmem:[%s14479_s12 + $0xdf0] sm:$0xff] %v2426_v62  ;;  %v2554_v62 = vld [vmem:[%s14474_s11 + $0x1fe0] sm:$0xff] }
 0x1d7   : > { %2429 = vst [vmem:[%s14479_s12 + $0xdf8] sm:$0xff] %v2428_v63  ;;  %v2556_v63 = vld [vmem:[%s14474_s11 + $0x1ff0] sm:$0xff] }
 0x1d8   : > { %2431 = vst [vmem:[%s14479_s12 + $0xe00] sm:$0xff] %v2430_v0  ;;  %v2558_v0 = vld [vmem:[%s14474_s11 + $0x2000] sm:$0xff] }
 0x1d9   : > { %2433 = vst [vmem:[%s14479_s12 + $0xe08] sm:$0xff] %v2432_v1  ;;  %v2560_v1 = vld [vmem:[%s14474_s11 + $0x2010] sm:$0xff] }
 0x1da   : > { %2435 = vst [vmem:[%s14479_s12 + $0xe10] sm:$0xff] %v2434_v2  ;;  %v2562_v2 = vld [vmem:[%s14474_s11 + $0x2020] sm:$0xff] }
 0x1db   : > { %2437 = vst [vmem:[%s14479_s12 + $0xe18] sm:$0xff] %v2436_v3  ;;  %v2564_v3 = vld [vmem:[%s14474_s11 + $0x2030] sm:$0xff] }
 0x1dc   : > { %2439 = vst [vmem:[%s14479_s12 + $0xe20] sm:$0xff] %v2438_v4  ;;  %v2566_v4 = vld [vmem:[%s14474_s11 + $0x2040] sm:$0xff] }
 0x1dd   : > { %2441 = vst [vmem:[%s14479_s12 + $0xe28] sm:$0xff] %v2440_v5  ;;  %v2568_v5 = vld [vmem:[%s14474_s11 + $0x2050] sm:$0xff] }
 0x1de   : > { %2443 = vst [vmem:[%s14479_s12 + $0xe30] sm:$0xff] %v2442_v6  ;;  %v2570_v6 = vld [vmem:[%s14474_s11 + $0x2060] sm:$0xff] }
 0x1df   : > { %2445 = vst [vmem:[%s14479_s12 + $0xe38] sm:$0xff] %v2444_v7  ;;  %v2572_v7 = vld [vmem:[%s14474_s11 + $0x2070] sm:$0xff] }
 0x1e0   : > { %2447 = vst [vmem:[%s14479_s12 + $0xe40] sm:$0xff] %v2446_v8  ;;  %v2574_v8 = vld [vmem:[%s14474_s11 + $0x2080] sm:$0xff] }
 0x1e1   : > { %2449 = vst [vmem:[%s14479_s12 + $0xe48] sm:$0xff] %v2448_v9  ;;  %v2576_v9 = vld [vmem:[%s14474_s11 + $0x2090] sm:$0xff] }
 0x1e2   : > { %2451 = vst [vmem:[%s14479_s12 + $0xe50] sm:$0xff] %v2450_v10  ;;  %v2578_v10 = vld [vmem:[%s14474_s11 + $0x20a0] sm:$0xff] }
 0x1e3   : > { %2453 = vst [vmem:[%s14479_s12 + $0xe58] sm:$0xff] %v2452_v11  ;;  %v2580_v11 = vld [vmem:[%s14474_s11 + $0x20b0] sm:$0xff] }
 0x1e4   : > { %2455 = vst [vmem:[%s14479_s12 + $0xe60] sm:$0xff] %v2454_v12  ;;  %v2582_v12 = vld [vmem:[%s14474_s11 + $0x20c0] sm:$0xff] }
 0x1e5   : > { %2457 = vst [vmem:[%s14479_s12 + $0xe68] sm:$0xff] %v2456_v13  ;;  %v2584_v13 = vld [vmem:[%s14474_s11 + $0x20d0] sm:$0xff] }
 0x1e6   : > { %2459 = vst [vmem:[%s14479_s12 + $0xe70] sm:$0xff] %v2458_v14  ;;  %v2586_v14 = vld [vmem:[%s14474_s11 + $0x20e0] sm:$0xff] }
 0x1e7   : > { %2461 = vst [vmem:[%s14479_s12 + $0xe78] sm:$0xff] %v2460_v15  ;;  %v2588_v15 = vld [vmem:[%s14474_s11 + $0x20f0] sm:$0xff] }
 0x1e8   : > { %2463 = vst [vmem:[%s14479_s12 + $0xe80] sm:$0xff] %v2462_v16  ;;  %v2590_v16 = vld [vmem:[%s14474_s11 + $0x2100] sm:$0xff] }
 0x1e9   : > { %2465 = vst [vmem:[%s14479_s12 + $0xe88] sm:$0xff] %v2464_v17  ;;  %v2592_v17 = vld [vmem:[%s14474_s11 + $0x2110] sm:$0xff] }
 0x1ea   : > { %2467 = vst [vmem:[%s14479_s12 + $0xe90] sm:$0xff] %v2466_v18  ;;  %v2594_v18 = vld [vmem:[%s14474_s11 + $0x2120] sm:$0xff] }
 0x1eb   : > { %2469 = vst [vmem:[%s14479_s12 + $0xe98] sm:$0xff] %v2468_v19  ;;  %v2596_v19 = vld [vmem:[%s14474_s11 + $0x2130] sm:$0xff] }
 0x1ec   : > { %2471 = vst [vmem:[%s14479_s12 + $0xea0] sm:$0xff] %v2470_v20  ;;  %v2598_v20 = vld [vmem:[%s14474_s11 + $0x2140] sm:$0xff] }
 0x1ed   : > { %2473 = vst [vmem:[%s14479_s12 + $0xea8] sm:$0xff] %v2472_v21  ;;  %v2600_v21 = vld [vmem:[%s14474_s11 + $0x2150] sm:$0xff] }
 0x1ee   : > { %2475 = vst [vmem:[%s14479_s12 + $0xeb0] sm:$0xff] %v2474_v22  ;;  %v2602_v22 = vld [vmem:[%s14474_s11 + $0x2160] sm:$0xff] }
 0x1ef   : > { %2477 = vst [vmem:[%s14479_s12 + $0xeb8] sm:$0xff] %v2476_v23  ;;  %v2604_v23 = vld [vmem:[%s14474_s11 + $0x2170] sm:$0xff] }
 0x1f0   : > { %2479 = vst [vmem:[%s14479_s12 + $0xec0] sm:$0xff] %v2478_v24  ;;  %v2606_v24 = vld [vmem:[%s14474_s11 + $0x2180] sm:$0xff] }
 0x1f1   : > { %2481 = vst [vmem:[%s14479_s12 + $0xec8] sm:$0xff] %v2480_v25  ;;  %v2608_v25 = vld [vmem:[%s14474_s11 + $0x2190] sm:$0xff] }
 0x1f2   : > { %2483 = vst [vmem:[%s14479_s12 + $0xed0] sm:$0xff] %v2482_v26  ;;  %v2610_v26 = vld [vmem:[%s14474_s11 + $0x21a0] sm:$0xff] }
 0x1f3   : > { %2485 = vst [vmem:[%s14479_s12 + $0xed8] sm:$0xff] %v2484_v27  ;;  %v2612_v27 = vld [vmem:[%s14474_s11 + $0x21b0] sm:$0xff] }
 0x1f4   : > { %2487 = vst [vmem:[%s14479_s12 + $0xee0] sm:$0xff] %v2486_v28  ;;  %v2614_v28 = vld [vmem:[%s14474_s11 + $0x21c0] sm:$0xff] }
 0x1f5   : > { %2489 = vst [vmem:[%s14479_s12 + $0xee8] sm:$0xff] %v2488_v29  ;;  %v2616_v29 = vld [vmem:[%s14474_s11 + $0x21d0] sm:$0xff] }
 0x1f6   : > { %2491 = vst [vmem:[%s14479_s12 + $0xef0] sm:$0xff] %v2490_v30  ;;  %v2618_v30 = vld [vmem:[%s14474_s11 + $0x21e0] sm:$0xff] }
 0x1f7   : > { %2493 = vst [vmem:[%s14479_s12 + $0xef8] sm:$0xff] %v2492_v31  ;;  %v2620_v31 = vld [vmem:[%s14474_s11 + $0x21f0] sm:$0xff] }
 0x1f8   : > { %2495 = vst [vmem:[%s14479_s12 + $0xf00] sm:$0xff] %v2494_v32  ;;  %v2622_v32 = vld [vmem:[%s14474_s11 + $0x2200] sm:$0xff] }
 0x1f9   : > { %2497 = vst [vmem:[%s14479_s12 + $0xf08] sm:$0xff] %v2496_v33  ;;  %v2624_v33 = vld [vmem:[%s14474_s11 + $0x2210] sm:$0xff] }
 0x1fa   : > { %2499 = vst [vmem:[%s14479_s12 + $0xf10] sm:$0xff] %v2498_v34  ;;  %v2626_v34 = vld [vmem:[%s14474_s11 + $0x2220] sm:$0xff] }
 0x1fb   : > { %2501 = vst [vmem:[%s14479_s12 + $0xf18] sm:$0xff] %v2500_v35  ;;  %v2628_v35 = vld [vmem:[%s14474_s11 + $0x2230] sm:$0xff] }
 0x1fc   : > { %2503 = vst [vmem:[%s14479_s12 + $0xf20] sm:$0xff] %v2502_v36  ;;  %v2630_v36 = vld [vmem:[%s14474_s11 + $0x2240] sm:$0xff] }
 0x1fd   : > { %2505 = vst [vmem:[%s14479_s12 + $0xf28] sm:$0xff] %v2504_v37  ;;  %v2632_v37 = vld [vmem:[%s14474_s11 + $0x2250] sm:$0xff] }
 0x1fe   : > { %2507 = vst [vmem:[%s14479_s12 + $0xf30] sm:$0xff] %v2506_v38  ;;  %v2634_v38 = vld [vmem:[%s14474_s11 + $0x2260] sm:$0xff] }
 0x1ff   : > { %2509 = vst [vmem:[%s14479_s12 + $0xf38] sm:$0xff] %v2508_v39  ;;  %v2636_v39 = vld [vmem:[%s14474_s11 + $0x2270] sm:$0xff] }
 0x200   : > { %2511 = vst [vmem:[%s14479_s12 + $0xf40] sm:$0xff] %v2510_v40  ;;  %v2638_v40 = vld [vmem:[%s14474_s11 + $0x2280] sm:$0xff] }
 0x201   : > { %2513 = vst [vmem:[%s14479_s12 + $0xf48] sm:$0xff] %v2512_v41  ;;  %v2640_v41 = vld [vmem:[%s14474_s11 + $0x2290] sm:$0xff] }
 0x202   : > { %2515 = vst [vmem:[%s14479_s12 + $0xf50] sm:$0xff] %v2514_v42  ;;  %v2642_v42 = vld [vmem:[%s14474_s11 + $0x22a0] sm:$0xff] }
 0x203   : > { %2517 = vst [vmem:[%s14479_s12 + $0xf58] sm:$0xff] %v2516_v43  ;;  %v2644_v43 = vld [vmem:[%s14474_s11 + $0x22b0] sm:$0xff] }
 0x204   : > { %2519 = vst [vmem:[%s14479_s12 + $0xf60] sm:$0xff] %v2518_v44  ;;  %v2646_v44 = vld [vmem:[%s14474_s11 + $0x22c0] sm:$0xff] }
 0x205   : > { %2521 = vst [vmem:[%s14479_s12 + $0xf68] sm:$0xff] %v2520_v45  ;;  %v2648_v45 = vld [vmem:[%s14474_s11 + $0x22d0] sm:$0xff] }
 0x206   : > { %2523 = vst [vmem:[%s14479_s12 + $0xf70] sm:$0xff] %v2522_v46  ;;  %v2650_v46 = vld [vmem:[%s14474_s11 + $0x22e0] sm:$0xff] }
 0x207   : > { %2525 = vst [vmem:[%s14479_s12 + $0xf78] sm:$0xff] %v2524_v47  ;;  %v2652_v47 = vld [vmem:[%s14474_s11 + $0x22f0] sm:$0xff] }
 0x208   : > { %2527 = vst [vmem:[%s14479_s12 + $0xf80] sm:$0xff] %v2526_v48  ;;  %v2654_v48 = vld [vmem:[%s14474_s11 + $0x2300] sm:$0xff] }
 0x209   : > { %2529 = vst [vmem:[%s14479_s12 + $0xf88] sm:$0xff] %v2528_v49  ;;  %v2656_v49 = vld [vmem:[%s14474_s11 + $0x2310] sm:$0xff] }
 0x20a   : > { %2531 = vst [vmem:[%s14479_s12 + $0xf90] sm:$0xff] %v2530_v50  ;;  %v2658_v50 = vld [vmem:[%s14474_s11 + $0x2320] sm:$0xff] }
 0x20b   : > { %2533 = vst [vmem:[%s14479_s12 + $0xf98] sm:$0xff] %v2532_v51  ;;  %v2660_v51 = vld [vmem:[%s14474_s11 + $0x2330] sm:$0xff] }
 0x20c   : > { %2535 = vst [vmem:[%s14479_s12 + $0xfa0] sm:$0xff] %v2534_v52  ;;  %v2662_v52 = vld [vmem:[%s14474_s11 + $0x2340] sm:$0xff] }
 0x20d   : > { %2537 = vst [vmem:[%s14479_s12 + $0xfa8] sm:$0xff] %v2536_v53  ;;  %v2664_v53 = vld [vmem:[%s14474_s11 + $0x2350] sm:$0xff] }
 0x20e   : > { %2539 = vst [vmem:[%s14479_s12 + $0xfb0] sm:$0xff] %v2538_v54  ;;  %v2666_v54 = vld [vmem:[%s14474_s11 + $0x2360] sm:$0xff] }
 0x20f   : > { %2541 = vst [vmem:[%s14479_s12 + $0xfb8] sm:$0xff] %v2540_v55  ;;  %v2668_v55 = vld [vmem:[%s14474_s11 + $0x2370] sm:$0xff] }
 0x210   : > { %2543 = vst [vmem:[%s14479_s12 + $0xfc0] sm:$0xff] %v2542_v56  ;;  %v2670_v56 = vld [vmem:[%s14474_s11 + $0x2380] sm:$0xff] }
 0x211   : > { %2545 = vst [vmem:[%s14479_s12 + $0xfc8] sm:$0xff] %v2544_v57  ;;  %v2672_v57 = vld [vmem:[%s14474_s11 + $0x2390] sm:$0xff] }
 0x212   : > { %2547 = vst [vmem:[%s14479_s12 + $0xfd0] sm:$0xff] %v2546_v58  ;;  %v2674_v58 = vld [vmem:[%s14474_s11 + $0x23a0] sm:$0xff] }
 0x213   : > { %2549 = vst [vmem:[%s14479_s12 + $0xfd8] sm:$0xff] %v2548_v59  ;;  %v2676_v59 = vld [vmem:[%s14474_s11 + $0x23b0] sm:$0xff] }
 0x214   : > { %2551 = vst [vmem:[%s14479_s12 + $0xfe0] sm:$0xff] %v2550_v60  ;;  %v2678_v60 = vld [vmem:[%s14474_s11 + $0x23c0] sm:$0xff] }
 0x215   : > { %2553 = vst [vmem:[%s14479_s12 + $0xfe8] sm:$0xff] %v2552_v61  ;;  %v2680_v61 = vld [vmem:[%s14474_s11 + $0x23d0] sm:$0xff] }
 0x216   : > { %2555 = vst [vmem:[%s14479_s12 + $0xff0] sm:$0xff] %v2554_v62  ;;  %v2682_v62 = vld [vmem:[%s14474_s11 + $0x23e0] sm:$0xff] }
 0x217   : > { %2557 = vst [vmem:[%s14479_s12 + $0xff8] sm:$0xff] %v2556_v63  ;;  %v2684_v63 = vld [vmem:[%s14474_s11 + $0x23f0] sm:$0xff] }
 0x218   : > { %2559 = vst [vmem:[%s14479_s12 + $0x1000] sm:$0xff] %v2558_v0  ;;  %v2686_v0 = vld [vmem:[%s14474_s11 + $0x2400] sm:$0xff] }
 0x219   : > { %2561 = vst [vmem:[%s14479_s12 + $0x1008] sm:$0xff] %v2560_v1  ;;  %v2688_v1 = vld [vmem:[%s14474_s11 + $0x2410] sm:$0xff] }
 0x21a   : > { %2563 = vst [vmem:[%s14479_s12 + $0x1010] sm:$0xff] %v2562_v2  ;;  %v2690_v2 = vld [vmem:[%s14474_s11 + $0x2420] sm:$0xff] }
 0x21b   : > { %2565 = vst [vmem:[%s14479_s12 + $0x1018] sm:$0xff] %v2564_v3  ;;  %v2692_v3 = vld [vmem:[%s14474_s11 + $0x2430] sm:$0xff] }
 0x21c   : > { %2567 = vst [vmem:[%s14479_s12 + $0x1020] sm:$0xff] %v2566_v4  ;;  %v2694_v4 = vld [vmem:[%s14474_s11 + $0x2440] sm:$0xff] }
 0x21d   : > { %2569 = vst [vmem:[%s14479_s12 + $0x1028] sm:$0xff] %v2568_v5  ;;  %v2696_v5 = vld [vmem:[%s14474_s11 + $0x2450] sm:$0xff] }
 0x21e   : > { %2571 = vst [vmem:[%s14479_s12 + $0x1030] sm:$0xff] %v2570_v6  ;;  %v2698_v6 = vld [vmem:[%s14474_s11 + $0x2460] sm:$0xff] }
 0x21f   : > { %2573 = vst [vmem:[%s14479_s12 + $0x1038] sm:$0xff] %v2572_v7  ;;  %v2700_v7 = vld [vmem:[%s14474_s11 + $0x2470] sm:$0xff] }
 0x220   : > { %2575 = vst [vmem:[%s14479_s12 + $0x1040] sm:$0xff] %v2574_v8  ;;  %v2702_v8 = vld [vmem:[%s14474_s11 + $0x2480] sm:$0xff] }
 0x221   : > { %2577 = vst [vmem:[%s14479_s12 + $0x1048] sm:$0xff] %v2576_v9  ;;  %v2704_v9 = vld [vmem:[%s14474_s11 + $0x2490] sm:$0xff] }
 0x222   : > { %2579 = vst [vmem:[%s14479_s12 + $0x1050] sm:$0xff] %v2578_v10  ;;  %v2706_v10 = vld [vmem:[%s14474_s11 + $0x24a0] sm:$0xff] }
 0x223   : > { %2581 = vst [vmem:[%s14479_s12 + $0x1058] sm:$0xff] %v2580_v11  ;;  %v2708_v11 = vld [vmem:[%s14474_s11 + $0x24b0] sm:$0xff] }
 0x224   : > { %2583 = vst [vmem:[%s14479_s12 + $0x1060] sm:$0xff] %v2582_v12  ;;  %v2710_v12 = vld [vmem:[%s14474_s11 + $0x24c0] sm:$0xff] }
 0x225   : > { %2585 = vst [vmem:[%s14479_s12 + $0x1068] sm:$0xff] %v2584_v13  ;;  %v2712_v13 = vld [vmem:[%s14474_s11 + $0x24d0] sm:$0xff] }
 0x226   : > { %2587 = vst [vmem:[%s14479_s12 + $0x1070] sm:$0xff] %v2586_v14  ;;  %v2714_v14 = vld [vmem:[%s14474_s11 + $0x24e0] sm:$0xff] }
 0x227   : > { %2589 = vst [vmem:[%s14479_s12 + $0x1078] sm:$0xff] %v2588_v15  ;;  %v2716_v15 = vld [vmem:[%s14474_s11 + $0x24f0] sm:$0xff] }
 0x228   : > { %2591 = vst [vmem:[%s14479_s12 + $0x1080] sm:$0xff] %v2590_v16  ;;  %v2718_v16 = vld [vmem:[%s14474_s11 + $0x2500] sm:$0xff] }
 0x229   : > { %2593 = vst [vmem:[%s14479_s12 + $0x1088] sm:$0xff] %v2592_v17  ;;  %v2720_v17 = vld [vmem:[%s14474_s11 + $0x2510] sm:$0xff] }
 0x22a   : > { %2595 = vst [vmem:[%s14479_s12 + $0x1090] sm:$0xff] %v2594_v18  ;;  %v2722_v18 = vld [vmem:[%s14474_s11 + $0x2520] sm:$0xff] }
 0x22b   : > { %2597 = vst [vmem:[%s14479_s12 + $0x1098] sm:$0xff] %v2596_v19  ;;  %v2724_v19 = vld [vmem:[%s14474_s11 + $0x2530] sm:$0xff] }
 0x22c   : > { %2599 = vst [vmem:[%s14479_s12 + $0x10a0] sm:$0xff] %v2598_v20  ;;  %v2726_v20 = vld [vmem:[%s14474_s11 + $0x2540] sm:$0xff] }
 0x22d   : > { %2601 = vst [vmem:[%s14479_s12 + $0x10a8] sm:$0xff] %v2600_v21  ;;  %v2728_v21 = vld [vmem:[%s14474_s11 + $0x2550] sm:$0xff] }
 0x22e   : > { %2603 = vst [vmem:[%s14479_s12 + $0x10b0] sm:$0xff] %v2602_v22  ;;  %v2730_v22 = vld [vmem:[%s14474_s11 + $0x2560] sm:$0xff] }
 0x22f   : > { %2605 = vst [vmem:[%s14479_s12 + $0x10b8] sm:$0xff] %v2604_v23  ;;  %v2732_v23 = vld [vmem:[%s14474_s11 + $0x2570] sm:$0xff] }
 0x230   : > { %2607 = vst [vmem:[%s14479_s12 + $0x10c0] sm:$0xff] %v2606_v24  ;;  %v2734_v24 = vld [vmem:[%s14474_s11 + $0x2580] sm:$0xff] }
 0x231   : > { %2609 = vst [vmem:[%s14479_s12 + $0x10c8] sm:$0xff] %v2608_v25  ;;  %v2736_v25 = vld [vmem:[%s14474_s11 + $0x2590] sm:$0xff] }
 0x232   : > { %2611 = vst [vmem:[%s14479_s12 + $0x10d0] sm:$0xff] %v2610_v26  ;;  %v2738_v26 = vld [vmem:[%s14474_s11 + $0x25a0] sm:$0xff] }
 0x233   : > { %2613 = vst [vmem:[%s14479_s12 + $0x10d8] sm:$0xff] %v2612_v27  ;;  %v2740_v27 = vld [vmem:[%s14474_s11 + $0x25b0] sm:$0xff] }
 0x234   : > { %2615 = vst [vmem:[%s14479_s12 + $0x10e0] sm:$0xff] %v2614_v28  ;;  %v2742_v28 = vld [vmem:[%s14474_s11 + $0x25c0] sm:$0xff] }
 0x235   : > { %2617 = vst [vmem:[%s14479_s12 + $0x10e8] sm:$0xff] %v2616_v29  ;;  %v2744_v29 = vld [vmem:[%s14474_s11 + $0x25d0] sm:$0xff] }
 0x236   : > { %2619 = vst [vmem:[%s14479_s12 + $0x10f0] sm:$0xff] %v2618_v30  ;;  %v2746_v30 = vld [vmem:[%s14474_s11 + $0x25e0] sm:$0xff] }
 0x237   : > { %2621 = vst [vmem:[%s14479_s12 + $0x10f8] sm:$0xff] %v2620_v31  ;;  %v2748_v31 = vld [vmem:[%s14474_s11 + $0x25f0] sm:$0xff] }
 0x238   : > { %2623 = vst [vmem:[%s14479_s12 + $0x1100] sm:$0xff] %v2622_v32  ;;  %v2750_v32 = vld [vmem:[%s14474_s11 + $0x2600] sm:$0xff] }
 0x239   : > { %2625 = vst [vmem:[%s14479_s12 + $0x1108] sm:$0xff] %v2624_v33  ;;  %v2752_v33 = vld [vmem:[%s14474_s11 + $0x2610] sm:$0xff] }
 0x23a   : > { %2627 = vst [vmem:[%s14479_s12 + $0x1110] sm:$0xff] %v2626_v34  ;;  %v2754_v34 = vld [vmem:[%s14474_s11 + $0x2620] sm:$0xff] }
 0x23b   : > { %2629 = vst [vmem:[%s14479_s12 + $0x1118] sm:$0xff] %v2628_v35  ;;  %v2756_v35 = vld [vmem:[%s14474_s11 + $0x2630] sm:$0xff] }
 0x23c   : > { %2631 = vst [vmem:[%s14479_s12 + $0x1120] sm:$0xff] %v2630_v36  ;;  %v2758_v36 = vld [vmem:[%s14474_s11 + $0x2640] sm:$0xff] }
 0x23d   : > { %2633 = vst [vmem:[%s14479_s12 + $0x1128] sm:$0xff] %v2632_v37  ;;  %v2760_v37 = vld [vmem:[%s14474_s11 + $0x2650] sm:$0xff] }
 0x23e   : > { %2635 = vst [vmem:[%s14479_s12 + $0x1130] sm:$0xff] %v2634_v38  ;;  %v2762_v38 = vld [vmem:[%s14474_s11 + $0x2660] sm:$0xff] }
 0x23f   : > { %2637 = vst [vmem:[%s14479_s12 + $0x1138] sm:$0xff] %v2636_v39  ;;  %v2764_v39 = vld [vmem:[%s14474_s11 + $0x2670] sm:$0xff] }
 0x240   : > { %2639 = vst [vmem:[%s14479_s12 + $0x1140] sm:$0xff] %v2638_v40  ;;  %v2766_v40 = vld [vmem:[%s14474_s11 + $0x2680] sm:$0xff] }
 0x241   : > { %2641 = vst [vmem:[%s14479_s12 + $0x1148] sm:$0xff] %v2640_v41  ;;  %v2768_v41 = vld [vmem:[%s14474_s11 + $0x2690] sm:$0xff] }
 0x242   : > { %2643 = vst [vmem:[%s14479_s12 + $0x1150] sm:$0xff] %v2642_v42  ;;  %v2770_v42 = vld [vmem:[%s14474_s11 + $0x26a0] sm:$0xff] }
 0x243   : > { %2645 = vst [vmem:[%s14479_s12 + $0x1158] sm:$0xff] %v2644_v43  ;;  %v2772_v43 = vld [vmem:[%s14474_s11 + $0x26b0] sm:$0xff] }
 0x244   : > { %2647 = vst [vmem:[%s14479_s12 + $0x1160] sm:$0xff] %v2646_v44  ;;  %v2774_v44 = vld [vmem:[%s14474_s11 + $0x26c0] sm:$0xff] }
 0x245   : > { %2649 = vst [vmem:[%s14479_s12 + $0x1168] sm:$0xff] %v2648_v45  ;;  %v2776_v45 = vld [vmem:[%s14474_s11 + $0x26d0] sm:$0xff] }
 0x246   : > { %2651 = vst [vmem:[%s14479_s12 + $0x1170] sm:$0xff] %v2650_v46  ;;  %v2778_v46 = vld [vmem:[%s14474_s11 + $0x26e0] sm:$0xff] }
 0x247   : > { %2653 = vst [vmem:[%s14479_s12 + $0x1178] sm:$0xff] %v2652_v47  ;;  %v2780_v47 = vld [vmem:[%s14474_s11 + $0x26f0] sm:$0xff] }
 0x248   : > { %2655 = vst [vmem:[%s14479_s12 + $0x1180] sm:$0xff] %v2654_v48  ;;  %v2782_v48 = vld [vmem:[%s14474_s11 + $0x2700] sm:$0xff] }
 0x249   : > { %2657 = vst [vmem:[%s14479_s12 + $0x1188] sm:$0xff] %v2656_v49  ;;  %v2784_v49 = vld [vmem:[%s14474_s11 + $0x2710] sm:$0xff] }
 0x24a   : > { %2659 = vst [vmem:[%s14479_s12 + $0x1190] sm:$0xff] %v2658_v50  ;;  %v2786_v50 = vld [vmem:[%s14474_s11 + $0x2720] sm:$0xff] }
 0x24b   : > { %2661 = vst [vmem:[%s14479_s12 + $0x1198] sm:$0xff] %v2660_v51  ;;  %v2788_v51 = vld [vmem:[%s14474_s11 + $0x2730] sm:$0xff] }
 0x24c   : > { %2663 = vst [vmem:[%s14479_s12 + $0x11a0] sm:$0xff] %v2662_v52  ;;  %v2790_v52 = vld [vmem:[%s14474_s11 + $0x2740] sm:$0xff] }
 0x24d   : > { %2665 = vst [vmem:[%s14479_s12 + $0x11a8] sm:$0xff] %v2664_v53  ;;  %v2792_v53 = vld [vmem:[%s14474_s11 + $0x2750] sm:$0xff] }
 0x24e   : > { %2667 = vst [vmem:[%s14479_s12 + $0x11b0] sm:$0xff] %v2666_v54  ;;  %v2794_v54 = vld [vmem:[%s14474_s11 + $0x2760] sm:$0xff] }
 0x24f   : > { %2669 = vst [vmem:[%s14479_s12 + $0x11b8] sm:$0xff] %v2668_v55  ;;  %v2796_v55 = vld [vmem:[%s14474_s11 + $0x2770] sm:$0xff] }
 0x250   : > { %2671 = vst [vmem:[%s14479_s12 + $0x11c0] sm:$0xff] %v2670_v56  ;;  %v2798_v56 = vld [vmem:[%s14474_s11 + $0x2780] sm:$0xff] }
 0x251   : > { %2673 = vst [vmem:[%s14479_s12 + $0x11c8] sm:$0xff] %v2672_v57  ;;  %v2800_v57 = vld [vmem:[%s14474_s11 + $0x2790] sm:$0xff] }
 0x252   : > { %2675 = vst [vmem:[%s14479_s12 + $0x11d0] sm:$0xff] %v2674_v58  ;;  %v2802_v58 = vld [vmem:[%s14474_s11 + $0x27a0] sm:$0xff] }
 0x253   : > { %2677 = vst [vmem:[%s14479_s12 + $0x11d8] sm:$0xff] %v2676_v59  ;;  %v2804_v59 = vld [vmem:[%s14474_s11 + $0x27b0] sm:$0xff] }
 0x254   : > { %2679 = vst [vmem:[%s14479_s12 + $0x11e0] sm:$0xff] %v2678_v60  ;;  %v2806_v60 = vld [vmem:[%s14474_s11 + $0x27c0] sm:$0xff] }
 0x255   : > { %2681 = vst [vmem:[%s14479_s12 + $0x11e8] sm:$0xff] %v2680_v61  ;;  %v2808_v61 = vld [vmem:[%s14474_s11 + $0x27d0] sm:$0xff] }
 0x256   : > { %2683 = vst [vmem:[%s14479_s12 + $0x11f0] sm:$0xff] %v2682_v62  ;;  %v2810_v62 = vld [vmem:[%s14474_s11 + $0x27e0] sm:$0xff] }
 0x257   : > { %2685 = vst [vmem:[%s14479_s12 + $0x11f8] sm:$0xff] %v2684_v63  ;;  %v2812_v63 = vld [vmem:[%s14474_s11 + $0x27f0] sm:$0xff] }
 0x258   : > { %2687 = vst [vmem:[%s14479_s12 + $0x1200] sm:$0xff] %v2686_v0  ;;  %v2814_v0 = vld [vmem:[%s14474_s11 + $0x2800] sm:$0xff] }
 0x259   : > { %2689 = vst [vmem:[%s14479_s12 + $0x1208] sm:$0xff] %v2688_v1  ;;  %v2816_v1 = vld [vmem:[%s14474_s11 + $0x2810] sm:$0xff] }
 0x25a   : > { %2691 = vst [vmem:[%s14479_s12 + $0x1210] sm:$0xff] %v2690_v2  ;;  %v2818_v2 = vld [vmem:[%s14474_s11 + $0x2820] sm:$0xff] }
 0x25b   : > { %2693 = vst [vmem:[%s14479_s12 + $0x1218] sm:$0xff] %v2692_v3  ;;  %v2820_v3 = vld [vmem:[%s14474_s11 + $0x2830] sm:$0xff] }
 0x25c   : > { %2695 = vst [vmem:[%s14479_s12 + $0x1220] sm:$0xff] %v2694_v4  ;;  %v2822_v4 = vld [vmem:[%s14474_s11 + $0x2840] sm:$0xff] }
 0x25d   : > { %2697 = vst [vmem:[%s14479_s12 + $0x1228] sm:$0xff] %v2696_v5  ;;  %v2824_v5 = vld [vmem:[%s14474_s11 + $0x2850] sm:$0xff] }
 0x25e   : > { %2699 = vst [vmem:[%s14479_s12 + $0x1230] sm:$0xff] %v2698_v6  ;;  %v2826_v6 = vld [vmem:[%s14474_s11 + $0x2860] sm:$0xff] }
 0x25f   : > { %2701 = vst [vmem:[%s14479_s12 + $0x1238] sm:$0xff] %v2700_v7  ;;  %v2828_v7 = vld [vmem:[%s14474_s11 + $0x2870] sm:$0xff] }
 0x260   : > { %2703 = vst [vmem:[%s14479_s12 + $0x1240] sm:$0xff] %v2702_v8  ;;  %v2830_v8 = vld [vmem:[%s14474_s11 + $0x2880] sm:$0xff] }
 0x261   : > { %2705 = vst [vmem:[%s14479_s12 + $0x1248] sm:$0xff] %v2704_v9  ;;  %v2832_v9 = vld [vmem:[%s14474_s11 + $0x2890] sm:$0xff] }
 0x262   : > { %2707 = vst [vmem:[%s14479_s12 + $0x1250] sm:$0xff] %v2706_v10  ;;  %v2834_v10 = vld [vmem:[%s14474_s11 + $0x28a0] sm:$0xff] }
 0x263   : > { %2709 = vst [vmem:[%s14479_s12 + $0x1258] sm:$0xff] %v2708_v11  ;;  %v2836_v11 = vld [vmem:[%s14474_s11 + $0x28b0] sm:$0xff] }
 0x264   : > { %2711 = vst [vmem:[%s14479_s12 + $0x1260] sm:$0xff] %v2710_v12  ;;  %v2838_v12 = vld [vmem:[%s14474_s11 + $0x28c0] sm:$0xff] }
 0x265   : > { %2713 = vst [vmem:[%s14479_s12 + $0x1268] sm:$0xff] %v2712_v13  ;;  %v2840_v13 = vld [vmem:[%s14474_s11 + $0x28d0] sm:$0xff] }
 0x266   : > { %2715 = vst [vmem:[%s14479_s12 + $0x1270] sm:$0xff] %v2714_v14  ;;  %v2842_v14 = vld [vmem:[%s14474_s11 + $0x28e0] sm:$0xff] }
 0x267   : > { %2717 = vst [vmem:[%s14479_s12 + $0x1278] sm:$0xff] %v2716_v15  ;;  %v2844_v15 = vld [vmem:[%s14474_s11 + $0x28f0] sm:$0xff] }
 0x268   : > { %2719 = vst [vmem:[%s14479_s12 + $0x1280] sm:$0xff] %v2718_v16 }
 0x269   : > { %2721 = vst [vmem:[%s14479_s12 + $0x1288] sm:$0xff] %v2720_v17 }
 0x26a   : > { %2723 = vst [vmem:[%s14479_s12 + $0x1290] sm:$0xff] %v2722_v18 }
 0x26b   : > { %2725 = vst [vmem:[%s14479_s12 + $0x1298] sm:$0xff] %v2724_v19 }
 0x26c   : > { %2727 = vst [vmem:[%s14479_s12 + $0x12a0] sm:$0xff] %v2726_v20 }
 0x26d   : > { %2729 = vst [vmem:[%s14479_s12 + $0x12a8] sm:$0xff] %v2728_v21 }
 0x26e   : > { %2731 = vst [vmem:[%s14479_s12 + $0x12b0] sm:$0xff] %v2730_v22 }
 0x26f   : > { %2733 = vst [vmem:[%s14479_s12 + $0x12b8] sm:$0xff] %v2732_v23 }
 0x270   : > { %2735 = vst [vmem:[%s14479_s12 + $0x12c0] sm:$0xff] %v2734_v24 }
 0x271   : > { %2737 = vst [vmem:[%s14479_s12 + $0x12c8] sm:$0xff] %v2736_v25 }
 0x272   : > { %2739 = vst [vmem:[%s14479_s12 + $0x12d0] sm:$0xff] %v2738_v26 }
 0x273   : > { %2741 = vst [vmem:[%s14479_s12 + $0x12d8] sm:$0xff] %v2740_v27 }
 0x274   : > { %2743 = vst [vmem:[%s14479_s12 + $0x12e0] sm:$0xff] %v2742_v28 }
 0x275   : > { %2745 = vst [vmem:[%s14479_s12 + $0x12e8] sm:$0xff] %v2744_v29 }
 0x276   : > { %2747 = vst [vmem:[%s14479_s12 + $0x12f0] sm:$0xff] %v2746_v30 }
 0x277   : > { %2749 = vst [vmem:[%s14479_s12 + $0x12f8] sm:$0xff] %v2748_v31 }
 0x278   : > { %2751 = vst [vmem:[%s14479_s12 + $0x1300] sm:$0xff] %v2750_v32 }
 0x279   : > { %2753 = vst [vmem:[%s14479_s12 + $0x1308] sm:$0xff] %v2752_v33 }
 0x27a   : > { %2755 = vst [vmem:[%s14479_s12 + $0x1310] sm:$0xff] %v2754_v34 }
 0x27b   : > { %2757 = vst [vmem:[%s14479_s12 + $0x1318] sm:$0xff] %v2756_v35 }
 0x27c   : > { %2759 = vst [vmem:[%s14479_s12 + $0x1320] sm:$0xff] %v2758_v36 }
 0x27d   : > { %2761 = vst [vmem:[%s14479_s12 + $0x1328] sm:$0xff] %v2760_v37 }
 0x27e   : > { %2763 = vst [vmem:[%s14479_s12 + $0x1330] sm:$0xff] %v2762_v38 }
 0x27f   : > { %2765 = vst [vmem:[%s14479_s12 + $0x1338] sm:$0xff] %v2764_v39 }
 0x280   : > { %2767 = vst [vmem:[%s14479_s12 + $0x1340] sm:$0xff] %v2766_v40 }
 0x281   : > { %2769 = vst [vmem:[%s14479_s12 + $0x1348] sm:$0xff] %v2768_v41 }
 0x282   : > { %2771 = vst [vmem:[%s14479_s12 + $0x1350] sm:$0xff] %v2770_v42 }
 0x283   : > { %2773 = vst [vmem:[%s14479_s12 + $0x1358] sm:$0xff] %v2772_v43 }
 0x284   : > { %2775 = vst [vmem:[%s14479_s12 + $0x1360] sm:$0xff] %v2774_v44 }
 0x285   : > { %2777 = vst [vmem:[%s14479_s12 + $0x1368] sm:$0xff] %v2776_v45 }
 0x286   : > { %2779 = vst [vmem:[%s14479_s12 + $0x1370] sm:$0xff] %v2778_v46 }
 0x287   : > { %2781 = vst [vmem:[%s14479_s12 + $0x1378] sm:$0xff] %v2780_v47 }
 0x288   : > { %2783 = vst [vmem:[%s14479_s12 + $0x1380] sm:$0xff] %v2782_v48 }
 0x289   : > { %2785 = vst [vmem:[%s14479_s12 + $0x1388] sm:$0xff] %v2784_v49 }
 0x28a   : > { %2787 = vst [vmem:[%s14479_s12 + $0x1390] sm:$0xff] %v2786_v50 }
 0x28b   : > { %2789 = vst [vmem:[%s14479_s12 + $0x1398] sm:$0xff] %v2788_v51 }
 0x28c   : > { %2791 = vst [vmem:[%s14479_s12 + $0x13a0] sm:$0xff] %v2790_v52 }
 0x28d   : > { %2793 = vst [vmem:[%s14479_s12 + $0x13a8] sm:$0xff] %v2792_v53 }
 0x28e   : > { %2795 = vst [vmem:[%s14479_s12 + $0x13b0] sm:$0xff] %v2794_v54 }
 0x28f   : > { %2797 = vst [vmem:[%s14479_s12 + $0x13b8] sm:$0xff] %v2796_v55 }
 0x290   : > { %2799 = vst [vmem:[%s14479_s12 + $0x13c0] sm:$0xff] %v2798_v56 }
 0x291   : > { %2801 = vst [vmem:[%s14479_s12 + $0x13c8] sm:$0xff] %v2800_v57 }
 0x292   : > { %2803 = vst [vmem:[%s14479_s12 + $0x13d0] sm:$0xff] %v2802_v58 }
 0x293   : > { %2805 = vst [vmem:[%s14479_s12 + $0x13d8] sm:$0xff] %v2804_v59 }
 0x294   : > { %2807 = vst [vmem:[%s14479_s12 + $0x13e0] sm:$0xff] %v2806_v60 }
 0x295   : > { %2809 = vst [vmem:[%s14479_s12 + $0x13e8] sm:$0xff] %v2808_v61 }
 0x296   : > { %2811 = vst [vmem:[%s14479_s12 + $0x13f0] sm:$0xff] %v2810_v62 }
 0x297   : > { %2813 = vst [vmem:[%s14479_s12 + $0x13f8] sm:$0xff] %v2812_v63 }
 0x298   : > { %2815 = vst [vmem:[%s14479_s12 + $0x1400] sm:$0xff] %v2814_v0 }
 0x299   : > { %2817 = vst [vmem:[%s14479_s12 + $0x1408] sm:$0xff] %v2816_v1 }
 0x29a   : > { %2819 = vst [vmem:[%s14479_s12 + $0x1410] sm:$0xff] %v2818_v2 }
 0x29b   : > { %2821 = vst [vmem:[%s14479_s12 + $0x1418] sm:$0xff] %v2820_v3 }
 0x29c   : > { %2823 = vst [vmem:[%s14479_s12 + $0x1420] sm:$0xff] %v2822_v4 }
 0x29d   : > { %2825 = vst [vmem:[%s14479_s12 + $0x1428] sm:$0xff] %v2824_v5 }
 0x29e   : > { %2827 = vst [vmem:[%s14479_s12 + $0x1430] sm:$0xff] %v2826_v6 }
 0x29f   : > { %2829 = vst [vmem:[%s14479_s12 + $0x1438] sm:$0xff] %v2828_v7 }
 0x2a0   : > { %2831 = vst [vmem:[%s14479_s12 + $0x1440] sm:$0xff] %v2830_v8 }
 0x2a1   : > { %2833 = vst [vmem:[%s14479_s12 + $0x1448] sm:$0xff] %v2832_v9 }
 0x2a2   : > { %2835 = vst [vmem:[%s14479_s12 + $0x1450] sm:$0xff] %v2834_v10 }
 0x2a3   : > { %2837 = vst [vmem:[%s14479_s12 + $0x1458] sm:$0xff] %v2836_v11 }
 0x2a4   : > { %2839 = vst [vmem:[%s14479_s12 + $0x1460] sm:$0xff] %v2838_v12 }
 0x2a5   : > { %2841 = vst [vmem:[%s14479_s12 + $0x1468] sm:$0xff] %v2840_v13 }
 0x2a6   : > { %2843 = vst [vmem:[%s14479_s12 + $0x1470] sm:$0xff] %v2842_v14 }
 0x2a7   : > { %2845 = vst [vmem:[%s14479_s12 + $0x1478] sm:$0xff] %v2844_v15 }
 0x2a8 PF: > { %p10982_p7 = scmp.ge.s32.totalorder %s14386_s21, 1  ;;  %p5526_p8 = scmp.lt.s32.totalorder %s14386_s21, 9 }
 0x2aa   : > { %p5527_p9 = pnand %p10982_p7, %p5526_p8 }
 0x2ac   : > { %5530 = sbr.rel (%p5527_p9) target bundleno = 1680 (0x690), region = 84 }
 0x2b1   : > { %s5533_s13 = sand.u32 1, %s14362_s15   ;;  %s5571_s14 = smul.u32 41, %s14370_s17 }
 0x2b2   : > { %s14274_s24 = smul.u32 5248, %s5533_s13  ;;  %s10984_s25 = sshll.u32 %s14374_s18, 1 }
 0x2b3   : > { %p5572_p10 = scmp.lt.s32.totalorder %s5571_s14, 163  ;;  %p5580_p11 = scmp.lt.s32.totalorder %s10984_s25, 3 }
 0x2b4   : > { %s10985_s26 = sshll.u32 %s14374_s18, 5  ;;  %p5590_p13 = scmp.lt.s32.totalorder %s14374_s18, 1 }
 0x2b5   : > { %s17484_s14 = smov (!%p5572_p10, %s5571_s14), 163  ;;  %s17486_s25 = smov (!%p5580_p11, %s10984_s25), 3 }
 0x2b6   : > { %s10983_s27 = sshll.u32 %s17484_s14, 1  ;;  %p5585_p12 = scmp.lt.s32.totalorder %s10985_s26, 63 }
 0x2b7   : > { %s15801_s5 = scalar_lea.vmem %s17448_s0, %s10983_s27  ;;  %s5582_s7 = scalar_lea.vmem %s17450_s2, %s17486_s25 }
 0x2b8   : > { %s17488_s26 = smov (!%p5585_p12, %s10985_s26), 63  ;;  %s17490_s18 = smov (!%p5590_p13, %s14374_s18), 1 }
 0x2b9   : > { %s10986_s8 = sshll.u32 %s17488_s26, 3  ;;  %s10987_s12 = sshll.u32 %s17490_s18, 1 }
 0x2ba   : > { %s15811_s11 = scalar_lea.vmem %s17451_s3, %s10986_s8  ;;  %s15817_s29 = scalar_lea.vmem %s17452_s4, %s10987_s12 }
 0x2bb   : > { %s15819_s27 = scalar_lea.vmem [#allocation3], %s14274_s24  ;;  %p10988_p0 = scmp.ne.s32.totalorder %s14370_s17, 0 }
 0x2bd   : > { %5597 = sbr.rel (%p10988_p0) target bundleno = 708 (0x2c4), region = 92 }
 0x2c2   : > { %v14388_v16 = vmov 0.0  }
 0x2c3   : > { %5598 = vst [vmem:[#allocation2] sm:$0xf] %v14388_v16 }
 0x2c4 PF: > { %v11047_v17 = vld [vmem:[%s15819_s27 + $0x70] sm:$0xf]  ;;  %v13632_v18 = vld [vmem:[%s15819_s27 + $0x74] sm:$0xf0]  ;;  %v11039_v28 = vld [vmem:[%s15819_s27 + $0x60] sm:$0xf] }
 0x2c5   : > { %v11111_v19 = vld [vmem:[%s15819_s27 + $0xf0] sm:$0xf]  ;;  %v11048_v20 = vor.u32 %v13632_v18, %v11047_v17  ;;  %v13648_v21 = vld [vmem:[%s15819_s27 + $0xf4] sm:$0xf0]  ;;  %v13630_v30 = vld [vmem:[%s15819_s27 + $0x64] sm:$0xf0] }
 0x2c6   : > { %v11175_v22 = vld [vmem:[%s15819_s27 + $0x170] sm:$0xf]  ;;  %v13664_v23 = vld [vmem:[%s15819_s27 + $0x174] sm:$0xf0]  ;;  %v11112_v24 = vor.u32 %v13648_v21, %v11111_v19  ;;  %v11103_v31 = vld [vmem:[%s15819_s27 + $0xe0] sm:$0xf]  ;;  %v11040_v33 = vor.u32 %v13630_v30, %v11039_v28 }
 0x2c7   : > { %v11176_v25 = vor.u32 %v13664_v23, %v11175_v22  ;;  %v11239_v26 = vld [vmem:[%s15819_s27 + $0x1f0] sm:$0xf]  ;;  %v13680_v27 = vld [vmem:[%s15819_s27 + $0x1f4] sm:$0xf0]  ;;  %9693 = vmatpush.bf16.msra.mxu0 %v11048_v20  ;;  %v13646_v32 = vld [vmem:[%s15819_s27 + $0xe4] sm:$0xf0] }
 0x2c8   : > { %v11240_v29 = vor.u32 %v13680_v27, %v11239_v26  ;;  %9706 = vmatpush.bf16.msra.mxu1 %v11112_v24  ;;  %v11104_v34 = vor.u32 %v13646_v32, %v11103_v31  ;;  %v11167_v35 = vld [vmem:[%s15819_s27 + $0x160] sm:$0xf]  ;;  %v13662_v36 = vld [vmem:[%s15819_s27 + $0x164] sm:$0xf0]  ;;  %v11031_v40 = vld [vmem:[%s15819_s27 + $0x50] sm:$0xf] }
 0x2c9   : > { %9719 = vmatpush.bf16.msra.mxu2 %v11176_v25  ;;  %v11231_v37 = vld [vmem:[%s15819_s27 + $0x1e0] sm:$0xf]  ;;  %v11168_v38 = vor.u32 %v13662_v36, %v11167_v35  ;;  %v13678_v39 = vld [vmem:[%s15819_s27 + $0x1e4] sm:$0xf0]  ;;  %v13628_v41 = vld [vmem:[%s15819_s27 + $0x54] sm:$0xf0] }
 0x2ca   : > { %9732 = vmatpush.bf16.msra.mxu3 %v11240_v29  ;;  %v11232_v42 = vor.u32 %v13678_v39, %v11231_v37  ;;  %v11095_v43 = vld [vmem:[%s15819_s27 + $0xd0] sm:$0xf]  ;;  %v13644_v44 = vld [vmem:[%s15819_s27 + $0xd4] sm:$0xf0]  ;;  %v11032_v46 = vor.u32 %v13628_v41, %v11031_v40  ;;  %v11023_v52 = vld [vmem:[%s15819_s27 + $0x40] sm:$0xf] }
 0x2cb   : > { %v11159_v45 = vld [vmem:[%s15819_s27 + $0x150] sm:$0xf]  ;;  %9694 = vmatpush.bf16.msra.mxu0 %v11040_v33  ;;  %v13660_v47 = vld [vmem:[%s15819_s27 + $0x154] sm:$0xf0]  ;;  %v11096_v50 = vor.u32 %v13644_v44, %v11095_v43  ;;  %v13626_v53 = vld [vmem:[%s15819_s27 + $0x44] sm:$0xf0] }
 0x2cc   : > { %v11223_v48 = vld [vmem:[%s15819_s27 + $0x1d0] sm:$0xf]  ;;  %v13676_v49 = vld [vmem:[%s15819_s27 + $0x1d4] sm:$0xf0]  ;;  %9707 = vmatpush.bf16.msra.mxu1 %v11104_v34  ;;  %v11160_v51 = vor.u32 %v13660_v47, %v11159_v45  ;;  %v11087_v54 = vld [vmem:[%s15819_s27 + $0xc0] sm:$0xf]  ;;  %v11024_v61 = vor.u32 %v13626_v53, %v11023_v52 }
 0x2cd   : > { %9720 = vmatpush.bf16.msra.mxu2 %v11168_v38  ;;  %v11224_v55 = vor.u32 %v13676_v49, %v11223_v48  ;;  %v13642_v56 = vld [vmem:[%s15819_s27 + $0xc4] sm:$0xf0]  ;;  %v11151_v57 = vld [vmem:[%s15819_s27 + $0x140] sm:$0xf]  ;;  %v11015_v0 = vld [vmem:[%s15819_s27 + $0x30] sm:$0xf] }
 0x2ce   : > { %9733 = vmatpush.bf16.msra.mxu3 %v11232_v42  ;;  %v13658_v58 = vld [vmem:[%s15819_s27 + $0x144] sm:$0xf0]  ;;  %v11215_v59 = vld [vmem:[%s15819_s27 + $0x1c0] sm:$0xf]  ;;  %v11088_v62 = vor.u32 %v13642_v56, %v11087_v54  ;;  %v13624_v1 = vld [vmem:[%s15819_s27 + $0x34] sm:$0xf0] }
 0x2cf   : > { %v13674_v60 = vld [vmem:[%s15819_s27 + $0x1c4] sm:$0xf0]  ;;  %9695 = vmatpush.bf16.msra.mxu0 %v11032_v46  ;;  %v11152_v63 = vor.u32 %v13658_v58, %v11151_v57  ;;  %v11079_v2 = vld [vmem:[%s15819_s27 + $0xb0] sm:$0xf]  ;;  %v13640_v4 = vld [vmem:[%s15819_s27 + $0xb4] sm:$0xf0]  ;;  %v11016_v9 = vor.u32 %v13624_v1, %v11015_v0 }
 0x2d0   : > { %9708 = vmatpush.bf16.msra.mxu1 %v11096_v50  ;;  %v11216_v3 = vor.u32 %v13674_v60, %v11215_v59  ;;  %v11143_v5 = vld [vmem:[%s15819_s27 + $0x130] sm:$0xf]  ;;  %v13656_v6 = vld [vmem:[%s15819_s27 + $0x134] sm:$0xf0]  ;;  %v11080_v10 = vor.u32 %v13640_v4, %v11079_v2  ;;  %v11007_v12 = vld [vmem:[%s15819_s27 + $0x20] sm:$0xf] }
 0x2d1   : > { %9721 = vmatpush.bf16.msra.mxu2 %v11160_v51  ;;  %v11207_v7 = vld [vmem:[%s15819_s27 + $0x1b0] sm:$0xf]  ;;  %v13672_v8 = vld [vmem:[%s15819_s27 + $0x1b4] sm:$0xf0]  ;;  %v11144_v11 = vor.u32 %v13656_v6, %v11143_v5  ;;  %v13622_v13 = vld [vmem:[%s15819_s27 + $0x24] sm:$0xf0] }
 0x2d2   : > { %9734 = vmatpush.bf16.msra.mxu3 %v11224_v55  ;;  %v11071_v14 = vld [vmem:[%s15819_s27 + $0xa0] sm:$0xf]  ;;  %v11208_v15 = vor.u32 %v13672_v8, %v11207_v7  ;;  %v13638_v16 = vld [vmem:[%s15819_s27 + $0xa4] sm:$0xf0]  ;;  %v11008_v21 = vor.u32 %v13622_v13, %v11007_v12  ;;  %v10999_v24 = vld [vmem:[%s15819_s27 + $0x10] sm:$0xf] }
 0x2d3   : > { %9696 = vmatpush.bf16.msra.mxu0 %v11024_v61  ;;  %v11135_v17 = vld [vmem:[%s15819_s27 + $0x120] sm:$0xf]  ;;  %v13654_v18 = vld [vmem:[%s15819_s27 + $0x124] sm:$0xf0]  ;;  %v11072_v22 = vor.u32 %v13638_v16, %v11071_v14  ;;  %v13620_v25 = vld [vmem:[%s15819_s27 + $0x14] sm:$0xf0] }
 0x2d4   : > { %9709 = vmatpush.bf16.msra.mxu1 %v11088_v62  ;;  %v11199_v19 = vld [vmem:[%s15819_s27 + $0x1a0] sm:$0xf]  ;;  %v13670_v20 = vld [vmem:[%s15819_s27 + $0x1a4] sm:$0xf0]  ;;  %v11136_v23 = vor.u32 %v13654_v18, %v11135_v17  ;;  %v11063_v26 = vld [vmem:[%s15819_s27 + $0x90] sm:$0xf]  ;;  %v11000_v33 = vor.u32 %v13620_v25, %v10999_v24 }
 0x2d5   : > { %9722 = vmatpush.bf16.msra.mxu2 %v11152_v63  ;;  %v11200_v27 = vor.u32 %v13670_v20, %v11199_v19  ;;  %v13636_v28 = vld [vmem:[%s15819_s27 + $0x94] sm:$0xf0]  ;;  %v11127_v29 = vld [vmem:[%s15819_s27 + $0x110] sm:$0xf]  ;;  %v10991_v34 = vld [vmem:[%s15819_s27] sm:$0xf] }
 0x2d6   : > { %9735 = vmatpush.bf16.msra.mxu3 %v11216_v3  ;;  %v13652_v30 = vld [vmem:[%s15819_s27 + $0x114] sm:$0xf0]  ;;  %v11191_v31 = vld [vmem:[%s15819_s27 + $0x190] sm:$0xf]  ;;  %v13618_v35 = vld [vmem:[%s15819_s27 + $0x4] sm:$0xf0]  ;;  %v11064_v36 = vor.u32 %v13636_v28, %v11063_v26 }
 0x2d7   : > { %9697 = vmatpush.bf16.msra.mxu0 %v11016_v9  ;;  %v13668_v32 = vld [vmem:[%s15819_s27 + $0x194] sm:$0xf0]  ;;  %v11128_v37 = vor.u32 %v13652_v30, %v11127_v29  ;;  %v11055_v38 = vld [vmem:[%s15819_s27 + $0x80] sm:$0xf]  ;;  %v13634_v39 = vld [vmem:[%s15819_s27 + $0x84] sm:$0xf0]  ;;  %v10992_v48 = vor.u32 %v13618_v35, %v10991_v34 }
 0x2d8   : > { %9710 = vmatpush.bf16.msra.mxu1 %v11080_v10  ;;  %v11119_v40 = vld [vmem:[%s15819_s27 + $0x100] sm:$0xf]  ;;  %v11192_v41 = vor.u32 %v13668_v32, %v11191_v31  ;;  %v13650_v42 = vld [vmem:[%s15819_s27 + $0x104] sm:$0xf0]  ;;  %v11303_v43 = vld [vmem:[%s15819_s27 + $0x270] sm:$0xf]  ;;  %v11056_v52 = vor.u32 %v13634_v39, %v11055_v38 }
 0x2d9   : > { %9723 = vmatpush.bf16.msra.mxu2 %v11144_v11  ;;  %v13696_v44 = vld [vmem:[%s15819_s27 + $0x274] sm:$0xf0]  ;;  %v11367_v45 = vld [vmem:[%s15819_s27 + $0x2f0] sm:$0xf]  ;;  %v11183_v50 = vld [vmem:[%s15819_s27 + $0x180] sm:$0xf]  ;;  %v11120_v53 = vor.u32 %v13650_v42, %v11119_v40 }
 0x2da   : > { %9736 = vmatpush.bf16.msra.mxu3 %v11208_v15  ;;  %v13712_v46 = vld [vmem:[%s15819_s27 + $0x2f4] sm:$0xf0]  ;;  %v11431_v47 = vld [vmem:[%s15819_s27 + $0x370] sm:$0xf]  ;;  %v13666_v51 = vld [vmem:[%s15819_s27 + $0x184] sm:$0xf0]  ;;  %v11304_v56 = vor.u32 %v13696_v44, %v11303_v43 }
 0x2db   : > { %9698 = vmatpush.bf16.msra.mxu0 %v11008_v21  ;;  %v13728_v49 = vld [vmem:[%s15819_s27 + $0x374] sm:$0xf0]  ;;  %v11495_v54 = vld [vmem:[%s15819_s27 + $0x3f0] sm:$0xf]  ;;  %v11368_v57 = vor.u32 %v13712_v46, %v11367_v45  ;;  %v11295_v58 = vld [vmem:[%s15819_s27 + $0x260] sm:$0xf]  ;;  %v11184_v60 = vor.u32 %v13666_v51, %v11183_v50 }
 0x2dc   : > { %9711 = vmatpush.bf16.msra.mxu1 %v11072_v22  ;;  %v13744_v55 = vld [vmem:[%s15819_s27 + $0x3f4] sm:$0xf0]  ;;  %v11432_v59 = vor.u32 %v13728_v49, %v11431_v47  ;;  %v13694_v61 = vld [vmem:[%s15819_s27 + $0x264] sm:$0xf0]  ;;  %v11359_v62 = vld [vmem:[%s15819_s27 + $0x2e0] sm:$0xf] }
 0x2dd   : > { %9724 = vmatpush.bf16.msra.mxu2 %v11136_v23  ;;  %v13710_v63 = vld [vmem:[%s15819_s27 + $0x2e4] sm:$0xf0]  ;;  %v11496_v0 = vor.u32 %v13744_v55, %v11495_v54  ;;  %v11423_v1 = vld [vmem:[%s15819_s27 + $0x360] sm:$0xf]  ;;  %v11296_v5 = vor.u32 %v13694_v61, %v11295_v58  ;;  %v11287_v7 = vld [vmem:[%s15819_s27 + $0x250] sm:$0xf] }
 0x2de   : > { %9737 = vmatpush.bf16.msra.mxu3 %v11200_v27  ;;  %v13726_v2 = vld [vmem:[%s15819_s27 + $0x364] sm:$0xf0]  ;;  %v11487_v3 = vld [vmem:[%s15819_s27 + $0x3e0] sm:$0xf]  ;;  %v11360_v6 = vor.u32 %v13710_v63, %v11359_v62  ;;  %v13692_v8 = vld [vmem:[%s15819_s27 + $0x254] sm:$0xf0] }
 0x2df   : > { %9699 = vmatpush.bf16.msra.mxu0 %v11000_v33  ;;  %v13742_v4 = vld [vmem:[%s15819_s27 + $0x3e4] sm:$0xf0]  ;;  %v11424_v9 = vor.u32 %v13726_v2, %v11423_v1  ;;  %v11351_v10 = vld [vmem:[%s15819_s27 + $0x2d0] sm:$0xf]  ;;  %v13708_v11 = vld [vmem:[%s15819_s27 + $0x2d4] sm:$0xf0]  ;;  %v11288_v18 = vor.u32 %v13692_v8, %v11287_v7 }
 0x2e0   : > { %9712 = vmatpush.bf16.msra.mxu1 %v11064_v36  ;;  %v5600_v12 = vld [vmem:[%s15801_s5] sm:$0xff]  ;;  %v11488_v13 = vor.u32 %v13742_v4, %v11487_v3  ;;  %v11415_v14 = vld [vmem:[%s15819_s27 + $0x350] sm:$0xf]  ;;  %v11352_v19 = vor.u32 %v13708_v11, %v11351_v10  ;;  %v11279_v20 = vld [vmem:[%s15819_s27 + $0x240] sm:$0xf]  ;;  %vm10762_vm0 = vcmask 1041408  }
 0x2e1   : > { %9725 = vmatpush.bf16.msra.mxu2 %v11128_v37  ;;  %v13724_v15 = vld [vmem:[%s15819_s27 + $0x354] sm:$0xf0]  ;;  %5622 = vst [vmem:[#allocation1] ss:$4 sm:$0xff] %v5600_v12  ;;  %v11479_v16 = vld [vmem:[%s15819_s27 + $0x3d0] sm:$0xf] }
 0x2e2   : > { %9738 = vmatpush.bf16.msra.mxu3 %v11192_v41  ;;  %v13740_v17 = vld [vmem:[%s15819_s27 + $0x3d4] sm:$0xf0]  ;;  %v13690_v21 = vld [vmem:[%s15819_s27 + $0x244] sm:$0xf0]  ;;  %v11416_v22 = vor.u32 %v13724_v15, %v11415_v14  ;;  %v11343_v23 = vld [vmem:[%s15819_s27 + $0x2c0] sm:$0xf] }
 0x2e3   : > { %9700 = vmatpush.bf16.msra.mxu0 %v10992_v48  ;;  %v13706_v24 = vld [vmem:[%s15819_s27 + $0x2c4] sm:$0xf0]  ;;  %v11407_v25 = vld [vmem:[%s15819_s27 + $0x340] sm:$0xf]  ;;  %v11480_v26 = vor.u32 %v13740_v17, %v11479_v16  ;;  %v11271_v30 = vld [vmem:[%s15819_s27 + $0x230] sm:$0xf]  ;;  %v11280_v34 = vor.u32 %v13690_v21, %v11279_v20 }
 0x2e4   : > { %9713 = vmatpush.bf16.msra.mxu1 %v11056_v52  ;;  %v13722_v27 = vld [vmem:[%s15819_s27 + $0x344] sm:$0xf0]  ;;  %v11471_v28 = vld [vmem:[%s15819_s27 + $0x3c0] sm:$0xf]  ;;  %v13688_v31 = vld [vmem:[%s15819_s27 + $0x234] sm:$0xf0]  ;;  %v11344_v35 = vor.u32 %v13706_v24, %v11343_v23 }
 0x2e5   : > { %9726 = vmatpush.bf16.msra.mxu2 %v11120_v53  ;;  %v13738_v29 = vld [vmem:[%s15819_s27 + $0x3c4] sm:$0xf0]  ;;  %v11335_v32 = vld [vmem:[%s15819_s27 + $0x2b0] sm:$0xf]  ;;  %v13704_v33 = vld [vmem:[%s15819_s27 + $0x2b4] sm:$0xf0]  ;;  %v11408_v39 = vor.u32 %v13722_v27, %v11407_v25  ;;  %v11272_v51 = vor.u32 %v13688_v31, %v11271_v30 }
 0x2e6   : > { %9739 = vmatpush.bf16.msra.mxu3 %v11184_v60  ;;  %v11399_v36 = vld [vmem:[%s15819_s27 + $0x330] sm:$0xf]  ;;  %v13720_v37 = vld [vmem:[%s15819_s27 + $0x334] sm:$0xf0]  ;;  %v5602_v38 = vld [vmem:[%s15801_s5 + $0x10] sm:$0xff]  ;;  %v11472_v42 = vor.u32 %v13738_v29, %v11471_v28  ;;  %v11336_v52 = vor.u32 %v13704_v33, %v11335_v32  ;;  %p13613_p1 = scmp.ne.s32.totalorder %s14370_s17, 3 }
 0x2e7   : > { %9745 = vmatpush.bf16.msrb.mxu0 %v11304_v56  ;;  %v11463_v47 = vld [vmem:[%s15819_s27 + $0x3b0] sm:$0xf]  ;;  %v13736_v48 = vld [vmem:[%s15819_s27 + $0x3b4] sm:$0xf0]  ;;  %v11263_v53 = vld [vmem:[%s15819_s27 + $0x220] sm:$0xf]  ;;  %v11400_v54 = vor.u32 %v13720_v37, %v11399_v36 }
 0x2e8   : > { %9758 = vmatpush.bf16.msrb.mxu1 %v11368_v57  ;;  %v5627_v40 = vld.sshfl [vmem:[#allocation1 + $0x10] sm:$0xff pattern:$0x73625140]  ;;  %v5625_v41 = vld.sshfl [vmem:[#allocation1] sm:$0xff pattern:$0x73625140]  ;;  %v11464_v58 = vor.u32 %v13736_v48, %v11463_v47 }
 0x2e9   : > { %9771 = vmatpush.bf16.msrb.mxu2 %v11432_v59  ;;  %v15926_v43 = vpack.c.bf16 %v5627_v40, %v5627_v40  ;;  %v15928_v44 = vpack.c.bf16 %v5625_v41, %v5625_v41  ;;  %v5628_v45 = vld.sshfl [vmem:[#allocation1 + $0x18] sm:$0xff pattern:$0x73625140]  ;;  %v5626_v46 = vld.sshfl [vmem:[#allocation1 + $0x8] sm:$0xff pattern:$0x73625140] }
 0x2ea   : > { %9784 = vmatpush.bf16.msrb.mxu3 %v11496_v0  ;;  %v15932_v49 = vpack.c.bf16 %v5628_v45, %v5628_v45  ;;  %5633 = vst [vmem:[#allocation1] ss:$4 sm:$0xff] %v5602_v38  ;;  %v15934_v50 = vpack.c.bf16 %v5626_v46, %v5626_v46  ;;  %v13686_v55 = vld [vmem:[%s15819_s27 + $0x224] sm:$0xf0]  ;;  %v11327_v56 = vld [vmem:[%s15819_s27 + $0x2a0] sm:$0xf] }
 0x2eb   : > { %9746 = vmatpush.bf16.msrb.mxu0 %v11296_v5  ;;  %v13702_v57 = vld [vmem:[%s15819_s27 + $0x2a4] sm:$0xf0]  ;;  %9727 = vmatmul.bf16.vlgmr.msra.gmra.mxu2 %v15926_v43  ;;  %v11391_v59 = vld [vmem:[%s15819_s27 + $0x320] sm:$0xf]  ;;  %v11264_v0 = vor.u32 %v13686_v55, %v11263_v53  ;;  %v11255_v2 = vld [vmem:[%s15819_s27 + $0x210] sm:$0xf] }
 0x2ec   : > { %9759 = vmatpush.bf16.msrb.mxu1 %v11360_v6  ;;  %9701 = vmatmul.bf16.vlgmr.msra.gmra.mxu0 %v15928_v44  ;;  %v13718_v60 = vld [vmem:[%s15819_s27 + $0x324] sm:$0xf0]  ;;  %v11455_v61 = vld [vmem:[%s15819_s27 + $0x3a0] sm:$0xf]  ;;  %v11328_v1 = vor.u32 %v13702_v57, %v11327_v56  ;;  %v13684_v3 = vld [vmem:[%s15819_s27 + $0x214] sm:$0xf0] }
 0x2ed   : > { %9772 = vmatpush.bf16.msrb.mxu2 %v11424_v9  ;;  %9740 = vmatmul.bf16.vlgmr.msra.gmra.mxu3 %v15932_v49  ;;  %v13734_v62 = vld [vmem:[%s15819_s27 + $0x3a4] sm:$0xf0]  ;;  %v5601_v63 = vld [vmem:[%s15801_s5 + $0x8] sm:$0xff]  ;;  %v11392_v4 = vor.u32 %v13718_v60, %v11391_v59  ;;  %v11319_v5 = vld [vmem:[%s15819_s27 + $0x290] sm:$0xf]  ;;  %v11256_v16 = vor.u32 %v13684_v3, %v11255_v2 }
 0x2ee   : > { %9785 = vmatpush.bf16.msrb.mxu3 %v11488_v13  ;;  %9714 = vmatmul.bf16.vlgmr.msra.gmra.mxu1 %v15934_v50  ;;  %5624 = vst [vmem:[#allocation1 + $0x20] ss:$4 sm:$0xff] %v5601_v63  ;;  %v13700_v6 = vld [vmem:[%s15819_s27 + $0x294] sm:$0xf0]  ;;  %v11383_v7 = vld [vmem:[%s15819_s27 + $0x310] sm:$0xf]  ;;  %v11456_v8 = vor.u32 %v13734_v62, %v11455_v61 }
 0x2ef   : > { %9747 = vmatpush.bf16.msrb.mxu0 %v11288_v18  ;;  %v13716_v9 = vld [vmem:[%s15819_s27 + $0x314] sm:$0xf0]  ;;  %v11447_v10 = vld [vmem:[%s15819_s27 + $0x390] sm:$0xf]  ;;  %v11247_v12 = vld [vmem:[%s15819_s27 + $0x200] sm:$0xf]  ;;  %v11320_v17 = vor.u32 %v13700_v6, %v11319_v5 }
 0x2f0   : > { %9760 = vmatpush.bf16.msrb.mxu1 %v11352_v19  ;;  %v13732_v11 = vld [vmem:[%s15819_s27 + $0x394] sm:$0xf0]  ;;  %v13682_v13 = vld [vmem:[%s15819_s27 + $0x204] sm:$0xf0]  ;;  %v11311_v14 = vld [vmem:[%s15819_s27 + $0x280] sm:$0xf] }
 0x2f1   : > { %9773 = vmatpush.bf16.msrb.mxu2 %v11416_v22  ;;  %v13698_v15 = vld [vmem:[%s15819_s27 + $0x284] sm:$0xf0]  ;;  %v11375_v18 = vld [vmem:[%s15819_s27 + $0x300] sm:$0xf]  ;;  %v11559_v20 = vld [vmem:[%s15819_s27 + $0x470] sm:$0xf]  ;;  %v11384_v22 = vor.u32 %v13716_v9, %v11383_v7  ;;  %v11448_v27 = vor.u32 %v13732_v11, %v11447_v10  ;;  %v11248_v33 = vor.u32 %v13682_v13, %v11247_v12 }
 0x2f2   : > { %9786 = vmatpush.bf16.msrb.mxu3 %v11480_v26  ;;  %v13714_v19 = vld [vmem:[%s15819_s27 + $0x304] sm:$0xf0]  ;;  %v13760_v21 = vld [vmem:[%s15819_s27 + $0x474] sm:$0xf0]  ;;  %v11623_v23 = vld [vmem:[%s15819_s27 + $0x4f0] sm:$0xf] }
 0x2f3   : > { %9748 = vmatpush.bf16.msrb.mxu0 %v11280_v34  ;;  %v13776_v24 = vld [vmem:[%s15819_s27 + $0x4f4] sm:$0xf0]  ;;  %v11687_v25 = vld [vmem:[%s15819_s27 + $0x570] sm:$0xf]  ;;  %v11439_v28 = vld [vmem:[%s15819_s27 + $0x380] sm:$0xf]  ;;  %v11312_v34 = vor.u32 %v13698_v15, %v11311_v14  ;;  %v11376_v37 = vor.u32 %v13714_v19, %v11375_v18  ;;  %v11560_v38 = vor.u32 %v13760_v21, %v11559_v20 }
 0x2f4   : > { %9761 = vmatpush.bf16.msrb.mxu1 %v11344_v35  ;;  %v13792_v26 = vld [vmem:[%s15819_s27 + $0x574] sm:$0xf0]  ;;  %v13730_v29 = vld [vmem:[%s15819_s27 + $0x384] sm:$0xf0]  ;;  %v5603_v30 = vld [vmem:[%s15801_s5 + $0x18] sm:$0xff]  ;;  %v11624_v41 = vor.u32 %v13776_v24, %v11623_v23 }
 0x2f5   : > { %9774 = vmatpush.bf16.msrb.mxu2 %v11408_v39  ;;  %v5631_v31 = vld.sshfl [vmem:[#allocation1 + $0x30] sm:$0xff pattern:$0x73625140]  ;;  %v5629_v32 = vld.sshfl [vmem:[#allocation1 + $0x20] sm:$0xff pattern:$0x73625140]  ;;  %v11440_v48 = vor.u32 %v13730_v29, %v11439_v28 }
 0x2f6   : > { %9787 = vmatpush.bf16.msrb.mxu3 %v11472_v42  ;;  %v5632_v35 = vld.sshfl [vmem:[#allocation1 + $0x38] sm:$0xff pattern:$0x73625140]  ;;  %v5630_v36 = vld.sshfl [vmem:[#allocation1 + $0x28] sm:$0xff pattern:$0x73625140]  ;;  %v11688_v42 = vor.u32 %v13792_v26, %v11687_v25  ;;  %v15982_v56 = vpack.c.bf16 %v5631_v31, %v5631_v31 }
 0x2f7   : > { %9749 = vmatpush.bf16.msrb.mxu0 %v11272_v51  ;;  %v11751_v39 = vld [vmem:[%s15819_s27 + $0x5f0] sm:$0xf]  ;;  %v13808_v40 = vld [vmem:[%s15819_s27 + $0x5f4] sm:$0xf0]  ;;  %5634 = vst [vmem:[#allocation1 + $0x20] ss:$4 sm:$0xff] %v5603_v30  ;;  %v15986_v60 = vpack.c.bf16 %v5630_v36, %v5630_v36  ;;  %v15992_v2 = vpack.c.bf16 %v5632_v35, %v5632_v35 }
 0x2f8   : > { %9762 = vmatpush.bf16.msrb.mxu1 %v11336_v52  ;;  %v11551_v45 = vld [vmem:[%s15819_s27 + $0x460] sm:$0xf]  ;;  %v13758_v46 = vld [vmem:[%s15819_s27 + $0x464] sm:$0xf0]  ;;  %v11752_v55 = vor.u32 %v13808_v40, %v11751_v39  ;;  %v11543_v63 = vld [vmem:[%s15819_s27 + $0x450] sm:$0xf] }
 0x2f9   : > { %9775 = vmatpush.bf16.msrb.mxu2 %v11400_v54  ;;  %v11615_v47 = vld [vmem:[%s15819_s27 + $0x4e0] sm:$0xf]  ;;  %v13774_v51 = vld [vmem:[%s15819_s27 + $0x4e4] sm:$0xf0]  ;;  %v15980_v54 = vpack.c.bf16 %v5629_v32, %v5629_v32  ;;  %v11552_v57 = vor.u32 %v13758_v46, %v11551_v45  ;;  %v13772_v3 = vld [vmem:[%s15819_s27 + $0x4d4] sm:$0xf0] }
 0x2fa   : > { %9788 = vmatpush.bf16.msrb.mxu3 %v11464_v58  ;;  %v11679_v52 = vld [vmem:[%s15819_s27 + $0x560] sm:$0xf]  ;;  %v13790_v53 = vld [vmem:[%s15819_s27 + $0x564] sm:$0xf0]  ;;  %v11616_v61 = vor.u32 %v13774_v51, %v11615_v47  ;;  %v13788_v5 = vld [vmem:[%s15819_s27 + $0x554] sm:$0xf0] }
 0x2fb   : > { %9750 = vmatpush.bf16.msrb.mxu0 %v11264_v0  ;;  %v11743_v58 = vld [vmem:[%s15819_s27 + $0x5e0] sm:$0xf]  ;;  %v13806_v59 = vld [vmem:[%s15819_s27 + $0x5e4] sm:$0xf0]  ;;  %v11680_v62 = vor.u32 %v13790_v53, %v11679_v52  ;;  %v13756_v0 = vld [vmem:[%s15819_s27 + $0x454] sm:$0xf0] }
 0x2fc   : > { %9763 = vmatpush.bf16.msrb.mxu1 %v11328_v1  ;;  %v11607_v1 = vld [vmem:[%s15819_s27 + $0x4d0] sm:$0xf]  ;;  %v11744_v6 = vor.u32 %v13806_v59, %v11743_v58  ;;  %v11544_v7 = vor.u32 %v13756_v0, %v11543_v63  ;;  %v13804_v9 = vld [vmem:[%s15819_s27 + $0x5d4] sm:$0xf0]  ;;  %v11535_v12 = vld [vmem:[%s15819_s27 + $0x440] sm:$0xf] }
 0x2fd   : > { %9776 = vmatpush.bf16.msrb.mxu2 %v11392_v4  ;;  %v11671_v4 = vld [vmem:[%s15819_s27 + $0x550] sm:$0xf]  ;;  %v11608_v10 = vor.u32 %v13772_v3, %v11607_v1  ;;  %v13754_v13 = vld [vmem:[%s15819_s27 + $0x444] sm:$0xf0]  ;;  %v11599_v14 = vld [vmem:[%s15819_s27 + $0x4c0] sm:$0xf] }
 0x2fe   : > { %9789 = vmatpush.bf16.msrb.mxu3 %v11456_v8  ;;  %v11735_v8 = vld [vmem:[%s15819_s27 + $0x5d0] sm:$0xf]  ;;  %v11672_v11 = vor.u32 %v13788_v5, %v11671_v4  ;;  %v13770_v15 = vld [vmem:[%s15819_s27 + $0x4c4] sm:$0xf0]  ;;  %v11727_v19 = vld [vmem:[%s15819_s27 + $0x5c0] sm:$0xf]  ;;  %v11536_v20 = vor.u32 %v13754_v13, %v11535_v12 }
 0x2ff   : > { %9751 = vmatpush.bf16.msrb.mxu0 %v11256_v16  ;;  %v11663_v16 = vld [vmem:[%s15819_s27 + $0x540] sm:$0xf]  ;;  %v11736_v18 = vor.u32 %v13804_v9, %v11735_v8  ;;  %v13802_v21 = vld [vmem:[%s15819_s27 + $0x5c4] sm:$0xf0]  ;;  %v13752_v23 = vld [vmem:[%s15819_s27 + $0x434] sm:$0xf0]  ;;  %v11600_v24 = vor.u32 %v13770_v15, %v11599_v14 }
 0x300   : > { %9764 = vmatpush.bf16.msrb.mxu1 %v11320_v17  ;;  %v13786_v17 = vld [vmem:[%s15819_s27 + $0x544] sm:$0xf0]  ;;  %v11591_v26 = vld [vmem:[%s15819_s27 + $0x4b0] sm:$0xf]  ;;  %v13784_v29 = vld [vmem:[%s15819_s27 + $0x534] sm:$0xf0]  ;;  %v11728_v32 = vor.u32 %v13802_v21, %v11727_v19 }
 0x301   : > { %9777 = vmatpush.bf16.msrb.mxu2 %v11384_v22  ;;  %v11527_v22 = vld [vmem:[%s15819_s27 + $0x430] sm:$0xf]  ;;  %v11664_v25 = vor.u32 %v13786_v17, %v11663_v16  ;;  %v13800_v31 = vld [vmem:[%s15819_s27 + $0x5b4] sm:$0xf0]  ;;  %v11647_v47 = vld [vmem:[%s15819_s27 + $0x520] sm:$0xf] }
 0x302   : > { %9790 = vmatpush.bf16.msrb.mxu3 %v11448_v27  ;;  %v13768_v27 = vld [vmem:[%s15819_s27 + $0x4b4] sm:$0xf0]  ;;  %v11655_v28 = vld [vmem:[%s15819_s27 + $0x530] sm:$0xf]  ;;  %v11528_v36 = vor.u32 %v13752_v23, %v11527_v22  ;;  %v11711_v53 = vld [vmem:[%s15819_s27 + $0x5a0] sm:$0xf] }
 0x303   : > { %9752 = vmatpush.bf16.msrb.mxu0 %v11248_v33  ;;  %v11719_v30 = vld [vmem:[%s15819_s27 + $0x5b0] sm:$0xf]  ;;  %v11519_v33 = vld [vmem:[%s15819_s27 + $0x420] sm:$0xf]  ;;  %v5604_v40 = vld [vmem:[%s15801_s5 + $0x20] sm:$0xff] }
 0x304   : > { %9765 = vmatpush.bf16.msrb.mxu1 %v11312_v34  ;;  %v13750_v34 = vld [vmem:[%s15819_s27 + $0x424] sm:$0xf0]  ;;  %v16020_v35 = vld.sshfl [vmem:[#allocation1] sm:$0xff pattern:$0x73625140]  ;;  %v11720_v51 = vor.u32 %v13800_v31, %v11719_v30 }
 0x305   : > { %9778 = vmatpush.bf16.msrb.mxu2 %v11376_v37  ;;  %v11583_v37 = vld [vmem:[%s15819_s27 + $0x4a0] sm:$0xf]  ;;  %v16024_v39 = vld.sshfl [vmem:[#allocation1 + $0x10] sm:$0xff pattern:$0x73625140]  ;;  %v11520_v52 = vor.u32 %v13750_v34, %v11519_v33 }
 0x306   : > { %9791 = vmatpush.bf16.msrb.mxu3 %v11440_v48  ;;  %9753 = vmatmul.bf16.vlgmr.msrb.gmra.mxu0 %v15980_v54  ;;  %v16027_v45 = vld.sshfl [vmem:[#allocation1 + $0x8] sm:$0xff pattern:$0x73625140]  ;;  %v16029_v46 = vld.sshfl [vmem:[#allocation1 + $0x18] sm:$0xff pattern:$0x73625140] }
 0x307   : > { %9797 = vmatpush.bf16.msra.mxu0 %v11560_v38  ;;  %9766 = vmatmul.bf16.vlgmr.msrb.gmra.mxu1 %v15986_v60  ;;  %v13766_v38 = vld [vmem:[%s15819_s27 + $0x4a4] sm:$0xf0]  ;;  %5643 = vst [vmem:[#allocation1] ss:$4 sm:$0xff] %v5604_v40  ;;  %v11511_v59 = vld [vmem:[%s15819_s27 + $0x410] sm:$0xf] }
 0x308   : > { %9810 = vmatpush.bf16.msra.mxu1 %v11624_v41  ;;  %9779 = vmatmul.bf16.vlgmr.msrb.gmra.mxu2 %v15982_v56  ;;  %v11592_v41 = vor.u32 %v13768_v27, %v11591_v26  ;;  %v13782_v48 = vld [vmem:[%s15819_s27 + $0x524] sm:$0xf0]  ;;  %v13764_v63 = vld [vmem:[%s15819_s27 + $0x494] sm:$0xf0]  ;;  %v11639_v0 = vld [vmem:[%s15819_s27 + $0x510] sm:$0xf] }
 0x309   : > { %9823 = vmatpush.bf16.msra.mxu2 %v11688_v42  ;;  %9792 = vmatmul.bf16.vlgmr.msrb.gmra.mxu3 %v15992_v2  ;;  %v11656_v42 = vor.u32 %v13784_v29, %v11655_v28  ;;  %v11648_v58 = vor.u32 %v13782_v48, %v11647_v47  ;;  %v13780_v1 = vld [vmem:[%s15819_s27 + $0x514] sm:$0xf0]  ;;  %v11703_v4 = vld [vmem:[%s15819_s27 + $0x590] sm:$0xf]  ;;  %v13746_v8 = vld [vmem:[%s15819_s27 + $0x404] sm:$0xf0]  ;;  %v16075_v48 = vpack.c.bf16 %v16027_v45, %v16027_v45 }
 0x30a   : > { %9836 = vmatpush.bf16.msra.mxu3 %v11752_v55  ;;  %v13798_v55 = vld [vmem:[%s15819_s27 + $0x5a4] sm:$0xf0]  ;;  %v11631_v13 = vld [vmem:[%s15819_s27 + $0x500] sm:$0xf]  ;;  %v11815_v15 = vld [vmem:[%s15819_s27 + $0x670] sm:$0xf] }
 0x30b   : > { %9798 = vmatpush.bf16.msra.mxu0 %v11552_v57  ;;  %v11584_v57 = vor.u32 %v13766_v38, %v11583_v37  ;;  %v11712_v3 = vor.u32 %v13798_v55, %v11711_v53  ;;  %v13762_v12 = vld [vmem:[%s15819_s27 + $0x484] sm:$0xf0]  ;;  %v13824_v16 = vld [vmem:[%s15819_s27 + $0x674] sm:$0xf0]  ;;  %v11695_v23 = vld [vmem:[%s15819_s27 + $0x580] sm:$0xf]  ;;  %v16064_v37 = vpack.c.bf16 %v16020_v35, %v16020_v35  ;;  %v16068_v38 = vpack.c.bf16 %v16024_v39, %v16024_v39 }
 0x30c   : > { %9811 = vmatpush.bf16.msra.mxu1 %v11616_v61  ;;  %v13748_v61 = vld [vmem:[%s15819_s27 + $0x414] sm:$0xf0]  ;;  %v13778_v14 = vld [vmem:[%s15819_s27 + $0x504] sm:$0xf0]  ;;  %v11816_v27 = vor.u32 %v13824_v16, %v11815_v15  ;;  %v12007_v29 = vld [vmem:[%s15819_s27 + $0x7f0] sm:$0xf]  ;;  %v16079_v35 = vpack.c.bf16 %v16029_v46, %v16029_v46 }
 0x30d   : > { %9824 = vmatpush.bf16.msra.mxu2 %v11680_v62  ;;  %v11575_v62 = vld [vmem:[%s15819_s27 + $0x490] sm:$0xf]  ;;  %v11512_v5 = vor.u32 %v13748_v61, %v11511_v59  ;;  %v13840_v19 = vld [vmem:[%s15819_s27 + $0x6f4] sm:$0xf0]  ;;  %v11632_v26 = vor.u32 %v13778_v14, %v11631_v13  ;;  %v11807_v33 = vld [vmem:[%s15819_s27 + $0x660] sm:$0xf] }
 0x30e   : > { %9837 = vmatpush.bf16.msra.mxu3 %v11744_v6  ;;  %v13796_v6 = vld [vmem:[%s15819_s27 + $0x594] sm:$0xf0]  ;;  %v11576_v9 = vor.u32 %v13764_v63, %v11575_v62  ;;  %v13822_v34 = vld [vmem:[%s15819_s27 + $0x664] sm:$0xf0]  ;;  %v11799_v55 = vld [vmem:[%s15819_s27 + $0x650] sm:$0xf] }
 0x30f   : > { %9799 = vmatpush.bf16.msra.mxu0 %v11544_v7  ;;  %v11503_v7 = vld [vmem:[%s15819_s27 + $0x400] sm:$0xf]  ;;  %v11704_v17 = vor.u32 %v13796_v6, %v11703_v4  ;;  %v13856_v22 = vld [vmem:[%s15819_s27 + $0x774] sm:$0xf0]  ;;  %v13838_v40 = vld [vmem:[%s15819_s27 + $0x6e4] sm:$0xf0]  ;;  %v11808_v39 = vor.u32 %v13822_v34, %v11807_v33 }
 0x310   : > { %9812 = vmatpush.bf16.msra.mxu1 %v11608_v10  ;;  %v11640_v10 = vor.u32 %v13780_v1, %v11639_v0  ;;  %v11504_v21 = vor.u32 %v13746_v8, %v11503_v7  ;;  %v13872_v30 = vld [vmem:[%s15819_s27 + $0x7f4] sm:$0xf0]  ;;  %v11927_v59 = vld [vmem:[%s15819_s27 + $0x750] sm:$0xf]  ;;  %v11791_v1 = vld [vmem:[%s15819_s27 + $0x640] sm:$0xf] }
 0x311   : > { %9825 = vmatpush.bf16.msra.mxu2 %v11672_v11  ;;  %v11567_v11 = vld [vmem:[%s15819_s27 + $0x480] sm:$0xf]  ;;  %v12008_v47 = vor.u32 %v13872_v30, %v12007_v29  ;;  %v13836_v46 = vld [vmem:[%s15819_s27 + $0x6d4] sm:$0xf0]  ;;  %v11991_v63 = vld [vmem:[%s15819_s27 + $0x7d0] sm:$0xf] }
 0x312   : > { %9838 = vmatpush.bf16.msra.mxu3 %v11736_v18  ;;  %v11879_v18 = vld [vmem:[%s15819_s27 + $0x6f0] sm:$0xf]  ;;  %v13852_v61 = vld [vmem:[%s15819_s27 + $0x754] sm:$0xf0]  ;;  %v13818_v4 = vld [vmem:[%s15819_s27 + $0x644] sm:$0xf0] }
 0x313   : > { %9800 = vmatpush.bf16.msra.mxu0 %v11536_v20  ;;  %v11943_v20 = vld [vmem:[%s15819_s27 + $0x770] sm:$0xf]  ;;  %v11880_v28 = vor.u32 %v13840_v19, %v11879_v18  ;;  %v13868_v0 = vld [vmem:[%s15819_s27 + $0x7d4] sm:$0xf0]  ;;  %v13834_v6 = vld [vmem:[%s15819_s27 + $0x6c4] sm:$0xf0]  ;;  %v11928_v8 = vor.u32 %v13852_v61, %v11927_v59 }
 0x314   : > { %9813 = vmatpush.bf16.msra.mxu1 %v11600_v24  ;;  %v13794_v24 = vld [vmem:[%s15819_s27 + $0x584] sm:$0xf0]  ;;  %v11944_v31 = vor.u32 %v13856_v22, %v11943_v20  ;;  %v5605_v13 = vld [vmem:[%s15801_s5 + $0x28] sm:$0xff]  ;;  %v11992_v14 = vor.u32 %v13868_v0, %v11991_v63  ;;  %v16108_v16 = vld.sshfl [vmem:[#allocation1 + $0x38] sm:$0xff pattern:$0x73625140] }
 0x315   : > { %9826 = vmatpush.bf16.msra.mxu2 %v11664_v25  ;;  %v11568_v25 = vor.u32 %v13762_v12, %v11567_v11  ;;  %v13850_v11 = vld [vmem:[%s15819_s27 + $0x744] sm:$0xf0]  ;;  %v16106_v15 = vld.sshfl [vmem:[#allocation1 + $0x28] sm:$0xff pattern:$0x73625140] }
 0x316   : > { %9839 = vmatpush.bf16.msra.mxu3 %v11728_v32  ;;  %v11696_v32 = vor.u32 %v13794_v24, %v11695_v23  ;;  %v16103_v12 = vld.sshfl [vmem:[#allocation1 + $0x30] sm:$0xff pattern:$0x73625140]  ;;  %v11983_v18 = vld [vmem:[%s15819_s27 + $0x7c0] sm:$0xf] }
 0x317   : > { %9801 = vmatpush.bf16.msra.mxu0 %v11528_v36  ;;  %v11871_v36 = vld [vmem:[%s15819_s27 + $0x6e0] sm:$0xf]  ;;  %v13866_v19 = vld [vmem:[%s15819_s27 + $0x7c4] sm:$0xf0]  ;;  %v11783_v22 = vld [vmem:[%s15819_s27 + $0x630] sm:$0xf] }
 0x318   : > { %9814 = vmatpush.bf16.msra.mxu1 %v11592_v41  ;;  %v11935_v41 = vld [vmem:[%s15819_s27 + $0x760] sm:$0xf]  ;;  %v11872_v53 = vor.u32 %v13838_v40, %v11871_v36  ;;  %v13816_v23 = vld [vmem:[%s15819_s27 + $0x634] sm:$0xf0]  ;;  %v11847_v24 = vld [vmem:[%s15819_s27 + $0x6b0] sm:$0xf] }
 0x319   : > { %9827 = vmatpush.bf16.msra.mxu2 %v11656_v42  ;;  %v13854_v42 = vld [vmem:[%s15819_s27 + $0x764] sm:$0xf0]  ;;  %v11784_v29 = vor.u32 %v13816_v23, %v11783_v22  ;;  %v11975_v30 = vld [vmem:[%s15819_s27 + $0x7b0] sm:$0xf]  ;;  %v11775_v34 = vld [vmem:[%s15819_s27 + $0x620] sm:$0xf] }
 0x31a   : > { %9840 = vmatpush.bf16.msra.mxu3 %v11720_v51  ;;  %v11999_v51 = vld [vmem:[%s15819_s27 + $0x7e0] sm:$0xf]  ;;  %v11936_v45 = vor.u32 %v13854_v42, %v11935_v41  ;;  %v13814_v36 = vld [vmem:[%s15819_s27 + $0x624] sm:$0xf0]  ;;  %v13828_v59 = vld [vmem:[%s15819_s27 + $0x694] sm:$0xf0] }
 0x31b   : > { %9802 = vmatpush.bf16.msra.mxu0 %v11520_v52  ;;  %v13870_v52 = vld [vmem:[%s15819_s27 + $0x7e4] sm:$0xf0]  ;;  %v11839_v40 = vld [vmem:[%s15819_s27 + $0x6a0] sm:$0xf]  ;;  %v11895_v61 = vld [vmem:[%s15819_s27 + $0x710] sm:$0xf] }
 0x31c   : > { %9815 = vmatpush.bf16.msra.mxu1 %v11584_v57  ;;  %v13820_v57 = vld [vmem:[%s15819_s27 + $0x654] sm:$0xf0]  ;;  %v12000_v62 = vor.u32 %v13870_v52, %v11999_v51  ;;  %v13830_v41 = vld [vmem:[%s15819_s27 + $0x6a4] sm:$0xf0]  ;;  %v11903_v42 = vld [vmem:[%s15819_s27 + $0x720] sm:$0xf]  ;;  %v11776_v51 = vor.u32 %v13814_v36, %v11775_v34 }
 0x31d   : > { %9828 = vmatpush.bf16.msra.mxu2 %v11648_v58  ;;  %v11863_v58 = vld [vmem:[%s15819_s27 + $0x6d0] sm:$0xf]  ;;  %v11967_v52 = vld [vmem:[%s15819_s27 + $0x7a0] sm:$0xf]  ;;  %v13920_v23 = vld [vmem:[%s15819_s27 + $0x974] sm:$0xf0] }
 0x31e   : > { %9841 = vmatpush.bf16.msra.mxu3 %v11712_v3  ;;  %v11800_v3 = vor.u32 %v13820_v57, %v11799_v55  ;;  %v11864_v7 = vor.u32 %v13836_v46, %v11863_v58  ;;  %v11767_v57 = vld [vmem:[%s15819_s27 + $0x610] sm:$0xf]  ;;  %v13812_v58 = vld [vmem:[%s15819_s27 + $0x614] sm:$0xf0]  ;;  %v12063_v34 = vld [vmem:[%s15819_s27 + $0x860] sm:$0xf] }
 0x31f   : > { %9803 = vmatpush.bf16.msra.mxu0 %v11512_v5  ;;  %v11855_v5 = vld [vmem:[%s15819_s27 + $0x6c0] sm:$0xf]  ;;  %v11831_v46 = vld [vmem:[%s15819_s27 + $0x690] sm:$0xf]  ;;  %v13886_v36 = vld [vmem:[%s15819_s27 + $0x864] sm:$0xf0] }
 0x320   : > { %9816 = vmatpush.bf16.msra.mxu1 %v11576_v9  ;;  %v11919_v9 = vld [vmem:[%s15819_s27 + $0x740] sm:$0xf]  ;;  %v11856_v20 = vor.u32 %v13834_v6, %v11855_v5  ;;  %v11959_v0 = vld [vmem:[%s15819_s27 + $0x790] sm:$0xf]  ;;  %v13810_v5 = vld [vmem:[%s15819_s27 + $0x604] sm:$0xf0]  ;;  %v11832_v6 = vor.u32 %v13828_v59, %v11831_v46 }
 0x321   : > { %9829 = vmatpush.bf16.msra.mxu2 %v11640_v10  ;;  %v16100_v10 = vld.sshfl [vmem:[#allocation1 + $0x20] sm:$0xff pattern:$0x73625140]  ;;  %v12119_v59 = vld [vmem:[%s15819_s27 + $0x8d0] sm:$0xf] }
 0x322   : > { %9842 = vmatpush.bf16.msra.mxu3 %v11704_v17  ;;  %v11792_v17 = vor.u32 %v13818_v4, %v11791_v1  ;;  %5644 = vst [vmem:[#allocation1 + $0x20] ss:$4 sm:$0xff] %v5605_v13  ;;  %v11768_v1 = vor.u32 %v13812_v58, %v11767_v57  ;;  %v11759_v4 = vld [vmem:[%s15819_s27 + $0x600] sm:$0xf]  ;;  %v13842_v13 = vld [vmem:[%s15819_s27 + $0x704] sm:$0xf0] }
 0x323   : > { %9804 = vmatpush.bf16.msra.mxu0 %v11504_v21  ;;  %v11920_v21 = vor.u32 %v13850_v11, %v11919_v9  ;;  %v13826_v9 = vld [vmem:[%s15819_s27 + $0x684] sm:$0xf0]  ;;  %v11887_v11 = vld [vmem:[%s15819_s27 + $0x700] sm:$0xf]  ;;  %v11760_v22 = vor.u32 %v13810_v5, %v11759_v4  ;;  %v13884_v46 = vld [vmem:[%s15819_s27 + $0x854] sm:$0xf0] }
 0x324   : > { %9817 = vmatpush.bf16.msra.mxu1 %v11568_v25  ;;  %v13832_v25 = vld [vmem:[%s15819_s27 + $0x6b4] sm:$0xf0] }
 0x325   : > { %9830 = vmatpush.bf16.msra.mxu2 %v11632_v26  ;;  %v11911_v26 = vld [vmem:[%s15819_s27 + $0x730] sm:$0xf] }
 0x326   : > { %9843 = vmatpush.bf16.msra.mxu3 %v11696_v32  ;;  %9805 = vmatmul.bf16.vlgmr.msra.gmra.mxu0 %v16064_v37  ;;  %v11848_v32 = vor.u32 %v13832_v25, %v11847_v24  ;;  %v11951_v24 = vld [vmem:[%s15819_s27 + $0x780] sm:$0xf]  ;;  %v13858_v25 = vld [vmem:[%s15819_s27 + $0x784] sm:$0xf0] }
 0x327   : > { %9849 = vmatpush.bf16.msrb.mxu0 %v11816_v27  ;;  %9818 = vmatmul.bf16.vlgmr.msra.gmra.mxu1 %v16075_v48  ;;  %v13848_v27 = vld [vmem:[%s15819_s27 + $0x734] sm:$0xf0] }
 0x328   : > { %9862 = vmatpush.bf16.msrb.mxu1 %v11880_v28  ;;  %9831 = vmatmul.bf16.vlgmr.msra.gmra.mxu2 %v16068_v38  ;;  %v11984_v28 = vor.u32 %v13866_v19, %v11983_v18  ;;  %v11912_v33 = vor.u32 %v13848_v27, %v11911_v26  ;;  %v12135_v19 = vld [vmem:[%s15819_s27 + $0x8f0] sm:$0xf]  ;;  %v11888_v27 = vor.u32 %v13842_v13, %v11887_v11  ;;  %v12175_v11 = vld [vmem:[%s15819_s27 + $0x940] sm:$0xf]  ;;  %v13914_v13 = vld [vmem:[%s15819_s27 + $0x944] sm:$0xf0] }
 0x329   : > { %9875 = vmatpush.bf16.msrb.mxu2 %v11944_v31  ;;  %9844 = vmatmul.bf16.vlgmr.msra.gmra.mxu3 %v16079_v35  ;;  %v13864_v31 = vld [vmem:[%s15819_s27 + $0x7b4] sm:$0xf0] }
 0x32a   : > { %9888 = vmatpush.bf16.msrb.mxu3 %v12008_v47  ;;  %v13846_v47 = vld [vmem:[%s15819_s27 + $0x724] sm:$0xf0] }
 0x32b   : > { %9850 = vmatpush.bf16.msrb.mxu0 %v11808_v39  ;;  %v11976_v39 = vor.u32 %v13864_v31, %v11975_v30  ;;  %v11904_v55 = vor.u32 %v13846_v47, %v11903_v42  ;;  %v12263_v30 = vld [vmem:[%s15819_s27 + $0x9f0] sm:$0xf]  ;;  %v13936_v31 = vld [vmem:[%s15819_s27 + $0x9f4] sm:$0xf0]  ;;  %v16161_v42 = vpack.c.bf16 %v16103_v12, %v16103_v12  ;;  %v13902_v47 = vld [vmem:[%s15819_s27 + $0x8e4] sm:$0xf0]  ;;  %v12064_v12 = vor.u32 %v13886_v36, %v12063_v34 }
 0x32c   : > { %9863 = vmatpush.bf16.msrb.mxu1 %v11872_v53  ;;  %v13862_v53 = vld [vmem:[%s15819_s27 + $0x7a4] sm:$0xf0]  ;;  %v12031_v34 = vld [vmem:[%s15819_s27 + $0x820] sm:$0xf] }
 0x32d   : > { %9876 = vmatpush.bf16.msrb.mxu2 %v11936_v45  ;;  %v11840_v45 = vor.u32 %v13830_v41, %v11839_v40  ;;  %v11968_v63 = vor.u32 %v13862_v53, %v11967_v52  ;;  %v12127_v40 = vld [vmem:[%s15819_s27 + $0x8e0] sm:$0xf]  ;;  %v16157_v41 = vpack.c.bf16 %v16100_v10, %v16100_v10  ;;  %v12264_v52 = vor.u32 %v13936_v31, %v12263_v30  ;;  %v12231_v30 = vld [vmem:[%s15819_s27 + $0x9b0] sm:$0xf]  ;;  %v13928_v31 = vld [vmem:[%s15819_s27 + $0x9b4] sm:$0xf0] }
 0x32e   : > { %9889 = vmatpush.bf16.msrb.mxu3 %v12000_v62  ;;  %v13844_v62 = vld [vmem:[%s15819_s27 + $0x714] sm:$0xf0]  ;;  %v16168_v53 = vpack.c.bf16 %v16106_v15, %v16106_v15  ;;  %v16172_v10 = vpack.c.bf16 %v16108_v16, %v16108_v16  ;;  %v12128_v57 = vor.u32 %v13902_v47, %v12127_v40  ;;  %v12055_v15 = vld [vmem:[%s15819_s27 + $0x850] sm:$0xf]  ;;  %v13878_v36 = vld [vmem:[%s15819_s27 + $0x824] sm:$0xf0] }
 0x32f   : > { %9851 = vmatpush.bf16.msrb.mxu0 %v11800_v3  ;;  %v13860_v3 = vld [vmem:[%s15819_s27 + $0x794] sm:$0xf0]  ;;  %v12183_v16 = vld [vmem:[%s15819_s27 + $0x950] sm:$0xf]  ;;  %v12095_v40 = vld [vmem:[%s15819_s27 + $0x8a0] sm:$0xf] }
 0x330   : > { %9864 = vmatpush.bf16.msrb.mxu1 %v11864_v7  ;;  %v11896_v7 = vor.u32 %v13844_v62, %v11895_v61  ;;  %v11960_v18 = vor.u32 %v13860_v3, %v11959_v0  ;;  %v13900_v61 = vld [vmem:[%s15819_s27 + $0x8d4] sm:$0xf0]  ;;  %v12056_v0 = vor.u32 %v13884_v46, %v12055_v15  ;;  %v13894_v47 = vld [vmem:[%s15819_s27 + $0x8a4] sm:$0xf0] }
 0x331   : > { %9877 = vmatpush.bf16.msrb.mxu2 %v11928_v8  ;;  %v11823_v8 = vld [vmem:[%s15819_s27 + $0x680] sm:$0xf]  ;;  %v13916_v62 = vld [vmem:[%s15819_s27 + $0x954] sm:$0xf0]  ;;  %v12120_v4 = vor.u32 %v13900_v61, %v12119_v59  ;;  %v12087_v59 = vld [vmem:[%s15819_s27 + $0x890] sm:$0xf] }
 0x332   : > { %9890 = vmatpush.bf16.msrb.mxu3 %v11992_v14  ;;  %v12071_v14 = vld [vmem:[%s15819_s27 + $0x870] sm:$0xf]  ;;  %v11824_v26 = vor.u32 %v13826_v9, %v11823_v8  ;;  %v13932_v3 = vld [vmem:[%s15819_s27 + $0x9d4] sm:$0xf0]  ;;  %v12184_v5 = vor.u32 %v13916_v62, %v12183_v16  ;;  %v12111_v8 = vld [vmem:[%s15819_s27 + $0x8c0] sm:$0xf] }
 0x333   : > { %9852 = vmatpush.bf16.msrb.mxu0 %v11792_v17  ;;  %v13888_v17 = vld [vmem:[%s15819_s27 + $0x874] sm:$0xf0]  ;;  %v13898_v9 = vld [vmem:[%s15819_s27 + $0x8c4] sm:$0xf0]  ;;  %v12151_v16 = vld [vmem:[%s15819_s27 + $0x910] sm:$0xf] }
 0x334   : > { %9865 = vmatpush.bf16.msrb.mxu1 %v11856_v20  ;;  %v13904_v20 = vld [vmem:[%s15819_s27 + $0x8f4] sm:$0xf0] }
 0x335   : > { %9878 = vmatpush.bf16.msrb.mxu2 %v11920_v21  ;;  %v12199_v21 = vld [vmem:[%s15819_s27 + $0x970] sm:$0xf]  ;;  %v13876_v46 = vld [vmem:[%s15819_s27 + $0x814] sm:$0xf0] }
 0x336   : > { %9891 = vmatpush.bf16.msrb.mxu3 %v11984_v28  ;;  %v12072_v28 = vor.u32 %v13888_v17, %v12071_v14  ;;  %v13892_v61 = vld [vmem:[%s15819_s27 + $0x894] sm:$0xf0] }
 0x337   : > { %9853 = vmatpush.bf16.msrb.mxu0 %v11784_v29  ;;  %v12136_v29 = vor.u32 %v13904_v20, %v12135_v19  ;;  %v13930_v19 = vld [vmem:[%s15819_s27 + $0x9c4] sm:$0xf0]  ;;  %v12112_v20 = vor.u32 %v13898_v9, %v12111_v8  ;;  %v13908_v62 = vld [vmem:[%s15819_s27 + $0x914] sm:$0xf0]  ;;  %v12143_v8 = vld [vmem:[%s15819_s27 + $0x900] sm:$0xf]  ;;  %v12088_v9 = vor.u32 %v13892_v61, %v12087_v59 }
 0x338   : > { %9866 = vmatpush.bf16.msrb.mxu1 %v11848_v32  ;;  %v12200_v32 = vor.u32 %v13920_v23, %v12199_v21  ;;  %v12176_v21 = vor.u32 %v13914_v13, %v12175_v11  ;;  %v13880_v23 = vld [vmem:[%s15819_s27 + $0x834] sm:$0xf0]  ;;  %v12152_v11 = vor.u32 %v13908_v62, %v12151_v16  ;;  %v13906_v13 = vld [vmem:[%s15819_s27 + $0x904] sm:$0xf0]  ;;  %v12511_v16 = vld [vmem:[%s15819_s27 + $0xbe0] sm:$0xf] }
 0x339   : > { %9879 = vmatpush.bf16.msrb.mxu2 %v11912_v33  ;;  %v11952_v33 = vor.u32 %v13858_v25, %v11951_v24  ;;  %v12103_v24 = vld [vmem:[%s15819_s27 + $0x8b0] sm:$0xf]  ;;  %v13896_v25 = vld [vmem:[%s15819_s27 + $0x8b4] sm:$0xf0]  ;;  %v13998_v62 = vld [vmem:[%s15819_s27 + $0xbe4] sm:$0xf0] }
 0x33a   : > { %9892 = vmatpush.bf16.msrb.mxu3 %v11976_v39  ;;  %v12191_v39 = vld [vmem:[%s15819_s27 + $0x960] sm:$0xf] }
 0x33b   : > { %9854 = vmatpush.bf16.msrb.mxu0 %v11776_v51  ;;  %v13918_v51 = vld [vmem:[%s15819_s27 + $0x964] sm:$0xf0] }
 0x33c   : > { %9867 = vmatpush.bf16.msrb.mxu1 %v11840_v45  ;;  %v12255_v45 = vld [vmem:[%s15819_s27 + $0x9e0] sm:$0xf]  ;;  %v12192_v58 = vor.u32 %v13918_v51, %v12191_v39  ;;  %v13910_v51 = vld [vmem:[%s15819_s27 + $0x924] sm:$0xf0] }
 0x33d   : > { %9880 = vmatpush.bf16.msrb.mxu2 %v11904_v55  ;;  %v13934_v55 = vld [vmem:[%s15819_s27 + $0x9e4] sm:$0xf0]  ;;  %v12159_v39 = vld [vmem:[%s15819_s27 + $0x920] sm:$0xf] }
 0x33e   : > { %9893 = vmatpush.bf16.msrb.mxu3 %v11968_v63  ;;  %v12256_v63 = vor.u32 %v13934_v55, %v12255_v45  ;;  %v12223_v45 = vld [vmem:[%s15819_s27 + $0x9a0] sm:$0xf]  ;;  %v13926_v55 = vld [vmem:[%s15819_s27 + $0x9a4] sm:$0xf0]  ;;  %v12160_v15 = vor.u32 %v13910_v51, %v12159_v39 }
 0x33f   : > { %9855 = vmatpush.bf16.msrb.mxu0 %v11768_v1  ;;  %v12247_v1 = vld [vmem:[%s15819_s27 + $0x9d0] sm:$0xf]  ;;  %v12319_v39 = vld [vmem:[%s15819_s27 + $0xa60] sm:$0xf]  ;;  %v13950_v51 = vld [vmem:[%s15819_s27 + $0xa64] sm:$0xf0] }
 0x340   : > { %9868 = vmatpush.bf16.msrb.mxu1 %v11832_v6  ;;  %v12047_v6 = vld [vmem:[%s15819_s27 + $0x840] sm:$0xf]  ;;  %v12248_v14 = vor.u32 %v13932_v3, %v12247_v1  ;;  %v13924_v1 = vld [vmem:[%s15819_s27 + $0x994] sm:$0xf0]  ;;  %v12320_v61 = vor.u32 %v13950_v51, %v12319_v39  ;;  %v12487_v39 = vld [vmem:[%s15819_s27 + $0xbb0] sm:$0xf] }
 0x341   : > { %9881 = vmatpush.bf16.msrb.mxu2 %v11896_v7  ;;  %v13882_v7 = vld [vmem:[%s15819_s27 + $0x844] sm:$0xf0]  ;;  %v12015_v3 = vld [vmem:[%s15819_s27 + $0x800] sm:$0xf]  ;;  %v13992_v51 = vld [vmem:[%s15819_s27 + $0xbb4] sm:$0xf0] }
 0x342   : > { %9894 = vmatpush.bf16.msrb.mxu3 %v11960_v18  ;;  %v12048_v17 = vor.u32 %v13882_v7, %v12047_v6  ;;  %v12239_v18 = vld [vmem:[%s15819_s27 + $0x9c0] sm:$0xf]  ;;  %v13890_v7 = vld [vmem:[%s15819_s27 + $0x884] sm:$0xf0] }
 0x343   : > { %9856 = vmatpush.bf16.msrb.mxu0 %v11760_v22  ;;  %v12039_v22 = vld [vmem:[%s15819_s27 + $0x830] sm:$0xf]  ;;  %v12079_v6 = vld [vmem:[%s15819_s27 + $0x880] sm:$0xf] }
 0x344   : > { %9869 = vmatpush.bf16.msrb.mxu1 %v11824_v26  ;;  %v12167_v26 = vld [vmem:[%s15819_s27 + $0x930] sm:$0xf] }
 0x345   : > { %9882 = vmatpush.bf16.msrb.mxu2 %v11888_v27  ;;  %v13912_v27 = vld [vmem:[%s15819_s27 + $0x934] sm:$0xf0] }
 0x346   : > { %9895 = vmatpush.bf16.msrb.mxu3 %v11952_v33  ;;  %9857 = vmatmul.bf16.vlgmr.msrb.gmra.mxu0 %v16157_v41  ;;  %v12168_v33 = vor.u32 %v13912_v27, %v12167_v26  ;;  %v5645_v26 = vld.sshfl [vmem:[#allocation1] sm:$0xff pattern:$0x73625140]  ;;  %v12519_v27 = vld [vmem:[%s15819_s27 + $0xbf0] sm:$0xf] }
 0x347   : > { %9901 = vmatpush.bf16.msra.mxu0 %v12072_v28  ;;  %9870 = vmatmul.bf16.vlgmr.msrb.gmra.mxu1 %v16168_v53  ;;  %v12240_v28 = vor.u32 %v13930_v19, %v12239_v18  ;;  %v12391_v18 = vld [vmem:[%s15819_s27 + $0xaf0] sm:$0xf]  ;;  %v13968_v19 = vld [vmem:[%s15819_s27 + $0xaf4] sm:$0xf0] }
 0x348   : > { %9914 = vmatpush.bf16.msra.mxu1 %v12136_v29  ;;  %9883 = vmatmul.bf16.vlgmr.msrb.gmra.mxu2 %v16161_v42  ;;  %v12040_v29 = vor.u32 %v13880_v23, %v12039_v22  ;;  %v13984_v22 = vld [vmem:[%s15819_s27 + $0xb74] sm:$0xf0]  ;;  %v12207_v23 = vld [vmem:[%s15819_s27 + $0x980] sm:$0xf] }
 0x349   : > { %9927 = vmatpush.bf16.msra.mxu2 %v12200_v32  ;;  %9896 = vmatmul.bf16.vlgmr.msrb.gmra.mxu3 %v16172_v10  ;;  %v12104_v32 = vor.u32 %v13896_v25, %v12103_v24  ;;  %v13922_v24 = vld [vmem:[%s15819_s27 + $0x984] sm:$0xf0] }
 0x34a   : > { %9940 = vmatpush.bf16.msra.mxu3 %v12264_v52  ;;  %v12232_v52 = vor.u32 %v13928_v31, %v12231_v30  ;;  %v5647_v30 = vld.sshfl [vmem:[#allocation1 + $0x10] sm:$0xff pattern:$0x73625140]  ;;  %v14000_v31 = vld [vmem:[%s15819_s27 + $0xbf4] sm:$0xf0] }
 0x34b   : > { %9902 = vmatpush.bf16.msra.mxu0 %v12064_v12  ;;  %v12032_v12 = vor.u32 %v13878_v36, %v12031_v34  ;;  %v5646_v34 = vld.sshfl [vmem:[#allocation1 + $0x8] sm:$0xff pattern:$0x73625140]  ;;  %v5648_v36 = vld.sshfl [vmem:[#allocation1 + $0x18] sm:$0xff pattern:$0x73625140] }
 0x34c   : > { %9915 = vmatpush.bf16.msra.mxu1 %v12128_v57  ;;  %v12023_v57 = vld [vmem:[%s15819_s27 + $0x810] sm:$0xf]  ;;  %v16248_v59 = vpack.c.bf16 %v5648_v36, %v5648_v36  ;;  %v13976_v36 = vld [vmem:[%s15819_s27 + $0xb34] sm:$0xf0] }
 0x34d   : > { %9928 = vmatpush.bf16.msra.mxu2 %v12192_v58  ;;  %v12096_v58 = vor.u32 %v13894_v47, %v12095_v40  ;;  %v12208_v47 = vor.u32 %v13922_v24, %v12207_v23  ;;  %v13978_v23 = vld [vmem:[%s15819_s27 + $0xb44] sm:$0xf0] }
 0x34e   : > { %9941 = vmatpush.bf16.msra.mxu3 %v12256_v63  ;;  %v12215_v63 = vld [vmem:[%s15819_s27 + $0x990] sm:$0xf] }
 0x34f   : > { %9903 = vmatpush.bf16.msra.mxu0 %v12056_v0  ;;  %v12224_v0 = vor.u32 %v13926_v55, %v12223_v45  ;;  %v16241_v45 = vpack.c.bf16 %v5647_v30, %v5647_v30  ;;  %v13966_v55 = vld [vmem:[%s15819_s27 + $0xae4] sm:$0xf0]  ;;  %v12295_v30 = vld [vmem:[%s15819_s27 + $0xa30] sm:$0xf] }
 0x350   : > { %9916 = vmatpush.bf16.msra.mxu1 %v12120_v4  ;;  %v13874_v4 = vld [vmem:[%s15819_s27 + $0x804] sm:$0xf0] }
 0x351   : > { %9929 = vmatpush.bf16.msra.mxu2 %v12184_v5  ;;  %v12024_v5 = vor.u32 %v13876_v46, %v12023_v57  ;;  %v12016_v25 = vor.u32 %v13874_v4, %v12015_v3  ;;  %v12447_v57 = vld [vmem:[%s15819_s27 + $0xb60] sm:$0xf]  ;;  %v16246_v46 = vpack.c.bf16 %v5646_v34, %v5646_v34  ;;  %v13948_v3 = vld [vmem:[%s15819_s27 + $0xa54] sm:$0xf0]  ;;  %v12375_v4 = vld [vmem:[%s15819_s27 + $0xad0] sm:$0xf] }
 0x352   : > { %9942 = vmatpush.bf16.msra.mxu3 %v12248_v14  ;;  %v12327_v14 = vld [vmem:[%s15819_s27 + $0xa70] sm:$0xf] }
 0x353   : > { %9904 = vmatpush.bf16.msra.mxu0 %v12048_v17  ;;  %v13952_v17 = vld [vmem:[%s15819_s27 + $0xa74] sm:$0xf0]  ;;  %v12423_v34 = vld [vmem:[%s15819_s27 + $0xb30] sm:$0xf] }
 0x354   : > { %9917 = vmatpush.bf16.msra.mxu1 %v12112_v20  ;;  %v12455_v20 = vld [vmem:[%s15819_s27 + $0xb70] sm:$0xf] }
 0x355   : > { %9930 = vmatpush.bf16.msra.mxu2 %v12176_v21  ;;  %v12216_v21 = vor.u32 %v13924_v1, %v12215_v63  ;;  %v12456_v40 = vor.u32 %v13984_v22, %v12455_v20  ;;  %v12311_v1 = vld [vmem:[%s15819_s27 + $0xa50] sm:$0xf]  ;;  %v12367_v20 = vld [vmem:[%s15819_s27 + $0xac0] sm:$0xf] }
 0x356   : > { %9943 = vmatpush.bf16.msra.mxu3 %v12240_v28  ;;  %v12080_v28 = vor.u32 %v13890_v7, %v12079_v6  ;;  %v12439_v6 = vld [vmem:[%s15819_s27 + $0xb50] sm:$0xf]  ;;  %v13980_v7 = vld [vmem:[%s15819_s27 + $0xb54] sm:$0xf0]  ;;  %v12431_v22 = vld [vmem:[%s15819_s27 + $0xb40] sm:$0xf] }
 0x357   : > { %9905 = vmatpush.bf16.msra.mxu0 %v12040_v29  ;;  %v12144_v29 = vor.u32 %v13906_v13, %v12143_v8  ;;  %v12512_v8 = vor.u32 %v13998_v62, %v12511_v16  ;;  %v13996_v13 = vld [vmem:[%s15819_s27 + $0xbd4] sm:$0xf0]  ;;  %v12415_v16 = vld [vmem:[%s15819_s27 + $0xb20] sm:$0xf]  ;;  %v13974_v62 = vld [vmem:[%s15819_s27 + $0xb24] sm:$0xf0] }
 0x358   : > { %9918 = vmatpush.bf16.msra.mxu1 %v12104_v32  ;;  %v12328_v32 = vor.u32 %v13952_v17, %v12327_v14  ;;  %v12440_v17 = vor.u32 %v13980_v7, %v12439_v6  ;;  %v12416_v6 = vor.u32 %v13974_v62, %v12415_v16  ;;  %v13940_v7 = vld [vmem:[%s15819_s27 + $0xa14] sm:$0xf0]  ;;  %v5651_v16 = vld.sshfl [vmem:[#allocation1 + $0x30] sm:$0xff pattern:$0x73625140] }
 0x359   : > { %9931 = vmatpush.bf16.msra.mxu2 %v12168_v33  ;;  %v12392_v33 = vor.u32 %v13968_v19, %v12391_v18  ;;  %v12303_v18 = vld [vmem:[%s15819_s27 + $0xa40] sm:$0xf]  ;;  %v13946_v19 = vld [vmem:[%s15819_s27 + $0xa44] sm:$0xf0]  ;;  %v14064_v62 = vld [vmem:[%s15819_s27 + $0xdf4] sm:$0xf0] }
 0x35a   : > { %9944 = vmatpush.bf16.msra.mxu3 %v12232_v52  ;;  %v12383_v52 = vld [vmem:[%s15819_s27 + $0xae0] sm:$0xf] }
 0x35b   : > { %9906 = vmatpush.bf16.msra.mxu0 %v12032_v12  ;;  %v16239_v12 = vpack.c.bf16 %v5645_v26, %v5645_v26  ;;  %v12384_v63 = vor.u32 %v13966_v55, %v12383_v52  ;;  %v12495_v26 = vld [vmem:[%s15819_s27 + $0xbc0] sm:$0xf]  ;;  %v12424_v55 = vor.u32 %v13976_v36, %v12423_v34  ;;  %v12711_v34 = vld [vmem:[%s15819_s27 + $0xd70] sm:$0xf]  ;;  %v14048_v36 = vld [vmem:[%s15819_s27 + $0xd74] sm:$0xf0] }
 0x35c   : > { %9919 = vmatpush.bf16.msra.mxu1 %v12096_v58  ;;  %v13982_v58 = vld [vmem:[%s15819_s27 + $0xb64] sm:$0xf0] }
 0x35d   : > { %9932 = vmatpush.bf16.msra.mxu2 %v12160_v15  ;;  %v12520_v15 = vor.u32 %v14000_v31, %v12519_v27  ;;  %v13994_v27 = vld [vmem:[%s15819_s27 + $0xbc4] sm:$0xf0]  ;;  %v13944_v31 = vld [vmem:[%s15819_s27 + $0xa34] sm:$0xf0] }
 0x35e   : > { %9945 = vmatpush.bf16.msra.mxu3 %v12224_v0  ;;  %v12448_v0 = vor.u32 %v13982_v58, %v12447_v57  ;;  %v12287_v57 = vld [vmem:[%s15819_s27 + $0xa20] sm:$0xf]  ;;  %v13942_v58 = vld [vmem:[%s15819_s27 + $0xa24] sm:$0xf0] }
 0x35f   : > { %9907 = vmatpush.bf16.msra.mxu0 %v12024_v5  ;;  %v13964_v5 = vld [vmem:[%s15819_s27 + $0xad4] sm:$0xf0] }
 0x360   : > { %9920 = vmatpush.bf16.msra.mxu1 %v12088_v9  ;;  %v12312_v9 = vor.u32 %v13948_v3, %v12311_v1  ;;  %v12376_v14 = vor.u32 %v13964_v5, %v12375_v4  ;;  %v12479_v1 = vld [vmem:[%s15819_s27 + $0xba0] sm:$0xf]  ;;  %v13990_v3 = vld [vmem:[%s15819_s27 + $0xba4] sm:$0xf0]  ;;  %v12279_v4 = vld [vmem:[%s15819_s27 + $0xa10] sm:$0xf] }
 0x361   : > { %9933 = vmatpush.bf16.msra.mxu2 %v12152_v11  ;;  %v12503_v11 = vld [vmem:[%s15819_s27 + $0xbd0] sm:$0xf] }
 0x362   : > { %9946 = vmatpush.bf16.msra.mxu3 %v12216_v21  ;;  %v13962_v21 = vld [vmem:[%s15819_s27 + $0xac4] sm:$0xf0]  ;;  %v12504_v24 = vor.u32 %v13996_v13, %v12503_v11  ;;  %v12407_v11 = vld [vmem:[%s15819_s27 + $0xb10] sm:$0xf]  ;;  %v13972_v13 = vld [vmem:[%s15819_s27 + $0xb14] sm:$0xf0] }
 0x363   : > { %9908 = vmatpush.bf16.msra.mxu0 %v12016_v25  ;;  %v12304_v25 = vor.u32 %v13946_v19, %v12303_v18  ;;  %v13988_v18 = vld [vmem:[%s15819_s27 + $0xb94] sm:$0xf0] }
 0x364   : > { %9921 = vmatpush.bf16.msra.mxu1 %v12080_v28  ;;  %v12368_v28 = vor.u32 %v13962_v21, %v12367_v20  ;;  %v12271_v20 = vld [vmem:[%s15819_s27 + $0xa00] sm:$0xf]  ;;  %v13938_v21 = vld [vmem:[%s15819_s27 + $0xa04] sm:$0xf0] }
 0x365   : > { %9934 = vmatpush.bf16.msra.mxu2 %v12144_v29  ;;  %v12432_v29 = vor.u32 %v13978_v23, %v12431_v22  ;;  %v12280_v22 = vor.u32 %v13940_v7, %v12279_v4  ;;  %v12335_v23 = vld [vmem:[%s15819_s27 + $0xa80] sm:$0xf]  ;;  %v5652_v4 = vld.sshfl [vmem:[#allocation1 + $0x38] sm:$0xff pattern:$0x73625140] }
 0x366   : > { %9947 = vmatpush.bf16.msra.mxu3 %v12208_v47  ;;  %9909 = vmatmul.bf16.vlgmr.msra.gmra.mxu0 %v16239_v12  ;;  %v12296_v47 = vor.u32 %v13944_v31, %v12295_v30  ;;  %v14016_v30 = vld [vmem:[%s15819_s27 + $0xc74] sm:$0xf0]  ;;  %v12647_v31 = vld [vmem:[%s15819_s27 + $0xcf0] sm:$0xf] }
 0x367   : > { %9953 = vmatpush.bf16.msrb.mxu0 %v12328_v32  ;;  %9922 = vmatmul.bf16.vlgmr.msra.gmra.mxu1 %v16246_v46  ;;  %v12359_v32 = vld [vmem:[%s15819_s27 + $0xab0] sm:$0xf] }
 0x368   : > { %9966 = vmatpush.bf16.msrb.mxu1 %v12392_v33  ;;  %9935 = vmatmul.bf16.vlgmr.msra.gmra.mxu2 %v16241_v45  ;;  %v13960_v33 = vld [vmem:[%s15819_s27 + $0xab4] sm:$0xf0] }
 0x369   : > { %9979 = vmatpush.bf16.msrb.mxu2 %v12456_v40  ;;  %9948 = vmatmul.bf16.vlgmr.msra.gmra.mxu3 %v16248_v59  ;;  %v12496_v40 = vor.u32 %v13994_v27, %v12495_v26  ;;  %v12360_v52 = vor.u32 %v13960_v33, %v12359_v32  ;;  %v9702_v19 = vpop.f32.mrf.mxu0  ;;  %v13970_v26 = vld [vmem:[%s15819_s27 + $0xb04] sm:$0xf0]  ;;  %v14032_v32 = vld [vmem:[%s15819_s27 + $0xcf4] sm:$0xf0] }
 0x36a   : > { %9992 = vmatpush.bf16.msrb.mxu3 %v12520_v15  ;;  %v12351_v15 = vld [vmem:[%s15819_s27 + $0xaa0] sm:$0xf] }
 0x36b   : > { %9954 = vmatpush.bf16.msrb.mxu0 %v12320_v61  ;;  %v13958_v61 = vld [vmem:[%s15819_s27 + $0xaa4] sm:$0xf0]  ;;  %v9715_v33 = vpop.f32.mrf.mxu1 }
 0x36c   : > { %9967 = vmatpush.bf16.msrb.mxu1 %v12384_v63  ;;  %v12488_v63 = vor.u32 %v13992_v51, %v12487_v39  ;;  %v12352_v5 = vor.u32 %v13958_v61, %v12351_v15  ;;  %v12463_v51 = vld [vmem:[%s15819_s27 + $0xb80] sm:$0xf] }
 0x36d   : > { %9980 = vmatpush.bf16.msrb.mxu2 %v12448_v0  ;;  %v12288_v0 = vor.u32 %v13942_v58, %v12287_v57  ;;  %v5649_v57 = vld.sshfl [vmem:[#allocation1 + $0x20] sm:$0xff pattern:$0x73625140]  ;;  %v12775_v58 = vld [vmem:[%s15819_s27 + $0xdf0] sm:$0xf] }
 0x36e   : > { %9993 = vmatpush.bf16.msrb.mxu3 %v12512_v8  ;;  %v12343_v8 = vld [vmem:[%s15819_s27 + $0xa90] sm:$0xf] }
 0x36f   : > { %9955 = vmatpush.bf16.msrb.mxu0 %v12312_v9  ;;  %v13956_v9 = vld [vmem:[%s15819_s27 + $0xa94] sm:$0xf0] }
 0x370   : > { %9968 = vmatpush.bf16.msrb.mxu1 %v12376_v14  ;;  %v12471_v14 = vld [vmem:[%s15819_s27 + $0xb90] sm:$0xf]  ;;  %v12344_v27 = vor.u32 %v13956_v9, %v12343_v8  ;;  %v12575_v8 = vld [vmem:[%s15819_s27 + $0xc60] sm:$0xf]  ;;  %v14014_v9 = vld [vmem:[%s15819_s27 + $0xc64] sm:$0xf0] }
 0x371   : > { %9981 = vmatpush.bf16.msrb.mxu2 %v12440_v17  ;;  %v12480_v17 = vor.u32 %v13990_v3, %v12479_v1  ;;  %v12472_v39 = vor.u32 %v13988_v18, %v12471_v14  ;;  %v9728_v1 = vpop.f32.mrf.mxu2  ;;  %v5650_v3 = vld.sshfl [vmem:[#allocation1 + $0x28] sm:$0xff pattern:$0x73625140]  ;;  %v9704_v14 = vpop.f32.mrf.mxu0  ;;  %v16318_v18 = vpack.c.bf16 %v5651_v16, %v5651_v16  ;;  %v14010_v16 = vld [vmem:[%s15819_s27 + $0xc44] sm:$0xf0] }
 0x372   : > { %9994 = vmatpush.bf16.msrb.mxu3 %v12504_v24  ;;  %v13954_v24 = vld [vmem:[%s15819_s27 + $0xa84] sm:$0xf0]  ;;  %v12551_v14 = vld [vmem:[%s15819_s27 + $0xc30] sm:$0xf] }
 0x373   : > { %9956 = vmatpush.bf16.msrb.mxu0 %v12304_v25  ;;  %v12399_v25 = vld [vmem:[%s15819_s27 + $0xb00] sm:$0xf]  ;;  %v12336_v15 = vor.u32 %v13954_v24, %v12335_v23  ;;  %v16323_v23 = vpack.c.bf16 %v5650_v3, %v5650_v3  ;;  %v14042_v3 = vld [vmem:[%s15819_s27 + $0xd44] sm:$0xf0] }
 0x374   : > { %9969 = vmatpush.bf16.msrb.mxu1 %v12368_v28  ;;  %v12408_v28 = vor.u32 %v13972_v13, %v12407_v11  ;;  %v12400_v61 = vor.u32 %v13970_v26, %v12399_v25  ;;  %v12639_v11 = vld [vmem:[%s15819_s27 + $0xce0] sm:$0xf]  ;;  %v9741_v13 = vpop.f32.mrf.mxu3  ;;  %v9717_v25 = vpop.f32.mrf.mxu1  ;;  %v16325_v26 = vpack.c.bf16 %v5652_v4, %v5652_v4 }
 0x375   : > { %9982 = vmatpush.bf16.msrb.mxu2 %v12432_v29  ;;  %v12583_v29 = vld [vmem:[%s15819_s27 + $0xc70] sm:$0xf] }
 0x376   : > { %9995 = vmatpush.bf16.msrb.mxu3 %v12496_v40  ;;  %v9716_v40 = vadd.f32 %v9715_v33, %v9702_v19  ;;  %v14030_v19 = vld [vmem:[%s15819_s27 + $0xce4] sm:$0xf0]  ;;  %v14012_v33 = vld [vmem:[%s15819_s27 + $0xc54] sm:$0xf0]  ;;  %v12679_v25 = vld [vmem:[%s15819_s27 + $0xd30] sm:$0xf] }
 0x377   : > { %9957 = vmatpush.bf16.msrb.mxu0 %v12296_v47  ;;  %v5606_v47 = vld [vmem:[%s15801_s5 + $0x30] sm:$0xff] }
 0x378   : > { %9970 = vmatpush.bf16.msrb.mxu1 %v12360_v52  ;;  %v13986_v52 = vld [vmem:[%s15819_s27 + $0xb84] sm:$0xf0]  ;;  %5653 = vst [vmem:[#allocation1] ss:$4 sm:$0xff] %v5606_v47  ;;  %v9729_v7 = vadd.f32 %v9728_v1, %v9716_v40  ;;  %v12695_v40 = vld [vmem:[%s15819_s27 + $0xd50] sm:$0xf] }
 0x379   : > { %9983 = vmatpush.bf16.msrb.mxu2 %v12424_v55  ;;  %v12272_v55 = vor.u32 %v13938_v21, %v12271_v20  ;;  %v12703_v20 = vld [vmem:[%s15819_s27 + $0xd60] sm:$0xf]  ;;  %v14046_v21 = vld [vmem:[%s15819_s27 + $0xd64] sm:$0xf0]  ;;  %v14044_v47 = vld [vmem:[%s15819_s27 + $0xd54] sm:$0xf0] }
 0x37a   : > { %9996 = vmatpush.bf16.msrb.mxu3 %v12488_v63  ;;  %v12584_v63 = vor.u32 %v14016_v30, %v12583_v29  ;;  %v9742_v24 = vadd.f32 %v9741_v13, %v9729_v7  ;;  %v14062_v29 = vld [vmem:[%s15819_s27 + $0xde4] sm:$0xf0]  ;;  %v12640_v30 = vor.u32 %v14030_v19, %v12639_v11  ;;  %v12687_v1 = vld [vmem:[%s15819_s27 + $0xd40] sm:$0xf]  ;;  %v14008_v19 = vld [vmem:[%s15819_s27 + $0xc34] sm:$0xf0] }
 0x37b   : > { %9958 = vmatpush.bf16.msrb.mxu0 %v12288_v0  ;;  %v12648_v0 = vor.u32 %v14032_v32, %v12647_v31  ;;  %v12704_v31 = vor.u32 %v14046_v21, %v12703_v20  ;;  %v12567_v32 = vld [vmem:[%s15819_s27 + $0xc50] sm:$0xf]  ;;  %v12751_v7 = vld [vmem:[%s15819_s27 + $0xdc0] sm:$0xf]  ;;  %v12688_v13 = vor.u32 %v14042_v3, %v12687_v1  ;;  %v14004_v3 = vld [vmem:[%s15819_s27 + $0xc14] sm:$0xf0] }
 0x37c   : > { %9971 = vmatpush.bf16.msrb.mxu1 %v12352_v5  ;;  %v12712_v5 = vor.u32 %v14048_v36, %v12711_v34  ;;  %v12631_v34 = vld [vmem:[%s15819_s27 + $0xcd0] sm:$0xf]  ;;  %v14028_v36 = vld [vmem:[%s15819_s27 + $0xcd4] sm:$0xf0] }
 0x37d   : > { %9984 = vmatpush.bf16.msrb.mxu2 %v12416_v6  ;;  %v12464_v6 = vor.u32 %v13986_v52, %v12463_v51  ;;  %v12568_v51 = vor.u32 %v14012_v33, %v12567_v32  ;;  %v12759_v52 = vld [vmem:[%s15819_s27 + $0xdd0] sm:$0xf] }
 0x37e   : > { %9997 = vmatpush.bf16.msrb.mxu3 %v12480_v17  ;;  %v16316_v17 = vpack.c.bf16 %v5649_v57, %v5649_v57  ;;  %v9730_v57 = vpop.f32.mrf.mxu2  ;;  %v12615_v20 = vld [vmem:[%s15819_s27 + $0xcb0] sm:$0xf] }
 0x37f   : > { %9959 = vmatpush.bf16.msrb.mxu0 %v12280_v22  ;;  %v12776_v22 = vor.u32 %v14064_v62, %v12775_v58  ;;  %v12632_v58 = vor.u32 %v14028_v36, %v12631_v34  ;;  %v12623_v62 = vld [vmem:[%s15819_s27 + $0xcc0] sm:$0xf]  ;;  %v14006_v36 = vld [vmem:[%s15819_s27 + $0xc24] sm:$0xf0] }
 0x380   : > { %9972 = vmatpush.bf16.msrb.mxu1 %v12344_v27  ;;  %v12576_v27 = vor.u32 %v14014_v9, %v12575_v8  ;;  %v14058_v8 = vld [vmem:[%s15819_s27 + $0xdc4] sm:$0xf0]  ;;  %v12543_v34 = vld [vmem:[%s15819_s27 + $0xc20] sm:$0xf] }
 0x381   : > { %9985 = vmatpush.bf16.msrb.mxu2 %v12408_v28  ;;  %v12767_v28 = vld [vmem:[%s15819_s27 + $0xde0] sm:$0xf] }
 0x382   : > { %9998 = vmatpush.bf16.msrb.mxu3 %v12472_v39  ;;  %v12768_v39 = vor.u32 %v14062_v29, %v12767_v28  ;;  %v12552_v29 = vor.u32 %v14008_v19, %v12551_v14  ;;  %v14052_v14 = vld [vmem:[%s15819_s27 + $0xd94] sm:$0xf0]  ;;  %v12527_v19 = vld [vmem:[%s15819_s27 + $0xc00] sm:$0xf] }
 0x383   : > { %9960 = vmatpush.bf16.msrb.mxu0 %v12272_v55  ;;  %v14060_v55 = vld [vmem:[%s15819_s27 + $0xdd4] sm:$0xf0] }
 0x384   : > { %9973 = vmatpush.bf16.msrb.mxu1 %v12336_v15  ;;  %v12696_v15 = vor.u32 %v14044_v47, %v12695_v40  ;;  %v12760_v4 = vor.u32 %v14060_v55, %v12759_v52  ;;  %v9767_v21 = vpop.f32.mrf.mxu1  ;;  %v12607_v40 = vld [vmem:[%s15819_s27 + $0xca0] sm:$0xf]  ;;  %v14038_v52 = vld [vmem:[%s15819_s27 + $0xd24] sm:$0xf0] }
 0x385   : > { %9986 = vmatpush.bf16.msrb.mxu2 %v12400_v61  ;;  %v12559_v61 = vld [vmem:[%s15819_s27 + $0xc40] sm:$0xf] }
 0x386   : > { %9999 = vmatpush.bf16.msrb.mxu3 %v12464_v6  ;;  %9961 = vmatmul.bf16.vlgmr.msrb.gmra.mxu0 %v16316_v17  ;;  %v12560_v6 = vor.u32 %v14010_v16, %v12559_v61  ;;  %v12735_v61 = vld [vmem:[%s15819_s27 + $0xda0] sm:$0xf]  ;;  %v14054_v16 = vld [vmem:[%s15819_s27 + $0xda4] sm:$0xf0] }
 0x387   : > { %10005 = vmatpush.bf16.msra.mxu0 %v12584_v63  ;;  %9974 = vmatmul.bf16.vlgmr.msrb.gmra.mxu1 %v16323_v23  ;;  %v9743_v63 = vpop.f32.mrf.mxu3 }
 0x388   : > { %10018 = vmatpush.bf16.msra.mxu1 %v12648_v0  ;;  %9987 = vmatmul.bf16.vlgmr.msrb.gmra.mxu2 %v16318_v18  ;;  %v14026_v0 = vld [vmem:[%s15819_s27 + $0xcc4] sm:$0xf0] }
 0x389   : > { %10031 = vmatpush.bf16.msra.mxu2 %v12712_v5  ;;  %10000 = vmatmul.bf16.vlgmr.msrb.gmra.mxu3 %v16325_v26  ;;  %v9754_v5 = vpop.f32.mrf.mxu0  ;;  %v12624_v11 = vor.u32 %v14026_v0, %v12623_v62  ;;  %v12535_v62 = vld [vmem:[%s15819_s27 + $0xc10] sm:$0xf] }
 0x38a   : > { %10044 = vmatpush.bf16.msra.mxu3 %v12776_v22  ;;  %v9755_v9 = vadd.f32 %v9754_v5, %v9742_v24  ;;  %v14024_v22 = vld [vmem:[%s15819_s27 + $0xcb4] sm:$0xf0]  ;;  %v12752_v24 = vor.u32 %v14058_v8, %v12751_v7  ;;  %v12663_v8 = vld [vmem:[%s15819_s27 + $0xd10] sm:$0xf] }
 0x38b   : > { %10006 = vmatpush.bf16.msra.mxu0 %v12576_v27  ;;  %v14040_v27 = vld [vmem:[%s15819_s27 + $0xd34] sm:$0xf0]  ;;  %v12616_v32 = vor.u32 %v14024_v22, %v12615_v20  ;;  %v9780_v47 = vpop.f32.mrf.mxu2  ;;  %v14002_v20 = vld [vmem:[%s15819_s27 + $0xc04] sm:$0xf0]  ;;  %v12591_v22 = vld [vmem:[%s15819_s27 + $0xc80] sm:$0xf] }
 0x38c   : > { %10019 = vmatpush.bf16.msra.mxu1 %v12640_v30  ;;  %v9768_v28 = vadd.f32 %v9767_v21, %v9755_v9  ;;  %v12743_v30 = vld [vmem:[%s15819_s27 + $0xdb0] sm:$0xf]  ;;  %v12680_v33 = vor.u32 %v14040_v27, %v12679_v25  ;;  %v14020_v5 = vld [vmem:[%s15819_s27 + $0xc94] sm:$0xf0]  ;;  %v12536_v21 = vor.u32 %v14004_v3, %v12535_v62  ;;  %v14018_v25 = vld [vmem:[%s15819_s27 + $0xc84] sm:$0xf0] }
 0x38d   : > { %10032 = vmatpush.bf16.msra.mxu2 %v12704_v31  ;;  %v14056_v31 = vld [vmem:[%s15819_s27 + $0xdb4] sm:$0xf0]  ;;  %v12655_v27 = vld [vmem:[%s15819_s27 + $0xd00] sm:$0xf] }
 0x38e   : > { %10045 = vmatpush.bf16.msra.mxu3 %v12768_v39  ;;  %v14022_v39 = vld [vmem:[%s15819_s27 + $0xca4] sm:$0xf0]  ;;  %v12744_v55 = vor.u32 %v14056_v31, %v12743_v30  ;;  %v9781_v57 = vadd.f32 %v9780_v47, %v9768_v28  ;;  %v14036_v9 = vld [vmem:[%s15819_s27 + $0xd14] sm:$0xf0]  ;;  %v12839_v30 = vld [vmem:[%s15819_s27 + $0xe70] sm:$0xf] }
 0x38f   : > { %10007 = vmatpush.bf16.msra.mxu0 %v12568_v51  ;;  %v12671_v51 = vld [vmem:[%s15819_s27 + $0xd20] sm:$0xf]  ;;  %v12608_v63 = vor.u32 %v14022_v39, %v12607_v40  ;;  %v9793_v1 = vpop.f32.mrf.mxu3  ;;  %v14034_v28 = vld [vmem:[%s15819_s27 + $0xd04] sm:$0xf0]  ;;  %v14080_v31 = vld [vmem:[%s15819_s27 + $0xe74] sm:$0xf0] }
 0x390   : > { %10020 = vmatpush.bf16.msra.mxu1 %v12632_v58  ;;  %v12672_v0 = vor.u32 %v14038_v52, %v12671_v51  ;;  %v16369_v7 = vadd.f32 %v9793_v1, %v9781_v57  ;;  %v5607_v40 = vld [vmem:[%s15801_s5 + $0x38] sm:$0xff]  ;;  %v14112_v39 = vld [vmem:[%s15819_s27 + $0xf74] sm:$0xf0]  ;;  %v12719_v51 = vld [vmem:[%s15819_s27 + $0xd80] sm:$0xf]  ;;  %v12528_v52 = vor.u32 %v14002_v20, %v12527_v19 }
 0x391   : > { %10033 = vmatpush.bf16.msra.mxu2 %v12696_v15  ;;  %v9756_v58 = vpop.f32.mrf.mxu0  ;;  %v12544_v15 = vor.u32 %v14006_v36, %v12543_v34  ;;  %v12967_v34 = vld [vmem:[%s15819_s27 + $0xf70] sm:$0xf]  ;;  %5654 = vst [vmem:[#allocation1 + $0x20] ss:$4 sm:$0xff] %v5607_v40  ;;  %v14094_v19 = vld [vmem:[%s15819_s27 + $0xee4] sm:$0xf0] }
 0x392   : > { %10046 = vmatpush.bf16.msra.mxu3 %v12760_v4  ;;  %v12599_v4 = vld [vmem:[%s15819_s27 + $0xc90] sm:$0xf]  ;;  %v14128_v58 = vld [vmem:[%s15819_s27 + $0xff4] sm:$0xf0]  ;;  %v12959_v20 = vld [vmem:[%s15819_s27 + $0xf60] sm:$0xf] }
 0x393   : > { %10008 = vmatpush.bf16.msra.mxu0 %v12560_v6  ;;  %v9769_v6 = vpop.f32.mrf.mxu1  ;;  %v9782_v36 = vpop.f32.mrf.mxu2  ;;  %v13031_v57 = vld [vmem:[%s15819_s27 + $0xff0] sm:$0xf]  ;;  %v5657_v62 = vld.sshfl [vmem:[#allocation1 + $0x10] sm:$0xff pattern:$0x73625140] }
 0x394   : > { %10021 = vmatpush.bf16.msra.mxu1 %v12624_v11  ;;  %v12727_v11 = vld [vmem:[%s15819_s27 + $0xd90] sm:$0xf]  ;;  %v5656_v3 = vld.sshfl [vmem:[#allocation1 + $0x8] sm:$0xff pattern:$0x73625140] }
 0x395   : > { %10034 = vmatpush.bf16.msra.mxu2 %v12688_v13  ;;  %v12736_v13 = vor.u32 %v14054_v16, %v12735_v61  ;;  %v12728_v47 = vor.u32 %v14052_v14, %v12727_v11  ;;  %v12656_v61 = vor.u32 %v14034_v28, %v12655_v27  ;;  %v5655_v16 = vld.sshfl [vmem:[#allocation1] sm:$0xff pattern:$0x73625140]  ;;  %v12895_v11 = vld [vmem:[%s15819_s27 + $0xee0] sm:$0xf]  ;;  %v16397_v14 = vpack.c.bf16 %v5657_v62, %v5657_v62 }
 0x396   : > { %10047 = vmatpush.bf16.msra.mxu3 %v12752_v24  ;;  %v12600_v24 = vor.u32 %v14020_v5, %v12599_v4  ;;  %v5658_v4 = vld.sshfl [vmem:[#allocation1 + $0x18] sm:$0xff pattern:$0x73625140]  ;;  %v12968_v5 = vor.u32 %v14112_v39, %v12967_v34  ;;  %v14092_v36 = vld [vmem:[%s15819_s27 + $0xed4] sm:$0xf0] }
 0x397   : > { %10009 = vmatpush.bf16.msra.mxu0 %v12552_v29  ;;  %v12664_v29 = vor.u32 %v14036_v9, %v12663_v8  ;;  %v12831_v8 = vld [vmem:[%s15819_s27 + $0xe60] sm:$0xf]  ;;  %v14078_v9 = vld [vmem:[%s15819_s27 + $0xe64] sm:$0xf0]  ;;  %v16404_v27 = vpack.c.bf16 %v5658_v4, %v5658_v4  ;;  %v12887_v34 = vld [vmem:[%s15819_s27 + $0xed0] sm:$0xf] }
 0x398   : > { %10022 = vmatpush.bf16.msra.mxu1 %v12616_v32  ;;  %v12903_v32 = vld [vmem:[%s15819_s27 + $0xef0] sm:$0xf]  ;;  %v12832_v28 = vor.u32 %v14078_v9, %v12831_v8  ;;  %v14090_v62 = vld [vmem:[%s15819_s27 + $0xec4] sm:$0xf0]  ;;  %v13007_v8 = vld [vmem:[%s15819_s27 + $0xfc0] sm:$0xf] }
 0x399   : > { %10035 = vmatpush.bf16.msra.mxu2 %v12680_v33  ;;  %v14096_v33 = vld [vmem:[%s15819_s27 + $0xef4] sm:$0xf0]  ;;  %v12951_v40 = vld [vmem:[%s15819_s27 + $0xf50] sm:$0xf]  ;;  %v14122_v9 = vld [vmem:[%s15819_s27 + $0xfc4] sm:$0xf0] }
 0x39a   : > { %10048 = vmatpush.bf16.msra.mxu3 %v12744_v55  ;;  %v14050_v55 = vld [vmem:[%s15819_s27 + $0xd84] sm:$0xf0]  ;;  %v12904_v1 = vor.u32 %v14096_v33, %v12903_v32  ;;  %v12823_v32 = vld [vmem:[%s15819_s27 + $0xe50] sm:$0xf]  ;;  %v14076_v33 = vld [vmem:[%s15819_s27 + $0xe54] sm:$0xf0] }
 0x39b   : > { %10010 = vmatpush.bf16.msra.mxu0 %v12544_v15  ;;  %v12592_v15 = vor.u32 %v14018_v25, %v12591_v22  ;;  %v12720_v6 = vor.u32 %v14050_v55, %v12719_v51  ;;  %v13032_v22 = vor.u32 %v14128_v58, %v13031_v57  ;;  %v16402_v25 = vpack.c.bf16 %v5656_v3, %v5656_v3  ;;  %v14124_v55 = vld [vmem:[%s15819_s27 + $0xfd4] sm:$0xf0] }
 0x39c   : > { %10023 = vmatpush.bf16.msra.mxu1 %v12608_v63  ;;  %v9795_v63 = vpop.f32.mrf.mxu3  ;;  %v12824_v51 = vor.u32 %v14076_v33, %v12823_v32  ;;  %v12888_v57 = vor.u32 %v14092_v36, %v12887_v34  ;;  %v12999_v32 = vld [vmem:[%s15819_s27 + $0xfb0] sm:$0xf]  ;;  %v14120_v33 = vld [vmem:[%s15819_s27 + $0xfb4] sm:$0xf0] }
 0x39d   : > { %10036 = vmatpush.bf16.msra.mxu2 %v12672_v0  ;;  %v12840_v0 = vor.u32 %v14080_v31, %v12839_v30  ;;  %v12896_v30 = vor.u32 %v14094_v19, %v12895_v11  ;;  %v12943_v63 = vld [vmem:[%s15819_s27 + $0xf40] sm:$0xf] }
 0x39e   : > { %10049 = vmatpush.bf16.msra.mxu3 %v12736_v13  ;;  %v16395_v13 = vpack.c.bf16 %v5655_v16, %v5655_v16  ;;  %v12879_v16 = vld [vmem:[%s15819_s27 + $0xec0] sm:$0xf] }
 0x39f   : > { %10011 = vmatpush.bf16.msra.mxu0 %v12536_v21  ;;  %v14110_v21 = vld [vmem:[%s15819_s27 + $0xf64] sm:$0xf0]  ;;  %v12880_v11 = vor.u32 %v14090_v62, %v12879_v16 }
 0x3a0   : > { %10024 = vmatpush.bf16.msra.mxu1 %v12600_v24  ;;  %v13023_v24 = vld [vmem:[%s15819_s27 + $0xfe0] sm:$0xf]  ;;  %v12960_v31 = vor.u32 %v14110_v21, %v12959_v20  ;;  %v12807_v20 = vld [vmem:[%s15819_s27 + $0xe30] sm:$0xf]  ;;  %v14072_v21 = vld [vmem:[%s15819_s27 + $0xe34] sm:$0xf0] }
 0x3a1   : > { %10037 = vmatpush.bf16.msra.mxu2 %v12664_v29  ;;  %v14126_v29 = vld [vmem:[%s15819_s27 + $0xfe4] sm:$0xf0] }
 0x3a2   : > { %10050 = vmatpush.bf16.msra.mxu3 %v12728_v47  ;;  %v14108_v47 = vld [vmem:[%s15819_s27 + $0xf54] sm:$0xf0]  ;;  %v13024_v39 = vor.u32 %v14126_v29, %v13023_v24  ;;  %v12935_v29 = vld [vmem:[%s15819_s27 + $0xf30] sm:$0xf] }
 0x3a3   : > { %10012 = vmatpush.bf16.msra.mxu0 %v12528_v52  ;;  %v13015_v52 = vld [vmem:[%s15819_s27 + $0xfd0] sm:$0xf]  ;;  %v12952_v58 = vor.u32 %v14108_v47, %v12951_v40  ;;  %v9806_v3 = vpop.f32.mrf.mxu0  ;;  %v14088_v24 = vld [vmem:[%s15819_s27 + $0xeb4] sm:$0xf0]  ;;  %v12799_v47 = vld [vmem:[%s15819_s27 + $0xe20] sm:$0xf] }
 0x3a4   : > { %10025 = vmatpush.bf16.msra.mxu1 %v12592_v15  ;;  %v12815_v15 = vld [vmem:[%s15819_s27 + $0xe40] sm:$0xf]  ;;  %v9807_v4 = vadd.f32 %v9806_v3, %v16369_v7  ;;  %v14104_v7 = vld [vmem:[%s15819_s27 + $0xf34] sm:$0xf0]  ;;  %v12791_v3 = vld [vmem:[%s15819_s27 + $0xe10] sm:$0xf] }
 0x3a5   : > { %10038 = vmatpush.bf16.msra.mxu2 %v12656_v61  ;;  %v14074_v61 = vld [vmem:[%s15819_s27 + $0xe44] sm:$0xf0]  ;;  %v12936_v36 = vor.u32 %v14104_v7, %v12935_v29 }
 0x3a6   : > { %10051 = vmatpush.bf16.msra.mxu3 %v12720_v6  ;;  %10013 = vmatmul.bf16.vlgmr.msra.gmra.mxu0 %v16395_v13  ;;  %v9819_v6 = vpop.f32.mrf.mxu1  ;;  %v14066_v29 = vld [vmem:[%s15819_s27 + $0xe04] sm:$0xf0] }
 0x3a7   : > { %10057 = vmatpush.bf16.msrb.mxu0 %v12840_v0  ;;  %10026 = vmatmul.bf16.vlgmr.msra.gmra.mxu1 %v16402_v25  ;;  %v14106_v0 = vld [vmem:[%s15819_s27 + $0xf44] sm:$0xf0] }
 0x3a8   : > { %10070 = vmatpush.bf16.msrb.mxu1 %v12904_v1  ;;  %10039 = vmatmul.bf16.vlgmr.msra.gmra.mxu2 %v16397_v14  ;;  %v13016_v1 = vor.u32 %v14124_v55, %v13015_v52  ;;  %v12944_v19 = vor.u32 %v14106_v0, %v12943_v63  ;;  %v14086_v55 = vld [vmem:[%s15819_s27 + $0xea4] sm:$0xf0]  ;;  %v12991_v0 = vld [vmem:[%s15819_s27 + $0xfa0] sm:$0xf] }
 0x3a9   : > { %10083 = vmatpush.bf16.msrb.mxu2 %v12968_v5  ;;  %10052 = vmatmul.bf16.vlgmr.msra.gmra.mxu3 %v16404_v27  ;;  %v12816_v5 = vor.u32 %v14074_v61, %v12815_v15  ;;  %v13000_v15 = vor.u32 %v14120_v33, %v12999_v32  ;;  %v12911_v32 = vld [vmem:[%s15819_s27 + $0xf00] sm:$0xf]  ;;  %v14098_v33 = vld [vmem:[%s15819_s27 + $0xf04] sm:$0xf0] }
 0x3aa   : > { %10096 = vmatpush.bf16.msrb.mxu3 %v13032_v22  ;;  %v12871_v22 = vld [vmem:[%s15819_s27 + $0xeb0] sm:$0xf] }
 0x3ab   : > { %10058 = vmatpush.bf16.msrb.mxu0 %v12832_v28  ;;  %v9820_v28 = vadd.f32 %v9819_v6, %v9807_v4  ;;  %v12872_v34 = vor.u32 %v14088_v24, %v12871_v22  ;;  %v9832_v40 = vpop.f32.mrf.mxu2  ;;  %v9808_v16 = vpop.f32.mrf.mxu0  ;;  %v12783_v24 = vld [vmem:[%s15819_s27 + $0xe00] sm:$0xf] }
 0x3ac   : > { %10071 = vmatpush.bf16.msrb.mxu1 %v12896_v30  ;;  %v13008_v30 = vor.u32 %v14122_v9, %v13007_v8  ;;  %v9845_v61 = vpop.f32.mrf.mxu3  ;;  %v14068_v8 = vld [vmem:[%s15819_s27 + $0xe14] sm:$0xf0]  ;;  %v12855_v9 = vld [vmem:[%s15819_s27 + $0xe90] sm:$0xf] }
 0x3ad   : > { %10084 = vmatpush.bf16.msrb.mxu2 %v12960_v31  ;;  %v12808_v31 = vor.u32 %v14072_v21, %v12807_v20  ;;  %v9833_v52 = vadd.f32 %v9832_v40, %v9820_v28  ;;  %v14100_v20 = vld [vmem:[%s15819_s27 + $0xf14] sm:$0xf0]  ;;  %v12983_v21 = vld [vmem:[%s15819_s27 + $0xf90] sm:$0xf]  ;;  %v12792_v7 = vor.u32 %v14068_v8, %v12791_v3 }
 0x3ae   : > { %10097 = vmatpush.bf16.msrb.mxu3 %v13024_v39  ;;  %v14070_v39 = vld [vmem:[%s15819_s27 + $0xe24] sm:$0xf0]  ;;  %v9821_v4 = vpop.f32.mrf.mxu1  ;;  %v14116_v28 = vld [vmem:[%s15819_s27 + $0xf94] sm:$0xf0]  ;;  %v13095_v40 = vld [vmem:[%s15819_s27 + $0x1070] sm:$0xf] }
 0x3af   : > { %10059 = vmatpush.bf16.msrb.mxu0 %v12824_v51  ;;  %v12863_v51 = vld [vmem:[%s15819_s27 + $0xea0] sm:$0xf]  ;;  %v16443_v62 = vadd.f32 %v9845_v61, %v9833_v52  ;;  %v12800_v63 = vor.u32 %v14070_v39, %v12799_v47  ;;  %v14144_v47 = vld [vmem:[%s15819_s27 + $0x1074] sm:$0xf0]  ;;  %v13159_v39 = vld [vmem:[%s15819_s27 + $0x10f0] sm:$0xf] }
 0x3b0   : > { %10072 = vmatpush.bf16.msrb.mxu1 %v12888_v57  ;;  %v12927_v57 = vld [vmem:[%s15819_s27 + $0xf20] sm:$0xf]  ;;  %v14160_v52 = vld [vmem:[%s15819_s27 + $0x10f4] sm:$0xf0] }
 0x3b1   : > { %10085 = vmatpush.bf16.msrb.mxu2 %v12952_v58  ;;  %v14102_v58 = vld [vmem:[%s15819_s27 + $0xf24] sm:$0xf0]  ;;  %v12975_v61 = vld [vmem:[%s15819_s27 + $0xf80] sm:$0xf]  ;;  %v14192_v3 = vld [vmem:[%s15819_s27 + $0x11f4] sm:$0xf0] }
 0x3b2   : > { %10098 = vmatpush.bf16.msrb.mxu3 %v13016_v1  ;;  %v14118_v1 = vld [vmem:[%s15819_s27 + $0xfa4] sm:$0xf0]  ;;  %v12928_v6 = vor.u32 %v14102_v58, %v12927_v57  ;;  %v5608_v57 = vld [vmem:[%s15801_s5 + $0x40] sm:$0xff]  ;;  %v12984_v58 = vor.u32 %v14116_v28, %v12983_v21  ;;  %v13087_v28 = vld [vmem:[%s15819_s27 + $0x1060] sm:$0xf] }
 0x3b3   : > { %10060 = vmatpush.bf16.msrb.mxu0 %v12816_v5  ;;  %v12864_v5 = vor.u32 %v14086_v55, %v12863_v51  ;;  %v12992_v22 = vor.u32 %v14118_v1, %v12991_v0  ;;  %v9834_v51 = vpop.f32.mrf.mxu2  ;;  %v13223_v55 = vld [vmem:[%s15819_s27 + $0x1170] sm:$0xf]  ;;  %5663 = vst [vmem:[#allocation1] ss:$4 sm:$0xff] %v5608_v57  ;;  %v14114_v0 = vld [vmem:[%s15819_s27 + $0xf84] sm:$0xf0] }
 0x3b4   : > { %10073 = vmatpush.bf16.msrb.mxu1 %v12880_v11  ;;  %v14084_v11 = vld [vmem:[%s15819_s27 + $0xe94] sm:$0xf0]  ;;  %v9847_v16 = vpop.f32.mrf.mxu3  ;;  %v13287_v1 = vld [vmem:[%s15819_s27 + $0x11f0] sm:$0xf]  ;;  %v14190_v51 = vld [vmem:[%s15819_s27 + $0x11e4] sm:$0xf0] }
 0x3b5   : > { %10086 = vmatpush.bf16.msrb.mxu2 %v12944_v19  ;;  %v12919_v19 = vld [vmem:[%s15819_s27 + $0xf10] sm:$0xf]  ;;  %v5661_v8 = vld.sshfl [vmem:[#allocation1 + $0x30] sm:$0xff pattern:$0x73625140] }
 0x3b6   : > { %10099 = vmatpush.bf16.msrb.mxu3 %v13008_v30  ;;  %v12847_v30 = vld [vmem:[%s15819_s27 + $0xe80] sm:$0xf]  ;;  %v13079_v57 = vld [vmem:[%s15819_s27 + $0x1050] sm:$0xf] }
 0x3b7   : > { %10061 = vmatpush.bf16.msrb.mxu0 %v12808_v31  ;;  %v14082_v31 = vld [vmem:[%s15819_s27 + $0xe84] sm:$0xf0]  ;;  %v13207_v16 = vld [vmem:[%s15819_s27 + $0x1150] sm:$0xf] }
 0x3b8   : > { %10074 = vmatpush.bf16.msrb.mxu1 %v12872_v34  ;;  %v12856_v34 = vor.u32 %v14084_v11, %v12855_v9  ;;  %v12848_v4 = vor.u32 %v14082_v31, %v12847_v30  ;;  %v13096_v9 = vor.u32 %v14144_v47, %v13095_v40  ;;  %v13160_v11 = vor.u32 %v14160_v52, %v13159_v39  ;;  %v14158_v31 = vld [vmem:[%s15819_s27 + $0x10e4] sm:$0xf0]  ;;  %v13279_v39 = vld [vmem:[%s15819_s27 + $0x11e0] sm:$0xf] }
 0x3b9   : > { %10087 = vmatpush.bf16.msrb.mxu2 %v12936_v36  ;;  %v12920_v36 = vor.u32 %v14100_v20, %v12919_v19  ;;  %v5660_v19 = vld.sshfl [vmem:[#allocation1 + $0x28] sm:$0xff pattern:$0x73625140]  ;;  %v5662_v20 = vld.sshfl [vmem:[#allocation1 + $0x38] sm:$0xff pattern:$0x73625140]  ;;  %v16477_v30 = vpack.c.bf16 %v5661_v8, %v5661_v8 }
 0x3ba   : > { %10100 = vmatpush.bf16.msrb.mxu3 %v13000_v15  ;;  %v14176_v15 = vld [vmem:[%s15819_s27 + $0x1174] sm:$0xf0]  ;;  %v16484_v40 = vpack.c.bf16 %v5662_v20, %v5662_v20  ;;  %v13071_v8 = vld [vmem:[%s15819_s27 + $0x1040] sm:$0xf] }
 0x3bb   : > { %10062 = vmatpush.bf16.msrb.mxu0 %v12800_v63  ;;  %v12784_v63 = vor.u32 %v14066_v29, %v12783_v24  ;;  %v13224_v21 = vor.u32 %v14176_v15, %v13223_v55  ;;  %v14142_v24 = vld [vmem:[%s15819_s27 + $0x1064] sm:$0xf0]  ;;  %v13151_v29 = vld [vmem:[%s15819_s27 + $0x10e0] sm:$0xf]  ;;  %v13143_v15 = vld [vmem:[%s15819_s27 + $0x10d0] sm:$0xf] }
 0x3bc   : > { %10075 = vmatpush.bf16.msrb.mxu1 %v12864_v5  ;;  %v12912_v5 = vor.u32 %v14098_v33, %v12911_v32  ;;  %v13215_v32 = vld [vmem:[%s15819_s27 + $0x1160] sm:$0xf]  ;;  %v14174_v33 = vld [vmem:[%s15819_s27 + $0x1164] sm:$0xf0]  ;;  %v13088_v47 = vor.u32 %v14142_v24, %v13087_v28  ;;  %v13152_v52 = vor.u32 %v14158_v31, %v13151_v29 }
 0x3bd   : > { %10088 = vmatpush.bf16.msrb.mxu2 %v12928_v6  ;;  %v5659_v6 = vld.sshfl [vmem:[#allocation1 + $0x20] sm:$0xff pattern:$0x73625140]  ;;  %v13216_v55 = vor.u32 %v14174_v33, %v13215_v32  ;;  %v13199_v20 = vld [vmem:[%s15819_s27 + $0x1140] sm:$0xf] }
 0x3be   : > { %10101 = vmatpush.bf16.msrb.mxu3 %v12992_v22  ;;  %v12976_v22 = vor.u32 %v14114_v0, %v12975_v61  ;;  %v14156_v61 = vld [vmem:[%s15819_s27 + $0x10d4] sm:$0xf0]  ;;  %v13280_v0 = vor.u32 %v14190_v51, %v13279_v39  ;;  %v13263_v32 = vld [vmem:[%s15819_s27 + $0x11c0] sm:$0xf]  ;;  %v14186_v33 = vld [vmem:[%s15819_s27 + $0x11c4] sm:$0xf0] }
 0x3bf   : > { %10063 = vmatpush.bf16.msrb.mxu0 %v12792_v7  ;;  %v16475_v7 = vpack.c.bf16 %v5659_v6, %v5659_v6  ;;  %v13063_v39 = vld [vmem:[%s15819_s27 + $0x1030] sm:$0xf]  ;;  %v14136_v51 = vld [vmem:[%s15819_s27 + $0x1034] sm:$0xf0] }
 0x3c0   : > { %10076 = vmatpush.bf16.msrb.mxu1 %v12856_v34  ;;  %v13288_v34 = vor.u32 %v14192_v3, %v13287_v1  ;;  %v13271_v3 = vld [vmem:[%s15819_s27 + $0x11d0] sm:$0xf] }
 0x3c1   : > { %10089 = vmatpush.bf16.msrb.mxu2 %v12920_v36  ;;  %v16482_v36 = vpack.c.bf16 %v5660_v19, %v5660_v19  ;;  %v14154_v19 = vld [vmem:[%s15819_s27 + $0x10c4] sm:$0xf0] }
 0x3c2   : > { %10102 = vmatpush.bf16.msrb.mxu3 %v12984_v58  ;;  %v14140_v58 = vld [vmem:[%s15819_s27 + $0x1054] sm:$0xf0] }
 0x3c3   : > { %10064 = vmatpush.bf16.msrb.mxu0 %v12784_v63  ;;  %v14172_v63 = vld [vmem:[%s15819_s27 + $0x1154] sm:$0xf0]  ;;  %v13080_v1 = vor.u32 %v14140_v58, %v13079_v57  ;;  %v9858_v28 = vpop.f32.mrf.mxu0  ;;  %v13191_v58 = vld [vmem:[%s15819_s27 + $0x1130] sm:$0xf] }
 0x3c4   : > { %10077 = vmatpush.bf16.msrb.mxu1 %v12848_v4  ;;  %v14188_v4 = vld [vmem:[%s15819_s27 + $0x11d4] sm:$0xf0]  ;;  %v13208_v6 = vor.u32 %v14172_v63, %v13207_v16  ;;  %v9859_v24 = vadd.f32 %v9858_v28, %v16443_v62  ;;  %v9871_v31 = vpop.f32.mrf.mxu1  ;;  %v13255_v16 = vld [vmem:[%s15819_s27 + $0x11b0] sm:$0xf] }
 0x3c5   : > { %10090 = vmatpush.bf16.msrb.mxu2 %v12912_v5  ;;  %v13144_v5 = vor.u32 %v14156_v61, %v13143_v15  ;;  %v14152_v57 = vld [vmem:[%s15819_s27 + $0x10b4] sm:$0xf0]  ;;  %v13264_v15 = vor.u32 %v14186_v33, %v13263_v32  ;;  %v13064_v61 = vor.u32 %v14136_v51, %v13063_v39  ;;  %v13047_v32 = vld [vmem:[%s15819_s27 + $0x1010] sm:$0xf] }
 0x3c6   : > { %10103 = vmatpush.bf16.msrb.mxu3 %v12976_v22  ;;  %10065 = vmatmul.bf16.vlgmr.msrb.gmra.mxu0 %v16475_v7  ;;  %v13272_v22 = vor.u32 %v14188_v4, %v13271_v3  ;;  %v14168_v62 = vld [vmem:[%s15819_s27 + $0x1134] sm:$0xf0]  ;;  %v13055_v4 = vld [vmem:[%s15819_s27 + $0x1020] sm:$0xf]  ;;  %v13111_v51 = vld [vmem:[%s15819_s27 + $0x1090] sm:$0xf] }
 0x3c7   : > { %10109 = vmatpush.bf16.msra.mxu0 %v13096_v9  ;;  %10078 = vmatmul.bf16.vlgmr.msrb.gmra.mxu1 %v16482_v36  ;;  %v14138_v9 = vld [vmem:[%s15819_s27 + $0x1044] sm:$0xf0]  ;;  %v14184_v63 = vld [vmem:[%s15819_s27 + $0x11b4] sm:$0xf0] }
 0x3c8   : > { %10122 = vmatpush.bf16.msra.mxu1 %v13160_v11  ;;  %10091 = vmatmul.bf16.vlgmr.msrb.gmra.mxu2 %v16477_v30  ;;  %v13135_v11 = vld [vmem:[%s15819_s27 + $0x10c0] sm:$0xf]  ;;  %v13072_v29 = vor.u32 %v14138_v9, %v13071_v8  ;;  %v14150_v9 = vld [vmem:[%s15819_s27 + $0x10a4] sm:$0xf0]  ;;  %v14132_v39 = vld [vmem:[%s15819_s27 + $0x1014] sm:$0xf0] }
 0x3c9   : > { %10135 = vmatpush.bf16.msra.mxu2 %v13224_v21  ;;  %10104 = vmatmul.bf16.vlgmr.msrb.gmra.mxu3 %v16484_v40  ;;  %v14170_v21 = vld [vmem:[%s15819_s27 + $0x1144] sm:$0xf0] }
 0x3ca   : > { %10148 = vmatpush.bf16.msra.mxu3 %v13288_v34  ;;  %v13136_v34 = vor.u32 %v14154_v19, %v13135_v11  ;;  %v13183_v11 = vld [vmem:[%s15819_s27 + $0x1120] sm:$0xf]  ;;  %v14166_v19 = vld [vmem:[%s15819_s27 + $0x1124] sm:$0xf0] }
 0x3cb   : > { %10110 = vmatpush.bf16.msra.mxu0 %v13088_v47  ;;  %v13200_v47 = vor.u32 %v14170_v21, %v13199_v20  ;;  %v9884_v3 = vpop.f32.mrf.mxu2  ;;  %v13256_v20 = vor.u32 %v14184_v63, %v13255_v16  ;;  %v14130_v16 = vld [vmem:[%s15819_s27 + $0x1004] sm:$0xf0]  ;;  %v13048_v63 = vor.u32 %v14132_v39, %v13047_v32  ;;  %v14256_v39 = vld [vmem:[%s15819_s27 + $0x13f4] sm:$0xf0] }
 0x3cc   : > { %10123 = vmatpush.bf16.msra.mxu1 %v13152_v52  ;;  %v13127_v52 = vld [vmem:[%s15819_s27 + $0x10b0] sm:$0xf]  ;;  %v9897_v21 = vpop.f32.mrf.mxu3  ;;  %v9873_v33 = vpop.f32.mrf.mxu1 }
 0x3cd   : > { %10136 = vmatpush.bf16.msra.mxu2 %v13216_v55  ;;  %v9872_v55 = vadd.f32 %v9871_v31, %v9859_v24  ;;  %v14182_v31 = vld [vmem:[%s15819_s27 + $0x11a4] sm:$0xf0] }
 0x3ce   : > { %10149 = vmatpush.bf16.msra.mxu3 %v13280_v0  ;;  %v13128_v0 = vor.u32 %v14152_v57, %v13127_v52  ;;  %v14148_v52 = vld [vmem:[%s15819_s27 + $0x1094] sm:$0xf0] }
 0x3cf   : > { %10111 = vmatpush.bf16.msra.mxu0 %v13080_v1  ;;  %v13192_v1 = vor.u32 %v14168_v62, %v13191_v58  ;;  %v9885_v8 = vadd.f32 %v9884_v3, %v9872_v55  ;;  %v13175_v55 = vld [vmem:[%s15819_s27 + $0x1110] sm:$0xf]  ;;  %v14164_v57 = vld [vmem:[%s15819_s27 + $0x1114] sm:$0xf0]  ;;  %v13167_v3 = vld [vmem:[%s15819_s27 + $0x1100] sm:$0xf] }
 0x3d0   : > { %10124 = vmatpush.bf16.msra.mxu1 %v13144_v5  ;;  %v14134_v5 = vld [vmem:[%s15819_s27 + $0x1024] sm:$0xf0]  ;;  %v13239_v58 = vld [vmem:[%s15819_s27 + $0x1190] sm:$0xf] }
 0x3d1   : > { %10137 = vmatpush.bf16.msra.mxu2 %v13208_v6  ;;  %v13119_v6 = vld [vmem:[%s15819_s27 + $0x10a0] sm:$0xf]  ;;  %v16523_v28 = vadd.f32 %v9897_v21, %v9885_v8  ;;  %v13056_v24 = vor.u32 %v14134_v5, %v13055_v4  ;;  %v14162_v4 = vld [vmem:[%s15819_s27 + $0x1104] sm:$0xf0]  ;;  %v13112_v5 = vor.u32 %v14148_v52, %v13111_v51  ;;  %v13351_v8 = vld [vmem:[%s15819_s27 + $0x1270] sm:$0xf] }
 0x3d2   : > { %10150 = vmatpush.bf16.msra.mxu3 %v13272_v22  ;;  %v9860_v22 = vpop.f32.mrf.mxu0  ;;  %v13479_v21 = vld [vmem:[%s15819_s27 + $0x1370] sm:$0xf]  ;;  %v13168_v52 = vor.u32 %v14162_v4, %v13167_v3  ;;  %v14222_v3 = vld [vmem:[%s15819_s27 + $0x12e4] sm:$0xf0]  ;;  %v13471_v4 = vld [vmem:[%s15819_s27 + $0x1360] sm:$0xf] }
 0x3d3   : > { %10112 = vmatpush.bf16.msra.mxu0 %v13072_v29  ;;  %v13247_v29 = vld [vmem:[%s15819_s27 + $0x11a0] sm:$0xf] }
 0x3d4   : > { %10125 = vmatpush.bf16.msra.mxu1 %v13136_v34  ;;  %v13120_v34 = vor.u32 %v14150_v9, %v13119_v6  ;;  %v13248_v62 = vor.u32 %v14182_v31, %v13247_v29  ;;  %v13176_v6 = vor.u32 %v14164_v57, %v13175_v55  ;;  %v14208_v9 = vld [vmem:[%s15819_s27 + $0x1274] sm:$0xf0]  ;;  %v5609_v22 = vld [vmem:[%s15801_s5 + $0x48] sm:$0xff]  ;;  %v9899_v32 = vpop.f32.mrf.mxu3  ;;  %v5667_v57 = vld.sshfl [vmem:[#allocation1 + $0x10] sm:$0xff pattern:$0x73625140] }
 0x3d5   : > { %10138 = vmatpush.bf16.msra.mxu2 %v13200_v47  ;;  %v13184_v47 = vor.u32 %v14166_v19, %v13183_v11  ;;  %v13415_v11 = vld [vmem:[%s15819_s27 + $0x12f0] sm:$0xf]  ;;  %v9886_v19 = vpop.f32.mrf.mxu2  ;;  %v14240_v29 = vld [vmem:[%s15819_s27 + $0x1374] sm:$0xf0]  ;;  %v13231_v31 = vld [vmem:[%s15819_s27 + $0x1180] sm:$0xf] }
 0x3d6   : > { %10151 = vmatpush.bf16.msra.mxu3 %v13264_v15  ;;  %v14180_v15 = vld [vmem:[%s15819_s27 + $0x1194] sm:$0xf0]  ;;  %5664 = vst [vmem:[#allocation1 + $0x20] ss:$4 sm:$0xff] %v5609_v22  ;;  %v13343_v19 = vld [vmem:[%s15819_s27 + $0x1260] sm:$0xf] }
 0x3d7   : > { %10113 = vmatpush.bf16.msra.mxu0 %v13064_v61  ;;  %v13039_v61 = vld [vmem:[%s15819_s27 + $0x1000] sm:$0xf]  ;;  %v5665_v55 = vld.sshfl [vmem:[#allocation1] sm:$0xff pattern:$0x73625140] }
 0x3d8   : > { %10126 = vmatpush.bf16.msra.mxu1 %v13128_v0  ;;  %v13103_v0 = vld [vmem:[%s15819_s27 + $0x1080] sm:$0xf]  ;;  %v13040_v33 = vor.u32 %v14130_v16, %v13039_v61  ;;  %v13480_v61 = vor.u32 %v14240_v29, %v13479_v21  ;;  %v14206_v22 = vld [vmem:[%s15819_s27 + $0x1264] sm:$0xf0] }
 0x3d9   : > { %10139 = vmatpush.bf16.msra.mxu2 %v13192_v1  ;;  %v14146_v1 = vld [vmem:[%s15819_s27 + $0x1084] sm:$0xf0]  ;;  %v13407_v32 = vld [vmem:[%s15819_s27 + $0x12e0] sm:$0xf] }
 0x3da   : > { %10152 = vmatpush.bf16.msra.mxu3 %v13256_v20  ;;  %v14224_v20 = vld [vmem:[%s15819_s27 + $0x12f4] sm:$0xf0]  ;;  %v13104_v51 = vor.u32 %v14146_v1, %v13103_v0  ;;  %v16555_v0 = vpack.c.bf16 %v5665_v55, %v5665_v55  ;;  %v16557_v1 = vpack.c.bf16 %v5667_v57, %v5667_v57  ;;  %v14254_v21 = vld [vmem:[%s15819_s27 + $0x13e4] sm:$0xf0]  ;;  %v13527_v57 = vld [vmem:[%s15819_s27 + $0x13d0] sm:$0xf] }
 0x3db   : > { %10114 = vmatpush.bf16.msra.mxu0 %v13056_v24  ;;  %v13240_v24 = vor.u32 %v14180_v15, %v13239_v58  ;;  %v13352_v58 = vor.u32 %v14208_v9, %v13351_v8  ;;  %v5666_v15 = vld.sshfl [vmem:[#allocation1 + $0x8] sm:$0xff pattern:$0x73625140] }
 0x3dc   : > { %10127 = vmatpush.bf16.msra.mxu1 %v13120_v34  ;;  %v14178_v34 = vld [vmem:[%s15819_s27 + $0x1184] sm:$0xf0]  ;;  %17459 = vst [vmem:[#allocation4_spill] sm:$0xff] %v16555_v0  ;;  %v16562_v8 = vpack.c.bf16 %v5666_v15, %v5666_v15 }
 0x3dd   : > { %10140 = vmatpush.bf16.msra.mxu2 %v13184_v47  ;;  %v13543_v47 = vld [vmem:[%s15819_s27 + $0x13f0] sm:$0xf]  ;;  %v13232_v16 = vor.u32 %v14178_v34, %v13231_v31  ;;  %17460 = vst [vmem:[#allocation5_spill] sm:$0xff] %v16557_v1 }
 0x3de   : > { %10153 = vmatpush.bf16.msra.mxu3 %v13248_v62  ;;  %v13416_v62 = vor.u32 %v14224_v20, %v13415_v11  ;;  %17461 = vst [vmem:[#allocation6_spill] sm:$0xff] %v16562_v8  ;;  %v13344_v11 = vor.u32 %v14206_v22, %v13343_v19  ;;  %v13535_v20 = vld [vmem:[%s15819_s27 + $0x13e0] sm:$0xf]  ;;  %v13335_v31 = vld [vmem:[%s15819_s27 + $0x1250] sm:$0xf] }
 0x3df   : > { %10115 = vmatpush.bf16.msra.mxu0 %v13048_v63  ;;  %v5668_v63 = vld.sshfl [vmem:[#allocation1 + $0x18] sm:$0xff pattern:$0x73625140]  ;;  %v14218_v19 = vld [vmem:[%s15819_s27 + $0x12c4] sm:$0xf0] }
 0x3e0   : > { %10128 = vmatpush.bf16.msra.mxu1 %v13112_v5  ;;  %v14238_v5 = vld [vmem:[%s15819_s27 + $0x1364] sm:$0xf0]  ;;  %v16564_v9 = vpack.c.bf16 %v5668_v63, %v5668_v63  ;;  %v13399_v34 = vld [vmem:[%s15819_s27 + $0x12d0] sm:$0xf]  ;;  %v13327_v63 = vld [vmem:[%s15819_s27 + $0x1240] sm:$0xf] }
 0x3e1   : > { %10141 = vmatpush.bf16.msra.mxu2 %v13176_v6  ;;  %v13544_v6 = vor.u32 %v14256_v39, %v13543_v47  ;;  %v13472_v29 = vor.u32 %v14238_v5, %v13471_v4  ;;  %v14220_v47 = vld [vmem:[%s15819_s27 + $0x12d4] sm:$0xf0]  ;;  %v13463_v39 = vld [vmem:[%s15819_s27 + $0x1350] sm:$0xf]  ;;  %v13455_v22 = vld [vmem:[%s15819_s27 + $0x1340] sm:$0xf] }
 0x3e2   : > { %10154 = vmatpush.bf16.msra.mxu3 %v13240_v24  ;;  %17462 = vst [vmem:[#allocation7_spill] sm:$0xff] %v16564_v9  ;;  %v13408_v24 = vor.u32 %v14222_v3, %v13407_v32  ;;  %v14234_v32 = vld [vmem:[%s15819_s27 + $0x1344] sm:$0xf0] }
 0x3e3   : > { %10116 = vmatpush.bf16.msra.mxu0 %v13040_v33  ;;  %v14204_v33 = vld [vmem:[%s15819_s27 + $0x1254] sm:$0xf0]  ;;  %v9910_v4 = vpop.f32.mrf.mxu0 }
 0x3e4   : > { %10129 = vmatpush.bf16.msra.mxu1 %v13104_v51  ;;  %v14236_v51 = vld [vmem:[%s15819_s27 + $0x1354] sm:$0xf0]  ;;  %v13336_v55 = vor.u32 %v14204_v33, %v13335_v31  ;;  %v9911_v5 = vadd.f32 %v9910_v4, %v16523_v28  ;;  %v13319_v31 = vld [vmem:[%s15819_s27 + $0x1230] sm:$0xf]  ;;  %v14230_v4 = vld [vmem:[%s15819_s27 + $0x1324] sm:$0xf0] }
 0x3e5   : > { %10142 = vmatpush.bf16.msra.mxu2 %v13168_v52  ;;  %v13536_v52 = vor.u32 %v14254_v21, %v13535_v20  ;;  %v13464_v15 = vor.u32 %v14236_v51, %v13463_v39  ;;  %v13519_v20 = vld [vmem:[%s15819_s27 + $0x13c0] sm:$0xf]  ;;  %v14250_v21 = vld [vmem:[%s15819_s27 + $0x13c4] sm:$0xf0]  ;;  %v14200_v33 = vld [vmem:[%s15819_s27 + $0x1234] sm:$0xf0] }
 0x3e6   : > { %10155 = vmatpush.bf16.msra.mxu3 %v13232_v16  ;;  %10117 = vmatmul.bf16.vlgmr.msra.gmra.mxu0 %v16555_v0  ;;  %v13391_v16 = vld [vmem:[%s15819_s27 + $0x12c0] sm:$0xf]  ;;  %v14216_v39 = vld [vmem:[%s15819_s27 + $0x12b4] sm:$0xf0]  ;;  %v13447_v51 = vld [vmem:[%s15819_s27 + $0x1330] sm:$0xf] }
 0x3e7   : > { %10161 = vmatpush.bf16.msrb.mxu0 %v13352_v58  ;;  %10130 = vmatmul.bf16.vlgmr.msra.gmra.mxu1 %v16562_v8  ;;  %v14252_v58 = vld [vmem:[%s15819_s27 + $0x13d4] sm:$0xf0]  ;;  %v14270_v0 = vld [vmem:[%s15819_s27 + $0x1464] sm:$0xf0]  ;;  %v13629_v8 = vld [vmem:[%s15819_s27 + $0x64] sm:$0xf] }
 0x3e8   : > { %10174 = vmatpush.bf16.msrb.mxu1 %v13416_v62  ;;  %10143 = vmatmul.bf16.vlgmr.msra.gmra.mxu2 %v16557_v1  ;;  %v13400_v62 = vor.u32 %v14220_v47, %v13399_v34  ;;  %v13528_v3 = vor.u32 %v14252_v58, %v13527_v57  ;;  %v13383_v34 = vld [vmem:[%s15819_s27 + $0x12b0] sm:$0xf]  ;;  %v14232_v28 = vld [vmem:[%s15819_s27 + $0x1334] sm:$0xf0] }
 0x3e9   : > { %10187 = vmatpush.bf16.msrb.mxu2 %v13480_v61  ;;  %10156 = vmatmul.bf16.vlgmr.msra.gmra.mxu3 %v16564_v9  ;;  %v14202_v61 = vld [vmem:[%s15819_s27 + $0x1244] sm:$0xf0]  ;;  %v13511_v57 = vld [vmem:[%s15819_s27 + $0x13b0] sm:$0xf]  ;;  %v14248_v58 = vld [vmem:[%s15819_s27 + $0x13b4] sm:$0xf0] }
 0x3ea   : > { %10200 = vmatpush.bf16.msrb.mxu3 %v13544_v6  ;;  %v13328_v6 = vor.u32 %v14202_v61, %v13327_v63  ;;  %v13311_v61 = vld [vmem:[%s15819_s27 + $0x1220] sm:$0xf] }
 0x3eb   : > { %10162 = vmatpush.bf16.msrb.mxu0 %v13344_v11  ;;  %v9923_v11 = vpop.f32.mrf.mxu1  ;;  %v9936_v63 = vpop.f32.mrf.mxu2  ;;  %v13487_v9 = vld [vmem:[%s15819_s27 + $0x1380] sm:$0xf] }
 0x3ec   : > { %10175 = vmatpush.bf16.msrb.mxu1 %v13408_v24  ;;  %v13392_v24 = vor.u32 %v14218_v19, %v13391_v16  ;;  %v9924_v47 = vadd.f32 %v9923_v11, %v9911_v5  ;;  %v14198_v16 = vld [vmem:[%s15819_s27 + $0x1224] sm:$0xf0]  ;;  %v13375_v19 = vld [vmem:[%s15819_s27 + $0x12a0] sm:$0xf]  ;;  %v13512_v5 = vor.u32 %v14248_v58, %v13511_v57  ;;  %v9912_v11 = vpop.f32.mrf.mxu0  ;;  %v13495_v57 = vld [vmem:[%s15819_s27 + $0x1390] sm:$0xf] }
 0x3ed   : > { %10188 = vmatpush.bf16.msrb.mxu2 %v13472_v29  ;;  %v13456_v29 = vor.u32 %v14234_v32, %v13455_v22  ;;  %v14214_v32 = vld [vmem:[%s15819_s27 + $0x12a4] sm:$0xf0]  ;;  %v13631_v11 = vld [vmem:[%s15819_s27 + $0x74] sm:$0xf] }
 0x3ee   : > { %10201 = vmatpush.bf16.msrb.mxu3 %v13536_v52  ;;  %v13520_v52 = vor.u32 %v14250_v21, %v13519_v20  ;;  %v9937_v22 = vadd.f32 %v9936_v63, %v9924_v47  ;;  %v13312_v21 = vor.u32 %v14198_v16, %v13311_v61  ;;  %v14244_v63 = vld [vmem:[%s15819_s27 + $0x1394] sm:$0xf0]  ;;  %v13359_v16 = vld [vmem:[%s15819_s27 + $0x1280] sm:$0xf] }
 0x3ef   : > { %10163 = vmatpush.bf16.msrb.mxu0 %v13336_v55  ;;  %v13320_v55 = vor.u32 %v14200_v33, %v13319_v31  ;;  %v13303_v31 = vld [vmem:[%s15819_s27 + $0x1210] sm:$0xf] }
 0x3f0   : > { %10176 = vmatpush.bf16.msrb.mxu1 %v13400_v62  ;;  %v13384_v62 = vor.u32 %v14216_v39, %v13383_v34  ;;  %v13376_v34 = vor.u32 %v14214_v32, %v13375_v19  ;;  %v14196_v39 = vld [vmem:[%s15819_s27 + $0x1214] sm:$0xf0]  ;;  %v14210_v19 = vld [vmem:[%s15819_s27 + $0x1284] sm:$0xf0] }
 0x3f1   : > { %10189 = vmatpush.bf16.msrb.mxu2 %v13464_v15  ;;  %v13448_v15 = vor.u32 %v14232_v28, %v13447_v51  ;;  %v13367_v51 = vld [vmem:[%s15819_s27 + $0x1290] sm:$0xf]  ;;  %v14212_v28 = vld [vmem:[%s15819_s27 + $0x1294] sm:$0xf0]  ;;  %v13304_v61 = vor.u32 %v14196_v39, %v13303_v31  ;;  %v14226_v32 = vld [vmem:[%s15819_s27 + $0x1304] sm:$0xf0] }
 0x3f2   : > { %10202 = vmatpush.bf16.msrb.mxu3 %v13528_v3  ;;  %v13439_v3 = vld [vmem:[%s15819_s27 + $0x1320] sm:$0xf]  ;;  %v5610_v31 = vld [vmem:[%s15801_s5 + $0x50] sm:$0x3]  ;;  %v11113_v39 = vld [vmem:[%s15819_s27 + $0xf8] sm:$0xf0] }
 0x3f3   : > { %10164 = vmatpush.bf16.msrb.mxu0 %v13328_v6  ;;  %v9949_v6 = vpop.f32.mrf.mxu3  ;;  %v9925_v33 = vpop.f32.mrf.mxu1  ;;  %v13440_v47 = vor.u32 %v14230_v4, %v13439_v3  ;;  %v13368_v3 = vor.u32 %v14212_v28, %v13367_v51  ;;  %5673 = vst [vmem:[#allocation1] ss:$4 sm:$0xff] %v5610_v31  ;;  %v13663_v51 = vld [vmem:[%s15819_s27 + $0x174] sm:$0xf]  ;;  %v11177_v28 = vld [vmem:[%s15819_s27 + $0x178] sm:$0xf0] }
 0x3f4   : > { %10177 = vmatpush.bf16.msrb.mxu1 %v13392_v24  ;;  %v16603_v20 = vadd.f32 %v9949_v6, %v9937_v22  ;;  %v13503_v24 = vld [vmem:[%s15819_s27 + $0x13a0] sm:$0xf]  ;;  %v14272_v6 = vld [vmem:[%s15819_s27 + $0x1474] sm:$0xf0]  ;;  %v13496_v33 = vor.u32 %v14244_v63, %v13495_v57 }
 0x3f5   : > { %10190 = vmatpush.bf16.msrb.mxu2 %v13456_v29  ;;  %v14246_v29 = vld [vmem:[%s15819_s27 + $0x13a4] sm:$0xf0]  ;;  %v13423_v22 = vld [vmem:[%s15819_s27 + $0x1300] sm:$0xf] }
 0x3f6   : > { %10203 = vmatpush.bf16.msrb.mxu3 %v13520_v52  ;;  %v13431_v52 = vld [vmem:[%s15819_s27 + $0x1310] sm:$0xf]  ;;  %v13504_v58 = vor.u32 %v14246_v29, %v13503_v24  ;;  %v9938_v24 = vpop.f32.mrf.mxu2  ;;  %v13647_v29 = vld [vmem:[%s15819_s27 + $0xf4] sm:$0xf]  ;;  %v13599_v31 = vld [vmem:[%s15819_s27 + $0x1460] sm:$0xf] }
 0x3f7   : > { %10165 = vmatpush.bf16.msrb.mxu0 %v13320_v55  ;;  %v14228_v55 = vld [vmem:[%s15819_s27 + $0x1314] sm:$0xf0]  ;;  %v5671_v57 = vld.sshfl [vmem:[#allocation1 + $0x30] sm:$0xff pattern:$0x73625140] }
 0x3f8   : > { %10178 = vmatpush.bf16.msrb.mxu1 %v13384_v62  ;;  %v13295_v62 = vld [vmem:[%s15819_s27 + $0x1200] sm:$0xf]  ;;  %v13432_v4 = vor.u32 %v14228_v55, %v13431_v52  ;;  %v13360_v52 = vor.u32 %v14210_v19, %v13359_v16  ;;  %v13424_v55 = vor.u32 %v14226_v32, %v13423_v22  ;;  %v5669_v24 = vld.sshfl [vmem:[#allocation1 + $0x20] sm:$0xff pattern:$0x73625140]  ;;  %v16637_v19 = vpack.c.bf16 %v5671_v57, %v5671_v57 }
 0x3f9   : > { %10191 = vmatpush.bf16.msrb.mxu2 %v13448_v15  ;;  %v14194_v15 = vld [vmem:[%s15819_s27 + $0x1204] sm:$0xf0]  ;;  %v5670_v63 = vld.sshfl [vmem:[#allocation1 + $0x28] sm:$0xff pattern:$0x73625140]  ;;  %v16635_v16 = vpack.c.bf16 %v5669_v24, %v5669_v24 }
 0x3fa   : > { %10204 = vmatpush.bf16.msrb.mxu3 %v13512_v5  ;;  %v13607_v5 = vld [vmem:[%s15819_s27 + $0x1470] sm:$0xf]  ;;  %17463 = vst [vmem:[#allocation8_spill] sm:$0xff] %v16637_v19  ;;  %v11041_v22 = vld [vmem:[%s15819_s27 + $0x68] sm:$0xf0] }
 0x3fb   : > { %10166 = vmatpush.bf16.msrb.mxu0 %v13312_v21  ;;  %v11049_v21 = vld [vmem:[%s15819_s27 + $0x78] sm:$0xf0]  ;;  %v9951_v1 = vpop.f32.mrf.mxu3  ;;  %v13645_v32 = vld [vmem:[%s15819_s27 + $0xe4] sm:$0xf] }
 0x3fc   : > { %10179 = vmatpush.bf16.msrb.mxu1 %v13376_v34  ;;  %v13296_v34 = vor.u32 %v14194_v15, %v13295_v62  ;;  %v11052_v1 = vor.u32 %v13631_v11, %v11049_v21  ;;  %v11116_v62 = vor.u32 %v13647_v29, %v11113_v39  ;;  %v13661_v11 = vld [vmem:[%s15819_s27 + $0x164] sm:$0xf]  ;;  %v11169_v21 = vld [vmem:[%s15819_s27 + $0x168] sm:$0xf0]  ;;  %v11044_v29 = vor.u32 %v13629_v8, %v11041_v22  ;;  %v13591_v39 = vld [vmem:[%s15819_s27 + $0x1450] sm:$0xf] }
 0x3fd   : > { %10192 = vmatpush.bf16.msrb.mxu2 %v13440_v47  ;;  %v14242_v47 = vld [vmem:[%s15819_s27 + $0x1384] sm:$0xf0]  ;;  %v11172_v8 = vor.u32 %v13661_v11, %v11169_v21  ;;  %v11161_v24 = vld [vmem:[%s15819_s27 + $0x158] sm:$0xf0]  ;;  %v13657_v11 = vld [vmem:[%s15819_s27 + $0x144] sm:$0xf] }
 0x3fe   : > { %10205 = vmatpush.bf16.msrb.mxu3 %v13504_v58  ;;  %v13608_v58 = vor.u32 %v14272_v6, %v13607_v5  ;;  %v13488_v15 = vor.u32 %v14242_v47, %v13487_v9  ;;  %v16642_v9 = vpack.c.bf16 %v5670_v63, %v5670_v63  ;;  %v13600_v6 = vor.u32 %v14270_v0, %v13599_v31  ;;  %v13627_v47 = vld [vmem:[%s15819_s27 + $0x54] sm:$0xf]  ;;  %v11097_v0 = vld [vmem:[%s15819_s27 + $0xd8] sm:$0xf0]  ;;  %v14266_v63 = vld [vmem:[%s15819_s27 + $0x1444] sm:$0xf0] }
 0x3ff   : > { %10167 = vmatpush.bf16.msrb.mxu0 %v13304_v61  ;;  %v5672_v61 = vld.sshfl [vmem:[#allocation1 + $0x38] sm:$0xff pattern:$0x73625140] }
 0x400   : > { %10180 = vmatpush.bf16.msrb.mxu1 %v13368_v3  ;;  %v11105_v3 = vld [vmem:[%s15819_s27 + $0xe8] sm:$0xf0]  ;;  %v16644_v5 = vpack.c.bf16 %v5672_v61, %v5672_v61  ;;  %v13625_v61 = vld [vmem:[%s15819_s27 + $0x44] sm:$0xf] }
 0x401   : > { %10193 = vmatpush.bf16.msrb.mxu2 %v13432_v4  ;;  %v11180_v4 = vor.u32 %v13663_v51, %v11177_v28  ;;  %v11033_v51 = vld [vmem:[%s15819_s27 + $0x58] sm:$0xf0]  ;;  %v13643_v28 = vld [vmem:[%s15819_s27 + $0xd4] sm:$0xf]  ;;  %v11089_v31 = vld [vmem:[%s15819_s27 + $0xc8] sm:$0xf0] }
 0x402   : > { %10206 = vmatpush.bf16.msrb.mxu3 %v13496_v33  ;;  %17464 = vst [vmem:[#allocation9_spill] sm:$0xff] %v16644_v5  ;;  %v11108_v33 = vor.u32 %v13645_v32, %v11105_v3  ;;  %v11036_v57 = vor.u32 %v13627_v47, %v11033_v51  ;;  %v11153_v21 = vld [vmem:[%s15819_s27 + $0x148] sm:$0xf0]  ;;  %v13623_v47 = vld [vmem:[%s15819_s27 + $0x34] sm:$0xf] }
 0x403   : > { %10168 = vmatpush.bf16.msrb.mxu0 %v13296_v34  ;;  %v14268_v34 = vld [vmem:[%s15819_s27 + $0x1454] sm:$0xf0]  ;;  %v9962_v32 = vpop.f32.mrf.mxu0 }
 0x404   : > { %10181 = vmatpush.bf16.msrb.mxu1 %v13360_v52  ;;  %v13592_v52 = vor.u32 %v14268_v34, %v13591_v39  ;;  %v9963_v3 = vadd.f32 %v9962_v32, %v16603_v20  ;;  %v13575_v39 = vld [vmem:[%s15819_s27 + $0x1430] sm:$0xf]  ;;  %v14264_v34 = vld [vmem:[%s15819_s27 + $0x1434] sm:$0xf0]  ;;  %v11081_v20 = vld [vmem:[%s15819_s27 + $0xb8] sm:$0xf0] }
 0x405   : > { %10194 = vmatpush.bf16.msrb.mxu2 %v13424_v55  ;;  %v13659_v55 = vld [vmem:[%s15819_s27 + $0x154] sm:$0xf]  ;;  %v11073_v32 = vld [vmem:[%s15819_s27 + $0xa8] sm:$0xf0] }
 0x406   : > { %10207 = vmatpush.bf16.msrb.mxu3 %v13488_v15  ;;  %10169 = vmatmul.bf16.vlgmr.msrb.gmra.mxu0 %v16635_v16  ;;  %v13641_v15 = vld [vmem:[%s15819_s27 + $0xc4] sm:$0xf]  ;;  %v11164_v22 = vor.u32 %v13659_v55, %v11161_v24  ;;  %v13655_v55 = vld [vmem:[%s15819_s27 + $0x134] sm:$0xf]  ;;  %v11145_v24 = vld [vmem:[%s15819_s27 + $0x138] sm:$0xf0] }
 0x407   : > { %10213 = vmatpush.bf16.msra.mxu0 %v13608_v58  ;;  %10182 = vmatmul.bf16.vlgmr.msrb.gmra.mxu1 %v16642_v9  ;;  %v11100_v58 = vor.u32 %v13643_v28, %v11097_v0  ;;  %v11017_v28 = vld [vmem:[%s15819_s27 + $0x38] sm:$0xf0]  ;;  %v13639_v0 = vld [vmem:[%s15819_s27 + $0xb4] sm:$0xf] }
 0x408   : > { %10226 = vmatpush.bf16.msra.mxu1 %v11052_v1  ;;  %10195 = vmatmul.bf16.vlgmr.msrb.gmra.mxu2 %v16637_v19  ;;  %v13583_v1 = vld [vmem:[%s15819_s27 + $0x1440] sm:$0xf]  ;;  %v11297_v19 = vld [vmem:[%s15819_s27 + $0x268] sm:$0xf0] }
 0x409   : > { %10239 = vmatpush.bf16.msra.mxu2 %v11116_v62  ;;  %10208 = vmatmul.bf16.vlgmr.msrb.gmra.mxu3 %v16644_v5  ;;  %v11025_v62 = vld [vmem:[%s15819_s27 + $0x48] sm:$0xf0]  ;;  %v13693_v5 = vld [vmem:[%s15819_s27 + $0x264] sm:$0xf] }
 0x40a   : > { %10252 = vmatpush.bf16.msra.mxu3 %v11180_v4  ;;  %v13584_v4 = vor.u32 %v14266_v63, %v13583_v1  ;;  %v13567_v63 = vld [vmem:[%s15819_s27 + $0x1420] sm:$0xf] }
 0x40b   : > { %10214 = vmatpush.bf16.msra.mxu0 %v13600_v6  ;;  %v9975_v6 = vpop.f32.mrf.mxu1  ;;  %v9988_v1 = vpop.f32.mrf.mxu2 }
 0x40c   : > { %10227 = vmatpush.bf16.msra.mxu1 %v11044_v29  ;;  %v11028_v29 = vor.u32 %v13625_v61, %v11025_v62  ;;  %v9976_v51 = vadd.f32 %v9975_v6, %v9963_v3  ;;  %v14262_v61 = vld [vmem:[%s15819_s27 + $0x1424] sm:$0xf0]  ;;  %v13621_v62 = vld [vmem:[%s15819_s27 + $0x24] sm:$0xf]  ;;  %v11148_v3 = vor.u32 %v13655_v55, %v11145_v24  ;;  %v9964_v6 = vpop.f32.mrf.mxu0  ;;  %v13651_v24 = vld [vmem:[%s15819_s27 + $0x114] sm:$0xf] }
 0x40d   : > { %10240 = vmatpush.bf16.msra.mxu2 %v11108_v33  ;;  %v11092_v33 = vor.u32 %v13641_v15, %v11089_v31  ;;  %v11009_v31 = vld [vmem:[%s15819_s27 + $0x28] sm:$0xf0]  ;;  %v11241_v6 = vld [vmem:[%s15819_s27 + $0x1f8] sm:$0xf0] }
 0x40e   : > { %10253 = vmatpush.bf16.msra.mxu3 %v11172_v8  ;;  %v11156_v8 = vor.u32 %v13657_v11, %v11153_v21  ;;  %v9989_v15 = vadd.f32 %v9988_v1, %v9976_v51  ;;  %v13568_v21 = vor.u32 %v14262_v61, %v13567_v63  ;;  %v13559_v51 = vld [vmem:[%s15819_s27 + $0x1410] sm:$0xf]  ;;  %v13551_v1 = vld [vmem:[%s15819_s27 + $0x1400] sm:$0xf]  ;;  %v14258_v63 = vld [vmem:[%s15819_s27 + $0x1404] sm:$0xf0] }
 0x40f   : > { %10215 = vmatpush.bf16.msra.mxu0 %v13592_v52  ;;  %v13576_v52 = vor.u32 %v14264_v34, %v13575_v39  ;;  %v11012_v34 = vor.u32 %v13621_v62, %v11009_v31  ;;  %v13617_v61 = vld [vmem:[%s15819_s27 + $0x4] sm:$0xf]  ;;  %v10993_v31 = vld [vmem:[%s15819_s27 + $0x8] sm:$0xf0] }
 0x410   : > { %10228 = vmatpush.bf16.msra.mxu1 %v11036_v57  ;;  %v11020_v57 = vor.u32 %v13623_v47, %v11017_v28  ;;  %v14260_v28 = vld [vmem:[%s15819_s27 + $0x1414] sm:$0xf0] }
 0x411   : > { %10241 = vmatpush.bf16.msra.mxu2 %v11100_v58  ;;  %v11084_v58 = vor.u32 %v13639_v0, %v11081_v20  ;;  %v13619_v0 = vld [vmem:[%s15819_s27 + $0x14] sm:$0xf]  ;;  %v11001_v20 = vld [vmem:[%s15819_s27 + $0x18] sm:$0xf0] }
 0x412   : > { %10254 = vmatpush.bf16.msra.mxu3 %v11164_v22  ;;  %v13637_v22 = vld [vmem:[%s15819_s27 + $0xa4] sm:$0xf]  ;;  %v11004_v62 = vor.u32 %v13619_v0, %v11001_v20  ;;  %v11121_v0 = vld [vmem:[%s15819_s27 + $0x108] sm:$0xf0]  ;;  %v13727_v20 = vld [vmem:[%s15819_s27 + $0x374] sm:$0xf] }
 0x413   : > { %10216 = vmatpush.bf16.msra.mxu0 %v13584_v4  ;;  %v10001_v4 = vpop.f32.mrf.mxu3  ;;  %v9977_v39 = vpop.f32.mrf.mxu1  ;;  %v11076_v47 = vor.u32 %v13637_v22, %v11073_v32  ;;  %v13633_v22 = vld [vmem:[%s15819_s27 + $0x84] sm:$0xf]  ;;  %v11057_v32 = vld [vmem:[%s15819_s27 + $0x88] sm:$0xf0] }
 0x414   : > { %10229 = vmatpush.bf16.msra.mxu1 %v11028_v29  ;;  %v16683_v11 = vadd.f32 %v10001_v4, %v9989_v15  ;;  %v13653_v29 = vld [vmem:[%s15819_s27 + $0x124] sm:$0xf]  ;;  %v13679_v4 = vld [vmem:[%s15819_s27 + $0x1f4] sm:$0xf] }
 0x415   : > { %10242 = vmatpush.bf16.msra.mxu2 %v11092_v33  ;;  %v11137_v33 = vld [vmem:[%s15819_s27 + $0x128] sm:$0xf0]  ;;  %v13711_v39 = vld [vmem:[%s15819_s27 + $0x2f4] sm:$0xf] }
 0x416   : > { %10255 = vmatpush.bf16.msra.mxu3 %v11156_v8  ;;  %v13635_v8 = vld [vmem:[%s15819_s27 + $0x94] sm:$0xf]  ;;  %v11140_v55 = vor.u32 %v13653_v29, %v11137_v33  ;;  %v11305_v33 = vld [vmem:[%s15819_s27 + $0x278] sm:$0xf0] }
 0x417   : > { %10217 = vmatpush.bf16.msra.mxu0 %v13576_v52  ;;  %v11065_v52 = vld [vmem:[%s15819_s27 + $0x98] sm:$0xf0] }
 0x418   : > { %10230 = vmatpush.bf16.msra.mxu1 %v11020_v57  ;;  %v11129_v57 = vld [vmem:[%s15819_s27 + $0x118] sm:$0xf0]  ;;  %v11068_v15 = vor.u32 %v13635_v8, %v11065_v52  ;;  %v10996_v8 = vor.u32 %v13617_v61, %v10993_v31  ;;  %v11060_v52 = vor.u32 %v13633_v22, %v11057_v32  ;;  %v11361_v31 = vld [vmem:[%s15819_s27 + $0x2e8] sm:$0xf0]  ;;  %v13725_v22 = vld [vmem:[%s15819_s27 + $0x364] sm:$0xf] }
 0x419   : > { %10243 = vmatpush.bf16.msra.mxu2 %v11084_v58  ;;  %v13560_v58 = vor.u32 %v14260_v28, %v13559_v51  ;;  %v11132_v29 = vor.u32 %v13651_v24, %v11129_v57  ;;  %v13552_v51 = vor.u32 %v14258_v63, %v13551_v1  ;;  %v13649_v28 = vld [vmem:[%s15819_s27 + $0x104] sm:$0xf]  ;;  %v11433_v24 = vld [vmem:[%s15819_s27 + $0x378] sm:$0xf0]  ;;  %v11244_v57 = vor.u32 %v13679_v4, %v11241_v6  ;;  %v11425_v32 = vld [vmem:[%s15819_s27 + $0x368] sm:$0xf0] }
 0x41a   : > { %10256 = vmatpush.bf16.msra.mxu3 %v11148_v3  ;;  %v9990_v3 = vpop.f32.mrf.mxu2  ;;  %v11124_v63 = vor.u32 %v13649_v28, %v11121_v0  ;;  %v11436_v61 = vor.u32 %v13727_v20, %v11433_v24  ;;  %v11300_v6 = vor.u32 %v13693_v5, %v11297_v19  ;;  %v13707_v28 = vld [vmem:[%s15819_s27 + $0x2d4] sm:$0xf]  ;;  %v11353_v0 = vld [vmem:[%s15819_s27 + $0x2d8] sm:$0xf0]  ;;  %v11217_v24 = vld [vmem:[%s15819_s27 + $0x1c8] sm:$0xf0] }
 0x41b   : > { %10218 = vmatpush.bf16.msra.mxu0 %v13568_v21  ;;  %v13695_v21 = vld [vmem:[%s15819_s27 + $0x274] sm:$0xf] }
 0x41c   : > { %10231 = vmatpush.bf16.msra.mxu1 %v11012_v34  ;;  %v11369_v34 = vld [vmem:[%s15819_s27 + $0x2f8] sm:$0xf0]  ;;  %v11308_v3 = vor.u32 %v13695_v21, %v11305_v33  ;;  %v13675_v21 = vld [vmem:[%s15819_s27 + $0x1d4] sm:$0xf] }
 0x41d   : > { %10244 = vmatpush.bf16.msra.mxu2 %v11076_v47  ;;  %v10003_v47 = vpop.f32.mrf.mxu3  ;;  %v11372_v1 = vor.u32 %v13711_v39, %v11369_v34  ;;  %v11225_v33 = vld [vmem:[%s15819_s27 + $0x1d8] sm:$0xf0]  ;;  %v13691_v39 = vld [vmem:[%s15819_s27 + $0x254] sm:$0xf] }
 0x41e   : > { %10257 = vmatpush.bf16.msra.mxu3 %v11140_v55  ;;  %v5674_v55 = vld.sshfl [vmem:[#allocation1] sm:$0xff pattern:$0x73625140]  ;;  %v11233_v47 = vld [vmem:[%s15819_s27 + $0x1e8] sm:$0xf0]  ;;  %v11228_v19 = vor.u32 %v13675_v21, %v11225_v33 }
 0x41f   : > { %10219 = vmatpush.bf16.msra.mxu0 %v13560_v58  ;;  %v13677_v58 = vld [vmem:[%s15819_s27 + $0x1e4] sm:$0xf]  ;;  %v11289_v34 = vld [vmem:[%s15819_s27 + $0x258] sm:$0xf0]  ;;  %v13723_v20 = vld [vmem:[%s15819_s27 + $0x354] sm:$0xf] }
 0x420   : > { %10232 = vmatpush.bf16.msra.mxu1 %v11004_v62  ;;  %v16715_v62 = vpack.c.bf16 %v5674_v55, %v5674_v55  ;;  %v11236_v4 = vor.u32 %v13677_v58, %v11233_v47  ;;  %v11292_v5 = vor.u32 %v13691_v39, %v11289_v34  ;;  %v11356_v55 = vor.u32 %v13707_v28, %v11353_v0  ;;  %v11345_v58 = vld [vmem:[%s15819_s27 + $0x2c8] sm:$0xf0]  ;;  %v11273_v21 = vld [vmem:[%s15819_s27 + $0x238] sm:$0xf0]  ;;  %v13703_v39 = vld [vmem:[%s15819_s27 + $0x2b4] sm:$0xf] }
 0x421   : > { %10245 = vmatpush.bf16.msra.mxu2 %v11068_v15  ;;  %v13709_v15 = vld [vmem:[%s15819_s27 + $0x2e4] sm:$0xf]  ;;  %v11409_v47 = vld [vmem:[%s15819_s27 + $0x348] sm:$0xf0]  ;;  %v11337_v34 = vld [vmem:[%s15819_s27 + $0x2b8] sm:$0xf0] }
 0x422   : > { %10258 = vmatpush.bf16.msra.mxu3 %v11132_v29  ;;  %v11364_v29 = vor.u32 %v13709_v15, %v11361_v31 }
 0x423   : > { %10220 = vmatpush.bf16.msra.mxu0 %v13552_v51  ;;  %v11428_v51 = vor.u32 %v13725_v22, %v11425_v32  ;;  %v13671_v22 = vld [vmem:[%s15819_s27 + $0x1b4] sm:$0xf] }
 0x424   : > { %10233 = vmatpush.bf16.msra.mxu1 %v10996_v8  ;;  %v11417_v8 = vld [vmem:[%s15819_s27 + $0x358] sm:$0xf0]  ;;  %v10027_v31 = vpop.f32.mrf.mxu1 }
 0x425   : > { %10246 = vmatpush.bf16.msra.mxu2 %v11060_v52  ;;  %v13673_v52 = vld [vmem:[%s15819_s27 + $0x1c4] sm:$0xf] }
 0x426   : > { %10259 = vmatpush.bf16.msra.mxu3 %v11124_v63  ;;  %10221 = vmatmul.bf16.vlgmr.msra.gmra.mxu0 %v16715_v62  ;;  %v13721_v63 = vld [vmem:[%s15819_s27 + $0x344] sm:$0xf]  ;;  %v11220_v15 = vor.u32 %v13673_v52, %v11217_v24 }
 0x427   : > { %10265 = vmatpush.bf16.msrb.mxu0 %v11244_v57  ;;  %10234 = vmatmul.bf16.vlgmr.msra.gmra.mxu1 %v15928_v44  ;;  %v13689_v57 = vld [vmem:[%s15819_s27 + $0x244] sm:$0xf]  ;;  %v11412_v33 = vor.u32 %v13721_v63, %v11409_v47 }
 0x428   : > { %10278 = vmatpush.bf16.msrb.mxu1 %v11308_v3  ;;  %10247 = vmatmul.bf16.vlgmr.msra.gmra.mxu2 %v15934_v50  ;;  %v11281_v3 = vld [vmem:[%s15819_s27 + $0x248] sm:$0xf0]  ;;  %v11420_v50 = vor.u32 %v13723_v20, %v11417_v8  ;;  %v13705_v44 = vld [vmem:[%s15819_s27 + $0x2c4] sm:$0xf]  ;;  %v11340_v8 = vor.u32 %v13703_v39, %v11337_v34  ;;  %v13715_v39 = vld [vmem:[%s15819_s27 + $0x314] sm:$0xf] }
 0x429   : > { %10291 = vmatpush.bf16.msrb.mxu2 %v11372_v1  ;;  %10260 = vmatmul.bf16.vlgmr.msra.gmra.mxu3 %v15926_v43  ;;  %v10014_v1 = vpop.f32.mrf.mxu0  ;;  %v11284_v43 = vor.u32 %v13689_v57, %v11281_v3  ;;  %v11348_v32 = vor.u32 %v13705_v44, %v11345_v58  ;;  %v13669_v20 = vld [vmem:[%s15819_s27 + $0x1a4] sm:$0xf]  ;;  %v11385_v34 = vld [vmem:[%s15819_s27 + $0x318] sm:$0xf0] }
 0x42a   : > { %10304 = vmatpush.bf16.msrb.mxu3 %v11436_v61  ;;  %v10015_v61 = vadd.f32 %v10014_v1, %v16683_v11  ;;  %v13719_v11 = vld [vmem:[%s15819_s27 + $0x334] sm:$0xf]  ;;  %v13685_v52 = vld [vmem:[%s15819_s27 + $0x224] sm:$0xf]  ;;  %v11393_v1 = vld [vmem:[%s15819_s27 + $0x328] sm:$0xf0] }
 0x42b   : > { %10266 = vmatpush.bf16.msrb.mxu0 %v11236_v4  ;;  %v11209_v4 = vld [vmem:[%s15819_s27 + $0x1b8] sm:$0xf0]  ;;  %v13701_v3 = vld [vmem:[%s15819_s27 + $0x2a4] sm:$0xf] }
 0x42c   : > { %10279 = vmatpush.bf16.msrb.mxu1 %v11300_v6  ;;  %v13687_v6 = vld [vmem:[%s15819_s27 + $0x234] sm:$0xf]  ;;  %v11212_v28 = vor.u32 %v13671_v22, %v11209_v4  ;;  %v10053_v44 = vpop.f32.mrf.mxu3  ;;  %v13717_v58 = vld [vmem:[%s15819_s27 + $0x324] sm:$0xf] }
 0x42d   : > { %10292 = vmatpush.bf16.msrb.mxu2 %v11364_v29  ;;  %v10028_v29 = vadd.f32 %v10027_v31, %v10015_v61  ;;  %v11276_v0 = vor.u32 %v13687_v6, %v11273_v21  ;;  %v10029_v31 = vpop.f32.mrf.mxu1  ;;  %v13683_v4 = vld [vmem:[%s15819_s27 + $0x214] sm:$0xf]  ;;  %v11257_v6 = vld [vmem:[%s15819_s27 + $0x218] sm:$0xf0]  ;;  %v11396_v21 = vor.u32 %v13717_v58, %v11393_v1 }
 0x42e   : > { %10305 = vmatpush.bf16.msrb.mxu3 %v11428_v51  ;;  %v11401_v51 = vld [vmem:[%s15819_s27 + $0x338] sm:$0xf0]  ;;  %v13775_v58 = vld [vmem:[%s15819_s27 + $0x4f4] sm:$0xf]  ;;  %v11377_v31 = vld [vmem:[%s15819_s27 + $0x308] sm:$0xf0] }
 0x42f   : > { %10267 = vmatpush.bf16.msrb.mxu0 %v11228_v19  ;;  %v10040_v19 = vpop.f32.mrf.mxu2  ;;  %v11404_v57 = vor.u32 %v13719_v11, %v11401_v51  ;;  %v11260_v51 = vor.u32 %v13683_v4, %v11257_v6  ;;  %v11625_v1 = vld [vmem:[%s15819_s27 + $0x4f8] sm:$0xf0]  ;;  %v13791_v4 = vld [vmem:[%s15819_s27 + $0x574] sm:$0xf] }
 0x430   : > { %10280 = vmatpush.bf16.msrb.mxu1 %v11292_v5  ;;  %v11201_v5 = vld [vmem:[%s15819_s27 + $0x1a8] sm:$0xf0]  ;;  %v10041_v24 = vadd.f32 %v10040_v19, %v10028_v29  ;;  %v13699_v29 = vld [vmem:[%s15819_s27 + $0x294] sm:$0xf]  ;;  %v11689_v6 = vld [vmem:[%s15819_s27 + $0x578] sm:$0xf0] }
 0x431   : > { %10293 = vmatpush.bf16.msrb.mxu2 %v11356_v55  ;;  %v11265_v55 = vld [vmem:[%s15819_s27 + $0x228] sm:$0xf0]  ;;  %v10016_v63 = vpop.f32.mrf.mxu0  ;;  %v11204_v61 = vor.u32 %v13669_v20, %v11201_v5  ;;  %v13681_v20 = vld [vmem:[%s15819_s27 + $0x204] sm:$0xf] }
 0x432   : > { %10306 = vmatpush.bf16.msrb.mxu3 %v11420_v50  ;;  %v11329_v50 = vld [vmem:[%s15819_s27 + $0x2a8] sm:$0xf0]  ;;  %v16758_v47 = vadd.f32 %v10053_v44, %v10041_v24  ;;  %v13697_v5 = vld [vmem:[%s15819_s27 + $0x284] sm:$0xf]  ;;  %v11388_v24 = vor.u32 %v13715_v39, %v11385_v34  ;;  %v11561_v44 = vld [vmem:[%s15819_s27 + $0x478] sm:$0xf0] }
 0x433   : > { %10268 = vmatpush.bf16.msrb.mxu0 %v11220_v15  ;;  %v11268_v15 = vor.u32 %v13685_v52, %v11265_v55  ;;  %v11332_v22 = vor.u32 %v13701_v3, %v11329_v50  ;;  %v11249_v19 = vld [vmem:[%s15819_s27 + $0x208] sm:$0xf0]  ;;  %v11497_v3 = vld [vmem:[%s15819_s27 + $0x3f8] sm:$0xf0]  ;;  %v13759_v50 = vld [vmem:[%s15819_s27 + $0x474] sm:$0xf] }
 0x434   : > { %10281 = vmatpush.bf16.msrb.mxu1 %v11284_v43  ;;  %v13667_v43 = vld [vmem:[%s15819_s27 + $0x194] sm:$0xf]  ;;  %v11313_v52 = vld [vmem:[%s15819_s27 + $0x288] sm:$0xf0]  ;;  %v10055_v63 = vpop.f32.mrf.mxu3  ;;  %v13757_v34 = vld [vmem:[%s15819_s27 + $0x464] sm:$0xf] }
 0x435   : > { %10294 = vmatpush.bf16.msrb.mxu2 %v11348_v32  ;;  %v11193_v32 = vld [vmem:[%s15819_s27 + $0x198] sm:$0xf0]  ;;  %v11489_v39 = vld [vmem:[%s15819_s27 + $0x3e8] sm:$0xf0] }
 0x436   : > { %10307 = vmatpush.bf16.msrb.mxu3 %v11412_v33  ;;  %v11321_v33 = vld [vmem:[%s15819_s27 + $0x298] sm:$0xf0]  ;;  %v11196_v11 = vor.u32 %v13667_v43, %v11193_v32  ;;  %v13713_v43 = vld [vmem:[%s15819_s27 + $0x304] sm:$0xf] }
 0x437   : > { %10269 = vmatpush.bf16.msrb.mxu0 %v11212_v28  ;;  %v13665_v28 = vld [vmem:[%s15819_s27 + $0x184] sm:$0xf]  ;;  %v10042_v55 = vpop.f32.mrf.mxu2 }
 0x438   : > { %10282 = vmatpush.bf16.msrb.mxu1 %v11276_v0  ;;  %v11185_v0 = vld [vmem:[%s15819_s27 + $0x188] sm:$0xf0] }
 0x439   : > { %10295 = vmatpush.bf16.msrb.mxu2 %v11340_v8  ;;  %v11324_v8 = vor.u32 %v13699_v29, %v11321_v33  ;;  %v11628_v29 = vor.u32 %v13775_v58, %v11625_v1  ;;  %v13741_v33 = vld [vmem:[%s15819_s27 + $0x3e4] sm:$0xf]  ;;  %v11609_v58 = vld [vmem:[%s15819_s27 + $0x4d8] sm:$0xf0] }
 0x43a   : > { %10308 = vmatpush.bf16.msrb.mxu3 %v11404_v57  ;;  %v13743_v57 = vld [vmem:[%s15819_s27 + $0x3f4] sm:$0xf] }
 0x43b   : > { %10270 = vmatpush.bf16.msrb.mxu0 %v11204_v61  ;;  %v11188_v61 = vor.u32 %v13665_v28, %v11185_v0  ;;  %v11500_v32 = vor.u32 %v13743_v57, %v11497_v3  ;;  %v13773_v28 = vld [vmem:[%s15819_s27 + $0x4e4] sm:$0xf]  ;;  %v11617_v0 = vld [vmem:[%s15819_s27 + $0x4e8] sm:$0xf0]  ;;  %v11481_v57 = vld [vmem:[%s15819_s27 + $0x3d8] sm:$0xf0] }
 0x43c   : > { %10283 = vmatpush.bf16.msrb.mxu1 %v11268_v15  ;;  %v11252_v15 = vor.u32 %v13681_v20, %v11249_v19  ;;  %v11692_v20 = vor.u32 %v13791_v4, %v11689_v6  ;;  %v13789_v19 = vld [vmem:[%s15819_s27 + $0x564] sm:$0xf]  ;;  %v11620_v55 = vor.u32 %v13773_v28, %v11617_v0  ;;  %v13755_v3 = vld [vmem:[%s15819_s27 + $0x454] sm:$0xf]  ;;  %v11601_v6 = vld [vmem:[%s15819_s27 + $0x4c8] sm:$0xf0] }
 0x43d   : > { %10296 = vmatpush.bf16.msrb.mxu2 %v11332_v22  ;;  %v11316_v22 = vor.u32 %v13697_v5, %v11313_v52  ;;  %v11681_v5 = vld [vmem:[%s15819_s27 + $0x568] sm:$0xf0]  ;;  %v13769_v4 = vld [vmem:[%s15819_s27 + $0x4c4] sm:$0xf]  ;;  %v13735_v28 = vld [vmem:[%s15819_s27 + $0x3b4] sm:$0xf] }
 0x43e   : > { %10309 = vmatpush.bf16.msrb.mxu3 %v11396_v21  ;;  %v11564_v21 = vor.u32 %v13759_v50, %v11561_v44  ;;  %v11545_v50 = vld [vmem:[%s15819_s27 + $0x458] sm:$0xf0]  ;;  %v13771_v44 = vld [vmem:[%s15819_s27 + $0x4d4] sm:$0xf]  ;;  %v11684_v1 = vor.u32 %v13789_v19, %v11681_v5 }
 0x43f   : > { %10271 = vmatpush.bf16.msrb.mxu0 %v11196_v11  ;;  %v11380_v11 = vor.u32 %v13713_v43, %v11377_v31  ;;  %v11612_v43 = vor.u32 %v13771_v44, %v11609_v58  ;;  %v13737_v31 = vld [vmem:[%s15819_s27 + $0x3c4] sm:$0xf]  ;;  %v11465_v0 = vld [vmem:[%s15819_s27 + $0x3b8] sm:$0xf0]  ;;  %v13767_v19 = vld [vmem:[%s15819_s27 + $0x4b4] sm:$0xf] }
 0x440   : > { %10284 = vmatpush.bf16.msrb.mxu1 %v11260_v51  ;;  %v11553_v51 = vld [vmem:[%s15819_s27 + $0x468] sm:$0xf0]  ;;  %v11593_v5 = vld [vmem:[%s15819_s27 + $0x4b8] sm:$0xf0]  ;;  %v13733_v44 = vld [vmem:[%s15819_s27 + $0x3a4] sm:$0xf] }
 0x441   : > { %10297 = vmatpush.bf16.msrb.mxu2 %v11324_v8  ;;  %v11492_v8 = vor.u32 %v13741_v33, %v11489_v39  ;;  %v11556_v52 = vor.u32 %v13757_v34, %v11553_v51  ;;  %v13785_v33 = vld [vmem:[%s15819_s27 + $0x544] sm:$0xf]  ;;  %v11665_v39 = vld [vmem:[%s15819_s27 + $0x548] sm:$0xf0] }
 0x442   : > { %10310 = vmatpush.bf16.msrb.mxu3 %v11388_v24  ;;  %v13739_v24 = vld [vmem:[%s15819_s27 + $0x3d4] sm:$0xf]  ;;  %v11457_v58 = vld [vmem:[%s15819_s27 + $0x3a8] sm:$0xf0] }
 0x443   : > { %10272 = vmatpush.bf16.msrb.mxu0 %v11188_v61  ;;  %v11484_v63 = vor.u32 %v13739_v24, %v11481_v57  ;;  %v13787_v61 = vld [vmem:[%s15819_s27 + $0x554] sm:$0xf]  ;;  %v11657_v57 = vld [vmem:[%s15819_s27 + $0x538] sm:$0xf0] }
 0x444   : > { %10285 = vmatpush.bf16.msrb.mxu1 %v11252_v15  ;;  %v11673_v15 = vld [vmem:[%s15819_s27 + $0x558] sm:$0xf0]  ;;  %v10079_v51 = vpop.f32.mrf.mxu1  ;;  %v13783_v24 = vld [vmem:[%s15819_s27 + $0x534] sm:$0xf] }
 0x445   : > { %10298 = vmatpush.bf16.msrb.mxu2 %v11316_v22  ;;  %v11473_v22 = vld [vmem:[%s15819_s27 + $0x3c8] sm:$0xf0] }
 0x446   : > { %10311 = vmatpush.bf16.msrb.mxu3 %v11380_v11  ;;  %10273 = vmatmul.bf16.vlgmr.msrb.gmra.mxu0 %v15932_v49  ;;  %v11548_v49 = vor.u32 %v13755_v3, %v11545_v50  ;;  %v11604_v11 = vor.u32 %v13769_v4, %v11601_v6  ;;  %v11596_v50 = vor.u32 %v13767_v19, %v11593_v5  ;;  %v11649_v4 = vld [vmem:[%s15819_s27 + $0x528] sm:$0xf0]  ;;  %v11641_v19 = vld [vmem:[%s15819_s27 + $0x518] sm:$0xf0]  ;;  %v13729_v5 = vld [vmem:[%s15819_s27 + $0x384] sm:$0xf] }
 0x447   : > { %10317 = vmatpush.bf16.msra.mxu0 %v11500_v32  ;;  %10286 = vmatmul.bf16.vlgmr.msrb.gmra.mxu1 %v15980_v54  ;;  %v13753_v32 = vld [vmem:[%s15819_s27 + $0x444] sm:$0xf]  ;;  %v11676_v54 = vor.u32 %v13787_v61, %v11673_v15  ;;  %v11521_v61 = vld [vmem:[%s15819_s27 + $0x428] sm:$0xf0] }
 0x448   : > { %10330 = vmatpush.bf16.msra.mxu1 %v11564_v21  ;;  %10299 = vmatmul.bf16.vlgmr.msrb.gmra.mxu2 %v15986_v60  ;;  %v11537_v60 = vld [vmem:[%s15819_s27 + $0x448] sm:$0xf0]  ;;  %v10066_v21 = vpop.f32.mrf.mxu0  ;;  %v13765_v15 = vld [vmem:[%s15819_s27 + $0x4a4] sm:$0xf] }
 0x449   : > { %10343 = vmatpush.bf16.msra.mxu2 %v11628_v29  ;;  %10312 = vmatmul.bf16.vlgmr.msrb.gmra.mxu3 %v15982_v56  ;;  %v11476_v29 = vor.u32 %v13737_v31, %v11473_v22  ;;  %v10067_v56 = vadd.f32 %v10066_v21, %v16758_v47  ;;  %v11540_v34 = vor.u32 %v13753_v32, %v11537_v60  ;;  %v13781_v60 = vld [vmem:[%s15819_s27 + $0x524] sm:$0xf] }
 0x44a   : > { %10356 = vmatpush.bf16.msra.mxu3 %v11692_v20  ;;  %v13751_v20 = vld [vmem:[%s15819_s27 + $0x434] sm:$0xf]  ;;  %v11468_v47 = vor.u32 %v13735_v28, %v11465_v0  ;;  %v11660_v31 = vor.u32 %v13783_v24, %v11657_v57  ;;  %v11460_v32 = vor.u32 %v13733_v44, %v11457_v58  ;;  %v11577_v28 = vld [vmem:[%s15819_s27 + $0x498] sm:$0xf0]  ;;  %v11652_v0 = vor.u32 %v13781_v60, %v11649_v4  ;;  %v13745_v24 = vld [vmem:[%s15819_s27 + $0x404] sm:$0xf] }
 0x44b   : > { %10318 = vmatpush.bf16.msra.mxu0 %v11492_v8  ;;  %v11529_v8 = vld [vmem:[%s15819_s27 + $0x438] sm:$0xf0]  ;;  %v11505_v57 = vld [vmem:[%s15819_s27 + $0x408] sm:$0xf0]  ;;  %v13807_v44 = vld [vmem:[%s15819_s27 + $0x5f4] sm:$0xf] }
 0x44c   : > { %10331 = vmatpush.bf16.msra.mxu1 %v11556_v52  ;;  %v10080_v52 = vadd.f32 %v10079_v51, %v10067_v56  ;;  %v11532_v3 = vor.u32 %v13751_v20, %v11529_v8  ;;  %v10105_v22 = vpop.f32.mrf.mxu3  ;;  %v13747_v56 = vld [vmem:[%s15819_s27 + $0x414] sm:$0xf]  ;;  %v11753_v58 = vld [vmem:[%s15819_s27 + $0x5f8] sm:$0xf0]  ;;  %v11508_v4 = vor.u32 %v13745_v24, %v11505_v57 }
 0x44d   : > { %10344 = vmatpush.bf16.msra.mxu2 %v11620_v55  ;;  %v11668_v55 = vor.u32 %v13785_v33, %v11665_v39  ;;  %v13731_v33 = vld [vmem:[%s15819_s27 + $0x394] sm:$0xf]  ;;  %v11449_v39 = vld [vmem:[%s15819_s27 + $0x398] sm:$0xf0] }
 0x44e   : > { %10357 = vmatpush.bf16.msra.mxu3 %v11684_v1  ;;  %v13749_v1 = vld [vmem:[%s15819_s27 + $0x424] sm:$0xf]  ;;  %v13763_v51 = vld [vmem:[%s15819_s27 + $0x494] sm:$0xf]  ;;  %v11452_v8 = vor.u32 %v13731_v33, %v11449_v39  ;;  %v11945_v39 = vld [vmem:[%s15819_s27 + $0x778] sm:$0xf0] }
 0x44f   : > { %10319 = vmatpush.bf16.msra.mxu0 %v11484_v63  ;;  %v10092_v63 = vpop.f32.mrf.mxu2  ;;  %v11524_v21 = vor.u32 %v13749_v1, %v11521_v61  ;;  %v13779_v20 = vld [vmem:[%s15819_s27 + $0x514] sm:$0xf] }
 0x450   : > { %10332 = vmatpush.bf16.msra.mxu1 %v11548_v49  ;;  %v11585_v49 = vld [vmem:[%s15819_s27 + $0x4a8] sm:$0xf0]  ;;  %v10068_v6 = vpop.f32.mrf.mxu0  ;;  %v13823_v61 = vld [vmem:[%s15819_s27 + $0x674] sm:$0xf] }
 0x451   : > { %10345 = vmatpush.bf16.msra.mxu2 %v11612_v43  ;;  %v10093_v43 = vadd.f32 %v10092_v63, %v10080_v52  ;;  %v11441_v52 = vld [vmem:[%s15819_s27 + $0x388] sm:$0xf0]  ;;  %v11644_v63 = vor.u32 %v13779_v20, %v11641_v19  ;;  %v13855_v33 = vld [vmem:[%s15819_s27 + $0x774] sm:$0xf]  ;;  %v13837_v20 = vld [vmem:[%s15819_s27 + $0x6e4] sm:$0xf] }
 0x452   : > { %10358 = vmatpush.bf16.msra.mxu3 %v11676_v54  ;;  %v11948_v19 = vor.u32 %v13855_v33, %v11945_v39  ;;  %v13803_v57 = vld [vmem:[%s15819_s27 + $0x5d4] sm:$0xf] }
 0x453   : > { %10320 = vmatpush.bf16.msra.mxu0 %v11476_v29  ;;  %v16829_v54 = vadd.f32 %v10105_v22, %v10093_v43  ;;  %v11588_v29 = vor.u32 %v13765_v15, %v11585_v49  ;;  %v11817_v15 = vld [vmem:[%s15819_s27 + $0x678] sm:$0xf0]  ;;  %v13839_v49 = vld [vmem:[%s15819_s27 + $0x6f4] sm:$0xf]  ;;  %v11444_v43 = vor.u32 %v13729_v5, %v11441_v52  ;;  %v13777_v22 = vld [vmem:[%s15819_s27 + $0x504] sm:$0xf] }
 0x454   : > { %10333 = vmatpush.bf16.msra.mxu1 %v11540_v34  ;;  %v10081_v34 = vpop.f32.mrf.mxu1  ;;  %v10107_v60 = vpop.f32.mrf.mxu3  ;;  %v13853_v52 = vld [vmem:[%s15819_s27 + $0x764] sm:$0xf] }
 0x455   : > { %10346 = vmatpush.bf16.msra.mxu2 %v11604_v11  ;;  %v11513_v11 = vld [vmem:[%s15819_s27 + $0x418] sm:$0xf0]  ;;  %v11857_v60 = vld [vmem:[%s15819_s27 + $0x6c8] sm:$0xf0] }
 0x456   : > { %10359 = vmatpush.bf16.msra.mxu3 %v11668_v55  ;;  %v11516_v55 = vor.u32 %v13747_v56, %v11513_v11  ;;  %v13805_v11 = vld [vmem:[%s15819_s27 + $0x5e4] sm:$0xf] }
 0x457   : > { %10321 = vmatpush.bf16.msra.mxu0 %v11468_v47  ;;  %v11580_v47 = vor.u32 %v13763_v51, %v11577_v28  ;;  %v10094_v1 = vpop.f32.mrf.mxu2  ;;  %v11745_v51 = vld [vmem:[%s15819_s27 + $0x5e8] sm:$0xf0]  ;;  %v13821_v28 = vld [vmem:[%s15819_s27 + $0x664] sm:$0xf] }
 0x458   : > { %10334 = vmatpush.bf16.msra.mxu1 %v11532_v3  ;;  %v13761_v3 = vld [vmem:[%s15819_s27 + $0x484] sm:$0xf]  ;;  %v11748_v5 = vor.u32 %v13805_v11, %v11745_v51  ;;  %v11865_v1 = vld [vmem:[%s15819_s27 + $0x6d8] sm:$0xf0]  ;;  %v13799_v11 = vld [vmem:[%s15819_s27 + $0x5b4] sm:$0xf] }
 0x459   : > { %10347 = vmatpush.bf16.msra.mxu2 %v11596_v50  ;;  %v11569_v50 = vld [vmem:[%s15819_s27 + $0x488] sm:$0xf0]  ;;  %v11721_v51 = vld [vmem:[%s15819_s27 + $0x5b8] sm:$0xf0] }
 0x45a   : > { %10360 = vmatpush.bf16.msra.mxu3 %v11660_v31  ;;  %v11881_v31 = vld [vmem:[%s15819_s27 + $0x6f8] sm:$0xf0]  ;;  %v11572_v6 = vor.u32 %v13761_v3, %v11569_v50  ;;  %v13819_v50 = vld [vmem:[%s15819_s27 + $0x654] sm:$0xf] }
 0x45b   : > { %10322 = vmatpush.bf16.msra.mxu0 %v11460_v32  ;;  %v11633_v32 = vld [vmem:[%s15819_s27 + $0x508] sm:$0xf0]  ;;  %v11884_v56 = vor.u32 %v13839_v49, %v11881_v31  ;;  %v11737_v3 = vld [vmem:[%s15819_s27 + $0x5d8] sm:$0xf0] }
 0x45c   : > { %10335 = vmatpush.bf16.msra.mxu1 %v11524_v21  ;;  %v11756_v21 = vor.u32 %v13807_v44, %v11753_v58  ;;  %v11636_v34 = vor.u32 %v13777_v22, %v11633_v32  ;;  %v11801_v44 = vld [vmem:[%s15819_s27 + $0x658] sm:$0xf0]  ;;  %v13835_v58 = vld [vmem:[%s15819_s27 + $0x6d4] sm:$0xf]  ;;  %v11729_v31 = vld [vmem:[%s15819_s27 + $0x5c8] sm:$0xf0] }
 0x45d   : > { %10348 = vmatpush.bf16.msra.mxu2 %v11588_v29  ;;  %v11820_v29 = vor.u32 %v13823_v61, %v11817_v15  ;;  %v11740_v61 = vor.u32 %v13803_v57, %v11737_v3  ;;  %v11929_v15 = vld [vmem:[%s15819_s27 + $0x758] sm:$0xf0]  ;;  %v11868_v49 = vor.u32 %v13835_v58, %v11865_v1  ;;  %v13817_v22 = vld [vmem:[%s15819_s27 + $0x644] sm:$0xf]  ;;  %v11793_v32 = vld [vmem:[%s15819_s27 + $0x648] sm:$0xf0] }
 0x45e   : > { %10361 = vmatpush.bf16.msra.mxu3 %v11652_v0  ;;  %v11809_v0 = vld [vmem:[%s15819_s27 + $0x668] sm:$0xf0]  ;;  %v11796_v39 = vor.u32 %v13817_v22, %v11793_v32  ;;  %v13797_v57 = vld [vmem:[%s15819_s27 + $0x5a4] sm:$0xf] }
 0x45f   : > { %10323 = vmatpush.bf16.msra.mxu0 %v11452_v8  ;;  %v11873_v8 = vld [vmem:[%s15819_s27 + $0x6e8] sm:$0xf0]  ;;  %v13829_v1 = vld [vmem:[%s15819_s27 + $0x6a4] sm:$0xf] }
 0x460   : > { %10336 = vmatpush.bf16.msra.mxu1 %v11516_v55  ;;  %v11937_v55 = vld [vmem:[%s15819_s27 + $0x768] sm:$0xf0]  ;;  %v11876_v24 = vor.u32 %v13837_v20, %v11873_v8  ;;  %v13831_v20 = vld [vmem:[%s15819_s27 + $0x6b4] sm:$0xf]  ;;  %v11849_v8 = vld [vmem:[%s15819_s27 + $0x6b8] sm:$0xf0] }
 0x461   : > { %10349 = vmatpush.bf16.msra.mxu2 %v11580_v47  ;;  %v11812_v47 = vor.u32 %v13821_v28, %v11809_v0  ;;  %v13815_v28 = vld [vmem:[%s15819_s27 + $0x634] sm:$0xf]  ;;  %v11785_v0 = vld [vmem:[%s15819_s27 + $0x638] sm:$0xf0]  ;;  %v11713_v3 = vld [vmem:[%s15819_s27 + $0x5a8] sm:$0xf0] }
 0x462   : > { %10362 = vmatpush.bf16.msra.mxu3 %v11644_v63  ;;  %v11940_v63 = vor.u32 %v13853_v52, %v11937_v55  ;;  %v13847_v52 = vld [vmem:[%s15819_s27 + $0x734] sm:$0xf]  ;;  %v11913_v55 = vld [vmem:[%s15819_s27 + $0x738] sm:$0xf0]  ;;  %v11777_v58 = vld [vmem:[%s15819_s27 + $0x628] sm:$0xf0] }
 0x463   : > { %10324 = vmatpush.bf16.msra.mxu0 %v11444_v43  ;;  %v13801_v43 = vld [vmem:[%s15819_s27 + $0x5c4] sm:$0xf] }
 0x464   : > { %10337 = vmatpush.bf16.msra.mxu1 %v11508_v4  ;;  %v10118_v4 = vpop.f32.mrf.mxu0 }
 0x465   : > { %10350 = vmatpush.bf16.msra.mxu2 %v11572_v6  ;;  %v11732_v6 = vor.u32 %v13801_v43, %v11729_v31  ;;  %v10119_v33 = vadd.f32 %v10118_v4, %v16829_v54  ;;  %v11724_v54 = vor.u32 %v13799_v11, %v11721_v51  ;;  %v11905_v43 = vld [vmem:[%s15819_s27 + $0x728] sm:$0xf0]  ;;  %v13811_v4 = vld [vmem:[%s15819_s27 + $0x614] sm:$0xf]  ;;  %v11897_v11 = vld [vmem:[%s15819_s27 + $0x718] sm:$0xf0] }
 0x466   : > { %10363 = vmatpush.bf16.msra.mxu3 %v11636_v34  ;;  %10325 = vmatmul.bf16.vlgmr.msra.gmra.mxu0 %v15992_v2  ;;  %v13851_v2 = vld [vmem:[%s15819_s27 + $0x754] sm:$0xf]  ;;  %v10131_v34 = vpop.f32.mrf.mxu1  ;;  %v13793_v51 = vld [vmem:[%s15819_s27 + $0x584] sm:$0xf] }
 0x467   : > { %10369 = vmatpush.bf16.msrb.mxu0 %v11756_v21  ;;  %10338 = vmatmul.bf16.vlgmr.msra.gmra.mxu1 %v16064_v37  ;;  %v13833_v37 = vld [vmem:[%s15819_s27 + $0x6c4] sm:$0xf] }
 0x468   : > { %10382 = vmatpush.bf16.msrb.mxu1 %v11820_v29  ;;  %10351 = vmatmul.bf16.vlgmr.msra.gmra.mxu2 %v16075_v48  ;;  %v11804_v48 = vor.u32 %v13819_v50, %v11801_v44  ;;  %v13849_v21 = vld [vmem:[%s15819_s27 + $0x744] sm:$0xf]  ;;  %v11921_v29 = vld [vmem:[%s15819_s27 + $0x748] sm:$0xf0] }
 0x469   : > { %10395 = vmatpush.bf16.msrb.mxu2 %v11884_v56  ;;  %10364 = vmatmul.bf16.vlgmr.msra.gmra.mxu3 %v16068_v38  ;;  %v11932_v38 = vor.u32 %v13851_v2, %v11929_v15  ;;  %v11860_v56 = vor.u32 %v13833_v37, %v11857_v60  ;;  %v13813_v50 = vld [vmem:[%s15819_s27 + $0x624] sm:$0xf]  ;;  %v11916_v2 = vor.u32 %v13847_v52, %v11913_v55  ;;  %v13795_v60 = vld [vmem:[%s15819_s27 + $0x594] sm:$0xf]  ;;  %v12009_v55 = vld [vmem:[%s15819_s27 + $0x7f8] sm:$0xf0] }
 0x46a   : > { %10408 = vmatpush.bf16.msrb.mxu3 %v11948_v19  ;;  %v10132_v19 = vadd.f32 %v10131_v34, %v10119_v33  ;;  %v11780_v32 = vor.u32 %v13813_v50, %v11777_v58  ;;  %v11833_v33 = vld [vmem:[%s15819_s27 + $0x698] sm:$0xf0]  ;;  %v13871_v52 = vld [vmem:[%s15819_s27 + $0x7f4] sm:$0xf] }
 0x46b   : > { %10370 = vmatpush.bf16.msrb.mxu0 %v11748_v5  ;;  %v11924_v5 = vor.u32 %v13849_v21, %v11921_v29  ;;  %v10144_v44 = vpop.f32.mrf.mxu2  ;;  %v11769_v21 = vld [vmem:[%s15819_s27 + $0x618] sm:$0xf0]  ;;  %v13827_v29 = vld [vmem:[%s15819_s27 + $0x694] sm:$0xf] }
 0x46c   : > { %10383 = vmatpush.bf16.msrb.mxu1 %v11812_v47  ;;  %v11788_v47 = vor.u32 %v13815_v28, %v11785_v0  ;;  %v10157_v15 = vpop.f32.mrf.mxu3  ;;  %v10120_v31 = vpop.f32.mrf.mxu0  ;;  %v11697_v28 = vld [vmem:[%s15819_s27 + $0x588] sm:$0xf0]  ;;  %v11772_v0 = vor.u32 %v13811_v4, %v11769_v21  ;;  %v13903_v50 = vld [vmem:[%s15819_s27 + $0x8f4] sm:$0xf]  ;;  %v12137_v58 = vld [vmem:[%s15819_s27 + $0x8f8] sm:$0xf0] }
 0x46d   : > { %10396 = vmatpush.bf16.msrb.mxu2 %v11876_v24  ;;  %v11852_v24 = vor.u32 %v13831_v20, %v11849_v8  ;;  %v11836_v20 = vor.u32 %v13827_v29, %v11833_v33  ;;  %v13809_v8 = vld [vmem:[%s15819_s27 + $0x604] sm:$0xf]  ;;  %v12201_v31 = vld [vmem:[%s15819_s27 + $0x978] sm:$0xf0]  ;;  %v12129_v29 = vld [vmem:[%s15819_s27 + $0x8e8] sm:$0xf0] }
 0x46e   : > { %10409 = vmatpush.bf16.msrb.mxu3 %v11940_v63  ;;  %v11841_v63 = vld [vmem:[%s15819_s27 + $0x6a8] sm:$0xf0]  ;;  %v13885_v4 = vld [vmem:[%s15819_s27 + $0x864] sm:$0xf] }
 0x46f   : > { %10371 = vmatpush.bf16.msrb.mxu0 %v11740_v61  ;;  %v10145_v61 = vadd.f32 %v10144_v44, %v10132_v19  ;;  %v11844_v37 = vor.u32 %v13829_v1, %v11841_v63  ;;  %v11761_v19 = vld [vmem:[%s15819_s27 + $0x608] sm:$0xf0]  ;;  %v11700_v44 = vor.u32 %v13793_v51, %v11697_v28  ;;  %v13841_v1 = vld [vmem:[%s15819_s27 + $0x704] sm:$0xf]  ;;  %v13867_v28 = vld [vmem:[%s15819_s27 + $0x7d4] sm:$0xf] }
 0x470   : > { %10384 = vmatpush.bf16.msrb.mxu1 %v11804_v48  ;;  %v11716_v48 = vor.u32 %v13797_v57, %v11713_v3  ;;  %v13887_v57 = vld [vmem:[%s15819_s27 + $0x874] sm:$0xf]  ;;  %v12073_v3 = vld [vmem:[%s15819_s27 + $0x878] sm:$0xf0]  ;;  %v11889_v63 = vld [vmem:[%s15819_s27 + $0x708] sm:$0xf0] }
 0x471   : > { %10397 = vmatpush.bf16.msrb.mxu2 %v11868_v49  ;;  %v13845_v49 = vld [vmem:[%s15819_s27 + $0x724] sm:$0xf]  ;;  %v16900_v22 = vadd.f32 %v10157_v15, %v10145_v61 }
 0x472   : > { %10410 = vmatpush.bf16.msrb.mxu3 %v11932_v38  ;;  %v11705_v38 = vld [vmem:[%s15819_s27 + $0x598] sm:$0xf0]  ;;  %v13901_v21 = vld [vmem:[%s15819_s27 + $0x8e4] sm:$0xf] }
 0x473   : > { %10372 = vmatpush.bf16.msrb.mxu0 %v11732_v6  ;;  %v10133_v6 = vpop.f32.mrf.mxu1  ;;  %v11708_v34 = vor.u32 %v13795_v60, %v11705_v38  ;;  %v13869_v60 = vld [vmem:[%s15819_s27 + $0x7e4] sm:$0xf]  ;;  %v12001_v38 = vld [vmem:[%s15819_s27 + $0x7e8] sm:$0xf0]  ;;  %v12132_v51 = vor.u32 %v13901_v21, %v12129_v29  ;;  %v13911_v21 = vld [vmem:[%s15819_s27 + $0x934] sm:$0xf] }
 0x474   : > { %10385 = vmatpush.bf16.msrb.mxu1 %v11796_v39  ;;  %v11908_v39 = vor.u32 %v13845_v49, %v11905_v43  ;;  %v10159_v61 = vpop.f32.mrf.mxu3  ;;  %v12076_v49 = vor.u32 %v13887_v57, %v12073_v3  ;;  %v13919_v43 = vld [vmem:[%s15819_s27 + $0x974] sm:$0xf]  ;;  %v12065_v6 = vld [vmem:[%s15819_s27 + $0x868] sm:$0xf0]  ;;  %v13881_v3 = vld [vmem:[%s15819_s27 + $0x844] sm:$0xf] }
 0x475   : > { %10398 = vmatpush.bf16.msrb.mxu2 %v11860_v56  ;;  %v13843_v56 = vld [vmem:[%s15819_s27 + $0x714] sm:$0xf]  ;;  %v12204_v33 = vor.u32 %v13919_v43, %v12201_v31  ;;  %v11985_v57 = vld [vmem:[%s15819_s27 + $0x7c8] sm:$0xf0]  ;;  %v11977_v31 = vld [vmem:[%s15819_s27 + $0x7b8] sm:$0xf0] }
 0x476   : > { %10411 = vmatpush.bf16.msrb.mxu3 %v11924_v5  ;;  %v13825_v5 = vld [vmem:[%s15819_s27 + $0x684] sm:$0xf]  ;;  %v12177_v61 = vld [vmem:[%s15819_s27 + $0x948] sm:$0xf0]  ;;  %v13863_v43 = vld [vmem:[%s15819_s27 + $0x7b4] sm:$0xf] }
 0x477   : > { %10373 = vmatpush.bf16.msrb.mxu0 %v11724_v54  ;;  %v11825_v54 = vld [vmem:[%s15819_s27 + $0x688] sm:$0xf0]  ;;  %v12169_v29 = vld [vmem:[%s15819_s27 + $0x938] sm:$0xf0] }
 0x478   : > { %10386 = vmatpush.bf16.msrb.mxu1 %v11788_v47  ;;  %v10146_v47 = vpop.f32.mrf.mxu2  ;;  %v11828_v15 = vor.u32 %v13825_v5, %v11825_v54  ;;  %v12121_v5 = vld [vmem:[%s15819_s27 + $0x8d8] sm:$0xf0] }
 0x479   : > { %10399 = vmatpush.bf16.msrb.mxu2 %v11852_v24  ;;  %v11900_v24 = vor.u32 %v13843_v56, %v11897_v11  ;;  %v13917_v56 = vld [vmem:[%s15819_s27 + $0x964] sm:$0xf]  ;;  %v12068_v11 = vor.u32 %v13885_v4, %v12065_v6 }
 0x47a   : > { %10412 = vmatpush.bf16.msrb.mxu3 %v11916_v2  ;;  %v11764_v2 = vor.u32 %v13809_v8, %v11761_v19  ;;  %v12057_v8 = vld [vmem:[%s15819_s27 + $0x858] sm:$0xf0]  ;;  %v13899_v19 = vld [vmem:[%s15819_s27 + $0x8d4] sm:$0xf] }
 0x47b   : > { %10374 = vmatpush.bf16.msrb.mxu0 %v11716_v48  ;;  %v12012_v48 = vor.u32 %v13871_v52, %v12009_v55  ;;  %v12185_v55 = vld [vmem:[%s15819_s27 + $0x958] sm:$0xf0]  ;;  %v12124_v47 = vor.u32 %v13899_v19, %v12121_v5  ;;  %v12172_v19 = vor.u32 %v13911_v21, %v12169_v29  ;;  %v13951_v21 = vld [vmem:[%s15819_s27 + $0xa74] sm:$0xf] }
 0x47c   : > { %10387 = vmatpush.bf16.msrb.mxu1 %v11780_v32  ;;  %v12140_v32 = vor.u32 %v13903_v50, %v12137_v58  ;;  %v12049_v50 = vld [vmem:[%s15819_s27 + $0x848] sm:$0xf0]  ;;  %v12329_v29 = vld [vmem:[%s15819_s27 + $0xa78] sm:$0xf0] }
 0x47d   : > { %10400 = vmatpush.bf16.msrb.mxu2 %v11844_v37  ;;  %v11892_v37 = vor.u32 %v13841_v1, %v11889_v63  ;;  %v13913_v63 = vld [vmem:[%s15819_s27 + $0x944] sm:$0xf] }
 0x47e   : > { %10413 = vmatpush.bf16.msrb.mxu3 %v11908_v39  ;;  %v12004_v39 = vor.u32 %v13869_v60, %v12001_v38  ;;  %v13895_v60 = vld [vmem:[%s15819_s27 + $0x8b4] sm:$0xf]  ;;  %v12105_v38 = vld [vmem:[%s15819_s27 + $0x8b8] sm:$0xf0]  ;;  %v12180_v6 = vor.u32 %v13913_v63, %v12177_v61 }
 0x47f   : > { %10375 = vmatpush.bf16.msrb.mxu0 %v11708_v34  ;;  %v12193_v34 = vld [vmem:[%s15819_s27 + $0x968] sm:$0xf0]  ;;  %v13907_v63 = vld [vmem:[%s15819_s27 + $0x914] sm:$0xf] }
 0x480   : > { %10388 = vmatpush.bf16.msrb.mxu1 %v11772_v0  ;;  %v11993_v0 = vld [vmem:[%s15819_s27 + $0x7d8] sm:$0xf0]  ;;  %v12196_v54 = vor.u32 %v13917_v56, %v12193_v34  ;;  %v13861_v56 = vld [vmem:[%s15819_s27 + $0x7a4] sm:$0xf]  ;;  %v11969_v34 = vld [vmem:[%s15819_s27 + $0x7a8] sm:$0xf0] }
 0x481   : > { %10401 = vmatpush.bf16.msrb.mxu2 %v11836_v20  ;;  %v13883_v20 = vld [vmem:[%s15819_s27 + $0x854] sm:$0xf]  ;;  %v11996_v52 = vor.u32 %v13867_v28, %v11993_v0  ;;  %v12033_v28 = vld [vmem:[%s15819_s27 + $0x828] sm:$0xf0]  ;;  %v13893_v0 = vld [vmem:[%s15819_s27 + $0x8a4] sm:$0xf] }
 0x482   : > { %10414 = vmatpush.bf16.msrb.mxu3 %v11900_v24  ;;  %v13865_v24 = vld [vmem:[%s15819_s27 + $0x7c4] sm:$0xf] }
 0x483   : > { %10376 = vmatpush.bf16.msrb.mxu0 %v11700_v44  ;;  %v12113_v44 = vld [vmem:[%s15819_s27 + $0x8c8] sm:$0xf0]  ;;  %v10170_v58 = vpop.f32.mrf.mxu0  ;;  %v11988_v1 = vor.u32 %v13865_v24, %v11985_v57  ;;  %v13859_v57 = vld [vmem:[%s15819_s27 + $0x794] sm:$0xf] }
 0x484   : > { %10389 = vmatpush.bf16.msrb.mxu1 %v11764_v2  ;;  %v10171_v2 = vadd.f32 %v10170_v58, %v16900_v22  ;;  %v11980_v22 = vor.u32 %v13863_v43, %v11977_v31  ;;  %v12089_v58 = vld [vmem:[%s15819_s27 + $0x898] sm:$0xf0]  ;;  %v13873_v31 = vld [vmem:[%s15819_s27 + $0x804] sm:$0xf] }
 0x485   : > { %10402 = vmatpush.bf16.msrb.mxu2 %v11828_v15  ;;  %v12052_v15 = vor.u32 %v13881_v3, %v12049_v50  ;;  %v11961_v3 = vld [vmem:[%s15819_s27 + $0x798] sm:$0xf0]  ;;  %v13875_v50 = vld [vmem:[%s15819_s27 + $0x814] sm:$0xf] }
 0x486   : > { %10415 = vmatpush.bf16.msrb.mxu3 %v11892_v37  ;;  %10377 = vmatmul.bf16.vlgmr.msrb.gmra.mxu0 %v16079_v35  ;;  %v13915_v35 = vld [vmem:[%s15819_s27 + $0x954] sm:$0xf]  ;;  %v12041_v37 = vld [vmem:[%s15819_s27 + $0x838] sm:$0xf0]  ;;  %v11964_v61 = vor.u32 %v13859_v57, %v11961_v3  ;;  %v13965_v57 = vld [vmem:[%s15819_s27 + $0xae4] sm:$0xf] }
 0x487   : > { %10421 = vmatpush.bf16.msra.mxu0 %v12012_v48  ;;  %10390 = vmatmul.bf16.vlgmr.msrb.gmra.mxu1 %v16157_v41  ;;  %v13897_v41 = vld [vmem:[%s15819_s27 + $0x8c4] sm:$0xf]  ;;  %v12385_v3 = vld [vmem:[%s15819_s27 + $0xae8] sm:$0xf0] }
 0x488   : > { %10434 = vmatpush.bf16.msra.mxu1 %v12076_v49  ;;  %10403 = vmatmul.bf16.vlgmr.msrb.gmra.mxu2 %v16168_v53  ;;  %v12060_v53 = vor.u32 %v13883_v20, %v12057_v8  ;;  %v12116_v48 = vor.u32 %v13897_v41, %v12113_v44  ;;  %v10183_v49 = vpop.f32.mrf.mxu1  ;;  %v12097_v20 = vld [vmem:[%s15819_s27 + $0x8a8] sm:$0xf0]  ;;  %v12025_v44 = vld [vmem:[%s15819_s27 + $0x818] sm:$0xf0] }
 0x489   : > { %10447 = vmatpush.bf16.msra.mxu2 %v12140_v32  ;;  %10416 = vmatmul.bf16.vlgmr.msrb.gmra.mxu3 %v16161_v42  ;;  %v12188_v42 = vor.u32 %v13915_v35, %v12185_v55  ;;  %v13879_v32 = vld [vmem:[%s15819_s27 + $0x834] sm:$0xf]  ;;  %v10184_v4 = vadd.f32 %v10183_v49, %v10171_v2  ;;  %v12161_v35 = vld [vmem:[%s15819_s27 + $0x928] sm:$0xf0]  ;;  %v12100_v24 = vor.u32 %v13893_v0, %v12097_v20  ;;  %v12153_v2 = vld [vmem:[%s15819_s27 + $0x918] sm:$0xf0] }
 0x48a   : > { %10460 = vmatpush.bf16.msra.mxu3 %v12204_v33  ;;  %v12044_v33 = vor.u32 %v13879_v32, %v12041_v37  ;;  %v12028_v49 = vor.u32 %v13875_v50, %v12025_v44  ;;  %v12017_v32 = vld [vmem:[%s15819_s27 + $0x808] sm:$0xf0]  ;;  %v13889_v37 = vld [vmem:[%s15819_s27 + $0x884] sm:$0xf] }
 0x48b   : > { %10422 = vmatpush.bf16.msra.mxu0 %v12004_v39  ;;  %v12108_v39 = vor.u32 %v13895_v60, %v12105_v38  ;;  %v10172_v55 = vpop.f32.mrf.mxu0  ;;  %v12081_v60 = vld [vmem:[%s15819_s27 + $0x888] sm:$0xf0]  ;;  %v13935_v38 = vld [vmem:[%s15819_s27 + $0x9f4] sm:$0xf]  ;;  %v13981_v44 = vld [vmem:[%s15819_s27 + $0xb64] sm:$0xf] }
 0x48c   : > { %10435 = vmatpush.bf16.msra.mxu1 %v12068_v11  ;;  %v13877_v11 = vld [vmem:[%s15819_s27 + $0x824] sm:$0xf]  ;;  %v10209_v5 = vpop.f32.mrf.mxu3  ;;  %v12084_v0 = vor.u32 %v13889_v37, %v12081_v60  ;;  %v12257_v55 = vld [vmem:[%s15819_s27 + $0x9e8] sm:$0xf0] }
 0x48d   : > { %10448 = vmatpush.bf16.msra.mxu2 %v12132_v51  ;;  %v10196_v51 = vpop.f32.mrf.mxu2  ;;  %v13929_v60 = vld [vmem:[%s15819_s27 + $0x9c4] sm:$0xf] }
 0x48e   : > { %10461 = vmatpush.bf16.msra.mxu3 %v12196_v54  ;;  %v10197_v8 = vadd.f32 %v10196_v51, %v10184_v4  ;;  %v11972_v54 = vor.u32 %v13861_v56, %v11969_v34  ;;  %v12265_v4 = vld [vmem:[%s15819_s27 + $0x9f8] sm:$0xf0]  ;;  %v13905_v34 = vld [vmem:[%s15819_s27 + $0x904] sm:$0xf] }
 0x48f   : > { %10423 = vmatpush.bf16.msra.mxu0 %v11996_v52  ;;  %v13909_v52 = vld [vmem:[%s15819_s27 + $0x924] sm:$0xf]  ;;  %v12393_v56 = vld [vmem:[%s15819_s27 + $0xaf8] sm:$0xf0]  ;;  %v12268_v20 = vor.u32 %v13935_v38, %v12265_v4  ;;  %v12241_v38 = vld [vmem:[%s15819_s27 + $0x9c8] sm:$0xf0] }
 0x490   : > { %10436 = vmatpush.bf16.msra.mxu1 %v12060_v53  ;;  %v16971_v53 = vadd.f32 %v10209_v5, %v10197_v8  ;;  %v10185_v41 = vpop.f32.mrf.mxu1  ;;  %v12332_v8 = vor.u32 %v13951_v21, %v12329_v29  ;;  %v12457_v5 = vld [vmem:[%s15819_s27 + $0xb78] sm:$0xf0]  ;;  %v13945_v4 = vld [vmem:[%s15819_s27 + $0xa44] sm:$0xf]  ;;  %v12244_v29 = vor.u32 %v13929_v60, %v12241_v38  ;;  %v13955_v60 = vld [vmem:[%s15819_s27 + $0xa94] sm:$0xf] }
 0x491   : > { %10449 = vmatpush.bf16.msra.mxu2 %v12124_v47  ;;  %v12036_v47 = vor.u32 %v13877_v11, %v12033_v28  ;;  %v12145_v11 = vld [vmem:[%s15819_s27 + $0x908] sm:$0xf0]  ;;  %v12020_v28 = vor.u32 %v13873_v31, %v12017_v32  ;;  %v12441_v32 = vld [vmem:[%s15819_s27 + $0xb58] sm:$0xf0] }
 0x492   : > { %10462 = vmatpush.bf16.msra.mxu3 %v12188_v42  ;;  %v13891_v42 = vld [vmem:[%s15819_s27 + $0x894] sm:$0xf]  ;;  %v12345_v38 = vld [vmem:[%s15819_s27 + $0xa98] sm:$0xf0] }
 0x493   : > { %10424 = vmatpush.bf16.msra.mxu0 %v11988_v1  ;;  %v12164_v1 = vor.u32 %v13909_v52, %v12161_v35  ;;  %v12092_v43 = vor.u32 %v13891_v42, %v12089_v58  ;;  %v12148_v52 = vor.u32 %v13905_v34, %v12145_v11  ;;  %v13933_v35 = vld [vmem:[%s15819_s27 + $0x9e4] sm:$0xf]  ;;  %v12449_v42 = vld [vmem:[%s15819_s27 + $0xb68] sm:$0xf0] }
 0x494   : > { %10437 = vmatpush.bf16.msra.mxu1 %v12052_v15  ;;  %v13857_v15 = vld [vmem:[%s15819_s27 + $0x784] sm:$0xf]  ;;  %v10211_v51 = vpop.f32.mrf.mxu3  ;;  %v12260_v41 = vor.u32 %v13933_v35, %v12257_v55  ;;  %v12425_v35 = vld [vmem:[%s15819_s27 + $0xb38] sm:$0xf0] }
 0x495   : > { %10450 = vmatpush.bf16.msra.mxu2 %v12116_v48  ;;  %v11953_v48 = vld [vmem:[%s15819_s27 + $0x788] sm:$0xf0]  ;;  %v13927_v51 = vld [vmem:[%s15819_s27 + $0x9b4] sm:$0xf] }
 0x496   : > { %10463 = vmatpush.bf16.msra.mxu3 %v12180_v6  ;;  %v10198_v6 = vpop.f32.mrf.mxu2 }
 0x497   : > { %10425 = vmatpush.bf16.msra.mxu0 %v11980_v22  ;;  %v12156_v22 = vor.u32 %v13907_v63, %v12153_v2  ;;  %v13931_v63 = vld [vmem:[%s15819_s27 + $0x9d4] sm:$0xf]  ;;  %v12305_v6 = vld [vmem:[%s15819_s27 + $0xa48] sm:$0xf0] }
 0x498   : > { %10438 = vmatpush.bf16.msra.mxu1 %v12044_v33  ;;  %v13967_v33 = vld [vmem:[%s15819_s27 + $0xaf4] sm:$0xf]  ;;  %v12308_v34 = vor.u32 %v13945_v4, %v12305_v6 }
 0x499   : > { %10451 = vmatpush.bf16.msra.mxu2 %v12108_v39  ;;  %v11956_v39 = vor.u32 %v13857_v15, %v11953_v48  ;;  %v13947_v2 = vld [vmem:[%s15819_s27 + $0xa54] sm:$0xf]  ;;  %v12313_v15 = vld [vmem:[%s15819_s27 + $0xa58] sm:$0xf0] }
 0x49a   : > { %10464 = vmatpush.bf16.msra.mxu3 %v12172_v19  ;;  %v13983_v19 = vld [vmem:[%s15819_s27 + $0xb74] sm:$0xf] }
 0x49b   : > { %10426 = vmatpush.bf16.msra.mxu0 %v11972_v54  ;;  %v12396_v54 = vor.u32 %v13967_v33, %v12393_v56  ;;  %v12460_v50 = vor.u32 %v13983_v19, %v12457_v5  ;;  %v13963_v48 = vld [vmem:[%s15819_s27 + $0xad4] sm:$0xf]  ;;  %v13977_v33 = vld [vmem:[%s15819_s27 + $0xb44] sm:$0xf]  ;;  %v12361_v5 = vld [vmem:[%s15819_s27 + $0xab8] sm:$0xf0] }
 0x49c   : > { %10439 = vmatpush.bf16.msra.mxu1 %v12036_v47  ;;  %v13949_v47 = vld [vmem:[%s15819_s27 + $0xa64] sm:$0xf]  ;;  %v13959_v19 = vld [vmem:[%s15819_s27 + $0xab4] sm:$0xf] }
 0x49d   : > { %10452 = vmatpush.bf16.msra.mxu2 %v12100_v24  ;;  %v12321_v24 = vld [vmem:[%s15819_s27 + $0xa68] sm:$0xf0] }
 0x49e   : > { %10465 = vmatpush.bf16.msra.mxu3 %v12164_v1  ;;  %v12324_v58 = vor.u32 %v13949_v47, %v12321_v24  ;;  %v12388_v1 = vor.u32 %v13965_v57, %v12385_v3  ;;  %v12364_v47 = vor.u32 %v13959_v19, %v12361_v5  ;;  %v13925_v24 = vld [vmem:[%s15819_s27 + $0x9a4] sm:$0xf]  ;;  %v12225_v57 = vld [vmem:[%s15819_s27 + $0x9a8] sm:$0xf0]  ;;  %v14015_v19 = vld [vmem:[%s15819_s27 + $0xc74] sm:$0xf] }
 0x49f   : > { %10427 = vmatpush.bf16.msra.mxu0 %v11964_v61  ;;  %v12249_v61 = vld [vmem:[%s15819_s27 + $0x9d8] sm:$0xf0]  ;;  %v13941_v3 = vld [vmem:[%s15819_s27 + $0xa24] sm:$0xf] }
 0x4a0   : > { %10440 = vmatpush.bf16.msra.mxu1 %v12028_v49  ;;  %v12377_v49 = vld [vmem:[%s15819_s27 + $0xad8] sm:$0xf0]  ;;  %v12252_v31 = vor.u32 %v13931_v63, %v12249_v61  ;;  %v13973_v63 = vld [vmem:[%s15819_s27 + $0xb24] sm:$0xf]  ;;  %v12417_v61 = vld [vmem:[%s15819_s27 + $0xb28] sm:$0xf0] }
 0x4a1   : > { %10453 = vmatpush.bf16.msra.mxu2 %v12092_v43  ;;  %v12452_v43 = vor.u32 %v13981_v44, %v12449_v42  ;;  %v12380_v37 = vor.u32 %v13963_v48, %v12377_v49  ;;  %v12353_v44 = vld [vmem:[%s15819_s27 + $0xaa8] sm:$0xf0]  ;;  %v12420_v6 = vor.u32 %v13973_v63, %v12417_v61  ;;  %v12585_v5 = vld [vmem:[%s15819_s27 + $0xc78] sm:$0xf0]  ;;  %v13997_v63 = vld [vmem:[%s15819_s27 + $0xbe4] sm:$0xf] }
 0x4a2   : > { %10466 = vmatpush.bf16.msra.mxu3 %v12156_v22  ;;  %v12369_v22 = vld [vmem:[%s15819_s27 + $0xac8] sm:$0xf0] }
 0x4a3   : > { %10428 = vmatpush.bf16.msra.mxu0 %v11956_v39  ;;  %v10222_v21 = vpop.f32.mrf.mxu0  ;;  %v12433_v39 = vld [vmem:[%s15819_s27 + $0xb48] sm:$0xf0] }
 0x4a4   : > { %10441 = vmatpush.bf16.msra.mxu1 %v12020_v28  ;;  %v17026_v56 = vadd.f32 %v10222_v21, %v16971_v53  ;;  %v12233_v28 = vld [vmem:[%s15819_s27 + $0x9b8] sm:$0xf0]  ;;  %v13921_v21 = vld [vmem:[%s15819_s27 + $0x984] sm:$0xf]  ;;  %v12513_v61 = vld [vmem:[%s15819_s27 + $0xbe8] sm:$0xf0] }
 0x4a5   : > { %10454 = vmatpush.bf16.msra.mxu2 %v12084_v0  ;;  %v13943_v0 = vld [vmem:[%s15819_s27 + $0xa34] sm:$0xf]  ;;  %v12236_v53 = vor.u32 %v13927_v51, %v12233_v28  ;;  %v13953_v51 = vld [vmem:[%s15819_s27 + $0xa84] sm:$0xf]  ;;  %v12337_v28 = vld [vmem:[%s15819_s27 + $0xa88] sm:$0xf0] }
 0x4a6   : > { %10467 = vmatpush.bf16.msra.mxu3 %v12148_v52  ;;  %10429 = vmatmul.bf16.vlgmr.msra.gmra.mxu0 %v16172_v10  ;;  %v13979_v10 = vld [vmem:[%s15819_s27 + $0xb54] sm:$0xf] }
 0x4a7   : > { %10473 = vmatpush.bf16.msrb.mxu0 %v12268_v20  ;;  %10442 = vmatmul.bf16.vlgmr.msra.gmra.mxu1 %v16239_v12  ;;  %v13961_v12 = vld [vmem:[%s15819_s27 + $0xac4] sm:$0xf]  ;;  %v10235_v20 = vpop.f32.mrf.mxu1  ;;  %v13975_v52 = vld [vmem:[%s15819_s27 + $0xb34] sm:$0xf] }
 0x4a8   : > { %10486 = vmatpush.bf16.msrb.mxu1 %v12332_v8  ;;  %10455 = vmatmul.bf16.vlgmr.msra.gmra.mxu2 %v16246_v46  ;;  %v12316_v46 = vor.u32 %v13947_v2, %v12313_v15  ;;  %v12372_v11 = vor.u32 %v13961_v12, %v12369_v22  ;;  %v12297_v8 = vld [vmem:[%s15819_s27 + $0xa38] sm:$0xf0]  ;;  %v12428_v42 = vor.u32 %v13975_v52, %v12425_v35  ;;  %v13971_v12 = vld [vmem:[%s15819_s27 + $0xb14] sm:$0xf] }
 0x4a9   : > { %10499 = vmatpush.bf16.msrb.mxu2 %v12396_v54  ;;  %10468 = vmatmul.bf16.vlgmr.msra.gmra.mxu3 %v16241_v45  ;;  %v12444_v45 = vor.u32 %v13979_v10, %v12441_v32  ;;  %v12436_v54 = vor.u32 %v13977_v33, %v12433_v39  ;;  %v12300_v55 = vor.u32 %v13943_v0, %v12297_v8  ;;  %v13939_v10 = vld [vmem:[%s15819_s27 + $0xa14] sm:$0xf]  ;;  %v12649_v35 = vld [vmem:[%s15819_s27 + $0xcf8] sm:$0xf0] }
 0x4aa   : > { %10512 = vmatpush.bf16.msrb.mxu3 %v12460_v50  ;;  %v12289_v50 = vld [vmem:[%s15819_s27 + $0xa28] sm:$0xf0]  ;;  %v12348_v39 = vor.u32 %v13955_v60, %v12345_v38  ;;  %v13999_v0 = vld [vmem:[%s15819_s27 + $0xbf4] sm:$0xf]  ;;  %v12505_v38 = vld [vmem:[%s15819_s27 + $0xbd8] sm:$0xf0] }
 0x4ab   : > { %10474 = vmatpush.bf16.msrb.mxu0 %v12260_v41  ;;  %v13957_v41 = vld [vmem:[%s15819_s27 + $0xaa4] sm:$0xf]  ;;  %v10224_v15 = vpop.f32.mrf.mxu0  ;;  %v12292_v48 = vor.u32 %v13941_v3, %v12289_v50  ;;  %v13995_v60 = vld [vmem:[%s15819_s27 + $0xbd4] sm:$0xf] }
 0x4ac   : > { %10487 = vmatpush.bf16.msrb.mxu1 %v12324_v58  ;;  %v10248_v58 = vpop.f32.mrf.mxu2  ;;  %v12356_v49 = vor.u32 %v13957_v41, %v12353_v44  ;;  %v10261_v32 = vpop.f32.mrf.mxu3  ;;  %v12588_v41 = vor.u32 %v14015_v19, %v12585_v5  ;;  %v14047_v44 = vld [vmem:[%s15819_s27 + $0xd74] sm:$0xf]  ;;  %v12577_v15 = vld [vmem:[%s15819_s27 + $0xc68] sm:$0xf0]  ;;  %v14041_v19 = vld [vmem:[%s15819_s27 + $0xd44] sm:$0xf] }
 0x4ad   : > { %10500 = vmatpush.bf16.msrb.mxu2 %v12388_v1  ;;  %v12228_v1 = vor.u32 %v13925_v24, %v12225_v57  ;;  %v10249_v2 = vadd.f32 %v10248_v58, %v10235_v20  ;;  %v12521_v20 = vld [vmem:[%s15819_s27 + $0xbf8] sm:$0xf0]  ;;  %v12340_v57 = vor.u32 %v13953_v51, %v12337_v28  ;;  %v14009_v51 = vld [vmem:[%s15819_s27 + $0xc44] sm:$0xf]  ;;  %v12561_v28 = vld [vmem:[%s15819_s27 + $0xc48] sm:$0xf0] }
 0x4ae   : > { %10513 = vmatpush.bf16.msrb.mxu3 %v12452_v43  ;;  %v13923_v43 = vld [vmem:[%s15819_s27 + $0x994] sm:$0xf]  ;;  %v12524_v50 = vor.u32 %v13999_v0, %v12521_v20  ;;  %v12625_v0 = vld [vmem:[%s15819_s27 + $0xcc8] sm:$0xf0] }
 0x4af   : > { %10475 = vmatpush.bf16.msrb.mxu0 %v12252_v31  ;;  %v12217_v31 = vld [vmem:[%s15819_s27 + $0x998] sm:$0xf0]  ;;  %v17050_v4 = vadd.f32 %v10261_v32, %v10249_v2  ;;  %v14013_v2 = vld [vmem:[%s15819_s27 + $0xc64] sm:$0xf]  ;;  %v12705_v32 = vld [vmem:[%s15819_s27 + $0xd68] sm:$0xf0] }
 0x4b0   : > { %10488 = vmatpush.bf16.msrb.mxu1 %v12316_v46  ;;  %v10237_v46 = vpop.f32.mrf.mxu1  ;;  %v12220_v22 = vor.u32 %v13923_v43, %v12217_v31  ;;  %v12516_v31 = vor.u32 %v13997_v63, %v12513_v61  ;;  %v12689_v5 = vld [vmem:[%s15819_s27 + $0xd48] sm:$0xf0]  ;;  %v13989_v61 = vld [vmem:[%s15819_s27 + $0xba4] sm:$0xf] }
 0x4b1   : > { %10501 = vmatpush.bf16.msrb.mxu2 %v12380_v37  ;;  %v12281_v37 = vld [vmem:[%s15819_s27 + $0xa18] sm:$0xf0]  ;;  %v12580_v46 = vor.u32 %v14013_v2, %v12577_v15  ;;  %v12481_v2 = vld [vmem:[%s15819_s27 + $0xba8] sm:$0xf0]  ;;  %v14005_v15 = vld [vmem:[%s15819_s27 + $0xc24] sm:$0xf] }
 0x4b2   : > { %10514 = vmatpush.bf16.msrb.mxu3 %v12444_v45  ;;  %v12409_v45 = vld [vmem:[%s15819_s27 + $0xb18] sm:$0xf0]  ;;  %v12284_v33 = vor.u32 %v13939_v10, %v12281_v37  ;;  %v14045_v10 = vld [vmem:[%s15819_s27 + $0xd64] sm:$0xf] }
 0x4b3   : > { %10476 = vmatpush.bf16.msrb.mxu0 %v12244_v29  ;;  %v12209_v29 = vld [vmem:[%s15819_s27 + $0x988] sm:$0xf0]  ;;  %v12412_v8 = vor.u32 %v13971_v12, %v12409_v45  ;;  %v12569_v12 = vld [vmem:[%s15819_s27 + $0xc58] sm:$0xf0] }
 0x4b4   : > { %10489 = vmatpush.bf16.msrb.mxu1 %v12308_v34  ;;  %v13937_v34 = vld [vmem:[%s15819_s27 + $0xa04] sm:$0xf]  ;;  %v12212_v52 = vor.u32 %v13921_v21, %v12209_v29  ;;  %v10263_v3 = vpop.f32.mrf.mxu3  ;;  %v12633_v45 = vld [vmem:[%s15819_s27 + $0xcd8] sm:$0xf0]  ;;  %v12708_v21 = vor.u32 %v14045_v10, %v12705_v32  ;;  %v12508_v29 = vor.u32 %v13995_v60, %v12505_v38  ;;  %v12673_v38 = vld [vmem:[%s15819_s27 + $0xd28] sm:$0xf0] }
 0x4b5   : > { %10502 = vmatpush.bf16.msrb.mxu2 %v12372_v11  ;;  %v12273_v11 = vld [vmem:[%s15819_s27 + $0xa08] sm:$0xf0]  ;;  %v14023_v3 = vld [vmem:[%s15819_s27 + $0xcb4] sm:$0xf]  ;;  %v14037_v60 = vld [vmem:[%s15819_s27 + $0xd24] sm:$0xf] }
 0x4b6   : > { %10515 = vmatpush.bf16.msrb.mxu3 %v12436_v54  ;;  %v14031_v54 = vld [vmem:[%s15819_s27 + $0xcf4] sm:$0xf]  ;;  %v12276_v24 = vor.u32 %v13937_v34, %v12273_v11  ;;  %v13993_v34 = vld [vmem:[%s15819_s27 + $0xbc4] sm:$0xf]  ;;  %v12497_v11 = vld [vmem:[%s15819_s27 + $0xbc8] sm:$0xf0] }
 0x4b7   : > { %10477 = vmatpush.bf16.msrb.mxu0 %v12236_v53  ;;  %v10250_v53 = vpop.f32.mrf.mxu2  ;;  %v12652_v58 = vor.u32 %v14031_v54, %v12649_v35  ;;  %v13991_v35 = vld [vmem:[%s15819_s27 + $0xbb4] sm:$0xf] }
 0x4b8   : > { %10490 = vmatpush.bf16.msrb.mxu1 %v12300_v55  ;;  %v13969_v55 = vld [vmem:[%s15819_s27 + $0xb04] sm:$0xf]  ;;  %v12564_v53 = vor.u32 %v14009_v51, %v12561_v28  ;;  %v14035_v51 = vld [vmem:[%s15819_s27 + $0xd14] sm:$0xf] }
 0x4b9   : > { %10503 = vmatpush.bf16.msrb.mxu2 %v12364_v47  ;;  %v12401_v47 = vld [vmem:[%s15819_s27 + $0xb08] sm:$0xf0] }
 0x4ba   : > { %10516 = vmatpush.bf16.msrb.mxu3 %v12428_v42  ;;  %v12713_v42 = vld [vmem:[%s15819_s27 + $0xd78] sm:$0xf0] }
 0x4bb   : > { %10478 = vmatpush.bf16.msrb.mxu0 %v12228_v1  ;;  %v12404_v1 = vor.u32 %v13969_v55, %v12401_v47  ;;  %v12716_v43 = vor.u32 %v14047_v44, %v12713_v42  ;;  %v12489_v55 = vld [vmem:[%s15819_s27 + $0xbb8] sm:$0xf0]  ;;  %v14007_v47 = vld [vmem:[%s15819_s27 + $0xc34] sm:$0xf] }
 0x4bc   : > { %10491 = vmatpush.bf16.msrb.mxu1 %v12292_v48  ;;  %v14029_v48 = vld [vmem:[%s15819_s27 + $0xce4] sm:$0xf]  ;;  %v12492_v44 = vor.u32 %v13991_v35, %v12489_v55  ;;  %v14039_v42 = vld [vmem:[%s15819_s27 + $0xd34] sm:$0xf]  ;;  %v12777_v35 = vld [vmem:[%s15819_s27 + $0xdf8] sm:$0xf0] }
 0x4bd   : > { %10504 = vmatpush.bf16.msrb.mxu2 %v12356_v49  ;;  %v12641_v49 = vld [vmem:[%s15819_s27 + $0xce8] sm:$0xf0] }
 0x4be   : > { %10517 = vmatpush.bf16.msrb.mxu3 %v12420_v6  ;;  %v12644_v37 = vor.u32 %v14029_v48, %v12641_v49  ;;  %v14011_v6 = vld [vmem:[%s15819_s27 + $0xc54] sm:$0xf]  ;;  %v12545_v49 = vld [vmem:[%s15819_s27 + $0xc28] sm:$0xf0] }
 0x4bf   : > { %10479 = vmatpush.bf16.msrb.mxu0 %v12220_v22  ;;  %v14027_v22 = vld [vmem:[%s15819_s27 + $0xcd4] sm:$0xf] }
 0x4c0   : > { %10492 = vmatpush.bf16.msrb.mxu1 %v12284_v33  ;;  %v12697_v33 = vld [vmem:[%s15819_s27 + $0xd58] sm:$0xf0] }
 0x4c1   : > { %10505 = vmatpush.bf16.msrb.mxu2 %v12348_v39  ;;  %v12636_v39 = vor.u32 %v14027_v22, %v12633_v45  ;;  %v13987_v45 = vld [vmem:[%s15819_s27 + $0xb94] sm:$0xf] }
 0x4c2   : > { %10518 = vmatpush.bf16.msrb.mxu3 %v12412_v8  ;;  %v12500_v8 = vor.u32 %v13993_v34, %v12497_v11  ;;  %v12601_v34 = vld [vmem:[%s15819_s27 + $0xc98] sm:$0xf0]  ;;  %v12676_v11 = vor.u32 %v14037_v60, %v12673_v38 }
 0x4c3   : > { %10480 = vmatpush.bf16.msrb.mxu0 %v12212_v52  ;;  %v10274_v20 = vpop.f32.mrf.mxu0 }
 0x4c4   : > { %10493 = vmatpush.bf16.msrb.mxu1 %v12276_v24  ;;  %v10275_v54 = vadd.f32 %v10274_v20, %v17050_v4  ;;  %v10287_v24 = vpop.f32.mrf.mxu1  ;;  %v12692_v4 = vor.u32 %v14041_v19, %v12689_v5  ;;  %v14001_v19 = vld [vmem:[%s15819_s27 + $0xc04] sm:$0xf]  ;;  %v12529_v5 = vld [vmem:[%s15819_s27 + $0xc08] sm:$0xf0] }
 0x4c5   : > { %10506 = vmatpush.bf16.msrb.mxu2 %v12340_v57  ;;  %v12553_v57 = vld [vmem:[%s15819_s27 + $0xc38] sm:$0xf0] }
 0x4c6   : > { %10519 = vmatpush.bf16.msrb.mxu3 %v12404_v1  ;;  %10481 = vmatmul.bf16.vlgmr.msrb.gmra.mxu0 %v16248_v59  ;;  %v14043_v59 = vld [vmem:[%s15819_s27 + $0xd54] sm:$0xf]  ;;  %v12556_v1 = vor.u32 %v14007_v47, %v12553_v57  ;;  %v12841_v57 = vld [vmem:[%s15819_s27 + $0xe78] sm:$0xf0] }
 0x4c7   : > { %10525 = vmatpush.bf16.msra.mxu0 %v12524_v50  ;;  %10494 = vmatmul.bf16.vlgmr.msrb.gmra.mxu1 %v16316_v17  ;;  %v14025_v17 = vld [vmem:[%s15819_s27 + $0xcc4] sm:$0xf]  ;;  %v12617_v50 = vld [vmem:[%s15819_s27 + $0xcb8] sm:$0xf0] }
 0x4c8   : > { %10538 = vmatpush.bf16.msra.mxu1 %v12588_v41  ;;  %10507 = vmatmul.bf16.vlgmr.msrb.gmra.mxu2 %v16323_v23  ;;  %v12572_v23 = vor.u32 %v14011_v6, %v12569_v12  ;;  %v12628_v52 = vor.u32 %v14025_v17, %v12625_v0  ;;  %v10288_v41 = vadd.f32 %v10287_v24, %v10275_v54  ;;  %v12665_v17 = vld [vmem:[%s15819_s27 + $0xd18] sm:$0xf0]  ;;  %v13985_v0 = vld [vmem:[%s15819_s27 + $0xb84] sm:$0xf]  ;;  %v14079_v24 = vld [vmem:[%s15819_s27 + $0xe74] sm:$0xf] }
 0x4c9   : > { %10551 = vmatpush.bf16.msra.mxu2 %v12652_v58  ;;  %10520 = vmatmul.bf16.vlgmr.msrb.gmra.mxu3 %v16318_v18  ;;  %v12700_v18 = vor.u32 %v14043_v59, %v12697_v33  ;;  %v12681_v58 = vld [vmem:[%s15819_s27 + $0xd38] sm:$0xf0]  ;;  %v12620_v63 = vor.u32 %v14023_v3, %v12617_v50  ;;  %v12548_v6 = vor.u32 %v14005_v15, %v12545_v49  ;;  %v14017_v54 = vld [vmem:[%s15819_s27 + $0xc84] sm:$0xf]  ;;  %v14095_v3 = vld [vmem:[%s15819_s27 + $0xef4] sm:$0xf] }
 0x4ca   : > { %10564 = vmatpush.bf16.msra.mxu3 %v12716_v43  ;;  %v14021_v43 = vld [vmem:[%s15819_s27 + $0xca4] sm:$0xf]  ;;  %v12684_v10 = vor.u32 %v14039_v42, %v12681_v58  ;;  %v12668_v47 = vor.u32 %v14035_v51, %v12665_v17  ;;  %v12532_v42 = vor.u32 %v14001_v19, %v12529_v5  ;;  %v12969_v15 = vld [vmem:[%s15819_s27 + $0xf78] sm:$0xf0]  ;;  %v12881_v19 = vld [vmem:[%s15819_s27 + $0xec8] sm:$0xf0] }
 0x4cb   : > { %10526 = vmatpush.bf16.msra.mxu0 %v12516_v31  ;;  %v10300_v48 = vpop.f32.mrf.mxu2  ;;  %v12609_v31 = vld [vmem:[%s15819_s27 + $0xca8] sm:$0xf0] }
 0x4cc   : > { %10539 = vmatpush.bf16.msra.mxu1 %v12580_v46  ;;  %v10301_v32 = vadd.f32 %v10300_v48, %v10288_v41  ;;  %v10276_v46 = vpop.f32.mrf.mxu0  ;;  %v12612_v12 = vor.u32 %v14021_v43, %v12609_v31  ;;  %v10313_v22 = vpop.f32.mrf.mxu3  ;;  %v12905_v41 = vld [vmem:[%s15819_s27 + $0xef8] sm:$0xf0]  ;;  %v14061_v43 = vld [vmem:[%s15819_s27 + $0xde4] sm:$0xf]  ;;  %v12769_v31 = vld [vmem:[%s15819_s27 + $0xde8] sm:$0xf0] }
 0x4cd   : > { %10552 = vmatpush.bf16.msra.mxu2 %v12644_v37  ;;  %v12484_v37 = vor.u32 %v13989_v61, %v12481_v2  ;;  %v10289_v59 = vpop.f32.mrf.mxu1  ;;  %v12844_v61 = vor.u32 %v14079_v24, %v12841_v57  ;;  %v14111_v2 = vld [vmem:[%s15819_s27 + $0xf74] sm:$0xf]  ;;  %v12908_v48 = vor.u32 %v14095_v3, %v12905_v41  ;;  %v14093_v46 = vld [vmem:[%s15819_s27 + $0xee4] sm:$0xf]  ;;  %v12772_v38 = vor.u32 %v14061_v43, %v12769_v31  ;;  %v12745_v3 = vld [vmem:[%s15819_s27 + $0xdb8] sm:$0xf0] }
 0x4ce   : > { %10565 = vmatpush.bf16.msra.mxu3 %v12708_v21  ;;  %v12473_v21 = vld [vmem:[%s15819_s27 + $0xb98] sm:$0xf0]  ;;  %v17118_v33 = vadd.f32 %v10313_v22, %v10301_v32  ;;  %v12833_v32 = vld [vmem:[%s15819_s27 + $0xe68] sm:$0xf0]  ;;  %v12972_v60 = vor.u32 %v14111_v2, %v12969_v15  ;;  %v14075_v59 = vld [vmem:[%s15819_s27 + $0xe54] sm:$0xf] }
 0x4cf   : > { %10527 = vmatpush.bf16.msra.mxu0 %v12508_v29  ;;  %v14003_v29 = vld [vmem:[%s15819_s27 + $0xc14] sm:$0xf]  ;;  %v12476_v28 = vor.u32 %v13987_v45, %v12473_v21  ;;  %v14069_v43 = vld [vmem:[%s15819_s27 + $0xe24] sm:$0xf] }
 0x4d0   : > { %10540 = vmatpush.bf16.msra.mxu1 %v12572_v23  ;;  %v12537_v23 = vld [vmem:[%s15819_s27 + $0xc18] sm:$0xf0]  ;;  %v14059_v21 = vld [vmem:[%s15819_s27 + $0xdd4] sm:$0xf] }
 0x4d1   : > { %10553 = vmatpush.bf16.msra.mxu2 %v12636_v39  ;;  %v14019_v39 = vld [vmem:[%s15819_s27 + $0xc94] sm:$0xf]  ;;  %v12540_v20 = vor.u32 %v14003_v29, %v12537_v23  ;;  %v12761_v29 = vld [vmem:[%s15819_s27 + $0xdd8] sm:$0xf0] }
 0x4d2   : > { %10566 = vmatpush.bf16.msra.mxu3 %v12700_v18  ;;  %v12465_v18 = vld [vmem:[%s15819_s27 + $0xb88] sm:$0xf0]  ;;  %v12825_v23 = vld [vmem:[%s15819_s27 + $0xe58] sm:$0xf0]  ;;  %v12764_v51 = vor.u32 %v14059_v21, %v12761_v29  ;;  %v14055_v57 = vld [vmem:[%s15819_s27 + $0xdb4] sm:$0xf] }
 0x4d3   : > { %10528 = vmatpush.bf16.msra.mxu0 %v12500_v8  ;;  %v12604_v8 = vor.u32 %v14019_v39, %v12601_v34  ;;  %v10302_v55 = vpop.f32.mrf.mxu2  ;;  %v12468_v50 = vor.u32 %v13985_v0, %v12465_v18  ;;  %v14091_v39 = vld [vmem:[%s15819_s27 + $0xed4] sm:$0xf]  ;;  %v12889_v34 = vld [vmem:[%s15819_s27 + $0xed8] sm:$0xf0]  ;;  %v14057_v0 = vld [vmem:[%s15819_s27 + $0xdc4] sm:$0xf] }
 0x4d4   : > { %10541 = vmatpush.bf16.msra.mxu1 %v12564_v53  ;;  %v12593_v53 = vld [vmem:[%s15819_s27 + $0xc88] sm:$0xf0]  ;;  %v12892_v17 = vor.u32 %v14091_v39, %v12889_v34  ;;  %v12729_v39 = vld [vmem:[%s15819_s27 + $0xd98] sm:$0xf0]  ;;  %v14067_v34 = vld [vmem:[%s15819_s27 + $0xe14] sm:$0xf] }
 0x4d5   : > { %10554 = vmatpush.bf16.msra.mxu2 %v12628_v52  ;;  %v14063_v52 = vld [vmem:[%s15819_s27 + $0xdf4] sm:$0xf]  ;;  %v12596_v58 = vor.u32 %v14017_v54, %v12593_v53  ;;  %v12753_v18 = vld [vmem:[%s15819_s27 + $0xdc8] sm:$0xf0] }
 0x4d6   : > { %10567 = vmatpush.bf16.msra.mxu3 %v12692_v4  ;;  %v14033_v4 = vld [vmem:[%s15819_s27 + $0xd04] sm:$0xf]  ;;  %v12756_v53 = vor.u32 %v14057_v0, %v12753_v18  ;;  %v12945_v55 = vld [vmem:[%s15819_s27 + $0xf48] sm:$0xf0]  ;;  %v12921_v0 = vld [vmem:[%s15819_s27 + $0xf18] sm:$0xf0] }
 0x4d7   : > { %10529 = vmatpush.bf16.msra.mxu0 %v12492_v44  ;;  %v12657_v44 = vld [vmem:[%s15819_s27 + $0xd08] sm:$0xf0]  ;;  %v14049_v18 = vld [vmem:[%s15819_s27 + $0xd84] sm:$0xf] }
 0x4d8   : > { %10542 = vmatpush.bf16.msra.mxu1 %v12556_v1  ;;  %v10315_v1 = vpop.f32.mrf.mxu3  ;;  %v12660_v49 = vor.u32 %v14033_v4, %v12657_v44  ;;  %v12809_v4 = vld [vmem:[%s15819_s27 + $0xe38] sm:$0xf0]  ;;  %v14087_v44 = vld [vmem:[%s15819_s27 + $0xeb4] sm:$0xf] }
 0x4d9   : > { %10555 = vmatpush.bf16.msra.mxu2 %v12620_v63  ;;  %v12780_v63 = vor.u32 %v14063_v52, %v12777_v35  ;;  %v14105_v35 = vld [vmem:[%s15819_s27 + $0xf44] sm:$0xf]  ;;  %v14103_v1 = vld [vmem:[%s15819_s27 + $0xf34] sm:$0xf] }
 0x4da   : > { %10568 = vmatpush.bf16.msra.mxu3 %v12684_v10  ;;  %v14077_v10 = vld [vmem:[%s15819_s27 + $0xe64] sm:$0xf] }
 0x4db   : > { %10530 = vmatpush.bf16.msra.mxu0 %v12484_v37  ;;  %v12897_v37 = vld [vmem:[%s15819_s27 + $0xee8] sm:$0xf0]  ;;  %v12836_v22 = vor.u32 %v14077_v10, %v12833_v32  ;;  %v14085_v32 = vld [vmem:[%s15819_s27 + $0xea4] sm:$0xf] }
 0x4dc   : > { %10543 = vmatpush.bf16.msra.mxu1 %v12548_v6  ;;  %v14109_v6 = vld [vmem:[%s15819_s27 + $0xf64] sm:$0xf]  ;;  %v12900_v45 = vor.u32 %v14093_v46, %v12897_v37  ;;  %v12801_v10 = vld [vmem:[%s15819_s27 + $0xe28] sm:$0xf0] }
 0x4dd   : > { %10556 = vmatpush.bf16.msra.mxu2 %v12612_v12  ;;  %v12961_v12 = vld [vmem:[%s15819_s27 + $0xf68] sm:$0xf0]  ;;  %v12804_v29 = vor.u32 %v14069_v43, %v12801_v10  ;;  %v14141_v43 = vld [vmem:[%s15819_s27 + $0x1064] sm:$0xf] }
 0x4de   : > { %10569 = vmatpush.bf16.msra.mxu3 %v12676_v11  ;;  %v12964_v11 = vor.u32 %v14109_v6, %v12961_v12  ;;  %v12865_v46 = vld [vmem:[%s15819_s27 + $0xea8] sm:$0xf0]  ;;  %v14157_v10 = vld [vmem:[%s15819_s27 + $0x10e4] sm:$0xf] }
 0x4df   : > { %10531 = vmatpush.bf16.msra.mxu0 %v12476_v28  ;;  %v12953_v28 = vld [vmem:[%s15819_s27 + $0xf58] sm:$0xf0] }
 0x4e0   : > { %10544 = vmatpush.bf16.msra.mxu1 %v12540_v20  ;;  %v14073_v20 = vld [vmem:[%s15819_s27 + $0xe44] sm:$0xf] }
 0x4e1   : > { %10557 = vmatpush.bf16.msra.mxu2 %v12604_v8  ;;  %v12817_v8 = vld [vmem:[%s15819_s27 + $0xe48] sm:$0xf0] }
 0x4e2   : > { %10570 = vmatpush.bf16.msra.mxu3 %v12668_v47  ;;  %v12820_v47 = vor.u32 %v14073_v20, %v12817_v8  ;;  %v12721_v20 = vld [vmem:[%s15819_s27 + $0xd88] sm:$0xf0] }
 0x4e3   : > { %10532 = vmatpush.bf16.msra.mxu0 %v12468_v50  ;;  %v10326_v5 = vpop.f32.mrf.mxu0  ;;  %v14071_v50 = vld [vmem:[%s15819_s27 + $0xe34] sm:$0xf] }
 0x4e4   : > { %10545 = vmatpush.bf16.msra.mxu1 %v12532_v42  ;;  %v10327_v54 = vadd.f32 %v10326_v5, %v17118_v33  ;;  %v10339_v52 = vpop.f32.mrf.mxu1  ;;  %v12873_v33 = vld [vmem:[%s15819_s27 + $0xeb8] sm:$0xf0]  ;;  %v12948_v42 = vor.u32 %v14105_v35, %v12945_v55  ;;  %v14081_v5 = vld [vmem:[%s15819_s27 + $0xe84] sm:$0xf] }
 0x4e5   : > { %10558 = vmatpush.bf16.msra.mxu2 %v12596_v58  ;;  %v12748_v58 = vor.u32 %v14055_v57, %v12745_v3  ;;  %v12876_v2 = vor.u32 %v14087_v44, %v12873_v33  ;;  %v13033_v35 = vld [vmem:[%s15819_s27 + $0xff8] sm:$0xf0]  ;;  %v14159_v57 = vld [vmem:[%s15819_s27 + $0x10f4] sm:$0xf]  ;;  %v12913_v44 = vld [vmem:[%s15819_s27 + $0xf08] sm:$0xf0] }
 0x4e6   : > { %10571 = vmatpush.bf16.msra.mxu3 %v12660_v49  ;;  %10533 = vmatmul.bf16.vlgmr.msra.gmra.mxu0 %v16325_v26  ;;  %v14107_v26 = vld [vmem:[%s15819_s27 + $0xf54] sm:$0xf]  ;;  %v10340_v41 = vadd.f32 %v10339_v52, %v10327_v54  ;;  %v12737_v49 = vld [vmem:[%s15819_s27 + $0xda8] sm:$0xf0] }
 0x4e7   : > { %10577 = vmatpush.bf16.msrb.mxu0 %v12780_v63  ;;  %10546 = vmatmul.bf16.vlgmr.msra.gmra.mxu1 %v16395_v13  ;;  %v14089_v13 = vld [vmem:[%s15819_s27 + $0xec4] sm:$0xf]  ;;  %v12937_v63 = vld [vmem:[%s15819_s27 + $0xf38] sm:$0xf0]  ;;  %v14127_v52 = vld [vmem:[%s15819_s27 + $0xff4] sm:$0xf] }
 0x4e8   : > { %10590 = vmatpush.bf16.msrb.mxu1 %v12844_v61  ;;  %10559 = vmatmul.bf16.vlgmr.msra.gmra.mxu2 %v16402_v25  ;;  %v12828_v25 = vor.u32 %v14075_v59, %v12825_v23  ;;  %v12884_v24 = vor.u32 %v14089_v13, %v12881_v19  ;;  %v12812_v61 = vor.u32 %v14071_v50, %v12809_v4  ;;  %v14051_v23 = vld [vmem:[%s15819_s27 + $0xd94] sm:$0xf]  ;;  %v14065_v19 = vld [vmem:[%s15819_s27 + $0xe04] sm:$0xf] }
 0x4e9   : > { %10603 = vmatpush.bf16.msrb.mxu2 %v12908_v48  ;;  %10572 = vmatmul.bf16.vlgmr.msra.gmra.mxu3 %v16397_v14  ;;  %v12956_v14 = vor.u32 %v14107_v26, %v12953_v28  ;;  %v14053_v48 = vld [vmem:[%s15819_s27 + $0xda4] sm:$0xf]  ;;  %v12940_v37 = vor.u32 %v14103_v1, %v12937_v63  ;;  %v12868_v59 = vor.u32 %v14085_v32, %v12865_v46  ;;  %v12857_v26 = vld [vmem:[%s15819_s27 + $0xe98] sm:$0xf0]  ;;  %v14175_v63 = vld [vmem:[%s15819_s27 + $0x1174] sm:$0xf] }
 0x4ea   : > { %10616 = vmatpush.bf16.msrb.mxu3 %v12972_v60  ;;  %v12740_v12 = vor.u32 %v14053_v48, %v12737_v49  ;;  %v12724_v50 = vor.u32 %v14049_v18, %v12721_v20  ;;  %v14097_v4 = vld [vmem:[%s15819_s27 + $0xf04] sm:$0xf]  ;;  %v13025_v49 = vld [vmem:[%s15819_s27 + $0xfe8] sm:$0xf0] }
 0x4eb   : > { %10578 = vmatpush.bf16.msrb.mxu0 %v12772_v38  ;;  %v10352_v15 = vpop.f32.mrf.mxu2  ;;  %v10328_v38 = vpop.f32.mrf.mxu0  ;;  %v14125_v48 = vld [vmem:[%s15819_s27 + $0xfe4] sm:$0xf]  ;;  %v13153_v32 = vld [vmem:[%s15819_s27 + $0x10e8] sm:$0xf0] }
 0x4ec   : > { %10591 = vmatpush.bf16.msrb.mxu1 %v12836_v22  ;;  %v10353_v31 = vadd.f32 %v10352_v15, %v10340_v41  ;;  %v10365_v60 = vpop.f32.mrf.mxu3  ;;  %v14101_v22 = vld [vmem:[%s15819_s27 + $0xf24] sm:$0xf]  ;;  %v10341_v21 = vpop.f32.mrf.mxu1  ;;  %v13161_v41 = vld [vmem:[%s15819_s27 + $0x10f8] sm:$0xf0]  ;;  %v12916_v15 = vor.u32 %v14097_v4, %v12913_v44  ;;  %v13217_v38 = vld [vmem:[%s15819_s27 + $0x1168] sm:$0xf0] }
 0x4ed   : > { %10604 = vmatpush.bf16.msrb.mxu2 %v12900_v45  ;;  %v12929_v45 = vld [vmem:[%s15819_s27 + $0xf28] sm:$0xf0]  ;;  %v13017_v21 = vld [vmem:[%s15819_s27 + $0xfd8] sm:$0xf0] }
 0x4ee   : > { %10617 = vmatpush.bf16.msrb.mxu3 %v12964_v11  ;;  %v17184_v6 = vadd.f32 %v10365_v60, %v10353_v31  ;;  %v12793_v11 = vld [vmem:[%s15819_s27 + $0xe18] sm:$0xf0]  ;;  %v12932_v28 = vor.u32 %v14101_v22, %v12929_v45  ;;  %v13089_v31 = vld [vmem:[%s15819_s27 + $0x1068] sm:$0xf0]  ;;  %v14173_v60 = vld [vmem:[%s15819_s27 + $0x1164] sm:$0xf]  ;;  %v13156_v22 = vor.u32 %v14157_v10, %v13153_v32 }
 0x4ef   : > { %10579 = vmatpush.bf16.msrb.mxu0 %v12764_v51  ;;  %v14083_v51 = vld [vmem:[%s15819_s27 + $0xe94] sm:$0xf]  ;;  %v12796_v8 = vor.u32 %v14067_v34, %v12793_v11  ;;  %v13220_v34 = vor.u32 %v14173_v60, %v13217_v38  ;;  %v13137_v18 = vld [vmem:[%s15819_s27 + $0x10c8] sm:$0xf0]  ;;  %v13193_v4 = vld [vmem:[%s15819_s27 + $0x1138] sm:$0xf0] }
 0x4f0   : > { %10592 = vmatpush.bf16.msrb.mxu1 %v12828_v25  ;;  %v14099_v25 = vld [vmem:[%s15819_s27 + $0xf14] sm:$0xf]  ;;  %v12860_v13 = vor.u32 %v14083_v51, %v12857_v26  ;;  %v13209_v51 = vld [vmem:[%s15819_s27 + $0x1158] sm:$0xf0] }
 0x4f1   : > { %10605 = vmatpush.bf16.msrb.mxu2 %v12892_v17  ;;  %v12732_v17 = vor.u32 %v14051_v23, %v12729_v39  ;;  %v12924_v55 = vor.u32 %v14099_v25, %v12921_v0  ;;  %v14123_v45 = vld [vmem:[%s15819_s27 + $0xfd4] sm:$0xf]  ;;  %v13145_v39 = vld [vmem:[%s15819_s27 + $0x10d8] sm:$0xf0]  ;;  %v13009_v25 = vld [vmem:[%s15819_s27 + $0xfc8] sm:$0xf0] }
 0x4f2   : > { %10618 = vmatpush.bf16.msrb.mxu3 %v12956_v14  ;;  %v12785_v14 = vld [vmem:[%s15819_s27 + $0xe08] sm:$0xf0]  ;;  %v14155_v23 = vld [vmem:[%s15819_s27 + $0x10d4] sm:$0xf]  ;;  %v13020_v11 = vor.u32 %v14123_v45, %v13017_v21  ;;  %v12985_v45 = vld [vmem:[%s15819_s27 + $0xf98] sm:$0xf0] }
 0x4f3   : > { %10580 = vmatpush.bf16.msrb.mxu0 %v12756_v53  ;;  %v10354_v54 = vpop.f32.mrf.mxu2  ;;  %v12849_v53 = vld [vmem:[%s15819_s27 + $0xe88] sm:$0xf0]  ;;  %v12788_v33 = vor.u32 %v14065_v19, %v12785_v14  ;;  %v13148_v26 = vor.u32 %v14155_v23, %v13145_v39  ;;  %v14169_v14 = vld [vmem:[%s15819_s27 + $0x1144] sm:$0xf]  ;;  %v14131_v21 = vld [vmem:[%s15819_s27 + $0x1014] sm:$0xf] }
 0x4f4   : > { %10593 = vmatpush.bf16.msrb.mxu1 %v12820_v47  ;;  %v14143_v47 = vld [vmem:[%s15819_s27 + $0x1074] sm:$0xf]  ;;  %v10367_v3 = vpop.f32.mrf.mxu3  ;;  %v13073_v0 = vld [vmem:[%s15819_s27 + $0x1048] sm:$0xf0]  ;;  %v13113_v23 = vld [vmem:[%s15819_s27 + $0x1098] sm:$0xf0] }
 0x4f5   : > { %10606 = vmatpush.bf16.msrb.mxu2 %v12884_v24  ;;  %v13097_v24 = vld [vmem:[%s15819_s27 + $0x1078] sm:$0xf0] }
 0x4f6   : > { %10619 = vmatpush.bf16.msrb.mxu3 %v12948_v42  ;;  %v12852_v42 = vor.u32 %v14081_v5, %v12849_v53  ;;  %v13100_v1 = vor.u32 %v14143_v47, %v13097_v24  ;;  %v13201_v5 = vld [vmem:[%s15819_s27 + $0x1148] sm:$0xf0]  ;;  %v13065_v24 = vld [vmem:[%s15819_s27 + $0x1038] sm:$0xf0] }
 0x4f7   : > { %10581 = vmatpush.bf16.msrb.mxu0 %v12748_v58  ;;  %v13036_v58 = vor.u32 %v14127_v52, %v13033_v35  ;;  %v14119_v52 = vld [vmem:[%s15819_s27 + $0xfb4] sm:$0xf]  ;;  %v13001_v35 = vld [vmem:[%s15819_s27 + $0xfb8] sm:$0xf0]  ;;  %v13204_v3 = vor.u32 %v14169_v14, %v13201_v5 }
 0x4f8   : > { %10594 = vmatpush.bf16.msrb.mxu1 %v12812_v61  ;;  %v13225_v61 = vld [vmem:[%s15819_s27 + $0x1178] sm:$0xf0]  ;;  %v14223_v14 = vld [vmem:[%s15819_s27 + $0x12f4] sm:$0xf] }
 0x4f9   : > { %10607 = vmatpush.bf16.msrb.mxu2 %v12876_v2  ;;  %v13164_v2 = vor.u32 %v14159_v57, %v13161_v41  ;;  %v13228_v46 = vor.u32 %v14175_v63, %v13225_v61  ;;  %v14151_v57 = vld [vmem:[%s15819_s27 + $0x10b4] sm:$0xf]  ;;  %v14133_v63 = vld [vmem:[%s15819_s27 + $0x1024] sm:$0xf] }
 0x4fa   : > { %10620 = vmatpush.bf16.msrb.mxu3 %v12940_v37  ;;  %v13028_v37 = vor.u32 %v14125_v48, %v13025_v49  ;;  %v14167_v41 = vld [vmem:[%s15819_s27 + $0x1134] sm:$0xf]  ;;  %v13121_v48 = vld [vmem:[%s15819_s27 + $0x10a8] sm:$0xf0] }
 0x4fb   : > { %10582 = vmatpush.bf16.msrb.mxu0 %v12740_v12  ;;  %v13092_v12 = vor.u32 %v14141_v43, %v13089_v31  ;;  %v13196_v49 = vor.u32 %v14167_v41, %v13193_v4  ;;  %v14189_v4 = vld [vmem:[%s15819_s27 + $0x11e4] sm:$0xf] }
 0x4fc   : > { %10595 = vmatpush.bf16.msrb.mxu1 %v12804_v29  ;;  %v14139_v29 = vld [vmem:[%s15819_s27 + $0x1054] sm:$0xf] }
 0x4fd   : > { %10608 = vmatpush.bf16.msrb.mxu2 %v12868_v59  ;;  %v13081_v59 = vld [vmem:[%s15819_s27 + $0x1058] sm:$0xf0] }
 0x4fe   : > { %10621 = vmatpush.bf16.msrb.mxu3 %v12932_v28  ;;  %v14121_v28 = vld [vmem:[%s15819_s27 + $0xfc4] sm:$0xf] }
 0x4ff   : > { %10583 = vmatpush.bf16.msrb.mxu0 %v12732_v17  ;;  %v14137_v17 = vld [vmem:[%s15819_s27 + $0x1044] sm:$0xf] }
 0x500   : > { %10596 = vmatpush.bf16.msrb.mxu1 %v12796_v8  ;;  %v13076_v54 = vor.u32 %v14137_v17, %v13073_v0  ;;  %v13041_v17 = vld [vmem:[%s15819_s27 + $0x1008] sm:$0xf0]  ;;  %v14145_v0 = vld [vmem:[%s15819_s27 + $0x1084] sm:$0xf] }
 0x501   : > { %10609 = vmatpush.bf16.msrb.mxu2 %v12860_v13  ;;  %v13012_v13 = vor.u32 %v14121_v28, %v13009_v25  ;;  %v14129_v25 = vld [vmem:[%s15819_s27 + $0x1004] sm:$0xf] }
 0x502   : > { %10622 = vmatpush.bf16.msrb.mxu3 %v12924_v55  ;;  %v14135_v55 = vld [vmem:[%s15819_s27 + $0x1034] sm:$0xf] }
 0x503   : > { %10584 = vmatpush.bf16.msrb.mxu0 %v12724_v50  ;;  %v10378_v20 = vpop.f32.mrf.mxu0  ;;  %v13004_v50 = vor.u32 %v14119_v52, %v13001_v35  ;;  %v13068_v44 = vor.u32 %v14135_v55, %v13065_v24  ;;  %v14161_v52 = vld [vmem:[%s15819_s27 + $0x1104] sm:$0xf]  ;;  %v13169_v35 = vld [vmem:[%s15819_s27 + $0x1108] sm:$0xf0]  ;;  %v13044_v55 = vor.u32 %v14129_v25, %v13041_v17 }
 0x504   : > { %10597 = vmatpush.bf16.msrb.mxu1 %v12788_v33  ;;  %v10379_v8 = vadd.f32 %v10378_v20, %v17184_v6  ;;  %v10391_v19 = vpop.f32.mrf.mxu1  ;;  %v13129_v6 = vld [vmem:[%s15819_s27 + $0x10b8] sm:$0xf0]  ;;  %v13172_v41 = vor.u32 %v14161_v52, %v13169_v35  ;;  %v14231_v35 = vld [vmem:[%s15819_s27 + $0x1334] sm:$0xf] }
 0x505   : > { %10610 = vmatpush.bf16.msrb.mxu2 %v12852_v42  ;;  %v13132_v33 = vor.u32 %v14151_v57, %v13129_v6  ;;  %v13289_v20 = vld [vmem:[%s15819_s27 + $0x11f8] sm:$0xf0]  ;;  %v14239_v6 = vld [vmem:[%s15819_s27 + $0x1374] sm:$0xf] }
 0x506   : > { %10623 = vmatpush.bf16.msrb.mxu3 %v12916_v15  ;;  %10585 = vmatmul.bf16.vlgmr.msrb.gmra.mxu0 %v16404_v27  ;;  %v14171_v27 = vld [vmem:[%s15819_s27 + $0x1154] sm:$0xf]  ;;  %v10392_v47 = vadd.f32 %v10391_v19, %v10379_v8  ;;  %v14149_v15 = vld [vmem:[%s15819_s27 + $0x10a4] sm:$0xf]  ;;  %v13353_v19 = vld [vmem:[%s15819_s27 + $0x1278] sm:$0xf0] }
 0x507   : > { %10629 = vmatpush.bf16.msra.mxu0 %v13036_v58  ;;  %10598 = vmatmul.bf16.vlgmr.msrb.gmra.mxu1 %v16475_v7  ;;  %v14153_v7 = vld [vmem:[%s15819_s27 + $0x10c4] sm:$0xf] }
 0x508   : > { %10642 = vmatpush.bf16.msra.mxu1 %v13100_v1  ;;  %10611 = vmatmul.bf16.vlgmr.msrb.gmra.mxu2 %v16482_v36  ;;  %v13084_v36 = vor.u32 %v14139_v29, %v13081_v59  ;;  %v13140_v53 = vor.u32 %v14153_v7, %v13137_v18  ;;  %v14117_v58 = vld [vmem:[%s15819_s27 + $0xfa4] sm:$0xf]  ;;  %v12993_v1 = vld [vmem:[%s15819_s27 + $0xfa8] sm:$0xf0]  ;;  %v13049_v29 = vld [vmem:[%s15819_s27 + $0x1018] sm:$0xf0] }
 0x509   : > { %10655 = vmatpush.bf16.msra.mxu2 %v13164_v2  ;;  %10624 = vmatmul.bf16.vlgmr.msrb.gmra.mxu3 %v16477_v30  ;;  %v13212_v30 = vor.u32 %v14171_v27, %v13209_v51  ;;  %v13057_v2 = vld [vmem:[%s15819_s27 + $0x1028] sm:$0xf0]  ;;  %v12996_v32 = vor.u32 %v14117_v58, %v12993_v1  ;;  %v14147_v59 = vld [vmem:[%s15819_s27 + $0x1094] sm:$0xf]  ;;  %v13177_v27 = vld [vmem:[%s15819_s27 + $0x1118] sm:$0xf0] }
 0x50a   : > { %10668 = vmatpush.bf16.msra.mxu3 %v13228_v46  ;;  %v14165_v46 = vld [vmem:[%s15819_s27 + $0x1124] sm:$0xf]  ;;  %v13060_v38 = vor.u32 %v14133_v63, %v13057_v2  ;;  %v13116_v28 = vor.u32 %v14147_v59, %v13113_v23  ;;  %v13105_v18 = vld [vmem:[%s15819_s27 + $0x1088] sm:$0xf0] }
 0x50b   : > { %10630 = vmatpush.bf16.msra.mxu0 %v13028_v37  ;;  %v10404_v42 = vpop.f32.mrf.mxu2  ;;  %v10380_v31 = vpop.f32.mrf.mxu0  ;;  %v13185_v37 = vld [vmem:[%s15819_s27 + $0x1128] sm:$0xf0]  ;;  %v14113_v51 = vld [vmem:[%s15819_s27 + $0xf84] sm:$0xf] }
 0x50c   : > { %10643 = vmatpush.bf16.msra.mxu1 %v13092_v12  ;;  %v10405_v61 = vadd.f32 %v10404_v42, %v10392_v47  ;;  %v10417_v43 = vpop.f32.mrf.mxu3  ;;  %v10393_v60 = vpop.f32.mrf.mxu1  ;;  %v13124_v12 = vor.u32 %v14149_v15, %v13121_v48  ;;  %v13188_v39 = vor.u32 %v14165_v46, %v13185_v37  ;;  %v13108_v47 = vor.u32 %v14145_v0, %v13105_v18  ;;  %v13345_v42 = vld [vmem:[%s15819_s27 + $0x1268] sm:$0xf0]  ;;  %v14221_v58 = vld [vmem:[%s15819_s27 + $0x12e4] sm:$0xf]  ;;  %v13273_v31 = vld [vmem:[%s15819_s27 + $0x11d8] sm:$0xf0] }
 0x50d   : > { %10656 = vmatpush.bf16.msra.mxu2 %v13156_v22  ;;  %v14115_v22 = vld [vmem:[%s15819_s27 + $0xf94] sm:$0xf]  ;;  %v13409_v1 = vld [vmem:[%s15819_s27 + $0x12e8] sm:$0xf0]  ;;  %v14237_v2 = vld [vmem:[%s15819_s27 + $0x1364] sm:$0xf] }
 0x50e   : > { %10669 = vmatpush.bf16.msra.mxu3 %v13220_v34  ;;  %v17255_v10 = vadd.f32 %v10417_v43, %v10405_v61  ;;  %v14163_v34 = vld [vmem:[%s15819_s27 + $0x1114] sm:$0xf]  ;;  %v13473_v15 = vld [vmem:[%s15819_s27 + $0x1368] sm:$0xf0]  ;;  %v13337_v37 = vld [vmem:[%s15819_s27 + $0x1258] sm:$0xf0] }
 0x50f   : > { %10631 = vmatpush.bf16.msra.mxu0 %v13020_v11  ;;  %v12988_v11 = vor.u32 %v14115_v22, %v12985_v45  ;;  %v13180_v8 = vor.u32 %v14163_v34, %v13177_v27  ;;  %v14187_v43 = vld [vmem:[%s15819_s27 + $0x11d4] sm:$0xf]  ;;  %v13476_v22 = vor.u32 %v14237_v2, %v13473_v15  ;;  %v17467_v45 = vld [vmem:[#allocation5_spill] sm:$0xff]  ;;  %v14229_v2 = vld [vmem:[%s15819_s27 + $0x1324] sm:$0xf] }
 0x510   : > { %10644 = vmatpush.bf16.msra.mxu1 %v13084_v36  ;;  %v12977_v36 = vld [vmem:[%s15819_s27 + $0xf88] sm:$0xf0]  ;;  %v17465_v46 = vld [vmem:[#allocation6_spill] sm:$0xff] }
 0x511   : > { %10657 = vmatpush.bf16.msra.mxu2 %v13148_v26  ;;  %v13052_v26 = vor.u32 %v14131_v21, %v13049_v29  ;;  %v14219_v60 = vld [vmem:[%s15819_s27 + $0x12d4] sm:$0xf]  ;;  %v13276_v21 = vor.u32 %v14187_v43, %v13273_v31  ;;  %v13465_v29 = vld [vmem:[%s15819_s27 + $0x1358] sm:$0xf0]  ;;  %v13265_v34 = vld [vmem:[%s15819_s27 + $0x11c8] sm:$0xf0] }
 0x512   : > { %10670 = vmatpush.bf16.msra.mxu3 %v13212_v30  ;;  %v14191_v30 = vld [vmem:[%s15819_s27 + $0x11f4] sm:$0xf]  ;;  %v13329_v27 = vld [vmem:[%s15819_s27 + $0x1248] sm:$0xf0] }
 0x513   : > { %10632 = vmatpush.bf16.msra.mxu0 %v13012_v13  ;;  %v10406_v7 = vpop.f32.mrf.mxu2  ;;  %v14207_v13 = vld [vmem:[%s15819_s27 + $0x1274] sm:$0xf]  ;;  %v13292_v24 = vor.u32 %v14191_v30, %v13289_v20  ;;  %v13457_v18 = vld [vmem:[%s15819_s27 + $0x1348] sm:$0xf0] }
 0x514   : > { %10645 = vmatpush.bf16.msra.mxu1 %v13076_v54  ;;  %v10419_v5 = vpop.f32.mrf.mxu3  ;;  %v12980_v54 = vor.u32 %v14113_v51, %v12977_v36  ;;  %v13356_v57 = vor.u32 %v14207_v13, %v13353_v19  ;;  %v14217_v51 = vld [vmem:[%s15819_s27 + $0x12c4] sm:$0xf]  ;;  %v13393_v36 = vld [vmem:[%s15819_s27 + $0x12c8] sm:$0xf0]  ;;  %v13257_v13 = vld [vmem:[%s15819_s27 + $0x11b8] sm:$0xf0] }
 0x515   : > { %10658 = vmatpush.bf16.msra.mxu2 %v13140_v53  ;;  %v13417_v53 = vld [vmem:[%s15819_s27 + $0x12f8] sm:$0xf0]  ;;  %v14233_v7 = vld [vmem:[%s15819_s27 + $0x1344] sm:$0xf]  ;;  %v13396_v20 = vor.u32 %v14217_v51, %v13393_v36  ;;  %v14199_v19 = vld [vmem:[%s15819_s27 + $0x1234] sm:$0xf] }
 0x516   : > { %10671 = vmatpush.bf16.msra.mxu3 %v13204_v3  ;;  %v13481_v3 = vld [vmem:[%s15819_s27 + $0x1378] sm:$0xf0]  ;;  %v13441_v15 = vld [vmem:[%s15819_s27 + $0x1328] sm:$0xf0]  ;;  %v14179_v31 = vld [vmem:[%s15819_s27 + $0x1194] sm:$0xf] }
 0x517   : > { %10633 = vmatpush.bf16.msra.mxu0 %v13004_v50  ;;  %v13420_v50 = vor.u32 %v14223_v14, %v13417_v53  ;;  %v13484_v63 = vor.u32 %v14239_v6, %v13481_v3  ;;  %v13321_v5 = vld [vmem:[%s15819_s27 + $0x1238] sm:$0xf0]  ;;  %v13460_v53 = vor.u32 %v14233_v7, %v13457_v18  ;;  %v14181_v6 = vld [vmem:[%s15819_s27 + $0x11a4] sm:$0xf]  ;;  %v13249_v3 = vld [vmem:[%s15819_s27 + $0x11a8] sm:$0xf0] }
 0x518   : > { %10646 = vmatpush.bf16.msra.mxu1 %v13068_v44  ;;  %v13281_v44 = vld [vmem:[%s15819_s27 + $0x11e8] sm:$0xf0]  ;;  %v14255_v36 = vld [vmem:[%s15819_s27 + $0x13f4] sm:$0xf]  ;;  %v14225_v18 = vld [vmem:[%s15819_s27 + $0x1304] sm:$0xf] }
 0x519   : > { %10659 = vmatpush.bf16.msra.mxu2 %v13132_v33  ;;  %v14205_v33 = vld [vmem:[%s15819_s27 + $0x1264] sm:$0xf]  ;;  %v13284_v61 = vor.u32 %v14189_v4, %v13281_v44  ;;  %v13313_v4 = vld [vmem:[%s15819_s27 + $0x1228] sm:$0xf0] }
 0x51a   : > { %10672 = vmatpush.bf16.msra.mxu3 %v13196_v49  ;;  %v13348_v48 = vor.u32 %v14205_v33, %v13345_v42  ;;  %v13412_v49 = vor.u32 %v14221_v58, %v13409_v1  ;;  %v14213_v44 = vld [vmem:[%s15819_s27 + $0x12a4] sm:$0xf]  ;;  %v13377_v33 = vld [vmem:[%s15819_s27 + $0x12a8] sm:$0xf0] }
 0x51b   : > { %10634 = vmatpush.bf16.msra.mxu0 %v12996_v32  ;;  %v14203_v32 = vld [vmem:[%s15819_s27 + $0x1254] sm:$0xf]  ;;  %v13380_v43 = vor.u32 %v14213_v44, %v13377_v33  ;;  %v13361_v51 = vld [vmem:[%s15819_s27 + $0x1288] sm:$0xf0]  ;;  %v14265_v33 = vld [vmem:[%s15819_s27 + $0x1444] sm:$0xf] }
 0x51c   : > { %10647 = vmatpush.bf16.msra.mxu1 %v13060_v38  ;;  %v13401_v38 = vld [vmem:[%s15819_s27 + $0x12d8] sm:$0xf0]  ;;  %v13340_v59 = vor.u32 %v14203_v32, %v13337_v37  ;;  %v13521_v44 = vld [vmem:[%s15819_s27 + $0x13c8] sm:$0xf0] }
 0x51d   : > { %10660 = vmatpush.bf16.msra.mxu2 %v13124_v12  ;;  %v17466_v12 = vld [vmem:[#allocation4_spill] sm:$0xff]  ;;  %v13404_v23 = vor.u32 %v14219_v60, %v13401_v38  ;;  %v13241_v32 = vld [vmem:[%s15819_s27 + $0x1198] sm:$0xf0]  ;;  %v14211_v60 = vld [vmem:[%s15819_s27 + $0x1294] sm:$0xf] }
 0x51e   : > { %10673 = vmatpush.bf16.msra.mxu3 %v13188_v39  ;;  %v14185_v39 = vld [vmem:[%s15819_s27 + $0x11c4] sm:$0xf]  ;;  %v13305_v37 = vld [vmem:[%s15819_s27 + $0x1218] sm:$0xf0] }
 0x51f   : > { %10635 = vmatpush.bf16.msra.mxu0 %v12988_v11  ;;  %v14201_v11 = vld [vmem:[%s15819_s27 + $0x1244] sm:$0xf]  ;;  %v13268_v17 = vor.u32 %v14185_v39, %v13265_v34  ;;  %v13369_v38 = vld [vmem:[%s15819_s27 + $0x1298] sm:$0xf0]  ;;  %v13297_v34 = vld [vmem:[%s15819_s27 + $0x1208] sm:$0xf0] }
 0x520   : > { %10648 = vmatpush.bf16.msra.mxu1 %v13052_v26  ;;  %v13332_v30 = vor.u32 %v14201_v11, %v13329_v27  ;;  %v14193_v39 = vld [vmem:[%s15819_s27 + $0x1204] sm:$0xf] }
 0x521   : > { %10661 = vmatpush.bf16.msra.mxu2 %v13116_v28  ;;  %v14209_v27 = vld [vmem:[%s15819_s27 + $0x1284] sm:$0xf] }
 0x522   : > { %10674 = vmatpush.bf16.msra.mxu3 %v13180_v8  ;;  %v14183_v8 = vld [vmem:[%s15819_s27 + $0x11b4] sm:$0xf] }
 0x523   : > { %10636 = vmatpush.bf16.msra.mxu0 %v12980_v54  ;;  %v10430_v28 = vpop.f32.mrf.mxu0  ;;  %v14215_v54 = vld [vmem:[%s15819_s27 + $0x12b4] sm:$0xf]  ;;  %v13260_v52 = vor.u32 %v14183_v8, %v13257_v13  ;;  %v13364_v8 = vor.u32 %v14209_v27, %v13361_v51 }
 0x524   : > { %10649 = vmatpush.bf16.msra.mxu1 %v13044_v55  ;;  %v10431_v25 = vadd.f32 %v10430_v28, %v17255_v10  ;;  %v10443_v0 = vpop.f32.mrf.mxu1  ;;  %v13385_v10 = vld [vmem:[%s15819_s27 + $0x12b8] sm:$0xf0] }
 0x525   : > { %10662 = vmatpush.bf16.msra.mxu2 %v13108_v47  ;;  %v13449_v55 = vld [vmem:[%s15819_s27 + $0x1338] sm:$0xf0]  ;;  %v13324_v47 = vor.u32 %v14199_v19, %v13321_v5  ;;  %v14253_v5 = vld [vmem:[%s15819_s27 + $0x13e4] sm:$0xf] }
 0x526   : > { %10675 = vmatpush.bf16.msra.mxu3 %v13172_v41  ;;  %10637 = vmatmul.bf16.vlgmr.msra.gmra.mxu0 %v16484_v40  ;;  %v14235_v40 = vld [vmem:[%s15819_s27 + $0x1354] sm:$0xf]  ;;  %v10444_v14 = vadd.f32 %v10443_v0, %v10431_v25  ;;  %v13452_v42 = vor.u32 %v14231_v35, %v13449_v55  ;;  %v13545_v28 = vld [vmem:[%s15819_s27 + $0x13f8] sm:$0xf0] }
 0x527   : > { %10681 = vmatpush.bf16.msrb.mxu0 %v13292_v24  ;;  %10650 = vmatmul.bf16.vlgmr.msra.gmra.mxu1 %v17466_v12  ;;  %v13468_v26 = vor.u32 %v14235_v40, %v13465_v29  ;;  %v13388_v24 = vor.u32 %v14215_v54, %v13385_v10  ;;  %v13444_v12 = vor.u32 %v14229_v2, %v13441_v15  ;;  %v14177_v40 = vld [vmem:[%s15819_s27 + $0x1184] sm:$0xf]  ;;  %v14271_v25 = vld [vmem:[%s15819_s27 + $0x1474] sm:$0xf]  ;;  %v13537_v54 = vld [vmem:[%s15819_s27 + $0x13e8] sm:$0xf0] }
 0x528   : > { %10694 = vmatpush.bf16.msrb.mxu1 %v13356_v57  ;;  %10663 = vmatmul.bf16.vlgmr.msra.gmra.mxu2 %v17465_v46  ;;  %v14195_v46 = vld [vmem:[%s15819_s27 + $0x1214] sm:$0xf]  ;;  %v13548_v13 = vor.u32 %v14255_v36, %v13545_v28  ;;  %v14269_v10 = vld [vmem:[%s15819_s27 + $0x1464] sm:$0xf]  ;;  %v17468_v35 = vld [vmem:[#allocation7_spill] sm:$0xff] }
 0x529   : > { %10707 = vmatpush.bf16.msrb.mxu2 %v13420_v50  ;;  %10676 = vmatmul.bf16.vlgmr.msra.gmra.mxu3 %v17467_v45  ;;  %v14197_v50 = vld [vmem:[%s15819_s27 + $0x1224] sm:$0xf]  ;;  %v14227_v45 = vld [vmem:[%s15819_s27 + $0x1314] sm:$0xf]  ;;  %v13308_v29 = vor.u32 %v14195_v46, %v13305_v37  ;;  %v13513_v15 = vld [vmem:[%s15819_s27 + $0x13b8] sm:$0xf0] }
 0x52a   : > { %10720 = vmatpush.bf16.msrb.mxu3 %v13484_v63  ;;  %v14247_v2 = vld [vmem:[%s15819_s27 + $0x13b4] sm:$0xf]  ;;  %v13505_v37 = vld [vmem:[%s15819_s27 + $0x13a8] sm:$0xf0]  ;;  %v14241_v36 = vld [vmem:[%s15819_s27 + $0x1384] sm:$0xf] }
 0x52b   : > { %10682 = vmatpush.bf16.msrb.mxu0 %v13284_v61  ;;  %v10456_v57 = vpop.f32.mrf.mxu2  ;;  %v10432_v1 = vpop.f32.mrf.mxu0  ;;  %v13252_v61 = vor.u32 %v14181_v6, %v13249_v3  ;;  %v13593_v6 = vld [vmem:[%s15819_s27 + $0x1458] sm:$0xf0]  ;;  %v17469_v3 = vld [vmem:[#allocation8_spill] sm:$0xff] }
 0x52c   : > { %10695 = vmatpush.bf16.msrb.mxu1 %v13348_v48  ;;  %v10457_v41 = vadd.f32 %v10456_v57, %v10444_v14  ;;  %v10469_v58 = vpop.f32.mrf.mxu3  ;;  %v10445_v48 = vpop.f32.mrf.mxu1  ;;  %v14267_v57 = vld [vmem:[%s15819_s27 + $0x1454] sm:$0xf] }
 0x52d   : > { %10708 = vmatpush.bf16.msrb.mxu2 %v13412_v49  ;;  %v13316_v49 = vor.u32 %v14197_v50, %v13313_v4  ;;  %v14249_v4 = vld [vmem:[%s15819_s27 + $0x13c4] sm:$0xf] }
 0x52e   : > { %10721 = vmatpush.bf16.msrb.mxu3 %v13476_v22  ;;  %v17326_v63 = vadd.f32 %v10469_v58, %v10457_v41  ;;  %v13244_v22 = vor.u32 %v14179_v31, %v13241_v32  ;;  %v13596_v41 = vor.u32 %v14267_v57, %v13593_v6  ;;  %v13516_v31 = vor.u32 %v14247_v2, %v13513_v15 }
 0x52f   : > { %10683 = vmatpush.bf16.msrb.mxu0 %v13276_v21  ;;  %v13433_v21 = vld [vmem:[%s15819_s27 + $0x1318] sm:$0xf0] }
 0x530   : > { %10696 = vmatpush.bf16.msrb.mxu1 %v13340_v59  ;;  %v13372_v59 = vor.u32 %v14211_v60, %v13369_v38  ;;  %v14261_v38 = vld [vmem:[%s15819_s27 + $0x1424] sm:$0xf] }
 0x531   : > { %10709 = vmatpush.bf16.msrb.mxu2 %v13404_v23  ;;  %v13233_v23 = vld [vmem:[%s15819_s27 + $0x1188] sm:$0xf0] }
 0x532   : > { %10722 = vmatpush.bf16.msrb.mxu3 %v13468_v26  ;;  %v13436_v26 = vor.u32 %v14227_v45, %v13433_v21  ;;  %v13236_v7 = vor.u32 %v14177_v40, %v13233_v23  ;;  %v14243_v23 = vld [vmem:[%s15819_s27 + $0x1394] sm:$0xf] }
 0x533   : > { %10684 = vmatpush.bf16.msrb.mxu0 %v13268_v17  ;;  %v10458_v11 = vpop.f32.mrf.mxu2  ;;  %v13609_v17 = vld [vmem:[%s15819_s27 + $0x1478] sm:$0xf0] }
 0x534   : > { %10697 = vmatpush.bf16.msrb.mxu1 %v13332_v30  ;;  %v10471_v0 = vpop.f32.mrf.mxu3  ;;  %v13425_v30 = vld [vmem:[%s15819_s27 + $0x1308] sm:$0xf0]  ;;  %v13612_v19 = vor.u32 %v14271_v25, %v13609_v17  ;;  %v13561_v11 = vld [vmem:[%s15819_s27 + $0x1418] sm:$0xf0]  ;;  %v14257_v25 = vld [vmem:[%s15819_s27 + $0x1404] sm:$0xf] }
 0x535   : > { %10710 = vmatpush.bf16.msrb.mxu2 %v13396_v20  ;;  %v13300_v20 = vor.u32 %v14193_v39, %v13297_v34  ;;  %v13428_v14 = vor.u32 %v14225_v18, %v13425_v30  ;;  %v13497_v39 = vld [vmem:[%s15819_s27 + $0x1398] sm:$0xf0]  ;;  %v14259_v34 = vld [vmem:[%s15819_s27 + $0x1414] sm:$0xf]  ;;  %v13553_v17 = vld [vmem:[%s15819_s27 + $0x1408] sm:$0xf0] }
 0x536   : > { %10723 = vmatpush.bf16.msrb.mxu3 %v13460_v53  ;;  %v13601_v53 = vld [vmem:[%s15819_s27 + $0x1468] sm:$0xf0]  ;;  %v13500_v27 = vor.u32 %v14243_v23, %v13497_v39  ;;  %v13564_v51 = vor.u32 %v14259_v34, %v13561_v11  ;;  %v13556_v18 = vor.u32 %v14257_v25, %v13553_v17 }
 0x537   : > { %10685 = vmatpush.bf16.msrb.mxu0 %v13260_v52  ;;  %v13540_v52 = vor.u32 %v14253_v5, %v13537_v54  ;;  %v13604_v55 = vor.u32 %v14269_v10, %v13601_v53  ;;  %v17470_v30 = vld [vmem:[#allocation9_spill] sm:$0xff] }
 0x538   : > { %10698 = vmatpush.bf16.msrb.mxu1 %v13324_v47  ;;  %v14251_v47 = vld [vmem:[%s15819_s27 + $0x13d4] sm:$0xf] }
 0x539   : > { %10711 = vmatpush.bf16.msrb.mxu2 %v13388_v24  ;;  %v13529_v24 = vld [vmem:[%s15819_s27 + $0x13d8] sm:$0xf0] }
 0x53a   : > { %10724 = vmatpush.bf16.msrb.mxu3 %v13452_v42  ;;  %v13532_v50 = vor.u32 %v14251_v47, %v13529_v24  ;;  %v13585_v42 = vld [vmem:[%s15819_s27 + $0x1448] sm:$0xf0] }
 0x53b   : > { %10686 = vmatpush.bf16.msrb.mxu0 %v13252_v61  ;;  %v13588_v61 = vor.u32 %v14265_v33, %v13585_v42 }
 0x53c   : > { %10699 = vmatpush.bf16.msrb.mxu1 %v13316_v49  ;;  %v14263_v49 = vld [vmem:[%s15819_s27 + $0x1434] sm:$0xf] }
 0x53d   : > { %10712 = vmatpush.bf16.msrb.mxu2 %v13380_v43  ;;  %v13577_v43 = vld [vmem:[%s15819_s27 + $0x1438] sm:$0xf0] }
 0x53e   : > { %10725 = vmatpush.bf16.msrb.mxu3 %v13444_v12  ;;  %v13580_v32 = vor.u32 %v14263_v49, %v13577_v43  ;;  %v13569_v12 = vld [vmem:[%s15819_s27 + $0x1428] sm:$0xf0] }
 0x53f   : > { %10687 = vmatpush.bf16.msrb.mxu0 %v13244_v22 }
 0x540   : > { %10700 = vmatpush.bf16.msrb.mxu1 %v13308_v29 }
 0x541   : > { %10713 = vmatpush.bf16.msrb.mxu2 %v13372_v59  ;;  %v13572_v59 = vor.u32 %v14261_v38, %v13569_v12 }
 0x542   : > { %10726 = vmatpush.bf16.msrb.mxu3 %v13436_v26  ;;  %v13489_v26 = vld [vmem:[%s15819_s27 + $0x1388] sm:$0xf0] }
 0x543   : > { %10688 = vmatpush.bf16.msrb.mxu0 %v13236_v7  ;;  %v10482_v58 = vpop.f32.mrf.mxu0  ;;  %v13492_v7 = vor.u32 %v14241_v36, %v13489_v26 }
 0x544   : > { %10701 = vmatpush.bf16.msrb.mxu1 %v13300_v20  ;;  %v10495_v1 = vpop.f32.mrf.mxu1 }
 0x545   : > { %10714 = vmatpush.bf16.msrb.mxu2 %v13364_v8 }
 0x546   : > { %10727 = vmatpush.bf16.msrb.mxu3 %v13428_v14  ;;  %10689 = vmatmul.bf16.vlgmr.msrb.gmra.mxu0 %v17468_v35 }
 0x547   : > { %10733 = vmatpush.bf16.msra.mxu0 %v13548_v13  ;;  %10702 = vmatmul.bf16.vlgmr.msrb.gmra.mxu1 %v16635_v16  ;;  %v10483_v16 = vadd.f32 %v10482_v58, %v17326_v63  ;;  %v14245_v63 = vld [vmem:[%s15819_s27 + $0x13a4] sm:$0xf] }
 0x548   : > { %10746 = vmatpush.bf16.msra.mxu1 %v13612_v19  ;;  %10715 = vmatmul.bf16.vlgmr.msrb.gmra.mxu2 %v16642_v9  ;;  %v13524_v9 = vor.u32 %v14249_v4, %v13521_v44  ;;  %v13508_v40 = vor.u32 %v14245_v63, %v13505_v37 }
 0x549   : > { %10728 = vmatmul.bf16.vlgmr.msrb.gmra.mxu3 %v17469_v3  ;;  %v10496_v48 = vadd.f32 %v10495_v1, %v10483_v16 }
 0x54b   : > { %10734 = vmatpush.bf16.msra.mxu0 %v13540_v52  ;;  %v10508_v46 = vpop.f32.mrf.mxu2  ;;  %v10484_v45 = vpop.f32.mrf.mxu0 }
 0x54c   : > { %10747 = vmatpush.bf16.msra.mxu1 %v13604_v55  ;;  %v10509_v60 = vadd.f32 %v10508_v46, %v10496_v48  ;;  %v10521_v22 = vpop.f32.mrf.mxu3  ;;  %v10497_v29 = vpop.f32.mrf.mxu1 }
 0x54e   : > { %v10522_v21 = vadd.f32 %v10521_v22, %v10509_v60 }
 0x54f   : > { %10735 = vmatpush.bf16.msra.mxu0 %v13532_v50 }
 0x550   : > { %10748 = vmatpush.bf16.msra.mxu1 %v13596_v41 }
 0x553   : > { %10736 = vmatpush.bf16.msra.mxu0 %v13524_v9  ;;  %v10510_v28 = vpop.f32.mrf.mxu2 }
 0x554   : > { %10749 = vmatpush.bf16.msra.mxu1 %v13588_v61  ;;  %v10523_v0 = vpop.f32.mrf.mxu3 }
 0x557   : > { %10737 = vmatpush.bf16.msra.mxu0 %v13516_v31 }
 0x558   : > { %10750 = vmatpush.bf16.msra.mxu1 %v13580_v32 }
 0x55b   : > { %10738 = vmatpush.bf16.msra.mxu0 %v13508_v40 }
 0x55c   : > { %10751 = vmatpush.bf16.msra.mxu1 %v13572_v59 }
 0x55f   : > { %10739 = vmatpush.bf16.msra.mxu0 %v13500_v27  ;;  %v5599_v27 = vld [vmem:[#allocation2] sm:$0xf] }
 0x560   : > { %10752 = vmatpush.bf16.msra.mxu1 %v13564_v51 }
 0x563   : > { %10740 = vmatpush.bf16.msra.mxu0 %v13492_v7  ;;  %v10534_v20 = vpop.f32.mrf.mxu0 }
 0x564   : > { %10753 = vmatpush.bf16.msra.mxu1 %v13556_v18  ;;  %v10535_v8 = vadd.f32 %v10534_v20, %v10522_v21  ;;  %v10547_v13 = vpop.f32.mrf.mxu1 }
 0x566   : > { %10741 = vmatmul.bf16.vlgmr.msra.gmra.mxu0 %v17470_v30  ;;  %v10548_v19 = vadd.f32 %v10547_v13, %v10535_v8 }
 0x567   : > { %10754 = vmatmul.bf16.vlgmr.msra.gmra.mxu1 %v16715_v62 }
 0x56b   : > { %v10560_v14 = vpop.f32.mrf.mxu2  ;;  %v10536_v10 = vpop.f32.mrf.mxu0 }
 0x56c   : > { %v10561_v5 = vadd.f32 %v10560_v14, %v10548_v19  ;;  %v10573_v54 = vpop.f32.mrf.mxu3  ;;  %v10549_v52 = vpop.f32.mrf.mxu1 }
 0x56e   : > { %v10574_v53 = vadd.f32 %v10573_v54, %v10561_v5 }
 0x573   : > { %v10562_v35 = vpop.f32.mrf.mxu2 }
 0x574   : > { %v10575_v55 = vpop.f32.mrf.mxu3 }
 0x583   : > { %v10586_v47 = vpop.f32.mrf.mxu0 }
 0x584   : > { %v10587_v24 = vadd.f32 %v10586_v47, %v10574_v53  ;;  %v10599_v57 = vpop.f32.mrf.mxu1 }
 0x586   : > { %v10600_v6 = vadd.f32 %v10599_v57, %v10587_v24 }
 0x58b   : > { %v10612_v3 = vpop.f32.mrf.mxu2  ;;  %v10588_v41 = vpop.f32.mrf.mxu0 }
 0x58c   : > { %v10625_v50 = vpop.f32.mrf.mxu3  ;;  %v10601_v62 = vpop.f32.mrf.mxu1  ;;  %v10613_v48 = vadd.f32 %v10612_v3, %v10600_v6 }
 0x58e   : > { %v10626_v43 = vadd.f32 %v10625_v50, %v10613_v48 }
 0x593   : > { %v10614_v4 = vpop.f32.mrf.mxu2 }
 0x594   : > { %v10627_v44 = vpop.f32.mrf.mxu3 }
 0x5a3   : > { %v10638_v33 = vpop.f32.mrf.mxu0 }
 0x5a4   : > { %v10651_v42 = vpop.f32.mrf.mxu1  ;;  %v10639_v31 = vadd.f32 %v10638_v33, %v10626_v43 }
 0x5a6   : > { %v10652_v60 = vadd.f32 %v10651_v42, %v10639_v31 }
 0x5ab   : > { %v10664_v58 = vpop.f32.mrf.mxu2  ;;  %v10640_v9 = vpop.f32.mrf.mxu0 }
 0x5ac   : > { %v10677_v16 = vpop.f32.mrf.mxu3  ;;  %v10653_v1 = vpop.f32.mrf.mxu1  ;;  %v10665_v38 = vadd.f32 %v10664_v58, %v10652_v60 }
 0x5ae   : > { %v10678_v22 = vadd.f32 %v10677_v16, %v10665_v38 }
 0x5b3   : > { %v10666_v61 = vpop.f32.mrf.mxu2 }
 0x5b4   : > { %v10679_v2 = vpop.f32.mrf.mxu3 }
 0x5c3   : > { %v10690_v15 = vpop.f32.mrf.mxu0 }
 0x5c4   : > { %v10703_v49 = vpop.f32.mrf.mxu1  ;;  %v10691_v21 = vadd.f32 %v10690_v15, %v10678_v22 }
 0x5c6   : > { %v10704_v40 = vadd.f32 %v10703_v49, %v10691_v21 }
 0x5cb   : > { %v10716_v32 = vpop.f32.mrf.mxu2  ;;  %v10692_v46 = vpop.f32.mrf.mxu0 }
 0x5cc   : > { %v10729_v63 = vpop.f32.mrf.mxu3  ;;  %v10705_v37 = vpop.f32.mrf.mxu1  ;;  %v10717_v29 = vadd.f32 %v10716_v32, %v10704_v40 }
 0x5ce   : > { %v10730_v59 = vadd.f32 %v10729_v63, %v10717_v29 }
 0x5d3   : > { %v10718_v12 = vpop.f32.mrf.mxu2 }
 0x5d4   : > { %v10731_v45 = vpop.f32.mrf.mxu3 }
 0x5e3   : > { %v10742_v23 = vpop.f32.mrf.mxu0 }
 0x5e4   : > { %v10743_v39 = vadd.f32 %v10742_v23, %v10730_v59  ;;  %v10755_v34 = vpop.f32.mrf.mxu1 }
 0x5e6   : > { %v10756_v11 = vadd.f32 %v10755_v34, %v10743_v39 }
 0x5e8   : > { %v10761_v51 = vrot.slane %v10756_v11, 6 }
 0x5e9   : > { %10770 = sbr.rel (%p13613_p1) target bundleno = 1680 (0x690), region = 96 }
 0x5ea   : > { %v10763_v36 = vsel %vm10762_vm0, %v17026_v56, %v10761_v51 }
 0x5eb   : > { %v10765_v26 = vadd.f32 %v10763_v36, %v5599_v27  ;;  %v10744_v28 = vpop.f32.mrf.mxu0 }
 0x5ec   : > { %v10757_v25 = vpop.f32.mrf.mxu1 }
 0x5ed   : > { %10766 = vst [vmem:[#allocation2] sm:$0xf] %v10765_v26 }
 0x5ee   : > { %v10796_v17 = vld [vmem:[%s15811_s11 + $0x78] sm:$0xff]  ;;  %v10795_v56 = vld [vmem:[%s15811_s11 + $0x70] sm:$0xff]  ;;  %v10794_v18 = vld [vmem:[%s15811_s11 + $0x68] sm:$0xff] }
 0x5ef   : > { %v10812_v0 = vld [vmem:[%s15811_s11 + $0xf8] sm:$0xff]  ;;  %10819 = vmatpush.msra.mxu0 %v10796_v17  ;;  %v10811_v7 = vld [vmem:[%s15811_s11 + $0xf0] sm:$0xff]  ;;  %v10810_v30 = vld [vmem:[%s15811_s11 + $0xe8] sm:$0xff] }
 0x5f0   : > { %10839 = vmatpush.msra.mxu1 %v10812_v0  ;;  %v10793_v20 = vld [vmem:[%s15811_s11 + $0x60] sm:$0xff]  ;;  %v10792_v13 = vld [vmem:[%s15811_s11 + $0x58] sm:$0xff]  ;;  %v10791_v14 = vld [vmem:[%s15811_s11 + $0x50] sm:$0xff] }
 0x5f1   : > { %10820 = vmatpush.msra.mxu0 %v10795_v56  ;;  %v10809_v8 = vld [vmem:[%s15811_s11 + $0xe0] sm:$0xff]  ;;  %v10808_v19 = vld [vmem:[%s15811_s11 + $0xd8] sm:$0xff]  ;;  %v10807_v5 = vld [vmem:[%s15811_s11 + $0xd0] sm:$0xff] }
 0x5f2   : > { %10840 = vmatpush.msra.mxu1 %v10811_v7  ;;  %v10790_v54 = vld [vmem:[%s15811_s11 + $0x48] sm:$0xff]  ;;  %v10772_v53 = vld [vmem:[%s5582_s7] sm:$0x3]  ;;  %v10788_v24 = vld [vmem:[%s15811_s11 + $0x38] sm:$0xff] }
 0x5f3   : > { %10821 = vmatpush.msra.mxu0 %v10794_v18  ;;  %v10806_v10 = vld [vmem:[%s15811_s11 + $0xc8] sm:$0xff]  ;;  %v10789_v52 = vld [vmem:[%s15811_s11 + $0x40] sm:$0xff]  ;;  %v10774_v55 = vperm.slane %v10772_v53, 0  ;;  %v10775_v47 = vperm.slane %v10772_v53, 1  ;;  %v10804_v57 = vld [vmem:[%s15811_s11 + $0xb8] sm:$0xff] }
 0x5f4   : > { %10841 = vmatpush.msra.mxu1 %v10810_v30  ;;  %v10805_v35 = vld [vmem:[%s15811_s11 + $0xc0] sm:$0xff]  ;;  %v10771_v6 = vld [vmem:[#allocation2] sm:$0xf]  ;;  %v10787_v50 = vld [vmem:[%s15811_s11 + $0x30] sm:$0xff] }
 0x5f5   : > { %10822 = vmatpush.msra.mxu0 %v10793_v20  ;;  %v10776_v3 = vrot.slane %v10775_v47, 6  ;;  %v10803_v41 = vld [vmem:[%s15811_s11 + $0xb0] sm:$0xff]  ;;  %v10786_v44 = vld [vmem:[%s15811_s11 + $0x28] sm:$0xff]  ;;  %v10785_v58 = vld [vmem:[%s15811_s11 + $0x20] sm:$0xff] }
 0x5f6   : > { %10842 = vmatpush.msra.mxu1 %v10809_v8  ;;  %v10802_v33 = vld [vmem:[%s15811_s11 + $0xa8] sm:$0xff]  ;;  %v10801_v16 = vld [vmem:[%s15811_s11 + $0xa0] sm:$0xff]  ;;  %v10784_v9 = vld [vmem:[%s15811_s11 + $0x18] sm:$0xff] }
 0x5f7   : > { %10823 = vmatpush.msra.mxu0 %v10792_v13  ;;  %v10777_v62 = vsel %vm10762_vm0, %v10774_v55, %v10776_v3  ;;  %v10800_v1 = vld [vmem:[%s15811_s11 + $0x98] sm:$0xff]  ;;  %v10783_v61 = vld [vmem:[%s15811_s11 + $0x10] sm:$0xff]  ;;  %v10782_v15 = vld [vmem:[%s15811_s11 + $0x8] sm:$0xff] }
 0x5f8   : > { %10843 = vmatpush.msra.mxu1 %v10808_v19  ;;  %v10779_v4 = vadd.f32 %v10777_v62, %v10771_v6  ;;  %v10799_v2 = vld [vmem:[%s15811_s11 + $0x90] sm:$0xff]  ;;  %v10798_v48 = vld [vmem:[%s15811_s11 + $0x88] sm:$0xff]  ;;  %v10781_v49 = vld [vmem:[%s15811_s11] sm:$0xff] }
 0x5f9   : > { %10824 = vmatpush.msra.mxu0 %v10791_v14  ;;  %v10797_v43 = vld [vmem:[%s15811_s11 + $0x80] sm:$0xff] }
 0x5fa   : > { %10844 = vmatpush.msra.mxu1 %v10807_v5  ;;  %v10780_v42 = vmax.f32 %v10779_v4, 0.0 }
 0x5fb   : > { %10825 = vmatpush.msra.mxu0 %v10790_v54 }
 0x5fc   : > { %10845 = vmatpush.msra.mxu1 %v10806_v10  ;;  %10814 = vst [vmem:[#allocation1] ss:$4 sm:$0xff] %v10780_v42 }
 0x5fd   : > { %10826 = vmatpush.msra.mxu0 %v10789_v52 }
 0x5fe   : > { %10846 = vmatpush.msra.mxu1 %v10805_v35 }
 0x5ff   : > { %10827 = vmatpush.msra.mxu0 %v10788_v24 }
 0x600   : > { %10847 = vmatpush.msra.mxu1 %v10804_v57 }
 0x601   : > { %10828 = vmatpush.msra.mxu0 %v10787_v50 }
 0x602   : > { %10848 = vmatpush.msra.mxu1 %v10803_v41 }
 0x603   : > { %10829 = vmatpush.msra.mxu0 %v10786_v44  ;;  %v10815_v31 = vld.sshfl [vmem:[#allocation1] sm:$0xff pattern:$0x73625140]  ;;  %v10816_v32 = vld.sshfl [vmem:[#allocation1 + $0x8] sm:$0xff pattern:$0x73625140] }
 0x604   : > { %10849 = vmatpush.msra.mxu1 %v10802_v33 }
 0x605   : > { %10830 = vmatpush.msra.mxu0 %v10785_v58 }
 0x606   : > { %10850 = vmatpush.msra.mxu1 %v10801_v16 }
 0x607   : > { %10831 = vmatpush.msra.mxu0 %v10784_v9 }
 0x608   : > { %10851 = vmatpush.msra.mxu1 %v10800_v1 }
 0x609   : > { %10832 = vmatpush.msra.mxu0 %v10783_v61 }
 0x60a   : > { %10852 = vmatpush.msra.mxu1 %v10799_v2 }
 0x60b   : > { %10833 = vmatpush.msra.mxu0 %v10782_v15 }
 0x60c   : > { %10853 = vmatpush.msra.mxu1 %v10798_v48 }
 0x60d   : > { %10834 = vmatpush.msra.mxu0 %v10781_v49 }
 0x60e   : > { %10854 = vmatpush.msra.mxu1 %v10797_v43  ;;  %10835 = vmatmul.f32.vlgmr.msra.gmra.mxu0 %v10815_v31 }
 0x60f   : > { %10855 = vmatmul.f32.vlgmr.msra.gmra.mxu1 %v10816_v32 }
 0x68b   : > { %v10836_v46 = vpop.f32.mrf.mxu0 }
 0x68c   : > { %v10856_v63 = vpop.f32.mrf.mxu1 }
 0x68d   : > { %v10857_v37 = vadd.f32 %v10856_v63, %v10836_v46 }
 0x68f   : > { %10859 = vst [vmem:[%s15817_s29] sm:$0x3] %v10857_v37 }
 0x690 PF: > { %s14_s21 = sadd.s32 1, %s14386_s21   ;;  %s17471_s15 = smov %s14366_s16 }
 0x691   : > { %p11_p2 = scmp.ge.s32.totalorder %s14_s21, 10   ;;  %s17472_s16 = smov %s14465_s28 }
 0x692   : > { %s17473_s17 = smov %s14378_s19  ;;  %s17474_s18 = smov %s14382_s20 }
 0x693   : > { %s17475_s19 = smov %s17478_s22  ;;  %s17476_s20 = smov %s17482_s23 }
 0x694   :  { %13 = sbr.rel (!%p11_p2) target bundleno = 4 (0x4), region = 147 }

</bundles_post_ra>
